<compile_context>
chip_gen: v7x
topology: tpu7x:2x2x1
jax: 0.10.0
libtpu: 0.0.40
codegen_flags: <defaults>
</compile_context>

<pallas_src>
from functools import partial

import jax
import jax.numpy as jnp
from jax.experimental import pallas as pl
from jax.experimental.pallas import tpu as pltpu

HIDDEN = 512     # hidden_channels
K_HOPS = 3       # TAGConv K
EPS_GN = 1e-5    # GraphNorm eps

_VMEM = pl.BlockSpec(memory_space=pltpu.MemorySpace.VMEM)
_HBM = pl.BlockSpec(memory_space=pl.ANY)


def _round_up(v, m):
    return (v + m - 1) // m * m


# ----------------------------- fused Pallas kernel ---------------------------

def _fused_net_kernel(x_ref, a_ref,
                      w1_ref, b1_ref, g1w_ref, g1b_ref, g1s_ref,
                      w2_hbm_ref, b2_ref, g2w_ref, g2b_ref, g2s_ref,
                      w3_hbm_ref, b3_ref,
                      out_ref,
                      w2_buf, w3_buf, hcat_buf, dma_sem):
    """conv1 -> gelu -> gnorm -> conv2 -> gelu -> gnorm -> conv3, in VMEM.

    x_ref   : [N, F_pad]  f32   node features (zero-padded to lane multiple)
    a_ref   : [N, N]      f32   gcn-normalized dense adjacency (a[i,j]: edge j->i)
    w1_ref  : [(K+1)*F_pad, 512] bf16   flattened hop-stacked weights (VMEM)
    w2_hbm  : [(K+1)*512, 512]   bf16   in HBM, manually prefetched
    w3_hbm  : [(K+1)*512, C_pad] bf16   in HBM, manually prefetched
    bX/gX*  : [1, F_out] f32     biases / GraphNorm weight, bias, mean_scale
    out_ref : [N, C_pad] f32     lane-dense padded logits
    """
    # Kick off the big weight fetches immediately so they overlap with the
    # layer-1 / layer-2 compute instead of serializing before the matmuls.
    cp_w2 = pltpu.make_async_copy(w2_hbm_ref, w2_buf, dma_sem.at[0])
    cp_w2.start()
    cp_w3 = pltpu.make_async_copy(w3_hbm_ref, w3_buf, dma_sem.at[1])
    cp_w3.start()

    a = a_ref[...]                            # f32: keep propagation exact-ish
    f_pad = x_ref.shape[1]
    cat_w1 = (K_HOPS + 1) * f_pad
    cat_wh = (K_HOPS + 1) * HIDDEN

    def stage_hops(h, width):
        # hcat_buf[:, :(K+1)*width] <- [h, a h, a^2 h, a^3 h], cast to bf16.
        # Propagation matmuls stay f32 (MXU, f32 accumulate); only the staged
        # copy fed to the transform matmul is bf16.
        hk = h
        hcat_buf[:, 0:width] = hk.astype(jnp.bfloat16)
        for k in range(1, K_HOPS + 1):        # static unroll (K = 3)
            hk = jnp.dot(a, hk, preferred_element_type=jnp.float32)
            hcat_buf[:, k * width:(k + 1) * width] = hk.astype(jnp.bfloat16)

    def gelu(v):
        # TODO(synk): torch F.gelu defaults to the exact erf form; the tanh
        # approximation (max abs err ~1e-3) is used for guaranteed Mosaic
        # lowering.  Elementwise math kept in f32 (v5e has no bf16 VPU/EUP).
        c = 0.7978845608028654  # sqrt(2/pi)
        return 0.5 * v * (1.0 + jnp.tanh(c * (v + 0.044715 * v * v * v)))

    def graph_norm(v, w, b, ms):
        mean = jnp.mean(v, axis=0, keepdims=True)          # [1, H]
        o = v - mean * ms
        var = jnp.mean(o * o, axis=0, keepdims=True)
        return w * o * jax.lax.rsqrt(var + EPS_GN) + b

    # ---- layer 1: TAGConv -> GELU -> GraphNorm ----
    stage_hops(x_ref[...], f_pad)
    z = jnp.dot(hcat_buf[:, :cat_w1], w1_ref[...],
                preferred_element_type=jnp.float32) + b1_ref[...]
    h = graph_norm(gelu(z), g1w_ref[...], g1b_ref[...], g1s_ref[...])

    # ---- layer 2: TAGConv -> GELU -> GraphNorm ----
    stage_hops(h, HIDDEN)
    cp_w2.wait()                               # DMA hidden behind layers 1-2
    z = jnp.dot(hcat_buf[:, :cat_wh], w2_buf[...],
                preferred_element_type=jnp.float32) + b2_ref[...]
    h = graph_norm(gelu(z), g2w_ref[...], g2b_ref[...], g2s_ref[...])

    # ---- layer 3: TAGConv (lane-dense padded logits) ----
    stage_hops(h, HIDDEN)
    cp_w3.wait()
    out_ref[...] = jnp.dot(hcat_buf[:, :cat_wh], w3_buf[...],
                           preferred_element_type=jnp.float32) + b3_ref[...]


def fused_net(x_pad, a_hat, p):
    n, f_pad = x_pad.shape
    c_pad = p["w3f"].shape[-1]
    cat_w = (K_HOPS + 1) * max(f_pad, HIDDEN)
    return pl.pallas_call(
        _fused_net_kernel,
        out_shape=jax.ShapeDtypeStruct((n, c_pad), jnp.float32),
        in_specs=[_VMEM, _VMEM,                       # x, a_hat
                  _VMEM, _VMEM, _VMEM, _VMEM, _VMEM,  # w1f, b1, g1w, g1b, g1s
                  _HBM, _VMEM, _VMEM, _VMEM, _VMEM,   # w2f (HBM!), b2, g2*
                  _HBM, _VMEM],                       # w3f (HBM!), b3
        out_specs=_VMEM,
        scratch_shapes=[
            pltpu.VMEM(p["w2f"].shape, jnp.bfloat16),   # w2 landing buffer
            pltpu.VMEM(p["w3f"].shape, jnp.bfloat16),   # w3 landing buffer
            pltpu.VMEM((n, cat_w), jnp.bfloat16),       # staged hop concat
            pltpu.SemaphoreType.DMA((2,)),
        ],
        # ~4 MiB footprint at these shapes (bf16 weights + bf16 staging).
        # Grid-less single call: no dimension_semantics.  For much larger N
        # add a node-row grid per layer (v7x 2nd TC) and row-block a_hat.
        compiler_params=pltpu.CompilerParams(vmem_limit_bytes=32 * 1024 * 1024),
    )(x_pad, a_hat,
      p["w1f"], p["b1"], p["g1w"], p["g1b"], p["g1s"],
      p["w2f"], p["b2"], p["g2w"], p["g2b"], p["g2s"],
      p["w3f"], p["b3p"])


# ------------------------------ plain-JAX glue --------------------------------

def build_norm_adj(edge_index, n):
    """gcn_norm with unit edge weights, add_self_loops=False, densified.

    a_hat[i, j] = deg_i^{-1/2} * deg_j^{-1/2} if there is an edge j -> i
    (deg = in-degree over targets).  Kept f32.  NOTE: the dense O(N^2) scatter
    is fine at these shapes; for large graphs build row-blocks inside the kernel
    from scalar-prefetched edge lists instead (and consider bf16 a_hat on v7x,
    whose VMEM is 64 MiB)."""
    src, dst = edge_index[0], edge_index[1]
    ones = jnp.ones(src.shape, jnp.float32)
    deg = jnp.zeros((n,), jnp.float32).at[dst].add(ones)
    dinv = jnp.where(deg > 0, jax.lax.rsqrt(deg), 0.0)
    a = jnp.zeros((n, n), jnp.float32).at[dst, src].add(ones)
    return dinv[:, None] * a * dinv[None, :]


def glorot(key, shape):
    fan_in, fan_out = shape[-2], shape[-1]
    limit = (6.0 / (fan_in + fan_out)) ** 0.5
    return jax.random.uniform(key, shape, jnp.float32, -limit, limit)


def init_params(key, in_dim, hidden, n_class):
    k1, k2, k3 = jax.random.split(key, 3)
    ones_h = jnp.ones((1, hidden), jnp.float32)
    zeros_h = jnp.zeros((1, hidden), jnp.float32)
    return dict(
        w1=glorot(k1, (K_HOPS + 1, in_dim, hidden)),
        b1=zeros_h,
        g1w=ones_h, g1b=zeros_h, g1s=ones_h,          # GraphNorm defaults
        w2=glorot(k2, (K_HOPS + 1, hidden, hidden)),
        b2=zeros_h,
        g2w=ones_h, g2b=zeros_h, g2s=ones_h,
        w3=glorot(k3, (K_HOPS + 1, hidden, n_class)),
        b3=jnp.zeros((1, n_class), jnp.float32),
    )


def pack_params(params):
    """Kernel-ready weights: flatten the hop stacks to [(K+1)*F_in, F_out],
    zero-pad F_in / n_class lane dims to multiples of 128 (lane-dense layout,
    exactly-equivalent math), and cast the matmul weights to bf16."""
    k1 = K_HOPS + 1
    w1 = params["w1"]
    f_in = w1.shape[1]
    f_pad = _round_up(f_in, 128)
    w1p = jnp.zeros((k1, f_pad, HIDDEN), jnp.float32).at[:, :f_in, :].set(w1)
    w3 = params["w3"]
    n_class = w3.shape[-1]
    c_pad = _round_up(n_class, 128)
    w3p = jnp.zeros((k1, HIDDEN, c_pad), jnp.float32).at[:, :, :n_class].set(w3)
    b3p = jnp.zeros((1, c_pad), jnp.float32).at[:, :n_class].set(params["b3"])

    out = dict(params)
    out["w1f"] = w1p.reshape(k1 * f_pad, HIDDEN).astype(jnp.bfloat16)
    out["w2f"] = params["w2"].reshape(k1 * HIDDEN, HIDDEN).astype(jnp.bfloat16)
    out["w3f"] = w3p.reshape(k1 * HIDDEN, c_pad).astype(jnp.bfloat16)
    out["b3p"] = b3p
    return out


@partial(jax.jit, static_argnames=("n_class",))
def model_forward(x, edge_index, edge_weight, packed, *, n_class):
    del edge_weight  # "nw": data.weight read in forward() but never passed to the convs
    n, f_in = x.shape
    f_pad = packed["w1f"].shape[0] // (K_HOPS + 1)
    x_pad = jnp.zeros((n, f_pad), jnp.float32).at[:, :f_in].set(x.astype(jnp.float32))
    a_hat = build_norm_adj(edge_index, n)
    out = fused_net(x_pad, a_hat, packed)
    return out[:, :n_class]


def reference_forward(x, edge_index, params):
    """Pure-JAX f32 reference (same formulas, no bf16 / padding) for validation."""
    a = build_norm_adj(edge_index, x.shape[0])

    def tag(h, w, b):
        out = h @ w[0]
        hk = h
        for k in range(1, K_HOPS + 1):
            hk = a @ hk
            out = out + hk @ w[k]
        return out + b

    def gelu(v):
        c = 0.7978845608028654
        return 0.5 * v * (1.0 + jnp.tanh(c * (v + 0.044715 * v * v * v)))

    def gnorm(v, w, b, ms):
        mean = jnp.mean(v, axis=0, keepdims=True)
        o = v - mean * ms
        var = jnp.mean(o * o, axis=0, keepdims=True)
        return w * o * jax.lax.rsqrt(var + EPS_GN) + b

    h = gnorm(gelu(tag(x, params["w1"], params["b1"])),
              params["g1w"], params["g1b"], params["g1s"])
    h = gnorm(gelu(tag(h, params["w2"], params["b2"])),
              params["g2w"], params["g2b"], params["g2s"])
    return tag(h, params["w3"], params["b3"])


# ----------------------------------- main --------------------------------------

if __name__ == "__main__":
    N, F_IN, N_CLASS = 64, 16, 8

    key = jax.random.PRNGKey(0)
    kx, kw, kp = jax.random.split(key, 3)

    x = jax.random.normal(kx, (N, F_IN), jnp.float32)

    # deterministic graph: bidirectional ring edges + bidirectional skip-5 chords
    idx = jnp.arange(N, dtype=jnp.int32)
    src = jnp.concatenate([idx, (idx + 1) % N, idx, (idx + 5) % N])
    dst = jnp.concatenate([(idx + 1) % N, idx, (idx + 5) % N, idx])
    edge_index = jnp.stack([src, dst])                                   # [2, 4N]
    edge_weight = jax.random.uniform(kw, (src.shape[0],), jnp.float32)   # present, unused ("nw")

    params = init_params(kp, F_IN, HIDDEN, N_CLASS)
    packed = pack_params(params)

    out = model_forward(x, edge_index, edge_weight, packed, n_class=N_CLASS)
    jax.block_until_ready(out)
    assert out.shape == (N, N_CLASS) and out.dtype == jnp.float32
    assert bool(jnp.all(jnp.isfinite(out)))

    # Loose check vs. the f32 reference (bf16 transform operands, f32 accumulate,
    # f32 propagation/norm -> expected relative error ~1e-2).
    ref = reference_forward(x, edge_index, params)
    rel = float(jnp.max(jnp.abs(out - ref)) / (jnp.max(jnp.abs(ref)) + 1e-6))
    assert rel < 1e-1, f"relative error vs f32 reference too large: {rel}"

    print("KERNEL_OK")
</pallas_src>

<mosaic_0001>
module attributes {stable_mosaic.version = 11 : i64} {
  func.func private @main(%arg0: i32) attributes {dimension_semantics = [#tpu.dimension_semantics<core_parallel>], iteration_bounds = array<i64: 2>, tpu.core_type = #tpu.core_type<sc_scalar_subcore>, window_params = []} {
    return
  }
}

module attributes {stable_mosaic.version = 11 : i64} {
  func.func private @main(%arg0: i32) attributes {dimension_semantics = [#tpu.dimension_semantics<core_parallel>], iteration_bounds = array<i64: 2>, tpu.core_type = #tpu.core_type<sc_scalar_subcore>, window_params = []} {
    return
  }
}

module attributes {stable_mosaic.version = 11 : i64} {
  func.func @_fused_net_kernel(%arg0: memref<64x128xf32, #tpu.memory_space<vmem>>, %arg1: memref<64x64xf32, #tpu.memory_space<vmem>>, %arg2: memref<512x512xbf16, #tpu.memory_space<vmem>>, %arg3: memref<1x512xf32, #tpu.memory_space<vmem>>, %arg4: memref<1x512xf32, #tpu.memory_space<vmem>>, %arg5: memref<1x512xf32, #tpu.memory_space<vmem>>, %arg6: memref<1x512xf32, #tpu.memory_space<vmem>>, %arg7: memref<2048x512xbf16, #tpu.memory_space<any>>, %arg8: memref<1x512xf32, #tpu.memory_space<vmem>>, %arg9: memref<1x512xf32, #tpu.memory_space<vmem>>, %arg10: memref<1x512xf32, #tpu.memory_space<vmem>>, %arg11: memref<1x512xf32, #tpu.memory_space<vmem>>, %arg12: memref<2048x128xbf16, #tpu.memory_space<any>>, %arg13: memref<1x128xf32, #tpu.memory_space<vmem>>, %arg14: memref<64x128xf32, #tpu.memory_space<vmem>>, %arg15: memref<2048x512xbf16, #tpu.memory_space<vmem>>, %arg16: memref<2048x128xbf16, #tpu.memory_space<vmem>>, %arg17: memref<64x2048xbf16, #tpu.memory_space<vmem>>, %arg18: memref<2x!tpu.dma_semaphore, #tpu.memory_space<semaphore_mem>>) attributes {dimension_semantics = [], scalar_prefetch = 0 : i64, scratch_operands = 4 : i64, tpu.core_type = #tpu.core_type<tc>} {
    %c0_i32 = arith.constant 0 : i32
    %0 = tpu.memref_slice %arg18[%c0_i32] : memref<2x!tpu.dma_semaphore, #tpu.memory_space<semaphore_mem>> -> memref<1x!tpu.dma_semaphore, #tpu.memory_space<semaphore_mem>>
    %1 = tpu.memref_squeeze %0 : memref<1x!tpu.dma_semaphore, #tpu.memory_space<semaphore_mem>> -> memref<!tpu.dma_semaphore, #tpu.memory_space<semaphore_mem>>
    tpu.enqueue_dma source(%arg7 : memref<2048x512xbf16, #tpu.memory_space<any>>) target(%arg15 : memref<2048x512xbf16, #tpu.memory_space<vmem>>) target_semaphore(%1 : memref<!tpu.dma_semaphore, #tpu.memory_space<semaphore_mem>>)
    %c1_i32 = arith.constant 1 : i32
    %2 = tpu.memref_slice %arg18[%c1_i32] : memref<2x!tpu.dma_semaphore, #tpu.memory_space<semaphore_mem>> -> memref<1x!tpu.dma_semaphore, #tpu.memory_space<semaphore_mem>>
    %3 = tpu.memref_squeeze %2 : memref<1x!tpu.dma_semaphore, #tpu.memory_space<semaphore_mem>> -> memref<!tpu.dma_semaphore, #tpu.memory_space<semaphore_mem>>
    tpu.enqueue_dma source(%arg12 : memref<2048x128xbf16, #tpu.memory_space<any>>) target(%arg16 : memref<2048x128xbf16, #tpu.memory_space<vmem>>) target_semaphore(%3 : memref<!tpu.dma_semaphore, #tpu.memory_space<semaphore_mem>>)
    %c0 = arith.constant 0 : index
    %c0_0 = arith.constant 0 : index
    %4 = vector.load %arg1[%c0, %c0_0] : memref<64x64xf32, #tpu.memory_space<vmem>>, vector<64x64xf32>
    %c0_1 = arith.constant 0 : index
    %c0_2 = arith.constant 0 : index
    %5 = vector.load %arg0[%c0_1, %c0_2] : memref<64x128xf32, #tpu.memory_space<vmem>>, vector<64x128xf32>
    %6 = arith.truncf %5 : vector<64x128xf32> to vector<64x128xbf16>
    %c0_3 = arith.constant 0 : index
    %c0_4 = arith.constant 0 : index
    %7 = vector.load %arg17[%c0_3, %c0_4] : memref<64x2048xbf16, #tpu.memory_space<vmem>>, vector<64x128xbf16>
    tpu.vector_store %arg17[%c0_3, %c0_4], %6 {strides = array<i32>} : memref<64x2048xbf16, #tpu.memory_space<vmem>>, vector<64x128xbf16>,
    %cst = arith.constant dense<0.000000e+00> : vector<64x128xf32>
    %8 = tpu.matmul %4, %5, %cst {dimension_numbers = #tpu.dot_dimension_numbers<[1], [0], [0], [1], [0, 0, 1, 1], [], []>} : vector<64x64xf32>, vector<64x128xf32>, vector<64x128xf32> -> vector<64x128xf32>
    %9 = arith.truncf %8 : vector<64x128xf32> to vector<64x128xbf16>
    %c0_5 = arith.constant 0 : index
    %c128 = arith.constant 128 : index
    %10 = vector.load %arg17[%c0_5, %c128] : memref<64x2048xbf16, #tpu.memory_space<vmem>>, vector<64x128xbf16>
    tpu.vector_store %arg17[%c0_5, %c128], %9 {strides = array<i32>} : memref<64x2048xbf16, #tpu.memory_space<vmem>>, vector<64x128xbf16>,
    %cst_6 = arith.constant dense<0.000000e+00> : vector<64x128xf32>
    %11 = tpu.matmul %4, %8, %cst_6 {dimension_numbers = #tpu.dot_dimension_numbers<[1], [0], [0], [1], [0, 0, 1, 1], [], []>} : vector<64x64xf32>, vector<64x128xf32>, vector<64x128xf32> -> vector<64x128xf32>
    %12 = arith.truncf %11 : vector<64x128xf32> to vector<64x128xbf16>
    %c0_7 = arith.constant 0 : index
    %c256 = arith.constant 256 : index
    %13 = vector.load %arg17[%c0_7, %c256] : memref<64x2048xbf16, #tpu.memory_space<vmem>>, vector<64x128xbf16>
    tpu.vector_store %arg17[%c0_7, %c256], %12 {strides = array<i32>} : memref<64x2048xbf16, #tpu.memory_space<vmem>>, vector<64x128xbf16>,
    %cst_8 = arith.constant dense<0.000000e+00> : vector<64x128xf32>
    %14 = tpu.matmul %4, %11, %cst_8 {dimension_numbers = #tpu.dot_dimension_numbers<[1], [0], [0], [1], [0, 0, 1, 1], [], []>} : vector<64x64xf32>, vector<64x128xf32>, vector<64x128xf32> -> vector<64x128xf32>
    %15 = arith.truncf %14 : vector<64x128xf32> to vector<64x128xbf16>
    %c0_9 = arith.constant 0 : index
    %c384 = arith.constant 384 : index
    %16 = vector.load %arg17[%c0_9, %c384] : memref<64x2048xbf16, #tpu.memory_space<vmem>>, vector<64x128xbf16>
    tpu.vector_store %arg17[%c0_9, %c384], %15 {strides = array<i32>} : memref<64x2048xbf16, #tpu.memory_space<vmem>>, vector<64x128xbf16>,
    %c0_10 = arith.constant 0 : index
    %c0_11 = arith.constant 0 : index
    %17 = vector.load %arg17[%c0_10, %c0_11] : memref<64x2048xbf16, #tpu.memory_space<vmem>>, vector<64x512xbf16>
    %c0_12 = arith.constant 0 : index
    %c0_13 = arith.constant 0 : index
    %18 = vector.load %arg2[%c0_12, %c0_13] : memref<512x512xbf16, #tpu.memory_space<vmem>>, vector<512x512xbf16>
    %cst_14 = arith.constant dense<0.000000e+00> : vector<64x512xf32>
    %19 = tpu.matmul %17, %18, %cst_14 {dimension_numbers = #tpu.dot_dimension_numbers<[1], [0], [0], [1], [0, 0, 1, 1], [], []>} : vector<64x512xbf16>, vector<512x512xbf16>, vector<64x512xf32> -> vector<64x512xf32>
    %c0_15 = arith.constant 0 : index
    %c0_16 = arith.constant 0 : index
    %20 = vector.load %arg3[%c0_15, %c0_16] : memref<1x512xf32, #tpu.memory_space<vmem>>, vector<1x512xf32>
    %21 = vector.broadcast %20 : vector<1x512xf32> to vector<64x512xf32>
    %22 = arith.addf %19, %21 : vector<64x512xf32>
    %cst_17 = arith.constant 5.000000e-01 : f32
    %23 = vector.broadcast %cst_17 : f32 to vector<64x512xf32>
    %24 = arith.mulf %23, %22 : vector<64x512xf32>
    %cst_18 = arith.constant 4.471500e-02 : f32
    %25 = vector.broadcast %cst_18 : f32 to vector<64x512xf32>
    %26 = arith.mulf %25, %22 : vector<64x512xf32>
    %27 = arith.mulf %26, %22 : vector<64x512xf32>
    %28 = arith.mulf %27, %22 : vector<64x512xf32>
    %29 = arith.addf %22, %28 : vector<64x512xf32>
    %cst_19 = arith.constant 0.797884583 : f32
    %30 = vector.broadcast %cst_19 : f32 to vector<64x512xf32>
    %31 = arith.mulf %30, %29 : vector<64x512xf32>
    %32 = math.tanh %31 : vector<64x512xf32>
    %cst_20 = arith.constant 1.000000e+00 : f32
    %33 = vector.broadcast %cst_20 : f32 to vector<64x512xf32>
    %34 = arith.addf %33, %32 : vector<64x512xf32>
    %35 = arith.mulf %24, %34 : vector<64x512xf32>
    %c0_21 = arith.constant 0 : index
    %c0_22 = arith.constant 0 : index
    %36 = vector.load %arg4[%c0_21, %c0_22] : memref<1x512xf32, #tpu.memory_space<vmem>>, vector<1x512xf32>
    %c0_23 = arith.constant 0 : index
    %c0_24 = arith.constant 0 : index
    %37 = vector.load %arg5[%c0_23, %c0_24] : memref<1x512xf32, #tpu.memory_space<vmem>>, vector<1x512xf32>
    %c0_25 = arith.constant 0 : index
    %c0_26 = arith.constant 0 : index
    %38 = vector.load %arg6[%c0_25, %c0_26] : memref<1x512xf32, #tpu.memory_space<vmem>>, vector<1x512xf32>
    %cst_27 = arith.constant dense<0.000000e+00> : vector<512xf32>
    %39 = vector.multi_reduction <add>, %35, %cst_27 [0] : vector<64x512xf32> to vector<512xf32>
    %40 = vector.shape_cast %39 : vector<512xf32> to vector<1x512xf32>
    %cst_28 = arith.constant 6.400000e+01 : f32
    %41 = vector.broadcast %cst_28 : f32 to vector<1x512xf32>
    %42 = arith.divf %40, %41 : vector<1x512xf32>
    %43 = arith.mulf %42, %38 : vector<1x512xf32>
    %44 = vector.broadcast %43 : vector<1x512xf32> to vector<64x512xf32>
    %45 = arith.subf %35, %44 : vector<64x512xf32>
    %46 = arith.mulf %45, %45 : vector<64x512xf32>
    %cst_29 = arith.constant dense<0.000000e+00> : vector<512xf32>
    %47 = vector.multi_reduction <add>, %46, %cst_29 [0] : vector<64x512xf32> to vector<512xf32>
    %48 = vector.shape_cast %47 : vector<512xf32> to vector<1x512xf32>
    %cst_30 = arith.constant 6.400000e+01 : f32
    %49 = vector.broadcast %cst_30 : f32 to vector<1x512xf32>
    %50 = arith.divf %48, %49 : vector<1x512xf32>
    %51 = vector.broadcast %36 : vector<1x512xf32> to vector<64x512xf32>
    %52 = arith.mulf %51, %45 : vector<64x512xf32>
    %cst_31 = arith.constant 9.99999974E-6 : f32
    %53 = vector.broadcast %cst_31 : f32 to vector<1x512xf32>
    %54 = arith.addf %50, %53 : vector<1x512xf32>
    %55 = math.rsqrt %54 : vector<1x512xf32>
    %56 = vector.broadcast %55 : vector<1x512xf32> to vector<64x512xf32>
    %57 = arith.mulf %52, %56 : vector<64x512xf32>
    %58 = vector.broadcast %37 : vector<1x512xf32> to vector<64x512xf32>
    %59 = arith.addf %57, %58 : vector<64x512xf32>
    %60 = arith.truncf %59 : vector<64x512xf32> to vector<64x512xbf16>
    %c0_32 = arith.constant 0 : index
    %c0_33 = arith.constant 0 : index
    %61 = vector.load %arg17[%c0_32, %c0_33] : memref<64x2048xbf16, #tpu.memory_space<vmem>>, vector<64x512xbf16>
    tpu.vector_store %arg17[%c0_32, %c0_33], %60 {strides = array<i32>} : memref<64x2048xbf16, #tpu.memory_space<vmem>>, vector<64x512xbf16>,
    %cst_34 = arith.constant dense<0.000000e+00> : vector<64x512xf32>
    %62 = tpu.matmul %4, %59, %cst_34 {dimension_numbers = #tpu.dot_dimension_numbers<[1], [0], [0], [1], [0, 0, 1, 1], [], []>} : vector<64x64xf32>, vector<64x512xf32>, vector<64x512xf32> -> vector<64x512xf32>
    %63 = arith.truncf %62 : vector<64x512xf32> to vector<64x512xbf16>
    %c0_35 = arith.constant 0 : index
    %c512 = arith.constant 512 : index
    %64 = vector.load %arg17[%c0_35, %c512] : memref<64x2048xbf16, #tpu.memory_space<vmem>>, vector<64x512xbf16>
    tpu.vector_store %arg17[%c0_35, %c512], %63 {strides = array<i32>} : memref<64x2048xbf16, #tpu.memory_space<vmem>>, vector<64x512xbf16>,
    %cst_36 = arith.constant dense<0.000000e+00> : vector<64x512xf32>
    %65 = tpu.matmul %4, %62, %cst_36 {dimension_numbers = #tpu.dot_dimension_numbers<[1], [0], [0], [1], [0, 0, 1, 1], [], []>} : vector<64x64xf32>, vector<64x512xf32>, vector<64x512xf32> -> vector<64x512xf32>
    %66 = arith.truncf %65 : vector<64x512xf32> to vector<64x512xbf16>
    %c0_37 = arith.constant 0 : index
    %c1024 = arith.constant 1024 : index
    %67 = vector.load %arg17[%c0_37, %c1024] : memref<64x2048xbf16, #tpu.memory_space<vmem>>, vector<64x512xbf16>
    tpu.vector_store %arg17[%c0_37, %c1024], %66 {strides = array<i32>} : memref<64x2048xbf16, #tpu.memory_space<vmem>>, vector<64x512xbf16>,
    %cst_38 = arith.constant dense<0.000000e+00> : vector<64x512xf32>
    %68 = tpu.matmul %4, %65, %cst_38 {dimension_numbers = #tpu.dot_dimension_numbers<[1], [0], [0], [1], [0, 0, 1, 1], [], []>} : vector<64x64xf32>, vector<64x512xf32>, vector<64x512xf32> -> vector<64x512xf32>
    %69 = arith.truncf %68 : vector<64x512xf32> to vector<64x512xbf16>
    %c0_39 = arith.constant 0 : index
    %c1536 = arith.constant 1536 : index
    %70 = vector.load %arg17[%c0_39, %c1536] : memref<64x2048xbf16, #tpu.memory_space<vmem>>, vector<64x512xbf16>
    tpu.vector_store %arg17[%c0_39, %c1536], %69 {strides = array<i32>} : memref<64x2048xbf16, #tpu.memory_space<vmem>>, vector<64x512xbf16>,
    %c0_i32_40 = arith.constant 0 : i32
    %71 = tpu.memref_slice %arg18[%c0_i32_40] : memref<2x!tpu.dma_semaphore, #tpu.memory_space<semaphore_mem>> -> memref<1x!tpu.dma_semaphore, #tpu.memory_space<semaphore_mem>>
    %72 = tpu.memref_squeeze %71 : memref<1x!tpu.dma_semaphore, #tpu.memory_space<semaphore_mem>> -> memref<!tpu.dma_semaphore, #tpu.memory_space<semaphore_mem>>
    tpu.wait_dma2 semaphore(%72 : memref<!tpu.dma_semaphore, #tpu.memory_space<semaphore_mem>>) src(%arg7 : memref<2048x512xbf16, #tpu.memory_space<any>>) dst(%arg15 : memref<2048x512xbf16, #tpu.memory_space<vmem>>)
    %c0_41 = arith.constant 0 : index
    %c0_42 = arith.constant 0 : index
    %73 = vector.load %arg17[%c0_41, %c0_42] : memref<64x2048xbf16, #tpu.memory_space<vmem>>, vector<64x2048xbf16>
    %c0_43 = arith.constant 0 : index
    %c0_44 = arith.constant 0 : index
    %74 = vector.load %arg15[%c0_43, %c0_44] : memref<2048x512xbf16, #tpu.memory_space<vmem>>, vector<2048x512xbf16>
    %cst_45 = arith.constant dense<0.000000e+00> : vector<64x512xf32>
    %75 = tpu.matmul %73, %74, %cst_45 {dimension_numbers = #tpu.dot_dimension_numbers<[1], [0], [0], [1], [0, 0, 1, 1], [], []>} : vector<64x2048xbf16>, vector<2048x512xbf16>, vector<64x512xf32> -> vector<64x512xf32>
    %c0_46 = arith.constant 0 : index
    %c0_47 = arith.constant 0 : index
    %76 = vector.load %arg8[%c0_46, %c0_47] : memref<1x512xf32, #tpu.memory_space<vmem>>, vector<1x512xf32>
    %77 = vector.broadcast %76 : vector<1x512xf32> to vector<64x512xf32>
    %78 = arith.addf %75, %77 : vector<64x512xf32>
    %cst_48 = arith.constant 5.000000e-01 : f32
    %79 = vector.broadcast %cst_48 : f32 to vector<64x512xf32>
    %80 = arith.mulf %79, %78 : vector<64x512xf32>
    %cst_49 = arith.constant 4.471500e-02 : f32
    %81 = vector.broadcast %cst_49 : f32 to vector<64x512xf32>
    %82 = arith.mulf %81, %78 : vector<64x512xf32>
    %83 = arith.mulf %82, %78 : vector<64x512xf32>
    %84 = arith.mulf %83, %78 : vector<64x512xf32>
    %85 = arith.addf %78, %84 : vector<64x512xf32>
    %cst_50 = arith.constant 0.797884583 : f32
    %86 = vector.broadcast %cst_50 : f32 to vector<64x512xf32>
    %87 = arith.mulf %86, %85 : vector<64x512xf32>
    %88 = math.tanh %87 : vector<64x512xf32>
    %cst_51 = arith.constant 1.000000e+00 : f32
    %89 = vector.broadcast %cst_51 : f32 to vector<64x512xf32>
    %90 = arith.addf %89, %88 : vector<64x512xf32>
    %91 = arith.mulf %80, %90 : vector<64x512xf32>
    %c0_52 = arith.constant 0 : index
    %c0_53 = arith.constant 0 : index
    %92 = vector.load %arg9[%c0_52, %c0_53] : memref<1x512xf32, #tpu.memory_space<vmem>>, vector<1x512xf32>
    %c0_54 = arith.constant 0 : index
    %c0_55 = arith.constant 0 : index
    %93 = vector.load %arg10[%c0_54, %c0_55] : memref<1x512xf32, #tpu.memory_space<vmem>>, vector<1x512xf32>
    %c0_56 = arith.constant 0 : index
    %c0_57 = arith.constant 0 : index
    %94 = vector.load %arg11[%c0_56, %c0_57] : memref<1x512xf32, #tpu.memory_space<vmem>>, vector<1x512xf32>
    %cst_58 = arith.constant dense<0.000000e+00> : vector<512xf32>
    %95 = vector.multi_reduction <add>, %91, %cst_58 [0] : vector<64x512xf32> to vector<512xf32>
    %96 = vector.shape_cast %95 : vector<512xf32> to vector<1x512xf32>
    %cst_59 = arith.constant 6.400000e+01 : f32
    %97 = vector.broadcast %cst_59 : f32 to vector<1x512xf32>
    %98 = arith.divf %96, %97 : vector<1x512xf32>
    %99 = arith.mulf %98, %94 : vector<1x512xf32>
    %100 = vector.broadcast %99 : vector<1x512xf32> to vector<64x512xf32>
    %101 = arith.subf %91, %100 : vector<64x512xf32>
    %102 = arith.mulf %101, %101 : vector<64x512xf32>
    %cst_60 = arith.constant dense<0.000000e+00> : vector<512xf32>
    %103 = vector.multi_reduction <add>, %102, %cst_60 [0] : vector<64x512xf32> to vector<512xf32>
    %104 = vector.shape_cast %103 : vector<512xf32> to vector<1x512xf32>
    %cst_61 = arith.constant 6.400000e+01 : f32
    %105 = vector.broadcast %cst_61 : f32 to vector<1x512xf32>
    %106 = arith.divf %104, %105 : vector<1x512xf32>
    %107 = vector.broadcast %92 : vector<1x512xf32> to vector<64x512xf32>
    %108 = arith.mulf %107, %101 : vector<64x512xf32>
    %cst_62 = arith.constant 9.99999974E-6 : f32
    %109 = vector.broadcast %cst_62 : f32 to vector<1x512xf32>
    %110 = arith.addf %106, %109 : vector<1x512xf32>
    %111 = math.rsqrt %110 : vector<1x512xf32>
    %112 = vector.broadcast %111 : vector<1x512xf32> to vector<64x512xf32>
    %113 = arith.mulf %108, %112 : vector<64x512xf32>
    %114 = vector.broadcast %93 : vector<1x512xf32> to vector<64x512xf32>
    %115 = arith.addf %113, %114 : vector<64x512xf32>
    %116 = arith.truncf %115 : vector<64x512xf32> to vector<64x512xbf16>
    %c0_63 = arith.constant 0 : index
    %c0_64 = arith.constant 0 : index
    %117 = vector.load %arg17[%c0_63, %c0_64] : memref<64x2048xbf16, #tpu.memory_space<vmem>>, vector<64x512xbf16>
    tpu.vector_store %arg17[%c0_63, %c0_64], %116 {strides = array<i32>} : memref<64x2048xbf16, #tpu.memory_space<vmem>>, vector<64x512xbf16>,
    %cst_65 = arith.constant dense<0.000000e+00> : vector<64x512xf32>
    %118 = tpu.matmul %4, %115, %cst_65 {dimension_numbers = #tpu.dot_dimension_numbers<[1], [0], [0], [1], [0, 0, 1, 1], [], []>} : vector<64x64xf32>, vector<64x512xf32>, vector<64x512xf32> -> vector<64x512xf32>
    %119 = arith.truncf %118 : vector<64x512xf32> to vector<64x512xbf16>
    %c0_66 = arith.constant 0 : index
    %c512_67 = arith.constant 512 : index
    %120 = vector.load %arg17[%c0_66, %c512_67] : memref<64x2048xbf16, #tpu.memory_space<vmem>>, vector<64x512xbf16>
    tpu.vector_store %arg17[%c0_66, %c512_67], %119 {strides = array<i32>} : memref<64x2048xbf16, #tpu.memory_space<vmem>>, vector<64x512xbf16>,
    %cst_68 = arith.constant dense<0.000000e+00> : vector<64x512xf32>
    %121 = tpu.matmul %4, %118, %cst_68 {dimension_numbers = #tpu.dot_dimension_numbers<[1], [0], [0], [1], [0, 0, 1, 1], [], []>} : vector<64x64xf32>, vector<64x512xf32>, vector<64x512xf32> -> vector<64x512xf32>
    %122 = arith.truncf %121 : vector<64x512xf32> to vector<64x512xbf16>
    %c0_69 = arith.constant 0 : index
    %c1024_70 = arith.constant 1024 : index
    %123 = vector.load %arg17[%c0_69, %c1024_70] : memref<64x2048xbf16, #tpu.memory_space<vmem>>, vector<64x512xbf16>
    tpu.vector_store %arg17[%c0_69, %c1024_70], %122 {strides = array<i32>} : memref<64x2048xbf16, #tpu.memory_space<vmem>>, vector<64x512xbf16>,
    %cst_71 = arith.constant dense<0.000000e+00> : vector<64x512xf32>
    %124 = tpu.matmul %4, %121, %cst_71 {dimension_numbers = #tpu.dot_dimension_numbers<[1], [0], [0], [1], [0, 0, 1, 1], [], []>} : vector<64x64xf32>, vector<64x512xf32>, vector<64x512xf32> -> vector<64x512xf32>
    %125 = arith.truncf %124 : vector<64x512xf32> to vector<64x512xbf16>
    %c0_72 = arith.constant 0 : index
    %c1536_73 = arith.constant 1536 : index
    %126 = vector.load %arg17[%c0_72, %c1536_73] : memref<64x2048xbf16, #tpu.memory_space<vmem>>, vector<64x512xbf16>
    tpu.vector_store %arg17[%c0_72, %c1536_73], %125 {strides = array<i32>} : memref<64x2048xbf16, #tpu.memory_space<vmem>>, vector<64x512xbf16>,
    %c1_i32_74 = arith.constant 1 : i32
    %127 = tpu.memref_slice %arg18[%c1_i32_74] : memref<2x!tpu.dma_semaphore, #tpu.memory_space<semaphore_mem>> -> memref<1x!tpu.dma_semaphore, #tpu.memory_space<semaphore_mem>>
    %128 = tpu.memref_squeeze %127 : memref<1x!tpu.dma_semaphore, #tpu.memory_space<semaphore_mem>> -> memref<!tpu.dma_semaphore, #tpu.memory_space<semaphore_mem>>
    tpu.wait_dma2 semaphore(%128 : memref<!tpu.dma_semaphore, #tpu.memory_space<semaphore_mem>>) src(%arg12 : memref<2048x128xbf16, #tpu.memory_space<any>>) dst(%arg16 : memref<2048x128xbf16, #tpu.memory_space<vmem>>)
    %c0_75 = arith.constant 0 : index
    %c0_76 = arith.constant 0 : index
    %129 = vector.load %arg17[%c0_75, %c0_76] : memref<64x2048xbf16, #tpu.memory_space<vmem>>, vector<64x2048xbf16>
    %c0_77 = arith.constant 0 : index
    %c0_78 = arith.constant 0 : index
    %130 = vector.load %arg16[%c0_77, %c0_78] : memref<2048x128xbf16, #tpu.memory_space<vmem>>, vector<2048x128xbf16>
    %cst_79 = arith.constant dense<0.000000e+00> : vector<64x128xf32>
    %131 = tpu.matmul %129, %130, %cst_79 {dimension_numbers = #tpu.dot_dimension_numbers<[1], [0], [0], [1], [0, 0, 1, 1], [], []>} : vector<64x2048xbf16>, vector<2048x128xbf16>, vector<64x128xf32> -> vector<64x128xf32>
    %c0_80 = arith.constant 0 : index
    %c0_81 = arith.constant 0 : index
    %132 = vector.load %arg13[%c0_80, %c0_81] : memref<1x128xf32, #tpu.memory_space<vmem>>, vector<1x128xf32>
    %133 = vector.broadcast %132 : vector<1x128xf32> to vector<64x128xf32>
    %134 = arith.addf %131, %133 : vector<64x128xf32>
    %c0_82 = arith.constant 0 : index
    %c0_83 = arith.constant 0 : index
    %135 = vector.load %arg14[%c0_82, %c0_83] : memref<64x128xf32, #tpu.memory_space<vmem>>, vector<64x128xf32>
    tpu.vector_store %arg14[%c0_82, %c0_83], %134 {strides = array<i32>} : memref<64x128xf32, #tpu.memory_space<vmem>>, vector<64x128xf32>,
    return
  }
}

</mosaic_0001>

<bundles_post_ra>
// kernel: model_forward.1
= control target key start
LH: loop header
LB: loop body
LE: loop exit
PB: predicated region body
PF: predicated region fallthrough
CT: control target
= control target key end

     0   :  { %s13362_s29 = smov [#allocation2]   ;;  %s13369_s17 = smov 0   ;;  %s18225_s0 = inlined_call_operand.vmem [shape: f32[64,128], index: 0, kind: input, shape index: {}]   ;;  %s18226_s1 = inlined_call_operand.vmem [shape: f32[64,64], index: 1, kind: input, shape index: {}]   ;;  %s18227_s2 = inlined_call_operand.vmem [shape: bf16[512,512], index: 2, kind: input, shape index: {}]   ;;  %s18228_s3 = inlined_call_operand.vmem [shape: f32[1,512], index: 3, kind: input, shape index: {}]   ;;  %s18229_s4 = inlined_call_operand.vmem [shape: f32[1,512], index: 4, kind: input, shape index: {}]   ;;  %s18230_s5 = inlined_call_operand.vmem [shape: f32[1,512], index: 5, kind: input, shape index: {}]   ;;  %s18231_s6 = inlined_call_operand.vmem [shape: f32[1,512], index: 6, kind: input, shape index: {}]   ;;  %s18232_s7 = inlined_call_operand.vmem [shape: bf16[2048,512], index: 7, kind: input, shape index: {}]   ;;  %s18233_s8 = inlined_call_operand.vmem [shape: f32[1,512], index: 8, kind: input, shape index: {}]   ;;  %s18234_s9 = inlined_call_operand.vmem [shape: f32[1,512], index: 9, kind: input, shape index: {}]   ;;  %s18235_s10 = inlined_call_operand.vmem [shape: f32[1,512], index: 10, kind: input, shape index: {}]   ;;  %s18236_s11 = inlined_call_operand.vmem [shape: f32[1,512], index: 11, kind: input, shape index: {}]   ;;  %s18237_s12 = inlined_call_operand.vmem [shape: bf16[2048,128], index: 12, kind: input, shape index: {}]   ;;  %s18238_s13 = inlined_call_operand.vmem [shape: f32[1,128], index: 13, kind: input, shape index: {}]   ;;  %s18239_s14 = inlined_call_operand.vmem [shape: f32[64,128], index: 14, kind: output, shape index: {}]  }
   0x1   :  { %s18336_s16 = smov %s18232_s7  ;;  %s13371_s18 = smov 0  }
   0x2 LB: > { %v64_v0 = vld [vmem:[%s13276_s16] sm:$0xf]  ;;  %v66_v1 = vld [vmem:[%s13276_s16 + $0x4] sm:$0xf]  ;;  %v68_v2 = vld [vmem:[%s13276_s16 + $0x8] sm:$0xf]  ;;  %s13284_s18 = sphi %s13371_s18, %s60_s18   ;;  %s13280_s17 = sphi %s13369_s17, %s18337_s17   ;;  %s13276_s16 = sphi %s18336_s16, %s1093_s16   ;;  %s13272_s29 = sphi %s13362_s29, %s1094_s29  }
   0x3   : > { %65 = vst [vmem:[%s13272_s29] sm:$0xf] %v64_v0  ;;  %67 = vst [vmem:[%s13272_s29 + $0x8] sm:$0xf] %v66_v1  ;;  %v70_v3 = vld [vmem:[%s13276_s16 + $0xc] sm:$0xf]  ;;  %s1088_s19 = sadd.s32 1, %s13280_s17 }
   0x4   : > { %69 = vst [vmem:[%s13272_s29 + $0x10] sm:$0xf] %v68_v2  ;;  %v72_v4 = vld [vmem:[%s13276_s16 + $0x20] sm:$0xf]  ;;  %v74_v5 = vld [vmem:[%s13276_s16 + $0x24] sm:$0xf] }
   0x5   : > { %71 = vst [vmem:[%s13272_s29 + $0x18] sm:$0xf] %v70_v3  ;;  %73 = vst [vmem:[%s13272_s29 + $0x20] sm:$0xf] %v72_v4  ;;  %v76_v6 = vld [vmem:[%s13276_s16 + $0x28] sm:$0xf] }
   0x6   : > { %75 = vst [vmem:[%s13272_s29 + $0x28] sm:$0xf] %v74_v5  ;;  %v78_v7 = vld [vmem:[%s13276_s16 + $0x2c] sm:$0xf]  ;;  %v80_v8 = vld [vmem:[%s13276_s16 + $0x40] sm:$0xf] }
   0x7   : > { %77 = vst [vmem:[%s13272_s29 + $0x30] sm:$0xf] %v76_v6  ;;  %79 = vst [vmem:[%s13272_s29 + $0x38] sm:$0xf] %v78_v7  ;;  %v82_v9 = vld [vmem:[%s13276_s16 + $0x44] sm:$0xf] }
   0x8   : > { %81 = vst [vmem:[%s13272_s29 + $0x40] sm:$0xf] %v80_v8  ;;  %v84_v10 = vld [vmem:[%s13276_s16 + $0x48] sm:$0xf]  ;;  %v86_v11 = vld [vmem:[%s13276_s16 + $0x4c] sm:$0xf] }
   0x9   : > { %83 = vst [vmem:[%s13272_s29 + $0x48] sm:$0xf] %v82_v9  ;;  %85 = vst [vmem:[%s13272_s29 + $0x50] sm:$0xf] %v84_v10  ;;  %v88_v12 = vld [vmem:[%s13276_s16 + $0x60] sm:$0xf] }
   0xa   : > { %87 = vst [vmem:[%s13272_s29 + $0x58] sm:$0xf] %v86_v11  ;;  %v90_v13 = vld [vmem:[%s13276_s16 + $0x64] sm:$0xf]  ;;  %v92_v14 = vld [vmem:[%s13276_s16 + $0x68] sm:$0xf] }
   0xb   : > { %89 = vst [vmem:[%s13272_s29 + $0x60] sm:$0xf] %v88_v12  ;;  %91 = vst [vmem:[%s13272_s29 + $0x68] sm:$0xf] %v90_v13  ;;  %v94_v15 = vld [vmem:[%s13276_s16 + $0x6c] sm:$0xf] }
   0xc   : > { %93 = vst [vmem:[%s13272_s29 + $0x70] sm:$0xf] %v92_v14  ;;  %v96_v16 = vld [vmem:[%s13276_s16 + $0x80] sm:$0xf]  ;;  %v98_v17 = vld [vmem:[%s13276_s16 + $0x84] sm:$0xf] }
   0xd   : > { %95 = vst [vmem:[%s13272_s29 + $0x78] sm:$0xf] %v94_v15  ;;  %97 = vst [vmem:[%s13272_s29 + $0x80] sm:$0xf] %v96_v16  ;;  %v100_v18 = vld [vmem:[%s13276_s16 + $0x88] sm:$0xf] }
   0xe   : > { %99 = vst [vmem:[%s13272_s29 + $0x88] sm:$0xf] %v98_v17  ;;  %v102_v19 = vld [vmem:[%s13276_s16 + $0x8c] sm:$0xf]  ;;  %v104_v20 = vld [vmem:[%s13276_s16 + $0xa0] sm:$0xf] }
   0xf   : > { %101 = vst [vmem:[%s13272_s29 + $0x90] sm:$0xf] %v100_v18  ;;  %103 = vst [vmem:[%s13272_s29 + $0x98] sm:$0xf] %v102_v19  ;;  %v106_v21 = vld [vmem:[%s13276_s16 + $0xa4] sm:$0xf] }
  0x10   : > { %105 = vst [vmem:[%s13272_s29 + $0xa0] sm:$0xf] %v104_v20  ;;  %v108_v22 = vld [vmem:[%s13276_s16 + $0xa8] sm:$0xf]  ;;  %v110_v23 = vld [vmem:[%s13276_s16 + $0xac] sm:$0xf] }
  0x11   : > { %107 = vst [vmem:[%s13272_s29 + $0xa8] sm:$0xf] %v106_v21  ;;  %109 = vst [vmem:[%s13272_s29 + $0xb0] sm:$0xf] %v108_v22  ;;  %v112_v24 = vld [vmem:[%s13276_s16 + $0xc0] sm:$0xf] }
  0x12   : > { %111 = vst [vmem:[%s13272_s29 + $0xb8] sm:$0xf] %v110_v23  ;;  %v114_v25 = vld [vmem:[%s13276_s16 + $0xc4] sm:$0xf]  ;;  %v116_v26 = vld [vmem:[%s13276_s16 + $0xc8] sm:$0xf] }
  0x13   : > { %113 = vst [vmem:[%s13272_s29 + $0xc0] sm:$0xf] %v112_v24  ;;  %115 = vst [vmem:[%s13272_s29 + $0xc8] sm:$0xf] %v114_v25  ;;  %v118_v27 = vld [vmem:[%s13276_s16 + $0xcc] sm:$0xf] }
  0x14   : > { %117 = vst [vmem:[%s13272_s29 + $0xd0] sm:$0xf] %v116_v26  ;;  %v120_v28 = vld [vmem:[%s13276_s16 + $0xe0] sm:$0xf]  ;;  %v122_v29 = vld [vmem:[%s13276_s16 + $0xe4] sm:$0xf] }
  0x15   : > { %119 = vst [vmem:[%s13272_s29 + $0xd8] sm:$0xf] %v118_v27  ;;  %121 = vst [vmem:[%s13272_s29 + $0xe0] sm:$0xf] %v120_v28  ;;  %v124_v30 = vld [vmem:[%s13276_s16 + $0xe8] sm:$0xf] }
  0x16   : > { %123 = vst [vmem:[%s13272_s29 + $0xe8] sm:$0xf] %v122_v29  ;;  %v126_v31 = vld [vmem:[%s13276_s16 + $0xec] sm:$0xf]  ;;  %v128_v32 = vld [vmem:[%s13276_s16 + $0x100] sm:$0xf] }
  0x17   : > { %125 = vst [vmem:[%s13272_s29 + $0xf0] sm:$0xf] %v124_v30  ;;  %127 = vst [vmem:[%s13272_s29 + $0xf8] sm:$0xf] %v126_v31  ;;  %v130_v33 = vld [vmem:[%s13276_s16 + $0x104] sm:$0xf] }
  0x18   : > { %129 = vst [vmem:[%s13272_s29 + $0x100] sm:$0xf] %v128_v32  ;;  %v132_v34 = vld [vmem:[%s13276_s16 + $0x108] sm:$0xf]  ;;  %v134_v35 = vld [vmem:[%s13276_s16 + $0x10c] sm:$0xf] }
  0x19   : > { %131 = vst [vmem:[%s13272_s29 + $0x108] sm:$0xf] %v130_v33  ;;  %133 = vst [vmem:[%s13272_s29 + $0x110] sm:$0xf] %v132_v34  ;;  %v136_v36 = vld [vmem:[%s13276_s16 + $0x120] sm:$0xf] }
  0x1a   : > { %135 = vst [vmem:[%s13272_s29 + $0x118] sm:$0xf] %v134_v35  ;;  %v138_v37 = vld [vmem:[%s13276_s16 + $0x124] sm:$0xf]  ;;  %v140_v38 = vld [vmem:[%s13276_s16 + $0x128] sm:$0xf] }
  0x1b   : > { %137 = vst [vmem:[%s13272_s29 + $0x120] sm:$0xf] %v136_v36  ;;  %139 = vst [vmem:[%s13272_s29 + $0x128] sm:$0xf] %v138_v37  ;;  %v142_v39 = vld [vmem:[%s13276_s16 + $0x12c] sm:$0xf] }
  0x1c   : > { %141 = vst [vmem:[%s13272_s29 + $0x130] sm:$0xf] %v140_v38  ;;  %v144_v40 = vld [vmem:[%s13276_s16 + $0x140] sm:$0xf]  ;;  %v146_v41 = vld [vmem:[%s13276_s16 + $0x144] sm:$0xf] }
  0x1d   : > { %143 = vst [vmem:[%s13272_s29 + $0x138] sm:$0xf] %v142_v39  ;;  %145 = vst [vmem:[%s13272_s29 + $0x140] sm:$0xf] %v144_v40  ;;  %v148_v42 = vld [vmem:[%s13276_s16 + $0x148] sm:$0xf] }
  0x1e   : > { %147 = vst [vmem:[%s13272_s29 + $0x148] sm:$0xf] %v146_v41  ;;  %v150_v43 = vld [vmem:[%s13276_s16 + $0x14c] sm:$0xf]  ;;  %v152_v44 = vld [vmem:[%s13276_s16 + $0x160] sm:$0xf] }
  0x1f   : > { %149 = vst [vmem:[%s13272_s29 + $0x150] sm:$0xf] %v148_v42  ;;  %151 = vst [vmem:[%s13272_s29 + $0x158] sm:$0xf] %v150_v43  ;;  %v154_v45 = vld [vmem:[%s13276_s16 + $0x164] sm:$0xf] }
  0x20   : > { %153 = vst [vmem:[%s13272_s29 + $0x160] sm:$0xf] %v152_v44  ;;  %v156_v46 = vld [vmem:[%s13276_s16 + $0x168] sm:$0xf]  ;;  %v158_v47 = vld [vmem:[%s13276_s16 + $0x16c] sm:$0xf] }
  0x21   : > { %155 = vst [vmem:[%s13272_s29 + $0x168] sm:$0xf] %v154_v45  ;;  %157 = vst [vmem:[%s13272_s29 + $0x170] sm:$0xf] %v156_v46  ;;  %v160_v48 = vld [vmem:[%s13276_s16 + $0x180] sm:$0xf] }
  0x22   : > { %159 = vst [vmem:[%s13272_s29 + $0x178] sm:$0xf] %v158_v47  ;;  %v162_v49 = vld [vmem:[%s13276_s16 + $0x184] sm:$0xf]  ;;  %v164_v50 = vld [vmem:[%s13276_s16 + $0x188] sm:$0xf] }
  0x23   : > { %161 = vst [vmem:[%s13272_s29 + $0x180] sm:$0xf] %v160_v48  ;;  %163 = vst [vmem:[%s13272_s29 + $0x188] sm:$0xf] %v162_v49  ;;  %v166_v51 = vld [vmem:[%s13276_s16 + $0x18c] sm:$0xf] }
  0x24   : > { %165 = vst [vmem:[%s13272_s29 + $0x190] sm:$0xf] %v164_v50  ;;  %v168_v52 = vld [vmem:[%s13276_s16 + $0x1a0] sm:$0xf]  ;;  %v170_v53 = vld [vmem:[%s13276_s16 + $0x1a4] sm:$0xf] }
  0x25   : > { %167 = vst [vmem:[%s13272_s29 + $0x198] sm:$0xf] %v166_v51  ;;  %169 = vst [vmem:[%s13272_s29 + $0x1a0] sm:$0xf] %v168_v52  ;;  %v172_v54 = vld [vmem:[%s13276_s16 + $0x1a8] sm:$0xf] }
  0x26   : > { %171 = vst [vmem:[%s13272_s29 + $0x1a8] sm:$0xf] %v170_v53  ;;  %v174_v55 = vld [vmem:[%s13276_s16 + $0x1ac] sm:$0xf]  ;;  %v176_v56 = vld [vmem:[%s13276_s16 + $0x1c0] sm:$0xf] }
  0x27   : > { %173 = vst [vmem:[%s13272_s29 + $0x1b0] sm:$0xf] %v172_v54  ;;  %175 = vst [vmem:[%s13272_s29 + $0x1b8] sm:$0xf] %v174_v55  ;;  %v178_v57 = vld [vmem:[%s13276_s16 + $0x1c4] sm:$0xf] }
  0x28   : > { %177 = vst [vmem:[%s13272_s29 + $0x1c0] sm:$0xf] %v176_v56  ;;  %v180_v58 = vld [vmem:[%s13276_s16 + $0x1c8] sm:$0xf]  ;;  %v182_v59 = vld [vmem:[%s13276_s16 + $0x1cc] sm:$0xf] }
  0x29   : > { %179 = vst [vmem:[%s13272_s29 + $0x1c8] sm:$0xf] %v178_v57  ;;  %181 = vst [vmem:[%s13272_s29 + $0x1d0] sm:$0xf] %v180_v58  ;;  %v184_v60 = vld [vmem:[%s13276_s16 + $0x1e0] sm:$0xf] }
  0x2a   : > { %183 = vst [vmem:[%s13272_s29 + $0x1d8] sm:$0xf] %v182_v59  ;;  %v186_v61 = vld [vmem:[%s13276_s16 + $0x1e4] sm:$0xf]  ;;  %v188_v62 = vld [vmem:[%s13276_s16 + $0x1e8] sm:$0xf] }
  0x2b   : > { %185 = vst [vmem:[%s13272_s29 + $0x1e0] sm:$0xf] %v184_v60  ;;  %187 = vst [vmem:[%s13272_s29 + $0x1e8] sm:$0xf] %v186_v61  ;;  %v190_v63 = vld [vmem:[%s13276_s16 + $0x1ec] sm:$0xf] }
  0x2c   : > { %189 = vst [vmem:[%s13272_s29 + $0x1f0] sm:$0xf] %v188_v62  ;;  %v192_v0 = vld [vmem:[%s13276_s16 + $0x200] sm:$0xf]  ;;  %v194_v1 = vld [vmem:[%s13276_s16 + $0x204] sm:$0xf] }
  0x2d   : > { %191 = vst [vmem:[%s13272_s29 + $0x1f8] sm:$0xf] %v190_v63  ;;  %193 = vst [vmem:[%s13272_s29 + $0x200] sm:$0xf] %v192_v0  ;;  %v196_v2 = vld [vmem:[%s13276_s16 + $0x208] sm:$0xf] }
  0x2e   : > { %195 = vst [vmem:[%s13272_s29 + $0x208] sm:$0xf] %v194_v1  ;;  %v198_v3 = vld [vmem:[%s13276_s16 + $0x20c] sm:$0xf]  ;;  %v200_v4 = vld [vmem:[%s13276_s16 + $0x220] sm:$0xf] }
  0x2f   : > { %197 = vst [vmem:[%s13272_s29 + $0x210] sm:$0xf] %v196_v2  ;;  %199 = vst [vmem:[%s13272_s29 + $0x218] sm:$0xf] %v198_v3  ;;  %v202_v5 = vld [vmem:[%s13276_s16 + $0x224] sm:$0xf] }
  0x30   : > { %201 = vst [vmem:[%s13272_s29 + $0x220] sm:$0xf] %v200_v4  ;;  %v204_v6 = vld [vmem:[%s13276_s16 + $0x228] sm:$0xf]  ;;  %v206_v7 = vld [vmem:[%s13276_s16 + $0x22c] sm:$0xf] }
  0x31   : > { %203 = vst [vmem:[%s13272_s29 + $0x228] sm:$0xf] %v202_v5  ;;  %205 = vst [vmem:[%s13272_s29 + $0x230] sm:$0xf] %v204_v6  ;;  %v208_v8 = vld [vmem:[%s13276_s16 + $0x240] sm:$0xf] }
  0x32   : > { %207 = vst [vmem:[%s13272_s29 + $0x238] sm:$0xf] %v206_v7  ;;  %v210_v9 = vld [vmem:[%s13276_s16 + $0x244] sm:$0xf]  ;;  %v212_v10 = vld [vmem:[%s13276_s16 + $0x248] sm:$0xf] }
  0x33   : > { %209 = vst [vmem:[%s13272_s29 + $0x240] sm:$0xf] %v208_v8  ;;  %211 = vst [vmem:[%s13272_s29 + $0x248] sm:$0xf] %v210_v9  ;;  %v214_v11 = vld [vmem:[%s13276_s16 + $0x24c] sm:$0xf] }
  0x34   : > { %213 = vst [vmem:[%s13272_s29 + $0x250] sm:$0xf] %v212_v10  ;;  %v216_v12 = vld [vmem:[%s13276_s16 + $0x260] sm:$0xf]  ;;  %v218_v13 = vld [vmem:[%s13276_s16 + $0x264] sm:$0xf] }
  0x35   : > { %215 = vst [vmem:[%s13272_s29 + $0x258] sm:$0xf] %v214_v11  ;;  %217 = vst [vmem:[%s13272_s29 + $0x260] sm:$0xf] %v216_v12  ;;  %v220_v14 = vld [vmem:[%s13276_s16 + $0x268] sm:$0xf] }
  0x36   : > { %219 = vst [vmem:[%s13272_s29 + $0x268] sm:$0xf] %v218_v13  ;;  %v222_v15 = vld [vmem:[%s13276_s16 + $0x26c] sm:$0xf]  ;;  %v224_v16 = vld [vmem:[%s13276_s16 + $0x280] sm:$0xf] }
  0x37   : > { %221 = vst [vmem:[%s13272_s29 + $0x270] sm:$0xf] %v220_v14  ;;  %223 = vst [vmem:[%s13272_s29 + $0x278] sm:$0xf] %v222_v15  ;;  %v226_v17 = vld [vmem:[%s13276_s16 + $0x284] sm:$0xf] }
  0x38   : > { %225 = vst [vmem:[%s13272_s29 + $0x280] sm:$0xf] %v224_v16  ;;  %v228_v18 = vld [vmem:[%s13276_s16 + $0x288] sm:$0xf]  ;;  %v230_v19 = vld [vmem:[%s13276_s16 + $0x28c] sm:$0xf] }
  0x39   : > { %227 = vst [vmem:[%s13272_s29 + $0x288] sm:$0xf] %v226_v17  ;;  %229 = vst [vmem:[%s13272_s29 + $0x290] sm:$0xf] %v228_v18  ;;  %v232_v20 = vld [vmem:[%s13276_s16 + $0x2a0] sm:$0xf] }
  0x3a   : > { %231 = vst [vmem:[%s13272_s29 + $0x298] sm:$0xf] %v230_v19  ;;  %v234_v21 = vld [vmem:[%s13276_s16 + $0x2a4] sm:$0xf]  ;;  %v236_v22 = vld [vmem:[%s13276_s16 + $0x2a8] sm:$0xf] }
  0x3b   : > { %233 = vst [vmem:[%s13272_s29 + $0x2a0] sm:$0xf] %v232_v20  ;;  %235 = vst [vmem:[%s13272_s29 + $0x2a8] sm:$0xf] %v234_v21  ;;  %v238_v23 = vld [vmem:[%s13276_s16 + $0x2ac] sm:$0xf] }
  0x3c   : > { %237 = vst [vmem:[%s13272_s29 + $0x2b0] sm:$0xf] %v236_v22  ;;  %v240_v24 = vld [vmem:[%s13276_s16 + $0x2c0] sm:$0xf]  ;;  %v242_v25 = vld [vmem:[%s13276_s16 + $0x2c4] sm:$0xf] }
  0x3d   : > { %239 = vst [vmem:[%s13272_s29 + $0x2b8] sm:$0xf] %v238_v23  ;;  %241 = vst [vmem:[%s13272_s29 + $0x2c0] sm:$0xf] %v240_v24  ;;  %v244_v26 = vld [vmem:[%s13276_s16 + $0x2c8] sm:$0xf] }
  0x3e   : > { %243 = vst [vmem:[%s13272_s29 + $0x2c8] sm:$0xf] %v242_v25  ;;  %v246_v27 = vld [vmem:[%s13276_s16 + $0x2cc] sm:$0xf]  ;;  %v248_v28 = vld [vmem:[%s13276_s16 + $0x2e0] sm:$0xf] }
  0x3f   : > { %245 = vst [vmem:[%s13272_s29 + $0x2d0] sm:$0xf] %v244_v26  ;;  %247 = vst [vmem:[%s13272_s29 + $0x2d8] sm:$0xf] %v246_v27  ;;  %v250_v29 = vld [vmem:[%s13276_s16 + $0x2e4] sm:$0xf] }
  0x40   : > { %249 = vst [vmem:[%s13272_s29 + $0x2e0] sm:$0xf] %v248_v28  ;;  %v252_v30 = vld [vmem:[%s13276_s16 + $0x2e8] sm:$0xf]  ;;  %v254_v31 = vld [vmem:[%s13276_s16 + $0x2ec] sm:$0xf] }
  0x41   : > { %251 = vst [vmem:[%s13272_s29 + $0x2e8] sm:$0xf] %v250_v29  ;;  %253 = vst [vmem:[%s13272_s29 + $0x2f0] sm:$0xf] %v252_v30  ;;  %v256_v32 = vld [vmem:[%s13276_s16 + $0x300] sm:$0xf] }
  0x42   : > { %255 = vst [vmem:[%s13272_s29 + $0x2f8] sm:$0xf] %v254_v31  ;;  %v258_v33 = vld [vmem:[%s13276_s16 + $0x304] sm:$0xf]  ;;  %v260_v34 = vld [vmem:[%s13276_s16 + $0x308] sm:$0xf] }
  0x43   : > { %257 = vst [vmem:[%s13272_s29 + $0x300] sm:$0xf] %v256_v32  ;;  %259 = vst [vmem:[%s13272_s29 + $0x308] sm:$0xf] %v258_v33  ;;  %v262_v35 = vld [vmem:[%s13276_s16 + $0x30c] sm:$0xf] }
  0x44   : > { %261 = vst [vmem:[%s13272_s29 + $0x310] sm:$0xf] %v260_v34  ;;  %v264_v36 = vld [vmem:[%s13276_s16 + $0x320] sm:$0xf]  ;;  %v266_v37 = vld [vmem:[%s13276_s16 + $0x324] sm:$0xf] }
  0x45   : > { %263 = vst [vmem:[%s13272_s29 + $0x318] sm:$0xf] %v262_v35  ;;  %265 = vst [vmem:[%s13272_s29 + $0x320] sm:$0xf] %v264_v36  ;;  %v268_v38 = vld [vmem:[%s13276_s16 + $0x328] sm:$0xf] }
  0x46   : > { %267 = vst [vmem:[%s13272_s29 + $0x328] sm:$0xf] %v266_v37  ;;  %v270_v39 = vld [vmem:[%s13276_s16 + $0x32c] sm:$0xf]  ;;  %v272_v40 = vld [vmem:[%s13276_s16 + $0x340] sm:$0xf] }
  0x47   : > { %269 = vst [vmem:[%s13272_s29 + $0x330] sm:$0xf] %v268_v38  ;;  %271 = vst [vmem:[%s13272_s29 + $0x338] sm:$0xf] %v270_v39  ;;  %v274_v41 = vld [vmem:[%s13276_s16 + $0x344] sm:$0xf] }
  0x48   : > { %273 = vst [vmem:[%s13272_s29 + $0x340] sm:$0xf] %v272_v40  ;;  %v276_v42 = vld [vmem:[%s13276_s16 + $0x348] sm:$0xf]  ;;  %v278_v43 = vld [vmem:[%s13276_s16 + $0x34c] sm:$0xf] }
  0x49   : > { %275 = vst [vmem:[%s13272_s29 + $0x348] sm:$0xf] %v274_v41  ;;  %277 = vst [vmem:[%s13272_s29 + $0x350] sm:$0xf] %v276_v42  ;;  %v280_v44 = vld [vmem:[%s13276_s16 + $0x360] sm:$0xf] }
  0x4a   : > { %279 = vst [vmem:[%s13272_s29 + $0x358] sm:$0xf] %v278_v43  ;;  %v282_v45 = vld [vmem:[%s13276_s16 + $0x364] sm:$0xf]  ;;  %v284_v46 = vld [vmem:[%s13276_s16 + $0x368] sm:$0xf] }
  0x4b   : > { %281 = vst [vmem:[%s13272_s29 + $0x360] sm:$0xf] %v280_v44  ;;  %283 = vst [vmem:[%s13272_s29 + $0x368] sm:$0xf] %v282_v45  ;;  %v286_v47 = vld [vmem:[%s13276_s16 + $0x36c] sm:$0xf] }
  0x4c   : > { %285 = vst [vmem:[%s13272_s29 + $0x370] sm:$0xf] %v284_v46  ;;  %v288_v48 = vld [vmem:[%s13276_s16 + $0x380] sm:$0xf]  ;;  %v290_v49 = vld [vmem:[%s13276_s16 + $0x384] sm:$0xf] }
  0x4d   : > { %287 = vst [vmem:[%s13272_s29 + $0x378] sm:$0xf] %v286_v47  ;;  %289 = vst [vmem:[%s13272_s29 + $0x380] sm:$0xf] %v288_v48  ;;  %v292_v50 = vld [vmem:[%s13276_s16 + $0x388] sm:$0xf] }
  0x4e   : > { %291 = vst [vmem:[%s13272_s29 + $0x388] sm:$0xf] %v290_v49  ;;  %v294_v51 = vld [vmem:[%s13276_s16 + $0x38c] sm:$0xf]  ;;  %v296_v52 = vld [vmem:[%s13276_s16 + $0x3a0] sm:$0xf] }
  0x4f   : > { %293 = vst [vmem:[%s13272_s29 + $0x390] sm:$0xf] %v292_v50  ;;  %295 = vst [vmem:[%s13272_s29 + $0x398] sm:$0xf] %v294_v51  ;;  %v298_v53 = vld [vmem:[%s13276_s16 + $0x3a4] sm:$0xf] }
  0x50   : > { %297 = vst [vmem:[%s13272_s29 + $0x3a0] sm:$0xf] %v296_v52  ;;  %v300_v54 = vld [vmem:[%s13276_s16 + $0x3a8] sm:$0xf]  ;;  %v302_v55 = vld [vmem:[%s13276_s16 + $0x3ac] sm:$0xf] }
  0x51   : > { %299 = vst [vmem:[%s13272_s29 + $0x3a8] sm:$0xf] %v298_v53  ;;  %301 = vst [vmem:[%s13272_s29 + $0x3b0] sm:$0xf] %v300_v54  ;;  %v304_v56 = vld [vmem:[%s13276_s16 + $0x3c0] sm:$0xf] }
  0x52   : > { %303 = vst [vmem:[%s13272_s29 + $0x3b8] sm:$0xf] %v302_v55  ;;  %v306_v57 = vld [vmem:[%s13276_s16 + $0x3c4] sm:$0xf]  ;;  %v308_v58 = vld [vmem:[%s13276_s16 + $0x3c8] sm:$0xf] }
  0x53   : > { %305 = vst [vmem:[%s13272_s29 + $0x3c0] sm:$0xf] %v304_v56  ;;  %307 = vst [vmem:[%s13272_s29 + $0x3c8] sm:$0xf] %v306_v57  ;;  %v310_v59 = vld [vmem:[%s13276_s16 + $0x3cc] sm:$0xf] }
  0x54   : > { %309 = vst [vmem:[%s13272_s29 + $0x3d0] sm:$0xf] %v308_v58  ;;  %v312_v60 = vld [vmem:[%s13276_s16 + $0x3e0] sm:$0xf]  ;;  %v314_v61 = vld [vmem:[%s13276_s16 + $0x3e4] sm:$0xf] }
  0x55   : > { %311 = vst [vmem:[%s13272_s29 + $0x3d8] sm:$0xf] %v310_v59  ;;  %313 = vst [vmem:[%s13272_s29 + $0x3e0] sm:$0xf] %v312_v60  ;;  %v316_v62 = vld [vmem:[%s13276_s16 + $0x3e8] sm:$0xf] }
  0x56   : > { %315 = vst [vmem:[%s13272_s29 + $0x3e8] sm:$0xf] %v314_v61  ;;  %v318_v63 = vld [vmem:[%s13276_s16 + $0x3ec] sm:$0xf]  ;;  %v320_v0 = vld [vmem:[%s13276_s16 + $0x400] sm:$0xf] }
  0x57   : > { %317 = vst [vmem:[%s13272_s29 + $0x3f0] sm:$0xf] %v316_v62  ;;  %319 = vst [vmem:[%s13272_s29 + $0x3f8] sm:$0xf] %v318_v63  ;;  %v322_v1 = vld [vmem:[%s13276_s16 + $0x404] sm:$0xf] }
  0x58   : > { %321 = vst [vmem:[%s13272_s29 + $0x400] sm:$0xf] %v320_v0  ;;  %v324_v2 = vld [vmem:[%s13276_s16 + $0x408] sm:$0xf]  ;;  %v326_v3 = vld [vmem:[%s13276_s16 + $0x40c] sm:$0xf] }
  0x59   : > { %323 = vst [vmem:[%s13272_s29 + $0x408] sm:$0xf] %v322_v1  ;;  %325 = vst [vmem:[%s13272_s29 + $0x410] sm:$0xf] %v324_v2  ;;  %v328_v4 = vld [vmem:[%s13276_s16 + $0x420] sm:$0xf] }
  0x5a   : > { %327 = vst [vmem:[%s13272_s29 + $0x418] sm:$0xf] %v326_v3  ;;  %v330_v5 = vld [vmem:[%s13276_s16 + $0x424] sm:$0xf]  ;;  %v332_v6 = vld [vmem:[%s13276_s16 + $0x428] sm:$0xf] }
  0x5b   : > { %329 = vst [vmem:[%s13272_s29 + $0x420] sm:$0xf] %v328_v4  ;;  %331 = vst [vmem:[%s13272_s29 + $0x428] sm:$0xf] %v330_v5  ;;  %v334_v7 = vld [vmem:[%s13276_s16 + $0x42c] sm:$0xf] }
  0x5c   : > { %333 = vst [vmem:[%s13272_s29 + $0x430] sm:$0xf] %v332_v6  ;;  %v336_v8 = vld [vmem:[%s13276_s16 + $0x440] sm:$0xf]  ;;  %v338_v9 = vld [vmem:[%s13276_s16 + $0x444] sm:$0xf] }
  0x5d   : > { %335 = vst [vmem:[%s13272_s29 + $0x438] sm:$0xf] %v334_v7  ;;  %337 = vst [vmem:[%s13272_s29 + $0x440] sm:$0xf] %v336_v8  ;;  %v340_v10 = vld [vmem:[%s13276_s16 + $0x448] sm:$0xf] }
  0x5e   : > { %339 = vst [vmem:[%s13272_s29 + $0x448] sm:$0xf] %v338_v9  ;;  %v342_v11 = vld [vmem:[%s13276_s16 + $0x44c] sm:$0xf]  ;;  %v344_v12 = vld [vmem:[%s13276_s16 + $0x460] sm:$0xf] }
  0x5f   : > { %341 = vst [vmem:[%s13272_s29 + $0x450] sm:$0xf] %v340_v10  ;;  %343 = vst [vmem:[%s13272_s29 + $0x458] sm:$0xf] %v342_v11  ;;  %v346_v13 = vld [vmem:[%s13276_s16 + $0x464] sm:$0xf] }
  0x60   : > { %345 = vst [vmem:[%s13272_s29 + $0x460] sm:$0xf] %v344_v12  ;;  %v348_v14 = vld [vmem:[%s13276_s16 + $0x468] sm:$0xf]  ;;  %v350_v15 = vld [vmem:[%s13276_s16 + $0x46c] sm:$0xf] }
  0x61   : > { %347 = vst [vmem:[%s13272_s29 + $0x468] sm:$0xf] %v346_v13  ;;  %349 = vst [vmem:[%s13272_s29 + $0x470] sm:$0xf] %v348_v14  ;;  %v352_v16 = vld [vmem:[%s13276_s16 + $0x480] sm:$0xf] }
  0x62   : > { %351 = vst [vmem:[%s13272_s29 + $0x478] sm:$0xf] %v350_v15  ;;  %v354_v17 = vld [vmem:[%s13276_s16 + $0x484] sm:$0xf]  ;;  %v356_v18 = vld [vmem:[%s13276_s16 + $0x488] sm:$0xf] }
  0x63   : > { %353 = vst [vmem:[%s13272_s29 + $0x480] sm:$0xf] %v352_v16  ;;  %355 = vst [vmem:[%s13272_s29 + $0x488] sm:$0xf] %v354_v17  ;;  %v358_v19 = vld [vmem:[%s13276_s16 + $0x48c] sm:$0xf] }
  0x64   : > { %357 = vst [vmem:[%s13272_s29 + $0x490] sm:$0xf] %v356_v18  ;;  %v360_v20 = vld [vmem:[%s13276_s16 + $0x4a0] sm:$0xf]  ;;  %v362_v21 = vld [vmem:[%s13276_s16 + $0x4a4] sm:$0xf] }
  0x65   : > { %359 = vst [vmem:[%s13272_s29 + $0x498] sm:$0xf] %v358_v19  ;;  %361 = vst [vmem:[%s13272_s29 + $0x4a0] sm:$0xf] %v360_v20  ;;  %v364_v22 = vld [vmem:[%s13276_s16 + $0x4a8] sm:$0xf] }
  0x66   : > { %363 = vst [vmem:[%s13272_s29 + $0x4a8] sm:$0xf] %v362_v21  ;;  %v366_v23 = vld [vmem:[%s13276_s16 + $0x4ac] sm:$0xf]  ;;  %v368_v24 = vld [vmem:[%s13276_s16 + $0x4c0] sm:$0xf] }
  0x67   : > { %365 = vst [vmem:[%s13272_s29 + $0x4b0] sm:$0xf] %v364_v22  ;;  %367 = vst [vmem:[%s13272_s29 + $0x4b8] sm:$0xf] %v366_v23  ;;  %v370_v25 = vld [vmem:[%s13276_s16 + $0x4c4] sm:$0xf] }
  0x68   : > { %369 = vst [vmem:[%s13272_s29 + $0x4c0] sm:$0xf] %v368_v24  ;;  %v372_v26 = vld [vmem:[%s13276_s16 + $0x4c8] sm:$0xf]  ;;  %v374_v27 = vld [vmem:[%s13276_s16 + $0x4cc] sm:$0xf] }
  0x69   : > { %371 = vst [vmem:[%s13272_s29 + $0x4c8] sm:$0xf] %v370_v25  ;;  %373 = vst [vmem:[%s13272_s29 + $0x4d0] sm:$0xf] %v372_v26  ;;  %v376_v28 = vld [vmem:[%s13276_s16 + $0x4e0] sm:$0xf] }
  0x6a   : > { %375 = vst [vmem:[%s13272_s29 + $0x4d8] sm:$0xf] %v374_v27  ;;  %v378_v29 = vld [vmem:[%s13276_s16 + $0x4e4] sm:$0xf]  ;;  %v380_v30 = vld [vmem:[%s13276_s16 + $0x4e8] sm:$0xf] }
  0x6b   : > { %377 = vst [vmem:[%s13272_s29 + $0x4e0] sm:$0xf] %v376_v28  ;;  %379 = vst [vmem:[%s13272_s29 + $0x4e8] sm:$0xf] %v378_v29  ;;  %v382_v31 = vld [vmem:[%s13276_s16 + $0x4ec] sm:$0xf] }
  0x6c   : > { %381 = vst [vmem:[%s13272_s29 + $0x4f0] sm:$0xf] %v380_v30  ;;  %v384_v32 = vld [vmem:[%s13276_s16 + $0x500] sm:$0xf]  ;;  %v386_v33 = vld [vmem:[%s13276_s16 + $0x504] sm:$0xf] }
  0x6d   : > { %383 = vst [vmem:[%s13272_s29 + $0x4f8] sm:$0xf] %v382_v31  ;;  %385 = vst [vmem:[%s13272_s29 + $0x500] sm:$0xf] %v384_v32  ;;  %v388_v34 = vld [vmem:[%s13276_s16 + $0x508] sm:$0xf] }
  0x6e   : > { %387 = vst [vmem:[%s13272_s29 + $0x508] sm:$0xf] %v386_v33  ;;  %v390_v35 = vld [vmem:[%s13276_s16 + $0x50c] sm:$0xf]  ;;  %v392_v36 = vld [vmem:[%s13276_s16 + $0x520] sm:$0xf] }
  0x6f   : > { %389 = vst [vmem:[%s13272_s29 + $0x510] sm:$0xf] %v388_v34  ;;  %391 = vst [vmem:[%s13272_s29 + $0x518] sm:$0xf] %v390_v35  ;;  %v394_v37 = vld [vmem:[%s13276_s16 + $0x524] sm:$0xf] }
  0x70   : > { %393 = vst [vmem:[%s13272_s29 + $0x520] sm:$0xf] %v392_v36  ;;  %v396_v38 = vld [vmem:[%s13276_s16 + $0x528] sm:$0xf]  ;;  %v398_v39 = vld [vmem:[%s13276_s16 + $0x52c] sm:$0xf] }
  0x71   : > { %395 = vst [vmem:[%s13272_s29 + $0x528] sm:$0xf] %v394_v37  ;;  %397 = vst [vmem:[%s13272_s29 + $0x530] sm:$0xf] %v396_v38  ;;  %v400_v40 = vld [vmem:[%s13276_s16 + $0x540] sm:$0xf] }
  0x72   : > { %399 = vst [vmem:[%s13272_s29 + $0x538] sm:$0xf] %v398_v39  ;;  %v402_v41 = vld [vmem:[%s13276_s16 + $0x544] sm:$0xf]  ;;  %v404_v42 = vld [vmem:[%s13276_s16 + $0x548] sm:$0xf] }
  0x73   : > { %401 = vst [vmem:[%s13272_s29 + $0x540] sm:$0xf] %v400_v40  ;;  %403 = vst [vmem:[%s13272_s29 + $0x548] sm:$0xf] %v402_v41  ;;  %v406_v43 = vld [vmem:[%s13276_s16 + $0x54c] sm:$0xf] }
  0x74   : > { %405 = vst [vmem:[%s13272_s29 + $0x550] sm:$0xf] %v404_v42  ;;  %v408_v44 = vld [vmem:[%s13276_s16 + $0x560] sm:$0xf]  ;;  %v410_v45 = vld [vmem:[%s13276_s16 + $0x564] sm:$0xf] }
  0x75   : > { %407 = vst [vmem:[%s13272_s29 + $0x558] sm:$0xf] %v406_v43  ;;  %409 = vst [vmem:[%s13272_s29 + $0x560] sm:$0xf] %v408_v44  ;;  %v412_v46 = vld [vmem:[%s13276_s16 + $0x568] sm:$0xf] }
  0x76   : > { %411 = vst [vmem:[%s13272_s29 + $0x568] sm:$0xf] %v410_v45  ;;  %v414_v47 = vld [vmem:[%s13276_s16 + $0x56c] sm:$0xf]  ;;  %v416_v48 = vld [vmem:[%s13276_s16 + $0x580] sm:$0xf] }
  0x77   : > { %413 = vst [vmem:[%s13272_s29 + $0x570] sm:$0xf] %v412_v46  ;;  %415 = vst [vmem:[%s13272_s29 + $0x578] sm:$0xf] %v414_v47  ;;  %v418_v49 = vld [vmem:[%s13276_s16 + $0x584] sm:$0xf] }
  0x78   : > { %417 = vst [vmem:[%s13272_s29 + $0x580] sm:$0xf] %v416_v48  ;;  %v420_v50 = vld [vmem:[%s13276_s16 + $0x588] sm:$0xf]  ;;  %v422_v51 = vld [vmem:[%s13276_s16 + $0x58c] sm:$0xf] }
  0x79   : > { %419 = vst [vmem:[%s13272_s29 + $0x588] sm:$0xf] %v418_v49  ;;  %421 = vst [vmem:[%s13272_s29 + $0x590] sm:$0xf] %v420_v50  ;;  %v424_v52 = vld [vmem:[%s13276_s16 + $0x5a0] sm:$0xf] }
  0x7a   : > { %423 = vst [vmem:[%s13272_s29 + $0x598] sm:$0xf] %v422_v51  ;;  %v426_v53 = vld [vmem:[%s13276_s16 + $0x5a4] sm:$0xf]  ;;  %v428_v54 = vld [vmem:[%s13276_s16 + $0x5a8] sm:$0xf] }
  0x7b   : > { %425 = vst [vmem:[%s13272_s29 + $0x5a0] sm:$0xf] %v424_v52  ;;  %427 = vst [vmem:[%s13272_s29 + $0x5a8] sm:$0xf] %v426_v53  ;;  %v430_v55 = vld [vmem:[%s13276_s16 + $0x5ac] sm:$0xf] }
  0x7c   : > { %429 = vst [vmem:[%s13272_s29 + $0x5b0] sm:$0xf] %v428_v54  ;;  %v432_v56 = vld [vmem:[%s13276_s16 + $0x5c0] sm:$0xf]  ;;  %v434_v57 = vld [vmem:[%s13276_s16 + $0x5c4] sm:$0xf] }
  0x7d   : > { %431 = vst [vmem:[%s13272_s29 + $0x5b8] sm:$0xf] %v430_v55  ;;  %433 = vst [vmem:[%s13272_s29 + $0x5c0] sm:$0xf] %v432_v56  ;;  %v436_v58 = vld [vmem:[%s13276_s16 + $0x5c8] sm:$0xf] }
  0x7e   : > { %435 = vst [vmem:[%s13272_s29 + $0x5c8] sm:$0xf] %v434_v57  ;;  %v438_v59 = vld [vmem:[%s13276_s16 + $0x5cc] sm:$0xf]  ;;  %v440_v60 = vld [vmem:[%s13276_s16 + $0x5e0] sm:$0xf] }
  0x7f   : > { %437 = vst [vmem:[%s13272_s29 + $0x5d0] sm:$0xf] %v436_v58  ;;  %439 = vst [vmem:[%s13272_s29 + $0x5d8] sm:$0xf] %v438_v59  ;;  %v442_v61 = vld [vmem:[%s13276_s16 + $0x5e4] sm:$0xf] }
  0x80   : > { %441 = vst [vmem:[%s13272_s29 + $0x5e0] sm:$0xf] %v440_v60  ;;  %v444_v62 = vld [vmem:[%s13276_s16 + $0x5e8] sm:$0xf]  ;;  %v446_v63 = vld [vmem:[%s13276_s16 + $0x5ec] sm:$0xf] }
  0x81   : > { %443 = vst [vmem:[%s13272_s29 + $0x5e8] sm:$0xf] %v442_v61  ;;  %445 = vst [vmem:[%s13272_s29 + $0x5f0] sm:$0xf] %v444_v62  ;;  %v448_v0 = vld [vmem:[%s13276_s16 + $0x600] sm:$0xf] }
  0x82   : > { %447 = vst [vmem:[%s13272_s29 + $0x5f8] sm:$0xf] %v446_v63  ;;  %v450_v1 = vld [vmem:[%s13276_s16 + $0x604] sm:$0xf]  ;;  %v452_v2 = vld [vmem:[%s13276_s16 + $0x608] sm:$0xf] }
  0x83   : > { %449 = vst [vmem:[%s13272_s29 + $0x600] sm:$0xf] %v448_v0  ;;  %451 = vst [vmem:[%s13272_s29 + $0x608] sm:$0xf] %v450_v1  ;;  %v454_v3 = vld [vmem:[%s13276_s16 + $0x60c] sm:$0xf] }
  0x84   : > { %453 = vst [vmem:[%s13272_s29 + $0x610] sm:$0xf] %v452_v2  ;;  %v456_v4 = vld [vmem:[%s13276_s16 + $0x620] sm:$0xf]  ;;  %v458_v5 = vld [vmem:[%s13276_s16 + $0x624] sm:$0xf] }
  0x85   : > { %455 = vst [vmem:[%s13272_s29 + $0x618] sm:$0xf] %v454_v3  ;;  %457 = vst [vmem:[%s13272_s29 + $0x620] sm:$0xf] %v456_v4  ;;  %v460_v6 = vld [vmem:[%s13276_s16 + $0x628] sm:$0xf] }
  0x86   : > { %459 = vst [vmem:[%s13272_s29 + $0x628] sm:$0xf] %v458_v5  ;;  %v462_v7 = vld [vmem:[%s13276_s16 + $0x62c] sm:$0xf]  ;;  %v464_v8 = vld [vmem:[%s13276_s16 + $0x640] sm:$0xf] }
  0x87   : > { %461 = vst [vmem:[%s13272_s29 + $0x630] sm:$0xf] %v460_v6  ;;  %463 = vst [vmem:[%s13272_s29 + $0x638] sm:$0xf] %v462_v7  ;;  %v466_v9 = vld [vmem:[%s13276_s16 + $0x644] sm:$0xf] }
  0x88   : > { %465 = vst [vmem:[%s13272_s29 + $0x640] sm:$0xf] %v464_v8  ;;  %v468_v10 = vld [vmem:[%s13276_s16 + $0x648] sm:$0xf]  ;;  %v470_v11 = vld [vmem:[%s13276_s16 + $0x64c] sm:$0xf] }
  0x89   : > { %467 = vst [vmem:[%s13272_s29 + $0x648] sm:$0xf] %v466_v9  ;;  %469 = vst [vmem:[%s13272_s29 + $0x650] sm:$0xf] %v468_v10  ;;  %v472_v12 = vld [vmem:[%s13276_s16 + $0x660] sm:$0xf] }
  0x8a   : > { %471 = vst [vmem:[%s13272_s29 + $0x658] sm:$0xf] %v470_v11  ;;  %v474_v13 = vld [vmem:[%s13276_s16 + $0x664] sm:$0xf]  ;;  %v476_v14 = vld [vmem:[%s13276_s16 + $0x668] sm:$0xf] }
  0x8b   : > { %473 = vst [vmem:[%s13272_s29 + $0x660] sm:$0xf] %v472_v12  ;;  %475 = vst [vmem:[%s13272_s29 + $0x668] sm:$0xf] %v474_v13  ;;  %v478_v15 = vld [vmem:[%s13276_s16 + $0x66c] sm:$0xf] }
  0x8c   : > { %477 = vst [vmem:[%s13272_s29 + $0x670] sm:$0xf] %v476_v14  ;;  %v480_v16 = vld [vmem:[%s13276_s16 + $0x680] sm:$0xf]  ;;  %v482_v17 = vld [vmem:[%s13276_s16 + $0x684] sm:$0xf] }
  0x8d   : > { %479 = vst [vmem:[%s13272_s29 + $0x678] sm:$0xf] %v478_v15  ;;  %481 = vst [vmem:[%s13272_s29 + $0x680] sm:$0xf] %v480_v16  ;;  %v484_v18 = vld [vmem:[%s13276_s16 + $0x688] sm:$0xf] }
  0x8e   : > { %483 = vst [vmem:[%s13272_s29 + $0x688] sm:$0xf] %v482_v17  ;;  %v486_v19 = vld [vmem:[%s13276_s16 + $0x68c] sm:$0xf]  ;;  %v488_v20 = vld [vmem:[%s13276_s16 + $0x6a0] sm:$0xf] }
  0x8f   : > { %485 = vst [vmem:[%s13272_s29 + $0x690] sm:$0xf] %v484_v18  ;;  %487 = vst [vmem:[%s13272_s29 + $0x698] sm:$0xf] %v486_v19  ;;  %v490_v21 = vld [vmem:[%s13276_s16 + $0x6a4] sm:$0xf] }
  0x90   : > { %489 = vst [vmem:[%s13272_s29 + $0x6a0] sm:$0xf] %v488_v20  ;;  %v492_v22 = vld [vmem:[%s13276_s16 + $0x6a8] sm:$0xf]  ;;  %v494_v23 = vld [vmem:[%s13276_s16 + $0x6ac] sm:$0xf] }
  0x91   : > { %491 = vst [vmem:[%s13272_s29 + $0x6a8] sm:$0xf] %v490_v21  ;;  %493 = vst [vmem:[%s13272_s29 + $0x6b0] sm:$0xf] %v492_v22  ;;  %v496_v24 = vld [vmem:[%s13276_s16 + $0x6c0] sm:$0xf] }
  0x92   : > { %495 = vst [vmem:[%s13272_s29 + $0x6b8] sm:$0xf] %v494_v23  ;;  %v498_v25 = vld [vmem:[%s13276_s16 + $0x6c4] sm:$0xf]  ;;  %v500_v26 = vld [vmem:[%s13276_s16 + $0x6c8] sm:$0xf] }
  0x93   : > { %497 = vst [vmem:[%s13272_s29 + $0x6c0] sm:$0xf] %v496_v24  ;;  %499 = vst [vmem:[%s13272_s29 + $0x6c8] sm:$0xf] %v498_v25  ;;  %v502_v27 = vld [vmem:[%s13276_s16 + $0x6cc] sm:$0xf] }
  0x94   : > { %501 = vst [vmem:[%s13272_s29 + $0x6d0] sm:$0xf] %v500_v26  ;;  %v504_v28 = vld [vmem:[%s13276_s16 + $0x6e0] sm:$0xf]  ;;  %v506_v29 = vld [vmem:[%s13276_s16 + $0x6e4] sm:$0xf] }
  0x95   : > { %503 = vst [vmem:[%s13272_s29 + $0x6d8] sm:$0xf] %v502_v27  ;;  %505 = vst [vmem:[%s13272_s29 + $0x6e0] sm:$0xf] %v504_v28  ;;  %v508_v30 = vld [vmem:[%s13276_s16 + $0x6e8] sm:$0xf] }
  0x96   : > { %507 = vst [vmem:[%s13272_s29 + $0x6e8] sm:$0xf] %v506_v29  ;;  %v510_v31 = vld [vmem:[%s13276_s16 + $0x6ec] sm:$0xf]  ;;  %v512_v32 = vld [vmem:[%s13276_s16 + $0x700] sm:$0xf] }
  0x97   : > { %509 = vst [vmem:[%s13272_s29 + $0x6f0] sm:$0xf] %v508_v30  ;;  %511 = vst [vmem:[%s13272_s29 + $0x6f8] sm:$0xf] %v510_v31  ;;  %v514_v33 = vld [vmem:[%s13276_s16 + $0x704] sm:$0xf] }
  0x98   : > { %513 = vst [vmem:[%s13272_s29 + $0x700] sm:$0xf] %v512_v32  ;;  %v516_v34 = vld [vmem:[%s13276_s16 + $0x708] sm:$0xf]  ;;  %v518_v35 = vld [vmem:[%s13276_s16 + $0x70c] sm:$0xf] }
  0x99   : > { %515 = vst [vmem:[%s13272_s29 + $0x708] sm:$0xf] %v514_v33  ;;  %517 = vst [vmem:[%s13272_s29 + $0x710] sm:$0xf] %v516_v34  ;;  %v520_v36 = vld [vmem:[%s13276_s16 + $0x720] sm:$0xf] }
  0x9a   : > { %519 = vst [vmem:[%s13272_s29 + $0x718] sm:$0xf] %v518_v35  ;;  %v522_v37 = vld [vmem:[%s13276_s16 + $0x724] sm:$0xf]  ;;  %v524_v38 = vld [vmem:[%s13276_s16 + $0x728] sm:$0xf] }
  0x9b   : > { %521 = vst [vmem:[%s13272_s29 + $0x720] sm:$0xf] %v520_v36  ;;  %523 = vst [vmem:[%s13272_s29 + $0x728] sm:$0xf] %v522_v37  ;;  %v526_v39 = vld [vmem:[%s13276_s16 + $0x72c] sm:$0xf] }
  0x9c   : > { %525 = vst [vmem:[%s13272_s29 + $0x730] sm:$0xf] %v524_v38  ;;  %v528_v40 = vld [vmem:[%s13276_s16 + $0x740] sm:$0xf]  ;;  %v530_v41 = vld [vmem:[%s13276_s16 + $0x744] sm:$0xf] }
  0x9d   : > { %527 = vst [vmem:[%s13272_s29 + $0x738] sm:$0xf] %v526_v39  ;;  %529 = vst [vmem:[%s13272_s29 + $0x740] sm:$0xf] %v528_v40  ;;  %v532_v42 = vld [vmem:[%s13276_s16 + $0x748] sm:$0xf] }
  0x9e   : > { %531 = vst [vmem:[%s13272_s29 + $0x748] sm:$0xf] %v530_v41  ;;  %v534_v43 = vld [vmem:[%s13276_s16 + $0x74c] sm:$0xf]  ;;  %v536_v44 = vld [vmem:[%s13276_s16 + $0x760] sm:$0xf] }
  0x9f   : > { %533 = vst [vmem:[%s13272_s29 + $0x750] sm:$0xf] %v532_v42  ;;  %535 = vst [vmem:[%s13272_s29 + $0x758] sm:$0xf] %v534_v43  ;;  %v538_v45 = vld [vmem:[%s13276_s16 + $0x764] sm:$0xf] }
  0xa0   : > { %537 = vst [vmem:[%s13272_s29 + $0x760] sm:$0xf] %v536_v44  ;;  %v540_v46 = vld [vmem:[%s13276_s16 + $0x768] sm:$0xf]  ;;  %v542_v47 = vld [vmem:[%s13276_s16 + $0x76c] sm:$0xf] }
  0xa1   : > { %539 = vst [vmem:[%s13272_s29 + $0x768] sm:$0xf] %v538_v45  ;;  %541 = vst [vmem:[%s13272_s29 + $0x770] sm:$0xf] %v540_v46  ;;  %v544_v48 = vld [vmem:[%s13276_s16 + $0x780] sm:$0xf] }
  0xa2   : > { %543 = vst [vmem:[%s13272_s29 + $0x778] sm:$0xf] %v542_v47  ;;  %v546_v49 = vld [vmem:[%s13276_s16 + $0x784] sm:$0xf]  ;;  %v548_v50 = vld [vmem:[%s13276_s16 + $0x788] sm:$0xf] }
  0xa3   : > { %545 = vst [vmem:[%s13272_s29 + $0x780] sm:$0xf] %v544_v48  ;;  %547 = vst [vmem:[%s13272_s29 + $0x788] sm:$0xf] %v546_v49  ;;  %v550_v51 = vld [vmem:[%s13276_s16 + $0x78c] sm:$0xf] }
  0xa4   : > { %549 = vst [vmem:[%s13272_s29 + $0x790] sm:$0xf] %v548_v50  ;;  %v552_v52 = vld [vmem:[%s13276_s16 + $0x7a0] sm:$0xf]  ;;  %v554_v53 = vld [vmem:[%s13276_s16 + $0x7a4] sm:$0xf] }
  0xa5   : > { %551 = vst [vmem:[%s13272_s29 + $0x798] sm:$0xf] %v550_v51  ;;  %553 = vst [vmem:[%s13272_s29 + $0x7a0] sm:$0xf] %v552_v52  ;;  %v556_v54 = vld [vmem:[%s13276_s16 + $0x7a8] sm:$0xf] }
  0xa6   : > { %555 = vst [vmem:[%s13272_s29 + $0x7a8] sm:$0xf] %v554_v53  ;;  %v558_v55 = vld [vmem:[%s13276_s16 + $0x7ac] sm:$0xf]  ;;  %v560_v56 = vld [vmem:[%s13276_s16 + $0x7c0] sm:$0xf] }
  0xa7   : > { %557 = vst [vmem:[%s13272_s29 + $0x7b0] sm:$0xf] %v556_v54  ;;  %559 = vst [vmem:[%s13272_s29 + $0x7b8] sm:$0xf] %v558_v55  ;;  %v562_v57 = vld [vmem:[%s13276_s16 + $0x7c4] sm:$0xf] }
  0xa8   : > { %561 = vst [vmem:[%s13272_s29 + $0x7c0] sm:$0xf] %v560_v56  ;;  %v564_v58 = vld [vmem:[%s13276_s16 + $0x7c8] sm:$0xf]  ;;  %v566_v59 = vld [vmem:[%s13276_s16 + $0x7cc] sm:$0xf] }
  0xa9   : > { %563 = vst [vmem:[%s13272_s29 + $0x7c8] sm:$0xf] %v562_v57  ;;  %565 = vst [vmem:[%s13272_s29 + $0x7d0] sm:$0xf] %v564_v58  ;;  %v568_v60 = vld [vmem:[%s13276_s16 + $0x7e0] sm:$0xf] }
  0xaa   : > { %567 = vst [vmem:[%s13272_s29 + $0x7d8] sm:$0xf] %v566_v59  ;;  %v570_v61 = vld [vmem:[%s13276_s16 + $0x7e4] sm:$0xf]  ;;  %v572_v62 = vld [vmem:[%s13276_s16 + $0x7e8] sm:$0xf] }
  0xab   : > { %569 = vst [vmem:[%s13272_s29 + $0x7e0] sm:$0xf] %v568_v60  ;;  %571 = vst [vmem:[%s13272_s29 + $0x7e8] sm:$0xf] %v570_v61  ;;  %v574_v63 = vld [vmem:[%s13276_s16 + $0x7ec] sm:$0xf] }
  0xac   : > { %573 = vst [vmem:[%s13272_s29 + $0x7f0] sm:$0xf] %v572_v62  ;;  %v576_v0 = vld [vmem:[%s13276_s16 + $0x800] sm:$0xf]  ;;  %v578_v1 = vld [vmem:[%s13276_s16 + $0x804] sm:$0xf] }
  0xad   : > { %575 = vst [vmem:[%s13272_s29 + $0x7f8] sm:$0xf] %v574_v63  ;;  %577 = vst [vmem:[%s13272_s29 + $0x800] sm:$0xf] %v576_v0  ;;  %v580_v2 = vld [vmem:[%s13276_s16 + $0x808] sm:$0xf] }
  0xae   : > { %579 = vst [vmem:[%s13272_s29 + $0x808] sm:$0xf] %v578_v1  ;;  %v582_v3 = vld [vmem:[%s13276_s16 + $0x80c] sm:$0xf]  ;;  %v584_v4 = vld [vmem:[%s13276_s16 + $0x820] sm:$0xf] }
  0xaf   : > { %581 = vst [vmem:[%s13272_s29 + $0x810] sm:$0xf] %v580_v2  ;;  %583 = vst [vmem:[%s13272_s29 + $0x818] sm:$0xf] %v582_v3  ;;  %v586_v5 = vld [vmem:[%s13276_s16 + $0x824] sm:$0xf] }
  0xb0   : > { %585 = vst [vmem:[%s13272_s29 + $0x820] sm:$0xf] %v584_v4  ;;  %v588_v6 = vld [vmem:[%s13276_s16 + $0x828] sm:$0xf]  ;;  %v590_v7 = vld [vmem:[%s13276_s16 + $0x82c] sm:$0xf] }
  0xb1   : > { %587 = vst [vmem:[%s13272_s29 + $0x828] sm:$0xf] %v586_v5  ;;  %589 = vst [vmem:[%s13272_s29 + $0x830] sm:$0xf] %v588_v6  ;;  %v592_v8 = vld [vmem:[%s13276_s16 + $0x840] sm:$0xf] }
  0xb2   : > { %591 = vst [vmem:[%s13272_s29 + $0x838] sm:$0xf] %v590_v7  ;;  %v594_v9 = vld [vmem:[%s13276_s16 + $0x844] sm:$0xf]  ;;  %v596_v10 = vld [vmem:[%s13276_s16 + $0x848] sm:$0xf] }
  0xb3   : > { %593 = vst [vmem:[%s13272_s29 + $0x840] sm:$0xf] %v592_v8  ;;  %595 = vst [vmem:[%s13272_s29 + $0x848] sm:$0xf] %v594_v9  ;;  %v598_v11 = vld [vmem:[%s13276_s16 + $0x84c] sm:$0xf] }
  0xb4   : > { %597 = vst [vmem:[%s13272_s29 + $0x850] sm:$0xf] %v596_v10  ;;  %v600_v12 = vld [vmem:[%s13276_s16 + $0x860] sm:$0xf]  ;;  %v602_v13 = vld [vmem:[%s13276_s16 + $0x864] sm:$0xf] }
  0xb5   : > { %599 = vst [vmem:[%s13272_s29 + $0x858] sm:$0xf] %v598_v11  ;;  %601 = vst [vmem:[%s13272_s29 + $0x860] sm:$0xf] %v600_v12  ;;  %v604_v14 = vld [vmem:[%s13276_s16 + $0x868] sm:$0xf] }
  0xb6   : > { %603 = vst [vmem:[%s13272_s29 + $0x868] sm:$0xf] %v602_v13  ;;  %v606_v15 = vld [vmem:[%s13276_s16 + $0x86c] sm:$0xf]  ;;  %v608_v16 = vld [vmem:[%s13276_s16 + $0x880] sm:$0xf] }
  0xb7   : > { %605 = vst [vmem:[%s13272_s29 + $0x870] sm:$0xf] %v604_v14  ;;  %607 = vst [vmem:[%s13272_s29 + $0x878] sm:$0xf] %v606_v15  ;;  %v610_v17 = vld [vmem:[%s13276_s16 + $0x884] sm:$0xf] }
  0xb8   : > { %609 = vst [vmem:[%s13272_s29 + $0x880] sm:$0xf] %v608_v16  ;;  %v612_v18 = vld [vmem:[%s13276_s16 + $0x888] sm:$0xf]  ;;  %v614_v19 = vld [vmem:[%s13276_s16 + $0x88c] sm:$0xf] }
  0xb9   : > { %611 = vst [vmem:[%s13272_s29 + $0x888] sm:$0xf] %v610_v17  ;;  %613 = vst [vmem:[%s13272_s29 + $0x890] sm:$0xf] %v612_v18  ;;  %v616_v20 = vld [vmem:[%s13276_s16 + $0x8a0] sm:$0xf] }
  0xba   : > { %615 = vst [vmem:[%s13272_s29 + $0x898] sm:$0xf] %v614_v19  ;;  %v618_v21 = vld [vmem:[%s13276_s16 + $0x8a4] sm:$0xf]  ;;  %v620_v22 = vld [vmem:[%s13276_s16 + $0x8a8] sm:$0xf] }
  0xbb   : > { %617 = vst [vmem:[%s13272_s29 + $0x8a0] sm:$0xf] %v616_v20  ;;  %619 = vst [vmem:[%s13272_s29 + $0x8a8] sm:$0xf] %v618_v21  ;;  %v622_v23 = vld [vmem:[%s13276_s16 + $0x8ac] sm:$0xf] }
  0xbc   : > { %621 = vst [vmem:[%s13272_s29 + $0x8b0] sm:$0xf] %v620_v22  ;;  %v624_v24 = vld [vmem:[%s13276_s16 + $0x8c0] sm:$0xf]  ;;  %v626_v25 = vld [vmem:[%s13276_s16 + $0x8c4] sm:$0xf] }
  0xbd   : > { %623 = vst [vmem:[%s13272_s29 + $0x8b8] sm:$0xf] %v622_v23  ;;  %625 = vst [vmem:[%s13272_s29 + $0x8c0] sm:$0xf] %v624_v24  ;;  %v628_v26 = vld [vmem:[%s13276_s16 + $0x8c8] sm:$0xf] }
  0xbe   : > { %627 = vst [vmem:[%s13272_s29 + $0x8c8] sm:$0xf] %v626_v25  ;;  %v630_v27 = vld [vmem:[%s13276_s16 + $0x8cc] sm:$0xf]  ;;  %v632_v28 = vld [vmem:[%s13276_s16 + $0x8e0] sm:$0xf] }
  0xbf   : > { %629 = vst [vmem:[%s13272_s29 + $0x8d0] sm:$0xf] %v628_v26  ;;  %631 = vst [vmem:[%s13272_s29 + $0x8d8] sm:$0xf] %v630_v27  ;;  %v634_v29 = vld [vmem:[%s13276_s16 + $0x8e4] sm:$0xf] }
  0xc0   : > { %633 = vst [vmem:[%s13272_s29 + $0x8e0] sm:$0xf] %v632_v28  ;;  %v636_v30 = vld [vmem:[%s13276_s16 + $0x8e8] sm:$0xf]  ;;  %v638_v31 = vld [vmem:[%s13276_s16 + $0x8ec] sm:$0xf] }
  0xc1   : > { %635 = vst [vmem:[%s13272_s29 + $0x8e8] sm:$0xf] %v634_v29  ;;  %637 = vst [vmem:[%s13272_s29 + $0x8f0] sm:$0xf] %v636_v30  ;;  %v640_v32 = vld [vmem:[%s13276_s16 + $0x900] sm:$0xf] }
  0xc2   : > { %639 = vst [vmem:[%s13272_s29 + $0x8f8] sm:$0xf] %v638_v31  ;;  %v642_v33 = vld [vmem:[%s13276_s16 + $0x904] sm:$0xf]  ;;  %v644_v34 = vld [vmem:[%s13276_s16 + $0x908] sm:$0xf] }
  0xc3   : > { %641 = vst [vmem:[%s13272_s29 + $0x900] sm:$0xf] %v640_v32  ;;  %643 = vst [vmem:[%s13272_s29 + $0x908] sm:$0xf] %v642_v33  ;;  %v646_v35 = vld [vmem:[%s13276_s16 + $0x90c] sm:$0xf] }
  0xc4   : > { %645 = vst [vmem:[%s13272_s29 + $0x910] sm:$0xf] %v644_v34  ;;  %v648_v36 = vld [vmem:[%s13276_s16 + $0x920] sm:$0xf]  ;;  %v650_v37 = vld [vmem:[%s13276_s16 + $0x924] sm:$0xf] }
  0xc5   : > { %647 = vst [vmem:[%s13272_s29 + $0x918] sm:$0xf] %v646_v35  ;;  %649 = vst [vmem:[%s13272_s29 + $0x920] sm:$0xf] %v648_v36  ;;  %v652_v38 = vld [vmem:[%s13276_s16 + $0x928] sm:$0xf] }
  0xc6   : > { %651 = vst [vmem:[%s13272_s29 + $0x928] sm:$0xf] %v650_v37  ;;  %v654_v39 = vld [vmem:[%s13276_s16 + $0x92c] sm:$0xf]  ;;  %v656_v40 = vld [vmem:[%s13276_s16 + $0x940] sm:$0xf] }
  0xc7   : > { %653 = vst [vmem:[%s13272_s29 + $0x930] sm:$0xf] %v652_v38  ;;  %655 = vst [vmem:[%s13272_s29 + $0x938] sm:$0xf] %v654_v39  ;;  %v658_v41 = vld [vmem:[%s13276_s16 + $0x944] sm:$0xf] }
  0xc8   : > { %657 = vst [vmem:[%s13272_s29 + $0x940] sm:$0xf] %v656_v40  ;;  %v660_v42 = vld [vmem:[%s13276_s16 + $0x948] sm:$0xf]  ;;  %v662_v43 = vld [vmem:[%s13276_s16 + $0x94c] sm:$0xf] }
  0xc9   : > { %659 = vst [vmem:[%s13272_s29 + $0x948] sm:$0xf] %v658_v41  ;;  %661 = vst [vmem:[%s13272_s29 + $0x950] sm:$0xf] %v660_v42  ;;  %v664_v44 = vld [vmem:[%s13276_s16 + $0x960] sm:$0xf] }
  0xca   : > { %663 = vst [vmem:[%s13272_s29 + $0x958] sm:$0xf] %v662_v43  ;;  %v666_v45 = vld [vmem:[%s13276_s16 + $0x964] sm:$0xf]  ;;  %v668_v46 = vld [vmem:[%s13276_s16 + $0x968] sm:$0xf] }
  0xcb   : > { %665 = vst [vmem:[%s13272_s29 + $0x960] sm:$0xf] %v664_v44  ;;  %667 = vst [vmem:[%s13272_s29 + $0x968] sm:$0xf] %v666_v45  ;;  %v670_v47 = vld [vmem:[%s13276_s16 + $0x96c] sm:$0xf] }
  0xcc   : > { %669 = vst [vmem:[%s13272_s29 + $0x970] sm:$0xf] %v668_v46  ;;  %v672_v48 = vld [vmem:[%s13276_s16 + $0x980] sm:$0xf]  ;;  %v674_v49 = vld [vmem:[%s13276_s16 + $0x984] sm:$0xf] }
  0xcd   : > { %671 = vst [vmem:[%s13272_s29 + $0x978] sm:$0xf] %v670_v47  ;;  %673 = vst [vmem:[%s13272_s29 + $0x980] sm:$0xf] %v672_v48  ;;  %v676_v50 = vld [vmem:[%s13276_s16 + $0x988] sm:$0xf] }
  0xce   : > { %675 = vst [vmem:[%s13272_s29 + $0x988] sm:$0xf] %v674_v49  ;;  %v678_v51 = vld [vmem:[%s13276_s16 + $0x98c] sm:$0xf]  ;;  %v680_v52 = vld [vmem:[%s13276_s16 + $0x9a0] sm:$0xf] }
  0xcf   : > { %677 = vst [vmem:[%s13272_s29 + $0x990] sm:$0xf] %v676_v50  ;;  %679 = vst [vmem:[%s13272_s29 + $0x998] sm:$0xf] %v678_v51  ;;  %v682_v53 = vld [vmem:[%s13276_s16 + $0x9a4] sm:$0xf] }
  0xd0   : > { %681 = vst [vmem:[%s13272_s29 + $0x9a0] sm:$0xf] %v680_v52  ;;  %v684_v54 = vld [vmem:[%s13276_s16 + $0x9a8] sm:$0xf]  ;;  %v686_v55 = vld [vmem:[%s13276_s16 + $0x9ac] sm:$0xf] }
  0xd1   : > { %683 = vst [vmem:[%s13272_s29 + $0x9a8] sm:$0xf] %v682_v53  ;;  %685 = vst [vmem:[%s13272_s29 + $0x9b0] sm:$0xf] %v684_v54  ;;  %v688_v56 = vld [vmem:[%s13276_s16 + $0x9c0] sm:$0xf] }
  0xd2   : > { %687 = vst [vmem:[%s13272_s29 + $0x9b8] sm:$0xf] %v686_v55  ;;  %v690_v57 = vld [vmem:[%s13276_s16 + $0x9c4] sm:$0xf]  ;;  %v692_v58 = vld [vmem:[%s13276_s16 + $0x9c8] sm:$0xf] }
  0xd3   : > { %689 = vst [vmem:[%s13272_s29 + $0x9c0] sm:$0xf] %v688_v56  ;;  %691 = vst [vmem:[%s13272_s29 + $0x9c8] sm:$0xf] %v690_v57  ;;  %v694_v59 = vld [vmem:[%s13276_s16 + $0x9cc] sm:$0xf] }
  0xd4   : > { %693 = vst [vmem:[%s13272_s29 + $0x9d0] sm:$0xf] %v692_v58  ;;  %v696_v60 = vld [vmem:[%s13276_s16 + $0x9e0] sm:$0xf]  ;;  %v698_v61 = vld [vmem:[%s13276_s16 + $0x9e4] sm:$0xf] }
  0xd5   : > { %695 = vst [vmem:[%s13272_s29 + $0x9d8] sm:$0xf] %v694_v59  ;;  %697 = vst [vmem:[%s13272_s29 + $0x9e0] sm:$0xf] %v696_v60  ;;  %v700_v62 = vld [vmem:[%s13276_s16 + $0x9e8] sm:$0xf] }
  0xd6   : > { %699 = vst [vmem:[%s13272_s29 + $0x9e8] sm:$0xf] %v698_v61  ;;  %v702_v63 = vld [vmem:[%s13276_s16 + $0x9ec] sm:$0xf]  ;;  %v704_v0 = vld [vmem:[%s13276_s16 + $0xa00] sm:$0xf] }
  0xd7   : > { %701 = vst [vmem:[%s13272_s29 + $0x9f0] sm:$0xf] %v700_v62  ;;  %703 = vst [vmem:[%s13272_s29 + $0x9f8] sm:$0xf] %v702_v63  ;;  %v706_v1 = vld [vmem:[%s13276_s16 + $0xa04] sm:$0xf] }
  0xd8   : > { %705 = vst [vmem:[%s13272_s29 + $0xa00] sm:$0xf] %v704_v0  ;;  %v708_v2 = vld [vmem:[%s13276_s16 + $0xa08] sm:$0xf]  ;;  %v710_v3 = vld [vmem:[%s13276_s16 + $0xa0c] sm:$0xf] }
  0xd9   : > { %707 = vst [vmem:[%s13272_s29 + $0xa08] sm:$0xf] %v706_v1  ;;  %709 = vst [vmem:[%s13272_s29 + $0xa10] sm:$0xf] %v708_v2  ;;  %v712_v4 = vld [vmem:[%s13276_s16 + $0xa20] sm:$0xf] }
  0xda   : > { %711 = vst [vmem:[%s13272_s29 + $0xa18] sm:$0xf] %v710_v3  ;;  %v714_v5 = vld [vmem:[%s13276_s16 + $0xa24] sm:$0xf]  ;;  %v716_v6 = vld [vmem:[%s13276_s16 + $0xa28] sm:$0xf] }
  0xdb   : > { %713 = vst [vmem:[%s13272_s29 + $0xa20] sm:$0xf] %v712_v4  ;;  %715 = vst [vmem:[%s13272_s29 + $0xa28] sm:$0xf] %v714_v5  ;;  %v718_v7 = vld [vmem:[%s13276_s16 + $0xa2c] sm:$0xf] }
  0xdc   : > { %717 = vst [vmem:[%s13272_s29 + $0xa30] sm:$0xf] %v716_v6  ;;  %v720_v8 = vld [vmem:[%s13276_s16 + $0xa40] sm:$0xf]  ;;  %v722_v9 = vld [vmem:[%s13276_s16 + $0xa44] sm:$0xf] }
  0xdd   : > { %719 = vst [vmem:[%s13272_s29 + $0xa38] sm:$0xf] %v718_v7  ;;  %721 = vst [vmem:[%s13272_s29 + $0xa40] sm:$0xf] %v720_v8  ;;  %v724_v10 = vld [vmem:[%s13276_s16 + $0xa48] sm:$0xf] }
  0xde   : > { %723 = vst [vmem:[%s13272_s29 + $0xa48] sm:$0xf] %v722_v9  ;;  %v726_v11 = vld [vmem:[%s13276_s16 + $0xa4c] sm:$0xf]  ;;  %v728_v12 = vld [vmem:[%s13276_s16 + $0xa60] sm:$0xf] }
  0xdf   : > { %725 = vst [vmem:[%s13272_s29 + $0xa50] sm:$0xf] %v724_v10  ;;  %727 = vst [vmem:[%s13272_s29 + $0xa58] sm:$0xf] %v726_v11  ;;  %v730_v13 = vld [vmem:[%s13276_s16 + $0xa64] sm:$0xf] }
  0xe0   : > { %729 = vst [vmem:[%s13272_s29 + $0xa60] sm:$0xf] %v728_v12  ;;  %v732_v14 = vld [vmem:[%s13276_s16 + $0xa68] sm:$0xf]  ;;  %v734_v15 = vld [vmem:[%s13276_s16 + $0xa6c] sm:$0xf] }
  0xe1   : > { %731 = vst [vmem:[%s13272_s29 + $0xa68] sm:$0xf] %v730_v13  ;;  %733 = vst [vmem:[%s13272_s29 + $0xa70] sm:$0xf] %v732_v14  ;;  %v736_v16 = vld [vmem:[%s13276_s16 + $0xa80] sm:$0xf] }
  0xe2   : > { %735 = vst [vmem:[%s13272_s29 + $0xa78] sm:$0xf] %v734_v15  ;;  %v738_v17 = vld [vmem:[%s13276_s16 + $0xa84] sm:$0xf]  ;;  %v740_v18 = vld [vmem:[%s13276_s16 + $0xa88] sm:$0xf] }
  0xe3   : > { %737 = vst [vmem:[%s13272_s29 + $0xa80] sm:$0xf] %v736_v16  ;;  %739 = vst [vmem:[%s13272_s29 + $0xa88] sm:$0xf] %v738_v17  ;;  %v742_v19 = vld [vmem:[%s13276_s16 + $0xa8c] sm:$0xf] }
  0xe4   : > { %741 = vst [vmem:[%s13272_s29 + $0xa90] sm:$0xf] %v740_v18  ;;  %v744_v20 = vld [vmem:[%s13276_s16 + $0xaa0] sm:$0xf]  ;;  %v746_v21 = vld [vmem:[%s13276_s16 + $0xaa4] sm:$0xf] }
  0xe5   : > { %743 = vst [vmem:[%s13272_s29 + $0xa98] sm:$0xf] %v742_v19  ;;  %745 = vst [vmem:[%s13272_s29 + $0xaa0] sm:$0xf] %v744_v20  ;;  %v748_v22 = vld [vmem:[%s13276_s16 + $0xaa8] sm:$0xf] }
  0xe6   : > { %747 = vst [vmem:[%s13272_s29 + $0xaa8] sm:$0xf] %v746_v21  ;;  %v750_v23 = vld [vmem:[%s13276_s16 + $0xaac] sm:$0xf]  ;;  %v752_v24 = vld [vmem:[%s13276_s16 + $0xac0] sm:$0xf] }
  0xe7   : > { %749 = vst [vmem:[%s13272_s29 + $0xab0] sm:$0xf] %v748_v22  ;;  %751 = vst [vmem:[%s13272_s29 + $0xab8] sm:$0xf] %v750_v23  ;;  %v754_v25 = vld [vmem:[%s13276_s16 + $0xac4] sm:$0xf] }
  0xe8   : > { %753 = vst [vmem:[%s13272_s29 + $0xac0] sm:$0xf] %v752_v24  ;;  %v756_v26 = vld [vmem:[%s13276_s16 + $0xac8] sm:$0xf]  ;;  %v758_v27 = vld [vmem:[%s13276_s16 + $0xacc] sm:$0xf] }
  0xe9   : > { %755 = vst [vmem:[%s13272_s29 + $0xac8] sm:$0xf] %v754_v25  ;;  %757 = vst [vmem:[%s13272_s29 + $0xad0] sm:$0xf] %v756_v26  ;;  %v760_v28 = vld [vmem:[%s13276_s16 + $0xae0] sm:$0xf] }
  0xea   : > { %759 = vst [vmem:[%s13272_s29 + $0xad8] sm:$0xf] %v758_v27  ;;  %v762_v29 = vld [vmem:[%s13276_s16 + $0xae4] sm:$0xf]  ;;  %v764_v30 = vld [vmem:[%s13276_s16 + $0xae8] sm:$0xf] }
  0xeb   : > { %761 = vst [vmem:[%s13272_s29 + $0xae0] sm:$0xf] %v760_v28  ;;  %763 = vst [vmem:[%s13272_s29 + $0xae8] sm:$0xf] %v762_v29  ;;  %v766_v31 = vld [vmem:[%s13276_s16 + $0xaec] sm:$0xf] }
  0xec   : > { %765 = vst [vmem:[%s13272_s29 + $0xaf0] sm:$0xf] %v764_v30  ;;  %v768_v32 = vld [vmem:[%s13276_s16 + $0xb00] sm:$0xf]  ;;  %v770_v33 = vld [vmem:[%s13276_s16 + $0xb04] sm:$0xf] }
  0xed   : > { %767 = vst [vmem:[%s13272_s29 + $0xaf8] sm:$0xf] %v766_v31  ;;  %769 = vst [vmem:[%s13272_s29 + $0xb00] sm:$0xf] %v768_v32  ;;  %v772_v34 = vld [vmem:[%s13276_s16 + $0xb08] sm:$0xf] }
  0xee   : > { %771 = vst [vmem:[%s13272_s29 + $0xb08] sm:$0xf] %v770_v33  ;;  %v774_v35 = vld [vmem:[%s13276_s16 + $0xb0c] sm:$0xf]  ;;  %v776_v36 = vld [vmem:[%s13276_s16 + $0xb20] sm:$0xf] }
  0xef   : > { %773 = vst [vmem:[%s13272_s29 + $0xb10] sm:$0xf] %v772_v34  ;;  %775 = vst [vmem:[%s13272_s29 + $0xb18] sm:$0xf] %v774_v35  ;;  %v778_v37 = vld [vmem:[%s13276_s16 + $0xb24] sm:$0xf] }
  0xf0   : > { %777 = vst [vmem:[%s13272_s29 + $0xb20] sm:$0xf] %v776_v36  ;;  %v780_v38 = vld [vmem:[%s13276_s16 + $0xb28] sm:$0xf]  ;;  %v782_v39 = vld [vmem:[%s13276_s16 + $0xb2c] sm:$0xf] }
  0xf1   : > { %779 = vst [vmem:[%s13272_s29 + $0xb28] sm:$0xf] %v778_v37  ;;  %781 = vst [vmem:[%s13272_s29 + $0xb30] sm:$0xf] %v780_v38  ;;  %v784_v40 = vld [vmem:[%s13276_s16 + $0xb40] sm:$0xf] }
  0xf2   : > { %783 = vst [vmem:[%s13272_s29 + $0xb38] sm:$0xf] %v782_v39  ;;  %v786_v41 = vld [vmem:[%s13276_s16 + $0xb44] sm:$0xf]  ;;  %v788_v42 = vld [vmem:[%s13276_s16 + $0xb48] sm:$0xf] }
  0xf3   : > { %785 = vst [vmem:[%s13272_s29 + $0xb40] sm:$0xf] %v784_v40  ;;  %787 = vst [vmem:[%s13272_s29 + $0xb48] sm:$0xf] %v786_v41  ;;  %v790_v43 = vld [vmem:[%s13276_s16 + $0xb4c] sm:$0xf] }
  0xf4   : > { %789 = vst [vmem:[%s13272_s29 + $0xb50] sm:$0xf] %v788_v42  ;;  %v792_v44 = vld [vmem:[%s13276_s16 + $0xb60] sm:$0xf]  ;;  %v794_v45 = vld [vmem:[%s13276_s16 + $0xb64] sm:$0xf] }
  0xf5   : > { %791 = vst [vmem:[%s13272_s29 + $0xb58] sm:$0xf] %v790_v43  ;;  %793 = vst [vmem:[%s13272_s29 + $0xb60] sm:$0xf] %v792_v44  ;;  %v796_v46 = vld [vmem:[%s13276_s16 + $0xb68] sm:$0xf] }
  0xf6   : > { %795 = vst [vmem:[%s13272_s29 + $0xb68] sm:$0xf] %v794_v45  ;;  %v798_v47 = vld [vmem:[%s13276_s16 + $0xb6c] sm:$0xf]  ;;  %v800_v48 = vld [vmem:[%s13276_s16 + $0xb80] sm:$0xf] }
  0xf7   : > { %797 = vst [vmem:[%s13272_s29 + $0xb70] sm:$0xf] %v796_v46  ;;  %799 = vst [vmem:[%s13272_s29 + $0xb78] sm:$0xf] %v798_v47  ;;  %v802_v49 = vld [vmem:[%s13276_s16 + $0xb84] sm:$0xf] }
  0xf8   : > { %801 = vst [vmem:[%s13272_s29 + $0xb80] sm:$0xf] %v800_v48  ;;  %v804_v50 = vld [vmem:[%s13276_s16 + $0xb88] sm:$0xf]  ;;  %v806_v51 = vld [vmem:[%s13276_s16 + $0xb8c] sm:$0xf] }
  0xf9   : > { %803 = vst [vmem:[%s13272_s29 + $0xb88] sm:$0xf] %v802_v49  ;;  %805 = vst [vmem:[%s13272_s29 + $0xb90] sm:$0xf] %v804_v50  ;;  %v808_v52 = vld [vmem:[%s13276_s16 + $0xba0] sm:$0xf] }
  0xfa   : > { %807 = vst [vmem:[%s13272_s29 + $0xb98] sm:$0xf] %v806_v51  ;;  %v810_v53 = vld [vmem:[%s13276_s16 + $0xba4] sm:$0xf]  ;;  %v812_v54 = vld [vmem:[%s13276_s16 + $0xba8] sm:$0xf] }
  0xfb   : > { %809 = vst [vmem:[%s13272_s29 + $0xba0] sm:$0xf] %v808_v52  ;;  %811 = vst [vmem:[%s13272_s29 + $0xba8] sm:$0xf] %v810_v53  ;;  %v814_v55 = vld [vmem:[%s13276_s16 + $0xbac] sm:$0xf] }
  0xfc   : > { %813 = vst [vmem:[%s13272_s29 + $0xbb0] sm:$0xf] %v812_v54  ;;  %v816_v56 = vld [vmem:[%s13276_s16 + $0xbc0] sm:$0xf]  ;;  %v818_v57 = vld [vmem:[%s13276_s16 + $0xbc4] sm:$0xf] }
  0xfd   : > { %815 = vst [vmem:[%s13272_s29 + $0xbb8] sm:$0xf] %v814_v55  ;;  %817 = vst [vmem:[%s13272_s29 + $0xbc0] sm:$0xf] %v816_v56  ;;  %v820_v58 = vld [vmem:[%s13276_s16 + $0xbc8] sm:$0xf] }
  0xfe   : > { %819 = vst [vmem:[%s13272_s29 + $0xbc8] sm:$0xf] %v818_v57  ;;  %v822_v59 = vld [vmem:[%s13276_s16 + $0xbcc] sm:$0xf]  ;;  %v824_v60 = vld [vmem:[%s13276_s16 + $0xbe0] sm:$0xf] }
  0xff   : > { %821 = vst [vmem:[%s13272_s29 + $0xbd0] sm:$0xf] %v820_v58  ;;  %823 = vst [vmem:[%s13272_s29 + $0xbd8] sm:$0xf] %v822_v59  ;;  %v826_v61 = vld [vmem:[%s13276_s16 + $0xbe4] sm:$0xf] }
 0x100   : > { %825 = vst [vmem:[%s13272_s29 + $0xbe0] sm:$0xf] %v824_v60  ;;  %v828_v62 = vld [vmem:[%s13276_s16 + $0xbe8] sm:$0xf]  ;;  %v830_v63 = vld [vmem:[%s13276_s16 + $0xbec] sm:$0xf] }
 0x101   : > { %827 = vst [vmem:[%s13272_s29 + $0xbe8] sm:$0xf] %v826_v61  ;;  %829 = vst [vmem:[%s13272_s29 + $0xbf0] sm:$0xf] %v828_v62  ;;  %v832_v0 = vld [vmem:[%s13276_s16 + $0xc00] sm:$0xf] }
 0x102   : > { %831 = vst [vmem:[%s13272_s29 + $0xbf8] sm:$0xf] %v830_v63  ;;  %v834_v1 = vld [vmem:[%s13276_s16 + $0xc04] sm:$0xf]  ;;  %v836_v2 = vld [vmem:[%s13276_s16 + $0xc08] sm:$0xf] }
 0x103   : > { %833 = vst [vmem:[%s13272_s29 + $0xc00] sm:$0xf] %v832_v0  ;;  %835 = vst [vmem:[%s13272_s29 + $0xc08] sm:$0xf] %v834_v1  ;;  %v838_v3 = vld [vmem:[%s13276_s16 + $0xc0c] sm:$0xf] }
 0x104   : > { %837 = vst [vmem:[%s13272_s29 + $0xc10] sm:$0xf] %v836_v2  ;;  %v840_v4 = vld [vmem:[%s13276_s16 + $0xc20] sm:$0xf]  ;;  %v842_v5 = vld [vmem:[%s13276_s16 + $0xc24] sm:$0xf] }
 0x105   : > { %839 = vst [vmem:[%s13272_s29 + $0xc18] sm:$0xf] %v838_v3  ;;  %841 = vst [vmem:[%s13272_s29 + $0xc20] sm:$0xf] %v840_v4  ;;  %v844_v6 = vld [vmem:[%s13276_s16 + $0xc28] sm:$0xf] }
 0x106   : > { %843 = vst [vmem:[%s13272_s29 + $0xc28] sm:$0xf] %v842_v5  ;;  %v846_v7 = vld [vmem:[%s13276_s16 + $0xc2c] sm:$0xf]  ;;  %v848_v8 = vld [vmem:[%s13276_s16 + $0xc40] sm:$0xf] }
 0x107   : > { %845 = vst [vmem:[%s13272_s29 + $0xc30] sm:$0xf] %v844_v6  ;;  %847 = vst [vmem:[%s13272_s29 + $0xc38] sm:$0xf] %v846_v7  ;;  %v850_v9 = vld [vmem:[%s13276_s16 + $0xc44] sm:$0xf] }
 0x108   : > { %849 = vst [vmem:[%s13272_s29 + $0xc40] sm:$0xf] %v848_v8  ;;  %v852_v10 = vld [vmem:[%s13276_s16 + $0xc48] sm:$0xf]  ;;  %v854_v11 = vld [vmem:[%s13276_s16 + $0xc4c] sm:$0xf] }
 0x109   : > { %851 = vst [vmem:[%s13272_s29 + $0xc48] sm:$0xf] %v850_v9  ;;  %853 = vst [vmem:[%s13272_s29 + $0xc50] sm:$0xf] %v852_v10  ;;  %v856_v12 = vld [vmem:[%s13276_s16 + $0xc60] sm:$0xf] }
 0x10a   : > { %855 = vst [vmem:[%s13272_s29 + $0xc58] sm:$0xf] %v854_v11  ;;  %v858_v13 = vld [vmem:[%s13276_s16 + $0xc64] sm:$0xf]  ;;  %v860_v14 = vld [vmem:[%s13276_s16 + $0xc68] sm:$0xf] }
 0x10b   : > { %857 = vst [vmem:[%s13272_s29 + $0xc60] sm:$0xf] %v856_v12  ;;  %859 = vst [vmem:[%s13272_s29 + $0xc68] sm:$0xf] %v858_v13  ;;  %v862_v15 = vld [vmem:[%s13276_s16 + $0xc6c] sm:$0xf] }
 0x10c   : > { %861 = vst [vmem:[%s13272_s29 + $0xc70] sm:$0xf] %v860_v14  ;;  %v864_v16 = vld [vmem:[%s13276_s16 + $0xc80] sm:$0xf]  ;;  %v866_v17 = vld [vmem:[%s13276_s16 + $0xc84] sm:$0xf] }
 0x10d   : > { %863 = vst [vmem:[%s13272_s29 + $0xc78] sm:$0xf] %v862_v15  ;;  %865 = vst [vmem:[%s13272_s29 + $0xc80] sm:$0xf] %v864_v16  ;;  %v868_v18 = vld [vmem:[%s13276_s16 + $0xc88] sm:$0xf] }
 0x10e   : > { %867 = vst [vmem:[%s13272_s29 + $0xc88] sm:$0xf] %v866_v17  ;;  %v870_v19 = vld [vmem:[%s13276_s16 + $0xc8c] sm:$0xf]  ;;  %v872_v20 = vld [vmem:[%s13276_s16 + $0xca0] sm:$0xf] }
 0x10f   : > { %869 = vst [vmem:[%s13272_s29 + $0xc90] sm:$0xf] %v868_v18  ;;  %871 = vst [vmem:[%s13272_s29 + $0xc98] sm:$0xf] %v870_v19  ;;  %v874_v21 = vld [vmem:[%s13276_s16 + $0xca4] sm:$0xf] }
 0x110   : > { %873 = vst [vmem:[%s13272_s29 + $0xca0] sm:$0xf] %v872_v20  ;;  %v876_v22 = vld [vmem:[%s13276_s16 + $0xca8] sm:$0xf]  ;;  %v878_v23 = vld [vmem:[%s13276_s16 + $0xcac] sm:$0xf] }
 0x111   : > { %875 = vst [vmem:[%s13272_s29 + $0xca8] sm:$0xf] %v874_v21  ;;  %877 = vst [vmem:[%s13272_s29 + $0xcb0] sm:$0xf] %v876_v22  ;;  %v880_v24 = vld [vmem:[%s13276_s16 + $0xcc0] sm:$0xf] }
 0x112   : > { %879 = vst [vmem:[%s13272_s29 + $0xcb8] sm:$0xf] %v878_v23  ;;  %v882_v25 = vld [vmem:[%s13276_s16 + $0xcc4] sm:$0xf]  ;;  %v884_v26 = vld [vmem:[%s13276_s16 + $0xcc8] sm:$0xf] }
 0x113   : > { %881 = vst [vmem:[%s13272_s29 + $0xcc0] sm:$0xf] %v880_v24  ;;  %883 = vst [vmem:[%s13272_s29 + $0xcc8] sm:$0xf] %v882_v25  ;;  %v886_v27 = vld [vmem:[%s13276_s16 + $0xccc] sm:$0xf] }
 0x114   : > { %885 = vst [vmem:[%s13272_s29 + $0xcd0] sm:$0xf] %v884_v26  ;;  %v888_v28 = vld [vmem:[%s13276_s16 + $0xce0] sm:$0xf]  ;;  %v890_v29 = vld [vmem:[%s13276_s16 + $0xce4] sm:$0xf] }
 0x115   : > { %887 = vst [vmem:[%s13272_s29 + $0xcd8] sm:$0xf] %v886_v27  ;;  %889 = vst [vmem:[%s13272_s29 + $0xce0] sm:$0xf] %v888_v28  ;;  %v892_v30 = vld [vmem:[%s13276_s16 + $0xce8] sm:$0xf] }
 0x116   : > { %891 = vst [vmem:[%s13272_s29 + $0xce8] sm:$0xf] %v890_v29  ;;  %v894_v31 = vld [vmem:[%s13276_s16 + $0xcec] sm:$0xf]  ;;  %v896_v32 = vld [vmem:[%s13276_s16 + $0xd00] sm:$0xf] }
 0x117   : > { %893 = vst [vmem:[%s13272_s29 + $0xcf0] sm:$0xf] %v892_v30  ;;  %895 = vst [vmem:[%s13272_s29 + $0xcf8] sm:$0xf] %v894_v31  ;;  %v898_v33 = vld [vmem:[%s13276_s16 + $0xd04] sm:$0xf] }
 0x118   : > { %897 = vst [vmem:[%s13272_s29 + $0xd00] sm:$0xf] %v896_v32  ;;  %v900_v34 = vld [vmem:[%s13276_s16 + $0xd08] sm:$0xf]  ;;  %v902_v35 = vld [vmem:[%s13276_s16 + $0xd0c] sm:$0xf] }
 0x119   : > { %899 = vst [vmem:[%s13272_s29 + $0xd08] sm:$0xf] %v898_v33  ;;  %901 = vst [vmem:[%s13272_s29 + $0xd10] sm:$0xf] %v900_v34  ;;  %v904_v36 = vld [vmem:[%s13276_s16 + $0xd20] sm:$0xf] }
 0x11a   : > { %903 = vst [vmem:[%s13272_s29 + $0xd18] sm:$0xf] %v902_v35  ;;  %v906_v37 = vld [vmem:[%s13276_s16 + $0xd24] sm:$0xf]  ;;  %v908_v38 = vld [vmem:[%s13276_s16 + $0xd28] sm:$0xf] }
 0x11b   : > { %905 = vst [vmem:[%s13272_s29 + $0xd20] sm:$0xf] %v904_v36  ;;  %907 = vst [vmem:[%s13272_s29 + $0xd28] sm:$0xf] %v906_v37  ;;  %v910_v39 = vld [vmem:[%s13276_s16 + $0xd2c] sm:$0xf] }
 0x11c   : > { %909 = vst [vmem:[%s13272_s29 + $0xd30] sm:$0xf] %v908_v38  ;;  %v912_v40 = vld [vmem:[%s13276_s16 + $0xd40] sm:$0xf]  ;;  %v914_v41 = vld [vmem:[%s13276_s16 + $0xd44] sm:$0xf] }
 0x11d   : > { %911 = vst [vmem:[%s13272_s29 + $0xd38] sm:$0xf] %v910_v39  ;;  %913 = vst [vmem:[%s13272_s29 + $0xd40] sm:$0xf] %v912_v40  ;;  %v916_v42 = vld [vmem:[%s13276_s16 + $0xd48] sm:$0xf] }
 0x11e   : > { %915 = vst [vmem:[%s13272_s29 + $0xd48] sm:$0xf] %v914_v41  ;;  %v918_v43 = vld [vmem:[%s13276_s16 + $0xd4c] sm:$0xf]  ;;  %v920_v44 = vld [vmem:[%s13276_s16 + $0xd60] sm:$0xf] }
 0x11f   : > { %917 = vst [vmem:[%s13272_s29 + $0xd50] sm:$0xf] %v916_v42  ;;  %919 = vst [vmem:[%s13272_s29 + $0xd58] sm:$0xf] %v918_v43  ;;  %v922_v45 = vld [vmem:[%s13276_s16 + $0xd64] sm:$0xf] }
 0x120   : > { %921 = vst [vmem:[%s13272_s29 + $0xd60] sm:$0xf] %v920_v44  ;;  %v924_v46 = vld [vmem:[%s13276_s16 + $0xd68] sm:$0xf]  ;;  %v926_v47 = vld [vmem:[%s13276_s16 + $0xd6c] sm:$0xf] }
 0x121   : > { %923 = vst [vmem:[%s13272_s29 + $0xd68] sm:$0xf] %v922_v45  ;;  %925 = vst [vmem:[%s13272_s29 + $0xd70] sm:$0xf] %v924_v46  ;;  %v928_v48 = vld [vmem:[%s13276_s16 + $0xd80] sm:$0xf] }
 0x122   : > { %927 = vst [vmem:[%s13272_s29 + $0xd78] sm:$0xf] %v926_v47  ;;  %v930_v49 = vld [vmem:[%s13276_s16 + $0xd84] sm:$0xf]  ;;  %v932_v50 = vld [vmem:[%s13276_s16 + $0xd88] sm:$0xf] }
 0x123   : > { %929 = vst [vmem:[%s13272_s29 + $0xd80] sm:$0xf] %v928_v48  ;;  %931 = vst [vmem:[%s13272_s29 + $0xd88] sm:$0xf] %v930_v49  ;;  %v934_v51 = vld [vmem:[%s13276_s16 + $0xd8c] sm:$0xf] }
 0x124   : > { %933 = vst [vmem:[%s13272_s29 + $0xd90] sm:$0xf] %v932_v50  ;;  %v936_v52 = vld [vmem:[%s13276_s16 + $0xda0] sm:$0xf]  ;;  %v938_v53 = vld [vmem:[%s13276_s16 + $0xda4] sm:$0xf] }
 0x125   : > { %935 = vst [vmem:[%s13272_s29 + $0xd98] sm:$0xf] %v934_v51  ;;  %937 = vst [vmem:[%s13272_s29 + $0xda0] sm:$0xf] %v936_v52  ;;  %v940_v54 = vld [vmem:[%s13276_s16 + $0xda8] sm:$0xf] }
 0x126   : > { %939 = vst [vmem:[%s13272_s29 + $0xda8] sm:$0xf] %v938_v53  ;;  %v942_v55 = vld [vmem:[%s13276_s16 + $0xdac] sm:$0xf]  ;;  %v944_v56 = vld [vmem:[%s13276_s16 + $0xdc0] sm:$0xf] }
 0x127   : > { %941 = vst [vmem:[%s13272_s29 + $0xdb0] sm:$0xf] %v940_v54  ;;  %943 = vst [vmem:[%s13272_s29 + $0xdb8] sm:$0xf] %v942_v55  ;;  %v946_v57 = vld [vmem:[%s13276_s16 + $0xdc4] sm:$0xf] }
 0x128   : > { %945 = vst [vmem:[%s13272_s29 + $0xdc0] sm:$0xf] %v944_v56  ;;  %v948_v58 = vld [vmem:[%s13276_s16 + $0xdc8] sm:$0xf]  ;;  %v950_v59 = vld [vmem:[%s13276_s16 + $0xdcc] sm:$0xf] }
 0x129   : > { %947 = vst [vmem:[%s13272_s29 + $0xdc8] sm:$0xf] %v946_v57  ;;  %949 = vst [vmem:[%s13272_s29 + $0xdd0] sm:$0xf] %v948_v58  ;;  %v952_v60 = vld [vmem:[%s13276_s16 + $0xde0] sm:$0xf] }
 0x12a   : > { %951 = vst [vmem:[%s13272_s29 + $0xdd8] sm:$0xf] %v950_v59  ;;  %v954_v61 = vld [vmem:[%s13276_s16 + $0xde4] sm:$0xf]  ;;  %v956_v62 = vld [vmem:[%s13276_s16 + $0xde8] sm:$0xf] }
 0x12b   : > { %953 = vst [vmem:[%s13272_s29 + $0xde0] sm:$0xf] %v952_v60  ;;  %955 = vst [vmem:[%s13272_s29 + $0xde8] sm:$0xf] %v954_v61  ;;  %v958_v63 = vld [vmem:[%s13276_s16 + $0xdec] sm:$0xf] }
 0x12c   : > { %957 = vst [vmem:[%s13272_s29 + $0xdf0] sm:$0xf] %v956_v62  ;;  %v960_v0 = vld [vmem:[%s13276_s16 + $0xe00] sm:$0xf]  ;;  %v962_v1 = vld [vmem:[%s13276_s16 + $0xe04] sm:$0xf] }
 0x12d   : > { %959 = vst [vmem:[%s13272_s29 + $0xdf8] sm:$0xf] %v958_v63  ;;  %961 = vst [vmem:[%s13272_s29 + $0xe00] sm:$0xf] %v960_v0  ;;  %v964_v2 = vld [vmem:[%s13276_s16 + $0xe08] sm:$0xf] }
 0x12e   : > { %963 = vst [vmem:[%s13272_s29 + $0xe08] sm:$0xf] %v962_v1  ;;  %v966_v3 = vld [vmem:[%s13276_s16 + $0xe0c] sm:$0xf]  ;;  %v968_v4 = vld [vmem:[%s13276_s16 + $0xe20] sm:$0xf] }
 0x12f   : > { %965 = vst [vmem:[%s13272_s29 + $0xe10] sm:$0xf] %v964_v2  ;;  %967 = vst [vmem:[%s13272_s29 + $0xe18] sm:$0xf] %v966_v3  ;;  %v970_v5 = vld [vmem:[%s13276_s16 + $0xe24] sm:$0xf] }
 0x130   : > { %969 = vst [vmem:[%s13272_s29 + $0xe20] sm:$0xf] %v968_v4  ;;  %v972_v6 = vld [vmem:[%s13276_s16 + $0xe28] sm:$0xf]  ;;  %v974_v7 = vld [vmem:[%s13276_s16 + $0xe2c] sm:$0xf] }
 0x131   : > { %971 = vst [vmem:[%s13272_s29 + $0xe28] sm:$0xf] %v970_v5  ;;  %973 = vst [vmem:[%s13272_s29 + $0xe30] sm:$0xf] %v972_v6  ;;  %v976_v8 = vld [vmem:[%s13276_s16 + $0xe40] sm:$0xf] }
 0x132   : > { %975 = vst [vmem:[%s13272_s29 + $0xe38] sm:$0xf] %v974_v7  ;;  %v978_v9 = vld [vmem:[%s13276_s16 + $0xe44] sm:$0xf]  ;;  %v980_v10 = vld [vmem:[%s13276_s16 + $0xe48] sm:$0xf] }
 0x133   : > { %977 = vst [vmem:[%s13272_s29 + $0xe40] sm:$0xf] %v976_v8  ;;  %979 = vst [vmem:[%s13272_s29 + $0xe48] sm:$0xf] %v978_v9  ;;  %v982_v11 = vld [vmem:[%s13276_s16 + $0xe4c] sm:$0xf] }
 0x134   : > { %981 = vst [vmem:[%s13272_s29 + $0xe50] sm:$0xf] %v980_v10  ;;  %v984_v12 = vld [vmem:[%s13276_s16 + $0xe60] sm:$0xf]  ;;  %v986_v13 = vld [vmem:[%s13276_s16 + $0xe64] sm:$0xf] }
 0x135   : > { %983 = vst [vmem:[%s13272_s29 + $0xe58] sm:$0xf] %v982_v11  ;;  %985 = vst [vmem:[%s13272_s29 + $0xe60] sm:$0xf] %v984_v12  ;;  %v988_v14 = vld [vmem:[%s13276_s16 + $0xe68] sm:$0xf] }
 0x136   : > { %987 = vst [vmem:[%s13272_s29 + $0xe68] sm:$0xf] %v986_v13  ;;  %v990_v15 = vld [vmem:[%s13276_s16 + $0xe6c] sm:$0xf]  ;;  %v992_v16 = vld [vmem:[%s13276_s16 + $0xe80] sm:$0xf] }
 0x137   : > { %989 = vst [vmem:[%s13272_s29 + $0xe70] sm:$0xf] %v988_v14  ;;  %991 = vst [vmem:[%s13272_s29 + $0xe78] sm:$0xf] %v990_v15  ;;  %v994_v17 = vld [vmem:[%s13276_s16 + $0xe84] sm:$0xf] }
 0x138   : > { %993 = vst [vmem:[%s13272_s29 + $0xe80] sm:$0xf] %v992_v16  ;;  %v996_v18 = vld [vmem:[%s13276_s16 + $0xe88] sm:$0xf]  ;;  %v998_v19 = vld [vmem:[%s13276_s16 + $0xe8c] sm:$0xf] }
 0x139   : > { %995 = vst [vmem:[%s13272_s29 + $0xe88] sm:$0xf] %v994_v17  ;;  %997 = vst [vmem:[%s13272_s29 + $0xe90] sm:$0xf] %v996_v18  ;;  %v1000_v20 = vld [vmem:[%s13276_s16 + $0xea0] sm:$0xf] }
 0x13a   : > { %999 = vst [vmem:[%s13272_s29 + $0xe98] sm:$0xf] %v998_v19  ;;  %v1002_v21 = vld [vmem:[%s13276_s16 + $0xea4] sm:$0xf]  ;;  %v1004_v22 = vld [vmem:[%s13276_s16 + $0xea8] sm:$0xf] }
 0x13b   : > { %1001 = vst [vmem:[%s13272_s29 + $0xea0] sm:$0xf] %v1000_v20  ;;  %1003 = vst [vmem:[%s13272_s29 + $0xea8] sm:$0xf] %v1002_v21  ;;  %v1006_v23 = vld [vmem:[%s13276_s16 + $0xeac] sm:$0xf] }
 0x13c   : > { %1005 = vst [vmem:[%s13272_s29 + $0xeb0] sm:$0xf] %v1004_v22  ;;  %v1008_v24 = vld [vmem:[%s13276_s16 + $0xec0] sm:$0xf]  ;;  %v1010_v25 = vld [vmem:[%s13276_s16 + $0xec4] sm:$0xf] }
 0x13d   : > { %1007 = vst [vmem:[%s13272_s29 + $0xeb8] sm:$0xf] %v1006_v23  ;;  %1009 = vst [vmem:[%s13272_s29 + $0xec0] sm:$0xf] %v1008_v24  ;;  %v1012_v26 = vld [vmem:[%s13276_s16 + $0xec8] sm:$0xf] }
 0x13e   : > { %1011 = vst [vmem:[%s13272_s29 + $0xec8] sm:$0xf] %v1010_v25  ;;  %v1014_v27 = vld [vmem:[%s13276_s16 + $0xecc] sm:$0xf]  ;;  %v1016_v28 = vld [vmem:[%s13276_s16 + $0xee0] sm:$0xf] }
 0x13f   : > { %1013 = vst [vmem:[%s13272_s29 + $0xed0] sm:$0xf] %v1012_v26  ;;  %1015 = vst [vmem:[%s13272_s29 + $0xed8] sm:$0xf] %v1014_v27  ;;  %v1018_v29 = vld [vmem:[%s13276_s16 + $0xee4] sm:$0xf] }
 0x140   : > { %1017 = vst [vmem:[%s13272_s29 + $0xee0] sm:$0xf] %v1016_v28  ;;  %v1020_v30 = vld [vmem:[%s13276_s16 + $0xee8] sm:$0xf]  ;;  %v1022_v31 = vld [vmem:[%s13276_s16 + $0xeec] sm:$0xf] }
 0x141   : > { %1019 = vst [vmem:[%s13272_s29 + $0xee8] sm:$0xf] %v1018_v29  ;;  %1021 = vst [vmem:[%s13272_s29 + $0xef0] sm:$0xf] %v1020_v30  ;;  %v1024_v32 = vld [vmem:[%s13276_s16 + $0xf00] sm:$0xf] }
 0x142   : > { %1023 = vst [vmem:[%s13272_s29 + $0xef8] sm:$0xf] %v1022_v31  ;;  %v1026_v33 = vld [vmem:[%s13276_s16 + $0xf04] sm:$0xf]  ;;  %v1028_v34 = vld [vmem:[%s13276_s16 + $0xf08] sm:$0xf] }
 0x143   : > { %1025 = vst [vmem:[%s13272_s29 + $0xf00] sm:$0xf] %v1024_v32  ;;  %1027 = vst [vmem:[%s13272_s29 + $0xf08] sm:$0xf] %v1026_v33  ;;  %v1030_v35 = vld [vmem:[%s13276_s16 + $0xf0c] sm:$0xf] }
 0x144   : > { %1029 = vst [vmem:[%s13272_s29 + $0xf10] sm:$0xf] %v1028_v34  ;;  %v1032_v36 = vld [vmem:[%s13276_s16 + $0xf20] sm:$0xf]  ;;  %v1034_v37 = vld [vmem:[%s13276_s16 + $0xf24] sm:$0xf] }
 0x145   : > { %1031 = vst [vmem:[%s13272_s29 + $0xf18] sm:$0xf] %v1030_v35  ;;  %1033 = vst [vmem:[%s13272_s29 + $0xf20] sm:$0xf] %v1032_v36  ;;  %v1036_v38 = vld [vmem:[%s13276_s16 + $0xf28] sm:$0xf] }
 0x146   : > { %1035 = vst [vmem:[%s13272_s29 + $0xf28] sm:$0xf] %v1034_v37  ;;  %v1038_v39 = vld [vmem:[%s13276_s16 + $0xf2c] sm:$0xf]  ;;  %v1040_v40 = vld [vmem:[%s13276_s16 + $0xf40] sm:$0xf] }
 0x147   : > { %1037 = vst [vmem:[%s13272_s29 + $0xf30] sm:$0xf] %v1036_v38  ;;  %1039 = vst [vmem:[%s13272_s29 + $0xf38] sm:$0xf] %v1038_v39  ;;  %v1042_v41 = vld [vmem:[%s13276_s16 + $0xf44] sm:$0xf] }
 0x148   : > { %1041 = vst [vmem:[%s13272_s29 + $0xf40] sm:$0xf] %v1040_v40  ;;  %v1044_v42 = vld [vmem:[%s13276_s16 + $0xf48] sm:$0xf]  ;;  %v1046_v43 = vld [vmem:[%s13276_s16 + $0xf4c] sm:$0xf] }
 0x149   : > { %1043 = vst [vmem:[%s13272_s29 + $0xf48] sm:$0xf] %v1042_v41  ;;  %1045 = vst [vmem:[%s13272_s29 + $0xf50] sm:$0xf] %v1044_v42  ;;  %v1048_v44 = vld [vmem:[%s13276_s16 + $0xf60] sm:$0xf] }
 0x14a   : > { %1047 = vst [vmem:[%s13272_s29 + $0xf58] sm:$0xf] %v1046_v43  ;;  %v1050_v45 = vld [vmem:[%s13276_s16 + $0xf64] sm:$0xf]  ;;  %v1052_v46 = vld [vmem:[%s13276_s16 + $0xf68] sm:$0xf] }
 0x14b   : > { %1049 = vst [vmem:[%s13272_s29 + $0xf60] sm:$0xf] %v1048_v44  ;;  %1051 = vst [vmem:[%s13272_s29 + $0xf68] sm:$0xf] %v1050_v45  ;;  %v1054_v47 = vld [vmem:[%s13276_s16 + $0xf6c] sm:$0xf] }
 0x14c   : > { %1053 = vst [vmem:[%s13272_s29 + $0xf70] sm:$0xf] %v1052_v46  ;;  %v1056_v48 = vld [vmem:[%s13276_s16 + $0xf80] sm:$0xf]  ;;  %v1058_v49 = vld [vmem:[%s13276_s16 + $0xf84] sm:$0xf] }
 0x14d   : > { %1055 = vst [vmem:[%s13272_s29 + $0xf78] sm:$0xf] %v1054_v47  ;;  %1057 = vst [vmem:[%s13272_s29 + $0xf80] sm:$0xf] %v1056_v48  ;;  %v1060_v50 = vld [vmem:[%s13276_s16 + $0xf88] sm:$0xf] }
 0x14e   : > { %1059 = vst [vmem:[%s13272_s29 + $0xf88] sm:$0xf] %v1058_v49  ;;  %v1062_v51 = vld [vmem:[%s13276_s16 + $0xf8c] sm:$0xf]  ;;  %v1064_v52 = vld [vmem:[%s13276_s16 + $0xfa0] sm:$0xf] }
 0x14f   : > { %1061 = vst [vmem:[%s13272_s29 + $0xf90] sm:$0xf] %v1060_v50  ;;  %1063 = vst [vmem:[%s13272_s29 + $0xf98] sm:$0xf] %v1062_v51  ;;  %v1066_v53 = vld [vmem:[%s13276_s16 + $0xfa4] sm:$0xf] }
 0x150   : > { %1065 = vst [vmem:[%s13272_s29 + $0xfa0] sm:$0xf] %v1064_v52  ;;  %v1068_v54 = vld [vmem:[%s13276_s16 + $0xfa8] sm:$0xf]  ;;  %v1070_v55 = vld [vmem:[%s13276_s16 + $0xfac] sm:$0xf] }
 0x151   : > { %1067 = vst [vmem:[%s13272_s29 + $0xfa8] sm:$0xf] %v1066_v53  ;;  %1069 = vst [vmem:[%s13272_s29 + $0xfb0] sm:$0xf] %v1068_v54  ;;  %v1072_v56 = vld [vmem:[%s13276_s16 + $0xfc0] sm:$0xf] }
 0x152   : > { %1071 = vst [vmem:[%s13272_s29 + $0xfb8] sm:$0xf] %v1070_v55  ;;  %v1074_v57 = vld [vmem:[%s13276_s16 + $0xfc4] sm:$0xf]  ;;  %v1076_v58 = vld [vmem:[%s13276_s16 + $0xfc8] sm:$0xf] }
 0x153   : > { %1073 = vst [vmem:[%s13272_s29 + $0xfc0] sm:$0xf] %v1072_v56  ;;  %1075 = vst [vmem:[%s13272_s29 + $0xfc8] sm:$0xf] %v1074_v57  ;;  %v1078_v59 = vld [vmem:[%s13276_s16 + $0xfcc] sm:$0xf] }
 0x154   : > { %1077 = vst [vmem:[%s13272_s29 + $0xfd0] sm:$0xf] %v1076_v58  ;;  %v1080_v60 = vld [vmem:[%s13276_s16 + $0xfe0] sm:$0xf]  ;;  %v1082_v61 = vld [vmem:[%s13276_s16 + $0xfe4] sm:$0xf] }
 0x155   : > { %1079 = vst [vmem:[%s13272_s29 + $0xfd8] sm:$0xf] %v1078_v59  ;;  %1081 = vst [vmem:[%s13272_s29 + $0xfe0] sm:$0xf] %v1080_v60  ;;  %v1084_v62 = vld [vmem:[%s13276_s16 + $0xfe8] sm:$0xf] }
 0x156   : > { %1083 = vst [vmem:[%s13272_s29 + $0xfe8] sm:$0xf] %v1082_v61  ;;  %v1086_v63 = vld [vmem:[%s13276_s16 + $0xfec] sm:$0xf]  ;;  %1085 = vst [vmem:[%s13272_s29 + $0xff0] sm:$0xf] %v1084_v62 }
 0x157   : > { %1087 = vst [vmem:[%s13272_s29 + $0xff8] sm:$0xf] %v1086_v63  ;;  %p1089_p0 = scmp.ge.s32.totalorder %s1088_s19, 2  ;;  %s60_s18 = sadd.s32 1, %s13284_s18  }
 0x158   : > { %p57_p1 = scmp.ge.s32.totalorder %s60_s18, 2  }
 0x159   : > { %s18734_s19 = smov (%p1089_p0, %s1088_s19), 0 }
 0x15a   : > { %s11592_s20 = sshll.u32 %s18734_s19, 4  ;;  %s11593_s21 = sshll.u32 %s18734_s19, 2 }
 0x15b   : > { %s1093_s16 = scalar_lea.vmem %s18232_s7, %s11592_s20   ;;  %s1094_s29 = scalar_lea.vmem [#allocation2], %s11593_s21  }
 0x15c   : > { %s18337_s17 = smov %s18734_s19  ;;  %59 = sbr.rel (!%p57_p1) target bundleno = 2 (0x2), region = 203 }
 0x163   :  { %4264 = vsyncadd [#allocation5], 65536  ;;  %v14425_v0 = vld [vmem:[%s18237_s12] sm:$0xff]  ;;  %v14430_v1 = vld [vmem:[%s18237_s12 + $0x8] sm:$0xff] }
 0x164   :  { %18338 = vst [vmem:[#allocation10_spill] sm:$0xff] %v14425_v0  ;;  %18339 = vst [vmem:[#allocation11_spill] sm:$0xff] %v14430_v1  ;;  %v14435_v2 = vld [vmem:[%s18237_s12 + $0x10] sm:$0xff]  ;;  %v14440_v3 = vld [vmem:[%s18237_s12 + $0x18] sm:$0xff] }
 0x165   :  { %18340 = vst [vmem:[#allocation12_spill] sm:$0xff] %v14435_v2  ;;  %18341 = vst [vmem:[#allocation13_spill] sm:$0xff] %v14440_v3  ;;  %v14445_v4 = vld [vmem:[%s18237_s12 + $0x20] sm:$0xff]  ;;  %v14450_v5 = vld [vmem:[%s18237_s12 + $0x28] sm:$0xff] }
 0x166   :  { %18342 = vst [vmem:[#allocation14_spill] sm:$0xff] %v14445_v4  ;;  %18343 = vst [vmem:[#allocation15_spill] sm:$0xff] %v14450_v5  ;;  %v14455_v6 = vld [vmem:[%s18237_s12 + $0x30] sm:$0xff]  ;;  %v14460_v7 = vld [vmem:[%s18237_s12 + $0x38] sm:$0xff] }
 0x167   :  { %18344 = vst [vmem:[#allocation16_spill] sm:$0xff] %v14455_v6  ;;  %18345 = vst [vmem:[#allocation17_spill] sm:$0xff] %v14460_v7  ;;  %v14465_v8 = vld [vmem:[%s18237_s12 + $0x40] sm:$0xff]  ;;  %v14470_v9 = vld [vmem:[%s18237_s12 + $0x48] sm:$0xff] }
 0x168   :  { %18346 = vst [vmem:[#allocation18_spill] sm:$0xff] %v14465_v8  ;;  %18347 = vst [vmem:[#allocation19_spill] sm:$0xff] %v14470_v9  ;;  %v14475_v10 = vld [vmem:[%s18237_s12 + $0x50] sm:$0xff]  ;;  %v14480_v11 = vld [vmem:[%s18237_s12 + $0x58] sm:$0xff] }
 0x169   :  { %18348 = vst [vmem:[#allocation20_spill] sm:$0xff] %v14475_v10  ;;  %18349 = vst [vmem:[#allocation21_spill] sm:$0xff] %v14480_v11  ;;  %v14485_v12 = vld [vmem:[%s18237_s12 + $0x60] sm:$0xff]  ;;  %v14490_v13 = vld [vmem:[%s18237_s12 + $0x68] sm:$0xff] }
 0x16a   :  { %18350 = vst [vmem:[#allocation22_spill] sm:$0xff] %v14485_v12  ;;  %18351 = vst [vmem:[#allocation23_spill] sm:$0xff] %v14490_v13  ;;  %v14495_v14 = vld [vmem:[%s18237_s12 + $0x70] sm:$0xff]  ;;  %v14500_v15 = vld [vmem:[%s18237_s12 + $0x78] sm:$0xff] }
 0x16b   :  { %18352 = vst [vmem:[#allocation24_spill] sm:$0xff] %v14495_v14  ;;  %18353 = vst [vmem:[#allocation25_spill] sm:$0xff] %v14500_v15  ;;  %v14505_v16 = vld [vmem:[%s18237_s12 + $0x80] sm:$0xff]  ;;  %v14510_v17 = vld [vmem:[%s18237_s12 + $0x88] sm:$0xff] }
 0x16c   :  { %18354 = vst [vmem:[#allocation26_spill] sm:$0xff] %v14505_v16  ;;  %18355 = vst [vmem:[#allocation27_spill] sm:$0xff] %v14510_v17  ;;  %v14515_v18 = vld [vmem:[%s18237_s12 + $0x90] sm:$0xff]  ;;  %v14520_v19 = vld [vmem:[%s18237_s12 + $0x98] sm:$0xff] }
 0x16d   :  { %18356 = vst [vmem:[#allocation28_spill] sm:$0xff] %v14515_v18  ;;  %18357 = vst [vmem:[#allocation29_spill] sm:$0xff] %v14520_v19  ;;  %v14525_v20 = vld [vmem:[%s18237_s12 + $0xa0] sm:$0xff]  ;;  %v14530_v21 = vld [vmem:[%s18237_s12 + $0xa8] sm:$0xff] }
 0x16e   :  { %18358 = vst [vmem:[#allocation30_spill] sm:$0xff] %v14525_v20  ;;  %18359 = vst [vmem:[#allocation31_spill] sm:$0xff] %v14530_v21  ;;  %v14535_v22 = vld [vmem:[%s18237_s12 + $0xb0] sm:$0xff]  ;;  %v14540_v23 = vld [vmem:[%s18237_s12 + $0xb8] sm:$0xff] }
 0x16f   :  { %18360 = vst [vmem:[#allocation32_spill] sm:$0xff] %v14535_v22  ;;  %18361 = vst [vmem:[#allocation33_spill] sm:$0xff] %v14540_v23  ;;  %v14545_v24 = vld [vmem:[%s18237_s12 + $0xc0] sm:$0xff]  ;;  %v14550_v25 = vld [vmem:[%s18237_s12 + $0xc8] sm:$0xff] }
 0x170   :  { %18362 = vst [vmem:[#allocation34_spill] sm:$0xff] %v14545_v24  ;;  %18363 = vst [vmem:[#allocation35_spill] sm:$0xff] %v14550_v25  ;;  %v14555_v26 = vld [vmem:[%s18237_s12 + $0xd0] sm:$0xff]  ;;  %v14560_v27 = vld [vmem:[%s18237_s12 + $0xd8] sm:$0xff] }
 0x171   :  { %18364 = vst [vmem:[#allocation36_spill] sm:$0xff] %v14555_v26  ;;  %18365 = vst [vmem:[#allocation37_spill] sm:$0xff] %v14560_v27  ;;  %v14565_v28 = vld [vmem:[%s18237_s12 + $0xe0] sm:$0xff]  ;;  %v14570_v29 = vld [vmem:[%s18237_s12 + $0xe8] sm:$0xff] }
 0x172   :  { %18366 = vst [vmem:[#allocation38_spill] sm:$0xff] %v14565_v28  ;;  %18367 = vst [vmem:[#allocation39_spill] sm:$0xff] %v14570_v29  ;;  %v14575_v30 = vld [vmem:[%s18237_s12 + $0xf0] sm:$0xff]  ;;  %v14580_v31 = vld [vmem:[%s18237_s12 + $0xf8] sm:$0xff] }
 0x173   :  { %18368 = vst [vmem:[#allocation40_spill] sm:$0xff] %v14575_v30  ;;  %18369 = vst [vmem:[#allocation41_spill] sm:$0xff] %v14580_v31  ;;  %v14585_v32 = vld [vmem:[%s18237_s12 + $0x100] sm:$0xff]  ;;  %v14590_v33 = vld [vmem:[%s18237_s12 + $0x108] sm:$0xff] }
 0x174   :  { %18370 = vst [vmem:[#allocation42_spill] sm:$0xff] %v14585_v32  ;;  %18371 = vst [vmem:[#allocation43_spill] sm:$0xff] %v14590_v33  ;;  %v14595_v34 = vld [vmem:[%s18237_s12 + $0x110] sm:$0xff]  ;;  %v14600_v35 = vld [vmem:[%s18237_s12 + $0x118] sm:$0xff] }
 0x175   :  { %18372 = vst [vmem:[#allocation44_spill] sm:$0xff] %v14595_v34  ;;  %18373 = vst [vmem:[#allocation45_spill] sm:$0xff] %v14600_v35  ;;  %v14605_v36 = vld [vmem:[%s18237_s12 + $0x120] sm:$0xff]  ;;  %v14610_v37 = vld [vmem:[%s18237_s12 + $0x128] sm:$0xff] }
 0x176   :  { %18374 = vst [vmem:[#allocation46_spill] sm:$0xff] %v14605_v36  ;;  %18375 = vst [vmem:[#allocation47_spill] sm:$0xff] %v14610_v37  ;;  %v14615_v38 = vld [vmem:[%s18237_s12 + $0x130] sm:$0xff]  ;;  %v14620_v39 = vld [vmem:[%s18237_s12 + $0x138] sm:$0xff] }
 0x177   :  { %18376 = vst [vmem:[#allocation48_spill] sm:$0xff] %v14615_v38  ;;  %18377 = vst [vmem:[#allocation49_spill] sm:$0xff] %v14620_v39  ;;  %v14625_v40 = vld [vmem:[%s18237_s12 + $0x140] sm:$0xff]  ;;  %v14630_v41 = vld [vmem:[%s18237_s12 + $0x148] sm:$0xff] }
 0x178   :  { %18378 = vst [vmem:[#allocation50_spill] sm:$0xff] %v14625_v40  ;;  %18379 = vst [vmem:[#allocation51_spill] sm:$0xff] %v14630_v41  ;;  %v14635_v42 = vld [vmem:[%s18237_s12 + $0x150] sm:$0xff]  ;;  %v14640_v43 = vld [vmem:[%s18237_s12 + $0x158] sm:$0xff] }
 0x179   :  { %18380 = vst [vmem:[#allocation52_spill] sm:$0xff] %v14635_v42  ;;  %18381 = vst [vmem:[#allocation53_spill] sm:$0xff] %v14640_v43  ;;  %v14645_v44 = vld [vmem:[%s18237_s12 + $0x160] sm:$0xff]  ;;  %v14650_v45 = vld [vmem:[%s18237_s12 + $0x168] sm:$0xff] }
 0x17a   :  { %18382 = vst [vmem:[#allocation54_spill] sm:$0xff] %v14645_v44  ;;  %18383 = vst [vmem:[#allocation55_spill] sm:$0xff] %v14650_v45  ;;  %v14655_v46 = vld [vmem:[%s18237_s12 + $0x170] sm:$0xff]  ;;  %v14660_v47 = vld [vmem:[%s18237_s12 + $0x178] sm:$0xff] }
 0x17b   :  { %18384 = vst [vmem:[#allocation56_spill] sm:$0xff] %v14655_v46  ;;  %18385 = vst [vmem:[#allocation57_spill] sm:$0xff] %v14660_v47  ;;  %v14665_v48 = vld [vmem:[%s18237_s12 + $0x180] sm:$0xff]  ;;  %v14670_v49 = vld [vmem:[%s18237_s12 + $0x188] sm:$0xff] }
 0x17c   :  { %18386 = vst [vmem:[#allocation58_spill] sm:$0xff] %v14665_v48  ;;  %18387 = vst [vmem:[#allocation59_spill] sm:$0xff] %v14670_v49  ;;  %v14675_v50 = vld [vmem:[%s18237_s12 + $0x190] sm:$0xff]  ;;  %v14680_v51 = vld [vmem:[%s18237_s12 + $0x198] sm:$0xff] }
 0x17d   :  { %18388 = vst [vmem:[#allocation60_spill] sm:$0xff] %v14675_v50  ;;  %18389 = vst [vmem:[#allocation61_spill] sm:$0xff] %v14680_v51  ;;  %v14685_v52 = vld [vmem:[%s18237_s12 + $0x1a0] sm:$0xff]  ;;  %v14690_v53 = vld [vmem:[%s18237_s12 + $0x1a8] sm:$0xff] }
 0x17e   :  { %18390 = vst [vmem:[#allocation62_spill] sm:$0xff] %v14685_v52  ;;  %18391 = vst [vmem:[#allocation63_spill] sm:$0xff] %v14690_v53  ;;  %v14695_v54 = vld [vmem:[%s18237_s12 + $0x1b0] sm:$0xff]  ;;  %v14700_v55 = vld [vmem:[%s18237_s12 + $0x1b8] sm:$0xff] }
 0x17f   :  { %18392 = vst [vmem:[#allocation64_spill] sm:$0xff] %v14695_v54  ;;  %18393 = vst [vmem:[#allocation65_spill] sm:$0xff] %v14700_v55  ;;  %v14705_v56 = vld [vmem:[%s18237_s12 + $0x1c0] sm:$0xff]  ;;  %v14710_v57 = vld [vmem:[%s18237_s12 + $0x1c8] sm:$0xff] }
 0x180   :  { %18394 = vst [vmem:[#allocation66_spill] sm:$0xff] %v14705_v56  ;;  %18395 = vst [vmem:[#allocation67_spill] sm:$0xff] %v14710_v57  ;;  %v14715_v58 = vld [vmem:[%s18237_s12 + $0x1d0] sm:$0xff]  ;;  %v14720_v59 = vld [vmem:[%s18237_s12 + $0x1d8] sm:$0xff] }
 0x181   :  { %18396 = vst [vmem:[#allocation68_spill] sm:$0xff] %v14715_v58  ;;  %18397 = vst [vmem:[#allocation69_spill] sm:$0xff] %v14720_v59  ;;  %v14725_v60 = vld [vmem:[%s18237_s12 + $0x1e0] sm:$0xff]  ;;  %v14730_v61 = vld [vmem:[%s18237_s12 + $0x1e8] sm:$0xff] }
 0x182   :  { %18398 = vst [vmem:[#allocation70_spill] sm:$0xff] %v14725_v60  ;;  %18399 = vst [vmem:[#allocation71_spill] sm:$0xff] %v14730_v61  ;;  %v14735_v62 = vld [vmem:[%s18237_s12 + $0x1f0] sm:$0xff]  ;;  %v14740_v63 = vld [vmem:[%s18237_s12 + $0x1f8] sm:$0xff] }
 0x183   :  { %18400 = vst [vmem:[#allocation72_spill] sm:$0xff] %v14735_v62  ;;  %18401 = vst [vmem:[#allocation73_spill] sm:$0xff] %v14740_v63  ;;  %v14745_v55 = vld [vmem:[%s18237_s12 + $0x200] sm:$0xff]  ;;  %v14750_v39 = vld [vmem:[%s18237_s12 + $0x208] sm:$0xff] }
 0x184   :  { %18402 = vst [vmem:[#allocation74_spill] sm:$0xff] %v14745_v55  ;;  %18403 = vst [vmem:[#allocation75_spill] sm:$0xff] %v14750_v39  ;;  %v14755_v47 = vld [vmem:[%s18237_s12 + $0x210] sm:$0xff]  ;;  %v14760_v54 = vld [vmem:[%s18237_s12 + $0x218] sm:$0xff] }
 0x185   :  { %18404 = vst [vmem:[#allocation76_spill] sm:$0xff] %v14755_v47  ;;  %18405 = vst [vmem:[#allocation77_spill] sm:$0xff] %v14760_v54  ;;  %v14765_v63 = vld [vmem:[%s18237_s12 + $0x220] sm:$0xff]  ;;  %v14770_v55 = vld [vmem:[%s18237_s12 + $0x228] sm:$0xff] }
 0x186   :  { %18406 = vst [vmem:[#allocation78_spill] sm:$0xff] %v14765_v63  ;;  %18407 = vst [vmem:[#allocation79_spill] sm:$0xff] %v14770_v55  ;;  %v14775_v39 = vld [vmem:[%s18237_s12 + $0x230] sm:$0xff]  ;;  %v14780_v47 = vld [vmem:[%s18237_s12 + $0x238] sm:$0xff] }
 0x187   :  { %18408 = vst [vmem:[#allocation80_spill] sm:$0xff] %v14775_v39  ;;  %18409 = vst [vmem:[#allocation81_spill] sm:$0xff] %v14780_v47  ;;  %v14785_v54 = vld [vmem:[%s18237_s12 + $0x240] sm:$0xff]  ;;  %v14790_v63 = vld [vmem:[%s18237_s12 + $0x248] sm:$0xff] }
 0x188   :  { %18410 = vst [vmem:[#allocation82_spill] sm:$0xff] %v14785_v54  ;;  %18411 = vst [vmem:[#allocation83_spill] sm:$0xff] %v14790_v63  ;;  %v14795_v55 = vld [vmem:[%s18237_s12 + $0x250] sm:$0xff]  ;;  %v14800_v39 = vld [vmem:[%s18237_s12 + $0x258] sm:$0xff] }
 0x189   :  { %18412 = vst [vmem:[#allocation84_spill] sm:$0xff] %v14795_v55  ;;  %18413 = vst [vmem:[#allocation85_spill] sm:$0xff] %v14800_v39  ;;  %v14805_v47 = vld [vmem:[%s18237_s12 + $0x260] sm:$0xff]  ;;  %v14810_v54 = vld [vmem:[%s18237_s12 + $0x268] sm:$0xff] }
 0x18a   :  { %18414 = vst [vmem:[#allocation86_spill] sm:$0xff] %v14805_v47  ;;  %18415 = vst [vmem:[#allocation87_spill] sm:$0xff] %v14810_v54  ;;  %v14815_v63 = vld [vmem:[%s18237_s12 + $0x270] sm:$0xff]  ;;  %v14820_v55 = vld [vmem:[%s18237_s12 + $0x278] sm:$0xff] }
 0x18b   :  { %18416 = vst [vmem:[#allocation88_spill] sm:$0xff] %v14815_v63  ;;  %18417 = vst [vmem:[#allocation89_spill] sm:$0xff] %v14820_v55  ;;  %v14825_v39 = vld [vmem:[%s18237_s12 + $0x280] sm:$0xff]  ;;  %v14830_v47 = vld [vmem:[%s18237_s12 + $0x288] sm:$0xff] }
 0x18c   :  { %18418 = vst [vmem:[#allocation90_spill] sm:$0xff] %v14825_v39  ;;  %18419 = vst [vmem:[#allocation91_spill] sm:$0xff] %v14830_v47  ;;  %v14835_v54 = vld [vmem:[%s18237_s12 + $0x290] sm:$0xff]  ;;  %v14840_v63 = vld [vmem:[%s18237_s12 + $0x298] sm:$0xff] }
 0x18d   :  { %18420 = vst [vmem:[#allocation92_spill] sm:$0xff] %v14835_v54  ;;  %18421 = vst [vmem:[#allocation93_spill] sm:$0xff] %v14840_v63  ;;  %v14845_v55 = vld [vmem:[%s18237_s12 + $0x2a0] sm:$0xff]  ;;  %v14850_v39 = vld [vmem:[%s18237_s12 + $0x2a8] sm:$0xff] }
 0x18e   :  { %18422 = vst [vmem:[#allocation94_spill] sm:$0xff] %v14845_v55  ;;  %18423 = vst [vmem:[#allocation95_spill] sm:$0xff] %v14850_v39  ;;  %v14855_v47 = vld [vmem:[%s18237_s12 + $0x2b0] sm:$0xff]  ;;  %v14860_v54 = vld [vmem:[%s18237_s12 + $0x2b8] sm:$0xff] }
 0x18f   :  { %18424 = vst [vmem:[#allocation96_spill] sm:$0xff] %v14855_v47  ;;  %18425 = vst [vmem:[#allocation97_spill] sm:$0xff] %v14860_v54  ;;  %v14865_v63 = vld [vmem:[%s18237_s12 + $0x2c0] sm:$0xff]  ;;  %v14870_v55 = vld [vmem:[%s18237_s12 + $0x2c8] sm:$0xff] }
 0x190   :  { %18426 = vst [vmem:[#allocation98_spill] sm:$0xff] %v14865_v63  ;;  %18427 = vst [vmem:[#allocation99_spill] sm:$0xff] %v14870_v55  ;;  %v14875_v39 = vld [vmem:[%s18237_s12 + $0x2d0] sm:$0xff]  ;;  %v14880_v47 = vld [vmem:[%s18237_s12 + $0x2d8] sm:$0xff] }
 0x191   :  { %18428 = vst [vmem:[#allocation100_spill] sm:$0xff] %v14875_v39  ;;  %18429 = vst [vmem:[#allocation101_spill] sm:$0xff] %v14880_v47  ;;  %v14885_v54 = vld [vmem:[%s18237_s12 + $0x2e0] sm:$0xff]  ;;  %v14890_v63 = vld [vmem:[%s18237_s12 + $0x2e8] sm:$0xff] }
 0x192   :  { %18430 = vst [vmem:[#allocation102_spill] sm:$0xff] %v14885_v54  ;;  %18431 = vst [vmem:[#allocation103_spill] sm:$0xff] %v14890_v63  ;;  %v14895_v55 = vld [vmem:[%s18237_s12 + $0x2f0] sm:$0xff]  ;;  %v14900_v39 = vld [vmem:[%s18237_s12 + $0x2f8] sm:$0xff] }
 0x193   :  { %18432 = vst [vmem:[#allocation104_spill] sm:$0xff] %v14895_v55  ;;  %18433 = vst [vmem:[#allocation105_spill] sm:$0xff] %v14900_v39  ;;  %v14905_v47 = vld [vmem:[%s18237_s12 + $0x300] sm:$0xff]  ;;  %v14910_v54 = vld [vmem:[%s18237_s12 + $0x308] sm:$0xff] }
 0x194   :  { %18434 = vst [vmem:[#allocation106_spill] sm:$0xff] %v14905_v47  ;;  %18435 = vst [vmem:[#allocation107_spill] sm:$0xff] %v14910_v54  ;;  %v14915_v63 = vld [vmem:[%s18237_s12 + $0x310] sm:$0xff]  ;;  %v14920_v55 = vld [vmem:[%s18237_s12 + $0x318] sm:$0xff] }
 0x195   :  { %18436 = vst [vmem:[#allocation108_spill] sm:$0xff] %v14915_v63  ;;  %18437 = vst [vmem:[#allocation109_spill] sm:$0xff] %v14920_v55  ;;  %v14925_v39 = vld [vmem:[%s18237_s12 + $0x320] sm:$0xff]  ;;  %v14930_v47 = vld [vmem:[%s18237_s12 + $0x328] sm:$0xff] }
 0x196   :  { %18438 = vst [vmem:[#allocation110_spill] sm:$0xff] %v14925_v39  ;;  %18439 = vst [vmem:[#allocation111_spill] sm:$0xff] %v14930_v47  ;;  %v14935_v54 = vld [vmem:[%s18237_s12 + $0x330] sm:$0xff]  ;;  %v14940_v63 = vld [vmem:[%s18237_s12 + $0x338] sm:$0xff] }
 0x197   :  { %18440 = vst [vmem:[#allocation112_spill] sm:$0xff] %v14935_v54  ;;  %18441 = vst [vmem:[#allocation113_spill] sm:$0xff] %v14940_v63  ;;  %v14945_v55 = vld [vmem:[%s18237_s12 + $0x340] sm:$0xff]  ;;  %v14950_v39 = vld [vmem:[%s18237_s12 + $0x348] sm:$0xff] }
 0x198   :  { %18442 = vst [vmem:[#allocation114_spill] sm:$0xff] %v14945_v55  ;;  %18443 = vst [vmem:[#allocation115_spill] sm:$0xff] %v14950_v39  ;;  %v14955_v47 = vld [vmem:[%s18237_s12 + $0x350] sm:$0xff]  ;;  %v14960_v54 = vld [vmem:[%s18237_s12 + $0x358] sm:$0xff] }
 0x199   :  { %18444 = vst [vmem:[#allocation116_spill] sm:$0xff] %v14955_v47  ;;  %18445 = vst [vmem:[#allocation117_spill] sm:$0xff] %v14960_v54  ;;  %v14965_v63 = vld [vmem:[%s18237_s12 + $0x360] sm:$0xff]  ;;  %v14970_v55 = vld [vmem:[%s18237_s12 + $0x368] sm:$0xff] }
 0x19a   :  { %18446 = vst [vmem:[#allocation118_spill] sm:$0xff] %v14965_v63  ;;  %18447 = vst [vmem:[#allocation119_spill] sm:$0xff] %v14970_v55  ;;  %v14975_v39 = vld [vmem:[%s18237_s12 + $0x370] sm:$0xff]  ;;  %v14980_v47 = vld [vmem:[%s18237_s12 + $0x378] sm:$0xff] }
 0x19b   :  { %18448 = vst [vmem:[#allocation120_spill] sm:$0xff] %v14975_v39  ;;  %18449 = vst [vmem:[#allocation121_spill] sm:$0xff] %v14980_v47  ;;  %v14985_v54 = vld [vmem:[%s18237_s12 + $0x380] sm:$0xff]  ;;  %v14990_v63 = vld [vmem:[%s18237_s12 + $0x388] sm:$0xff] }
 0x19c   :  { %18450 = vst [vmem:[#allocation122_spill] sm:$0xff] %v14985_v54  ;;  %18451 = vst [vmem:[#allocation123_spill] sm:$0xff] %v14990_v63  ;;  %v14995_v55 = vld [vmem:[%s18237_s12 + $0x390] sm:$0xff]  ;;  %v15000_v39 = vld [vmem:[%s18237_s12 + $0x398] sm:$0xff] }
 0x19d   :  { %18452 = vst [vmem:[#allocation124_spill] sm:$0xff] %v14995_v55  ;;  %18453 = vst [vmem:[#allocation125_spill] sm:$0xff] %v15000_v39  ;;  %v15005_v47 = vld [vmem:[%s18237_s12 + $0x3a0] sm:$0xff]  ;;  %v15010_v54 = vld [vmem:[%s18237_s12 + $0x3a8] sm:$0xff] }
 0x19e   :  { %18454 = vst [vmem:[#allocation126_spill] sm:$0xff] %v15005_v47  ;;  %18455 = vst [vmem:[#allocation127_spill] sm:$0xff] %v15010_v54  ;;  %v15015_v63 = vld [vmem:[%s18237_s12 + $0x3b0] sm:$0xff]  ;;  %v15020_v55 = vld [vmem:[%s18237_s12 + $0x3b8] sm:$0xff] }
 0x19f   :  { %18456 = vst [vmem:[#allocation128_spill] sm:$0xff] %v15015_v63  ;;  %18457 = vst [vmem:[#allocation129_spill] sm:$0xff] %v15020_v55  ;;  %v15025_v39 = vld [vmem:[%s18237_s12 + $0x3c0] sm:$0xff]  ;;  %v15030_v47 = vld [vmem:[%s18237_s12 + $0x3c8] sm:$0xff] }
 0x1a0   :  { %18458 = vst [vmem:[#allocation130_spill] sm:$0xff] %v15025_v39  ;;  %18459 = vst [vmem:[#allocation131_spill] sm:$0xff] %v15030_v47  ;;  %v15035_v54 = vld [vmem:[%s18237_s12 + $0x3d0] sm:$0xff]  ;;  %v15040_v63 = vld [vmem:[%s18237_s12 + $0x3d8] sm:$0xff] }
 0x1a1   :  { %18460 = vst [vmem:[#allocation132_spill] sm:$0xff] %v15035_v54  ;;  %18461 = vst [vmem:[#allocation133_spill] sm:$0xff] %v15040_v63  ;;  %v15045_v55 = vld [vmem:[%s18237_s12 + $0x3e0] sm:$0xff]  ;;  %v15050_v39 = vld [vmem:[%s18237_s12 + $0x3e8] sm:$0xff] }
 0x1a2   :  { %18462 = vst [vmem:[#allocation134_spill] sm:$0xff] %v15045_v55  ;;  %18463 = vst [vmem:[#allocation135_spill] sm:$0xff] %v15050_v39  ;;  %v15055_v47 = vld [vmem:[%s18237_s12 + $0x3f0] sm:$0xff]  ;;  %v15060_v54 = vld [vmem:[%s18237_s12 + $0x3f8] sm:$0xff] }
 0x1a3   :  { %18464 = vst [vmem:[#allocation136_spill] sm:$0xff] %v15055_v47  ;;  %18465 = vst [vmem:[#allocation137_spill] sm:$0xff] %v15060_v54 }
 0x1a4   :  { %4561 = vsyncadd [#allocation5 + $0x1], 16384  ;;  %v4570_v55 = vld [vmem:[%s18225_s0] sm:$0xff]  ;;  %v4571_v63 = vld [vmem:[%s18225_s0 + $0x8] sm:$0xff]  ;;  %vm4586_vm0 = vcmask 523264  }
 0x1a5   :  { %v15068_v39 = vpack.c.bf16 %v4571_v63, %v4570_v55  ;;  %v4572_v47 = vld [vmem:[%s18225_s0 + $0x10] sm:$0xff]  ;;  %v4573_v38 = vld [vmem:[%s18225_s0 + $0x18] sm:$0xff]  ;;  %v4574_v62 = vld [vmem:[%s18225_s0 + $0x20] sm:$0xff] }
 0x1a6   :  { %v15076_v54 = vpack.c.bf16 %v4573_v38, %v4572_v47  ;;  %v4575_v55 = vld [vmem:[%s18225_s0 + $0x28] sm:$0xff]  ;;  %v15088_v63 = vld [vmem:[%s18226_s1] sm:$0xff]  ;;  %v4576_v47 = vld [vmem:[%s18225_s0 + $0x30] sm:$0xff] }
 0x1a7   :  { %12298 = vmatprep.subr.bf16.mxu0 %v15068_v39  ;;  %18466 = vst [vmem:[#allocation138_spill] sm:$0xff] %v15088_v63  ;;  %12229 = vmatprep.mubr.msk.f32.mxu0 %vm4586_vm0, %v15088_v63  ;;  %v15094_v38 = vpack.c.bf16 %v4575_v55, %v4574_v62  ;;  %v4577_v46 = vld [vmem:[%s18225_s0 + $0x38] sm:$0xff]  ;;  %v15113_v62 = vld [vmem:[%s18226_s1 + $0x8] sm:$0xff]  ;;  %v15118_v55 = vld [vmem:[%s18226_s1 + $0x10] sm:$0xff] }
 0x1a8   :  { %12300 = vmatpush3.bf16.msra.mxu0 %v15068_v39  ;;  %12257 = vmatprep.mubr.msk.f32.mxu1 %vm4586_vm0, %v15088_v63  ;;  %v15106_v53 = vpack.c.bf16 %v4577_v46, %v4576_v47  ;;  %18467 = vst [vmem:[#allocation139_spill] sm:$0xff] %v15113_v62  ;;  %18468 = vst [vmem:[#allocation140_spill] sm:$0xff] %v15118_v55  ;;  %v15124_v46 = vld [vmem:[%s18226_s1 + $0x18] sm:$0xff]  ;;  %v15131_v47 = vld [vmem:[%s18226_s1 + $0x20] sm:$0xff] }
 0x1a9   :  { %12302 = vmatprep.subr.bf16.mxu0 %v15076_v54  ;;  %18469 = vst [vmem:[#allocation141_spill] sm:$0xff] %v15124_v46  ;;  %18470 = vst [vmem:[#allocation142_spill] sm:$0xff] %v15131_v47  ;;  %v15138_v37 = vld [vmem:[%s18226_s1 + $0x28] sm:$0xff]  ;;  %v15145_v61 = vld [vmem:[%s18226_s1 + $0x30] sm:$0xff] }
 0x1aa   :  { %18471 = vst [vmem:[#allocation143_spill] sm:$0xff] %v15138_v37  ;;  %18472 = vst [vmem:[#allocation144_spill] sm:$0xff] %v15145_v61  ;;  %v15152_v45 = vld [vmem:[%s18226_s1 + $0x38] sm:$0xff] }
 0x1ab   :  { %18473 = vst [vmem:[#allocation145_spill] sm:$0xff] %v15152_v45 }
 0x1ac   :  { %12304 = vmatpush3.bf16.msra.mxu0 %v15076_v54 }
 0x1ad   :  { %12306 = vmatprep.subr.bf16.mxu0 %v15094_v38 }
 0x1b0   :  { %12308 = vmatpush3.bf16.msra.mxu0 %v15094_v38 }
 0x1b1   :  { %12310 = vmatprep.subr.bf16.mxu0 %v15106_v53 }
 0x1b4   :  { %12312 = vmatpush3.bf16.msra.mxu0 %v15106_v53 }
 0x1b7   :  { %12230 = vmatmul.mubr.msk.f32.vlgmr.msra.gmra.mrb[0].mxu0 %vm4586_vm0, %v15113_v62 }
 0x1b8   :  { %12232 = vmatprep.mubr.msk.f32.mxu0 %vm4586_vm0, %v15118_v55 }
 0x1bb   :  { %12233 = vmatmul.mubr.msk.f32.gmra.mrb[2].mxu0 %vm4586_vm0, %v15124_v46 }
 0x1bc   :  { %12235 = vmatprep.mubr.msk.f32.mxu0 %vm4586_vm0, %v15131_v47 }
 0x1bf   :  { %12236 = vmatmul.mubr.msk.f32.gmra.mrb[4].mxu0 %vm4586_vm0, %v15138_v37 }
 0x1c0   :  { %12238 = vmatprep.mubr.msk.f32.mxu0 %vm4586_vm0, %v15145_v61 }
 0x1c3   :  { %12239 = vmatmul.mubr.msk.f32.gmra.mrb[6].mxu0 %vm4586_vm0, %v15152_v45 }
 0x1c4   :  { %12285 = vmatprep.mubr.msk.f32.mxu0 %vm4586_vm0, %v15088_v63 }
 0x28a   :  { %v12231_v52 = vpop.f32.mrb[0].mxu0 }
 0x28b   :  { %v4677_v36 = vpop.f32.mrb[1].mxu0 }
 0x28c   :  { %v15162_v60 = vpack.c.bf16 %v12231_v52, %v4677_v36 }
 0x28e   :  { %v12234_v44 = vpop.f32.mrb[2].mxu0  ;;  %12314 = vmatprep.subr.bf16.mxu1 %v15162_v60 }
 0x28f   :  { %v4687_v51 = vpop.f32.mrb[3].mxu0  ;;  %12316 = vmatpush3.bf16.msra.mxu1 %v15162_v60 }
 0x290   :  { %v15166_v35 = vpack.c.bf16 %v12234_v44, %v4687_v51  ;;  %v12908_v44 = vld [vmem:[%s18227_s2 + $0x4] ss:$16 sps:$4 sm:$0xff]  }
 0x291   :  { %v12911_v51 = vld [vmem:[%s18227_s2 + $0x24] ss:$16 sps:$4 sm:$0xff]  }
 0x292   :  { %v12237_v59 = vpop.f32.mrb[4].mxu0  ;;  %12318 = vmatprep.subr.bf16.mxu1 %v15166_v35 }
 0x293   :  { %v4697_v43 = vpop.f32.mrb[5].mxu0  ;;  %12320 = vmatpush3.bf16.msra.mxu1 %v15166_v35 }
 0x294   :  { %v15170_v50 = vpack.c.bf16 %v12237_v59, %v4697_v43  ;;  %v12906_v43 = vld [vmem:[%s18227_s2] ss:$16 sps:$4 sm:$0xff]   ;;  %v12914_v59 = vld [vmem:[%s18227_s2 + $0x44] ss:$16 sps:$4 sm:$0xff]  }
 0x296   :  { %v12240_v34 = vpop.f32.mrb[6].mxu0  ;;  %12322 = vmatprep.subr.bf16.mxu1 %v15170_v50 }
 0x297   :  { %v4707_v36 = vpop.f32.mrb[7].mxu0  ;;  %12324 = vmatpush3.bf16.msra.mxu1 %v15170_v50 }
 0x298   :  { %v15174_v52 = vpack.c.bf16 %v12240_v34, %v4707_v36  ;;  %v12909_v34 = vld [vmem:[%s18227_s2 + $0x20] ss:$16 sps:$4 sm:$0xff]  }
 0x299   :  { %v12912_v36 = vld [vmem:[%s18227_s2 + $0x40] ss:$16 sps:$4 sm:$0xff]  }
 0x29a   :  { %12326 = vmatprep.subr.bf16.mxu1 %v15174_v52 }
 0x29b   :  { %12328 = vmatpush3.bf16.msra.mxu1 %v15174_v52 }
 0x29c   :  { %5756 = vmatprep.subr.bf16.mxu1 %v12908_v44  ;;  %v12917_v44 = vld [vmem:[%s18227_s2 + $0x64] ss:$16 sps:$4 sm:$0xff]  }
 0x29e   :  { %12258 = vmatmul.mubr.msk.f32.vlgmr.msra.gmra.mrb[0].mxu1 %vm4586_vm0, %v15113_v62 }
 0x29f   :  { %5757 = vmatpush1.bf16.msra.mxu1 %v12906_v43  ;;  %12260 = vmatprep.mubr.msk.f32.mxu1 %vm4586_vm0, %v15118_v55  ;;  %v12915_v43 = vld [vmem:[%s18227_s2 + $0x60] ss:$16 sps:$4 sm:$0xff]  }
 0x2a0   :  { %5758 = vmatprep.subr.bf16.mxu1 %v12911_v51  ;;  %v12920_v51 = vld [vmem:[%s18227_s2 + $0x84] ss:$16 sps:$4 sm:$0xff]  }
 0x2a2   :  { %12261 = vmatmul.mubr.msk.f32.gmra.mrb[2].mxu1 %vm4586_vm0, %v15124_v46 }
 0x2a3   :  { %5759 = vmatpush1.bf16.msra.mxu1 %v12909_v34  ;;  %12263 = vmatprep.mubr.msk.f32.mxu1 %vm4586_vm0, %v15131_v47  ;;  %v12918_v34 = vld [vmem:[%s18227_s2 + $0x80] ss:$16 sps:$4 sm:$0xff]  }
 0x2a4   :  { %5760 = vmatprep.subr.bf16.mxu1 %v12914_v59  ;;  %v12923_v59 = vld [vmem:[%s18227_s2 + $0xa4] ss:$16 sps:$4 sm:$0xff]  }
 0x2a6   :  { %12264 = vmatmul.mubr.msk.f32.gmra.mrb[4].mxu1 %vm4586_vm0, %v15138_v37 }
 0x2a7   :  { %5761 = vmatpush1.bf16.msra.mxu1 %v12912_v36  ;;  %12266 = vmatprep.mubr.msk.f32.mxu1 %vm4586_vm0, %v15145_v61  ;;  %v12921_v36 = vld [vmem:[%s18227_s2 + $0xa0] ss:$16 sps:$4 sm:$0xff]  }
 0x2a8   :  { %5762 = vmatprep.subr.bf16.mxu1 %v12917_v44  ;;  %v12926_v44 = vld [vmem:[%s18227_s2 + $0xc4] ss:$16 sps:$4 sm:$0xff]  }
 0x2aa   :  { %12267 = vmatmul.mubr.msk.f32.gmra.mrb[6].mxu1 %vm4586_vm0, %v15152_v45 }
 0x2ab   :  { %5763 = vmatpush1.bf16.msra.mxu1 %v12915_v43  ;;  %5788 = vmatprep.mubr.bf16.mxu1 %v15162_v60  ;;  %v12924_v43 = vld [vmem:[%s18227_s2 + $0xc0] ss:$16 sps:$4 sm:$0xff]  }
 0x2ac   :  { %5764 = vmatprep.subr.bf16.mxu1 %v12920_v51  ;;  %v12929_v51 = vld [vmem:[%s18227_s2 + $0xe4] ss:$16 sps:$4 sm:$0xff]  }
 0x2af   :  { %5765 = vmatpush1.bf16.msra.mxu1 %v12918_v34  ;;  %v12927_v34 = vld [vmem:[%s18227_s2 + $0xe0] ss:$16 sps:$4 sm:$0xff]  }
 0x2b0   :  { %5766 = vmatprep.subr.bf16.mxu1 %v12923_v59  ;;  %v12932_v59 = vld [vmem:[%s18227_s2 + $0x104] ss:$16 sps:$4 sm:$0xff]  }
 0x2b3   :  { %5767 = vmatpush1.bf16.msra.mxu1 %v12921_v36  ;;  %v12930_v36 = vld [vmem:[%s18227_s2 + $0x100] ss:$16 sps:$4 sm:$0xff]  }
 0x2b4   :  { %5768 = vmatprep.subr.bf16.mxu1 %v12926_v44  ;;  %v12935_v44 = vld [vmem:[%s18227_s2 + $0x124] ss:$16 sps:$4 sm:$0xff]  }
 0x2b7   :  { %5769 = vmatpush1.bf16.msra.mxu1 %v12924_v43  ;;  %v12933_v43 = vld [vmem:[%s18227_s2 + $0x120] ss:$16 sps:$4 sm:$0xff]  }
 0x2b8   :  { %5770 = vmatprep.subr.bf16.mxu1 %v12929_v51  ;;  %v12938_v51 = vld [vmem:[%s18227_s2 + $0x144] ss:$16 sps:$4 sm:$0xff]  }
 0x2bb   :  { %5771 = vmatpush1.bf16.msra.mxu1 %v12927_v34  ;;  %v12936_v34 = vld [vmem:[%s18227_s2 + $0x140] ss:$16 sps:$4 sm:$0xff]  }
 0x2bc   :  { %5772 = vmatprep.subr.bf16.mxu1 %v12932_v59  ;;  %v12941_v59 = vld [vmem:[%s18227_s2 + $0x164] ss:$16 sps:$4 sm:$0xff]  }
 0x2bf   :  { %5773 = vmatpush1.bf16.msra.mxu1 %v12930_v36  ;;  %v12939_v36 = vld [vmem:[%s18227_s2 + $0x160] ss:$16 sps:$4 sm:$0xff]  }
 0x2c0   :  { %5774 = vmatprep.subr.bf16.mxu1 %v12935_v44  ;;  %v12944_v44 = vld [vmem:[%s18227_s2 + $0x184] ss:$16 sps:$4 sm:$0xff]  }
 0x2c3   :  { %5775 = vmatpush1.bf16.msra.mxu1 %v12933_v43  ;;  %v12942_v43 = vld [vmem:[%s18227_s2 + $0x180] ss:$16 sps:$4 sm:$0xff]  }
 0x2c4   :  { %5776 = vmatprep.subr.bf16.mxu1 %v12938_v51  ;;  %v12947_v51 = vld [vmem:[%s18227_s2 + $0x1a4] ss:$16 sps:$4 sm:$0xff]  }
 0x2c7   :  { %5777 = vmatpush1.bf16.msra.mxu1 %v12936_v34  ;;  %v12945_v34 = vld [vmem:[%s18227_s2 + $0x1a0] ss:$16 sps:$4 sm:$0xff]  }
 0x2c8   :  { %5778 = vmatprep.subr.bf16.mxu1 %v12941_v59  ;;  %v12950_v59 = vld [vmem:[%s18227_s2 + $0x1c4] ss:$16 sps:$4 sm:$0xff]  }
 0x2cb   :  { %5779 = vmatpush1.bf16.msra.mxu1 %v12939_v36  ;;  %v12948_v36 = vld [vmem:[%s18227_s2 + $0x1c0] ss:$16 sps:$4 sm:$0xff]  }
 0x2cc   :  { %5780 = vmatprep.subr.bf16.mxu1 %v12944_v44  ;;  %v12953_v44 = vld [vmem:[%s18227_s2 + $0x1e4] ss:$16 sps:$4 sm:$0xff]  }
 0x2cf   :  { %5781 = vmatpush1.bf16.msra.mxu1 %v12942_v43  ;;  %v12951_v43 = vld [vmem:[%s18227_s2 + $0x1e0] ss:$16 sps:$4 sm:$0xff]  }
 0x2d0   :  { %5782 = vmatprep.subr.bf16.mxu1 %v12947_v51  ;;  %v13002_v51 = vld [vmem:[%s18227_s2 + $0x200] ss:$16 sps:$4 sm:$0xff]  }
 0x2d3   :  { %5783 = vmatpush1.bf16.msra.mxu1 %v12945_v34  ;;  %v13004_v34 = vld [vmem:[%s18227_s2 + $0x204] ss:$16 sps:$4 sm:$0xff]  }
 0x2d4   :  { %5784 = vmatprep.subr.bf16.mxu1 %v12950_v59  ;;  %v13010_v59 = vld [vmem:[%s18227_s2 + $0x224] ss:$16 sps:$4 sm:$0xff]  }
 0x2d7   :  { %5785 = vmatpush1.bf16.msra.mxu1 %v12948_v36  ;;  %v13008_v36 = vld [vmem:[%s18227_s2 + $0x220] ss:$16 sps:$4 sm:$0xff]  }
 0x2d8   :  { %5786 = vmatprep.subr.bf16.mxu1 %v12953_v44  ;;  %v13016_v44 = vld [vmem:[%s18227_s2 + $0x244] ss:$16 sps:$4 sm:$0xff]  }
 0x2db   :  { %5787 = vmatpush1.bf16.msra.mxu1 %v12951_v43  ;;  %v13014_v43 = vld [vmem:[%s18227_s2 + $0x240] ss:$16 sps:$4 sm:$0xff]  }
 0x2dc   :  { %5829 = vmatprep.subr.bf16.mxu1 %v13004_v34  ;;  %v13022_v34 = vld [vmem:[%s18227_s2 + $0x264] ss:$16 sps:$4 sm:$0xff]  }
 0x2de   :  { %5789 = vmatmul.mubr.bf16.vlgmr.msra.gmra.mrb[8].mxu1 %v15068_v39 }
 0x2df   :  { %5798 = vmatprep.mubr.bf16.mxu1 %v15166_v35  ;;  %5830 = vmatpush1.bf16.msra.mxu1 %v13002_v51  ;;  %v13020_v51 = vld [vmem:[%s18227_s2 + $0x260] ss:$16 sps:$4 sm:$0xff]  }
 0x2e0   :  { %5831 = vmatprep.subr.bf16.mxu1 %v13010_v59  ;;  %v13028_v59 = vld [vmem:[%s18227_s2 + $0x284] ss:$16 sps:$4 sm:$0xff]  }
 0x2e3   :  { %5832 = vmatpush1.bf16.msra.mxu1 %v13008_v36  ;;  %v13026_v36 = vld [vmem:[%s18227_s2 + $0x280] ss:$16 sps:$4 sm:$0xff]  }
 0x2e4   :  { %5833 = vmatprep.subr.bf16.mxu1 %v13016_v44  ;;  %v13034_v44 = vld [vmem:[%s18227_s2 + $0x2a4] ss:$16 sps:$4 sm:$0xff]  }
 0x2e6   :  { %5799 = vmatmul.mubr.bf16.gmra.mrb[12].mxu1 %v15076_v54 }
 0x2e7   :  { %5808 = vmatprep.mubr.bf16.mxu1 %v15170_v50  ;;  %5834 = vmatpush1.bf16.msra.mxu1 %v13014_v43  ;;  %v13032_v43 = vld [vmem:[%s18227_s2 + $0x2a0] ss:$16 sps:$4 sm:$0xff]  }
 0x2e8   :  { %5835 = vmatprep.subr.bf16.mxu1 %v13022_v34  ;;  %v13040_v34 = vld [vmem:[%s18227_s2 + $0x2c4] ss:$16 sps:$4 sm:$0xff]  }
 0x2eb   :  { %5836 = vmatpush1.bf16.msra.mxu1 %v13020_v51  ;;  %v13038_v51 = vld [vmem:[%s18227_s2 + $0x2c0] ss:$16 sps:$4 sm:$0xff]  }
 0x2ec   :  { %5837 = vmatprep.subr.bf16.mxu1 %v13028_v59  ;;  %v13046_v59 = vld [vmem:[%s18227_s2 + $0x2e4] ss:$16 sps:$4 sm:$0xff]  }
 0x2ee   :  { %5809 = vmatmul.mubr.bf16.gmra.mrb[16].mxu1 %v15094_v38 }
 0x2ef   :  { %5818 = vmatprep.mubr.bf16.mxu1 %v15174_v52  ;;  %5838 = vmatpush1.bf16.msra.mxu1 %v13026_v36 }
 0x2f0   :  { %5839 = vmatprep.subr.bf16.mxu1 %v13034_v44  ;;  %v13044_v44 = vld [vmem:[%s18227_s2 + $0x2e0] ss:$16 sps:$4 sm:$0xff]  }
 0x2f3   :  { %5840 = vmatpush1.bf16.msra.mxu1 %v13032_v43  ;;  %v13052_v43 = vld [vmem:[%s18227_s2 + $0x304] ss:$16 sps:$4 sm:$0xff]  }
 0x2f4   :  { %5841 = vmatprep.subr.bf16.mxu1 %v13040_v34  ;;  %v13050_v34 = vld [vmem:[%s18227_s2 + $0x300] ss:$16 sps:$4 sm:$0xff]  }
 0x2f6   :  { %5819 = vmatmul.mubr.bf16.gmra.mrb[20].mxu1 %v15106_v53 }
 0x2f7   :  { %5842 = vmatpush1.bf16.msra.mxu1 %v13038_v51 }
 0x2f8   :  { %5843 = vmatprep.subr.bf16.mxu1 %v13046_v59  ;;  %v13058_v59 = vld [vmem:[%s18227_s2 + $0x324] ss:$16 sps:$4 sm:$0xff]  }
 0x2fb   :  { %5844 = vmatpush1.bf16.msra.mxu1 %v13044_v44 }
 0x2fc   :  { %5845 = vmatprep.subr.bf16.mxu1 %v13052_v43  ;;  %v13064_v43 = vld [vmem:[%s18227_s2 + $0x344] ss:$16 sps:$4 sm:$0xff]  }
 0x2ff   :  { %5846 = vmatpush1.bf16.msra.mxu1 %v13050_v34  ;;  %v13062_v34 = vld [vmem:[%s18227_s2 + $0x340] ss:$16 sps:$4 sm:$0xff]  }
 0x300   :  { %5847 = vmatprep.subr.bf16.mxu1 %v13058_v59  ;;  %v13070_v59 = vld [vmem:[%s18227_s2 + $0x364] ss:$16 sps:$4 sm:$0xff]  }
 0x371   :  { %v12259_v36 = vpop.f32.mrb[0].mxu1 }
 0x372   :  { %v4790_v58 = vpop.f32.mrb[1].mxu1 }
 0x373   :  { %v15347_v42 = vpack.c.bf16 %v12259_v36, %v4790_v58  ;;  %v13056_v36 = vld [vmem:[%s18227_s2 + $0x320] ss:$16 sps:$4 sm:$0xff]  }
 0x374   :  { %5848 = vmatpush1.bf16.msra.mxu1 %v13056_v36  ;;  %v13068_v36 = vld [vmem:[%s18227_s2 + $0x360] ss:$16 sps:$4 sm:$0xff]  }
 0x375   :  { %v12262_v49 = vpop.f32.mrb[2].mxu1  ;;  %12330 = vmatprep.subr.bf16.mxu0 %v15347_v42  ;;  %5849 = vmatprep.subr.bf16.mxu1 %v13064_v43  ;;  %v12959_v43 = vld [vmem:[%s18227_s2 + $0x2c] ss:$16 sps:$4 sm:$0xff]  }
 0x376   :  { %v4800_v51 = vpop.f32.mrb[3].mxu1  ;;  %12332 = vmatpush3.bf16.msra.mxu0 %v15347_v42 }
 0x377   :  { %v15357_v33 = vpack.c.bf16 %v12262_v49, %v4800_v51 }
 0x378   :  { %5850 = vmatpush1.bf16.msra.mxu1 %v13062_v34  ;;  %v13074_v34 = vld [vmem:[%s18227_s2 + $0x380] ss:$16 sps:$4 sm:$0xff]  }
 0x379   :  { %v12265_v58 = vpop.f32.mrb[4].mxu1  ;;  %12334 = vmatprep.subr.bf16.mxu0 %v15357_v33  ;;  %5851 = vmatprep.subr.bf16.mxu1 %v13070_v59  ;;  %v12962_v59 = vld [vmem:[%s18227_s2 + $0x4c] ss:$16 sps:$4 sm:$0xff]  }
 0x37a   :  { %v4810_v44 = vpop.f32.mrb[5].mxu1  ;;  %12336 = vmatpush3.bf16.msra.mxu0 %v15357_v33 }
 0x37b   :  { %v15367_v57 = vpack.c.bf16 %v12265_v58, %v4810_v44  ;;  %v12956_v58 = vld [vmem:[%s18227_s2 + $0xc] ss:$16 sps:$4 sm:$0xff]   ;;  %v12954_v44 = vld [vmem:[%s18227_s2 + $0x8] ss:$16 sps:$4 sm:$0xff]  }
 0x37c   :  { %5852 = vmatpush1.bf16.msra.mxu1 %v13068_v36  ;;  %v13080_v36 = vld [vmem:[%s18227_s2 + $0x3a0] ss:$16 sps:$4 sm:$0xff]  }
 0x37d   :  { %v12268_v49 = vpop.f32.mrb[6].mxu1  ;;  %12338 = vmatprep.subr.bf16.mxu0 %v15367_v57 }
 0x37e   :  { %v4820_v51 = vpop.f32.mrb[7].mxu1  ;;  %12340 = vmatpush3.bf16.msra.mxu0 %v15367_v57 }
 0x37f   :  { %v15377_v41 = vpack.c.bf16 %v12268_v49, %v4820_v51  ;;  %v13076_v49 = vld [vmem:[%s18227_s2 + $0x384] ss:$16 sps:$4 sm:$0xff]   ;;  %v12957_v51 = vld [vmem:[%s18227_s2 + $0x28] ss:$16 sps:$4 sm:$0xff]  }
 0x380   :  { %5853 = vmatprep.subr.bf16.mxu1 %v13076_v49  ;;  %v13088_v49 = vld [vmem:[%s18227_s2 + $0x3c4] ss:$16 sps:$4 sm:$0xff]  }
 0x381   :  { %12342 = vmatprep.subr.bf16.mxu0 %v15377_v41  ;;  %5854 = vmatpush1.bf16.msra.mxu1 %v13074_v34  ;;  %v13086_v34 = vld [vmem:[%s18227_s2 + $0x3c0] ss:$16 sps:$4 sm:$0xff]  }
 0x382   :  { %12344 = vmatpush3.bf16.msra.mxu0 %v15377_v41 }
 0x383   :  { %5902 = vmatprep.subr.bf16.mxu0 %v12956_v58  ;;  %v13082_v58 = vld [vmem:[%s18227_s2 + $0x3a4] ss:$16 sps:$4 sm:$0xff]  }
 0x384   :  { %5855 = vmatprep.subr.bf16.mxu1 %v13082_v58  ;;  %v12966_v58 = vld [vmem:[%s18227_s2 + $0x88] ss:$16 sps:$4 sm:$0xff]  }
 0x385   :  { %12286 = vmatmul.mubr.msk.f32.vlgmr.msra.gmra.mrb[8].mxu0 %vm4586_vm0, %v15113_v62  ;;  %5856 = vmatpush1.bf16.msra.mxu1 %v13080_v36  ;;  %v12971_v36 = vld [vmem:[%s18227_s2 + $0xac] ss:$16 sps:$4 sm:$0xff]  }
 0x386   :  { %5903 = vmatpush1.bf16.msra.mxu0 %v12954_v44  ;;  %12288 = vmatprep.mubr.msk.f32.mxu0 %vm4586_vm0, %v15118_v55  ;;  %v12960_v44 = vld [vmem:[%s18227_s2 + $0x48] ss:$16 sps:$4 sm:$0xff]  }
 0x387   :  { %5904 = vmatprep.subr.bf16.mxu0 %v12959_v43  ;;  %v12965_v43 = vld [vmem:[%s18227_s2 + $0x6c] ss:$16 sps:$4 sm:$0xff]   ;;  %5857 = vmatprep.subr.bf16.mxu1 %v13088_v49 }
 0x388   :  { %v12977_v49 = vld [vmem:[%s18227_s2 + $0xec] ss:$16 sps:$4 sm:$0xff]  }
 0x389   :  { %12289 = vmatmul.mubr.msk.f32.gmra.mrb[10].mxu0 %vm4586_vm0, %v15124_v46  ;;  %5858 = vmatpush1.bf16.msra.mxu1 %v13086_v34  ;;  %v12975_v34 = vld [vmem:[%s18227_s2 + $0xe8] ss:$16 sps:$4 sm:$0xff]  }
 0x38a   :  { %5905 = vmatpush1.bf16.msra.mxu0 %v12957_v51  ;;  %12291 = vmatprep.mubr.msk.f32.mxu0 %vm4586_vm0, %v15131_v47  ;;  %v12963_v51 = vld [vmem:[%s18227_s2 + $0x68] ss:$16 sps:$4 sm:$0xff]  }
 0x38b   :  { %5906 = vmatprep.subr.bf16.mxu0 %v12962_v59  ;;  %v12968_v59 = vld [vmem:[%s18227_s2 + $0x8c] ss:$16 sps:$4 sm:$0xff]  }
 0x38d   :  { %12292 = vmatmul.mubr.msk.f32.gmra.mrb[12].mxu0 %vm4586_vm0, %v15138_v37 }
 0x38e   :  { %5907 = vmatpush1.bf16.msra.mxu0 %v12960_v44  ;;  %12294 = vmatprep.mubr.msk.f32.mxu0 %vm4586_vm0, %v15145_v61  ;;  %v12969_v44 = vld [vmem:[%s18227_s2 + $0xa8] ss:$16 sps:$4 sm:$0xff]  }
 0x38f   :  { %5908 = vmatprep.subr.bf16.mxu0 %v12965_v43  ;;  %v12974_v43 = vld [vmem:[%s18227_s2 + $0xcc] ss:$16 sps:$4 sm:$0xff]  }
 0x391   :  { %12295 = vmatmul.mubr.msk.f32.gmra.mrb[14].mxu0 %vm4586_vm0, %v15152_v45 }
 0x392   :  { %5909 = vmatpush1.bf16.msra.mxu0 %v12963_v51  ;;  %5934 = vmatprep.mubr.bf16.mxu0 %v15162_v60  ;;  %v12972_v60 = vld [vmem:[%s18227_s2 + $0xc8] ss:$16 sps:$4 sm:$0xff]   ;;  %v12980_v51 = vld [vmem:[%s18227_s2 + $0x10c] ss:$16 sps:$4 sm:$0xff]  }
 0x393   :  { %5910 = vmatprep.subr.bf16.mxu0 %v12968_v59  ;;  %v12978_v59 = vld [vmem:[%s18227_s2 + $0x108] ss:$16 sps:$4 sm:$0xff]  }
 0x396   :  { %5911 = vmatpush1.bf16.msra.mxu0 %v12966_v58  ;;  %v12983_v58 = vld [vmem:[%s18227_s2 + $0x12c] ss:$16 sps:$4 sm:$0xff]  }
 0x397   :  { %5912 = vmatprep.subr.bf16.mxu0 %v12971_v36  ;;  %v12981_v36 = vld [vmem:[%s18227_s2 + $0x128] ss:$16 sps:$4 sm:$0xff]  }
 0x39a   :  { %5913 = vmatpush1.bf16.msra.mxu0 %v12969_v44  ;;  %v12986_v44 = vld [vmem:[%s18227_s2 + $0x14c] ss:$16 sps:$4 sm:$0xff]  }
 0x39b   :  { %5914 = vmatprep.subr.bf16.mxu0 %v12974_v43  ;;  %v12984_v43 = vld [vmem:[%s18227_s2 + $0x148] ss:$16 sps:$4 sm:$0xff]  }
 0x39e   :  { %5915 = vmatpush1.bf16.msra.mxu0 %v12972_v60  ;;  %v12989_v60 = vld [vmem:[%s18227_s2 + $0x16c] ss:$16 sps:$4 sm:$0xff]  }
 0x39f   :  { %5916 = vmatprep.subr.bf16.mxu0 %v12977_v49  ;;  %v12987_v49 = vld [vmem:[%s18227_s2 + $0x168] ss:$16 sps:$4 sm:$0xff]  }
 0x3a2   :  { %5917 = vmatpush1.bf16.msra.mxu0 %v12975_v34  ;;  %v12992_v34 = vld [vmem:[%s18227_s2 + $0x18c] ss:$16 sps:$4 sm:$0xff]  }
 0x3a3   :  { %5918 = vmatprep.subr.bf16.mxu0 %v12980_v51  ;;  %v12990_v51 = vld [vmem:[%s18227_s2 + $0x188] ss:$16 sps:$4 sm:$0xff]  }
 0x3a6   :  { %5919 = vmatpush1.bf16.msra.mxu0 %v12978_v59  ;;  %v12995_v59 = vld [vmem:[%s18227_s2 + $0x1ac] ss:$16 sps:$4 sm:$0xff]  }
 0x3a7   :  { %5920 = vmatprep.subr.bf16.mxu0 %v12983_v58  ;;  %v12993_v58 = vld [vmem:[%s18227_s2 + $0x1a8] ss:$16 sps:$4 sm:$0xff]  }
 0x3aa   :  { %5921 = vmatpush1.bf16.msra.mxu0 %v12981_v36  ;;  %v12998_v36 = vld [vmem:[%s18227_s2 + $0x1cc] ss:$16 sps:$4 sm:$0xff]  }
 0x3ab   :  { %5922 = vmatprep.subr.bf16.mxu0 %v12986_v44  ;;  %v12996_v44 = vld [vmem:[%s18227_s2 + $0x1c8] ss:$16 sps:$4 sm:$0xff]  }
 0x3ae   :  { %5923 = vmatpush1.bf16.msra.mxu0 %v12984_v43  ;;  %v13001_v43 = vld [vmem:[%s18227_s2 + $0x1ec] ss:$16 sps:$4 sm:$0xff]  }
 0x3af   :  { %5924 = vmatprep.subr.bf16.mxu0 %v12989_v60  ;;  %v12999_v60 = vld [vmem:[%s18227_s2 + $0x1e8] ss:$16 sps:$4 sm:$0xff]  }
 0x3b2   :  { %5925 = vmatpush1.bf16.msra.mxu0 %v12987_v49  ;;  %v13007_v49 = vld [vmem:[%s18227_s2 + $0x20c] ss:$16 sps:$4 sm:$0xff]  }
 0x3b3   :  { %5926 = vmatprep.subr.bf16.mxu0 %v12992_v34  ;;  %v13005_v34 = vld [vmem:[%s18227_s2 + $0x208] ss:$16 sps:$4 sm:$0xff]  }
 0x3b6   :  { %5927 = vmatpush1.bf16.msra.mxu0 %v12990_v51  ;;  %v13013_v51 = vld [vmem:[%s18227_s2 + $0x22c] ss:$16 sps:$4 sm:$0xff]  }
 0x3b7   :  { %5928 = vmatprep.subr.bf16.mxu0 %v12995_v59  ;;  %v13011_v59 = vld [vmem:[%s18227_s2 + $0x228] ss:$16 sps:$4 sm:$0xff]  }
 0x3ba   :  { %5929 = vmatpush1.bf16.msra.mxu0 %v12993_v58  ;;  %v13019_v58 = vld [vmem:[%s18227_s2 + $0x24c] ss:$16 sps:$4 sm:$0xff]  }
 0x3bb   :  { %5930 = vmatprep.subr.bf16.mxu0 %v12998_v36  ;;  %v13017_v36 = vld [vmem:[%s18227_s2 + $0x248] ss:$16 sps:$4 sm:$0xff]  }
 0x3be   :  { %5931 = vmatpush1.bf16.msra.mxu0 %v12996_v44  ;;  %v13031_v44 = vld [vmem:[%s18227_s2 + $0x28c] ss:$16 sps:$4 sm:$0xff]  }
 0x3bf   :  { %5932 = vmatprep.subr.bf16.mxu0 %v13001_v43  ;;  %v13029_v43 = vld [vmem:[%s18227_s2 + $0x288] ss:$16 sps:$4 sm:$0xff]  }
 0x3c2   :  { %5933 = vmatpush1.bf16.msra.mxu0 %v12999_v60  ;;  %v13043_v60 = vld [vmem:[%s18227_s2 + $0x2cc] ss:$16 sps:$4 sm:$0xff]  }
 0x3c3   :  { %5975 = vmatprep.subr.bf16.mxu0 %v13007_v49  ;;  %v13094_v49 = vld [vmem:[%s18227_s2 + $0x3e4] ss:$16 sps:$4 sm:$0xff]  }
 0x3c4   :  { %5859 = vmatprep.subr.bf16.mxu1 %v13094_v49  ;;  %v13083_v49 = vld [vmem:[%s18227_s2 + $0x3a8] ss:$16 sps:$4 sm:$0xff]  }
 0x3c5   :  { %5935 = vmatmul.mubr.bf16.vlgmr.msra.gmra.mrb[16].mxu0 %v15068_v39  ;;  %v13023_v39 = vld [vmem:[%s18227_s2 + $0x268] ss:$16 sps:$4 sm:$0xff]  }
 0x3c6   :  { %5944 = vmatprep.mubr.bf16.mxu0 %v15166_v35  ;;  %5976 = vmatpush1.bf16.msra.mxu0 %v13005_v34  ;;  %v13025_v35 = vld [vmem:[%s18227_s2 + $0x26c] ss:$16 sps:$4 sm:$0xff]  }
 0x3c7   :  { %5977 = vmatprep.subr.bf16.mxu0 %v13013_v51  ;;  %v13049_v34 = vld [vmem:[%s18227_s2 + $0x2ec] ss:$16 sps:$4 sm:$0xff]   ;;  %v13047_v51 = vld [vmem:[%s18227_s2 + $0x2e8] ss:$16 sps:$4 sm:$0xff]  }
 0x3ca   :  { %5978 = vmatpush1.bf16.msra.mxu0 %v13011_v59  ;;  %v13055_v59 = vld [vmem:[%s18227_s2 + $0x30c] ss:$16 sps:$4 sm:$0xff]  }
 0x3cb   :  { %5979 = vmatprep.subr.bf16.mxu0 %v13019_v58  ;;  %v13053_v58 = vld [vmem:[%s18227_s2 + $0x308] ss:$16 sps:$4 sm:$0xff]  }
 0x3cd   :  { %5945 = vmatmul.mubr.bf16.gmra.mrb[20].mxu0 %v15076_v54  ;;  %v13035_v54 = vld [vmem:[%s18227_s2 + $0x2a8] ss:$16 sps:$4 sm:$0xff]  }
 0x3ce   :  { %5954 = vmatprep.mubr.bf16.mxu0 %v15170_v50  ;;  %5980 = vmatpush1.bf16.msra.mxu0 %v13017_v36  ;;  %v13037_v50 = vld [vmem:[%s18227_s2 + $0x2ac] ss:$16 sps:$4 sm:$0xff]   ;;  %v13059_v36 = vld [vmem:[%s18227_s2 + $0x328] ss:$16 sps:$4 sm:$0xff]  }
 0x3cf   :  { %5981 = vmatprep.subr.bf16.mxu0 %v13025_v35  ;;  %v13067_v35 = vld [vmem:[%s18227_s2 + $0x34c] ss:$16 sps:$4 sm:$0xff]  }
 0x3d2   :  { %5982 = vmatpush1.bf16.msra.mxu0 %v13023_v39  ;;  %v13065_v39 = vld [vmem:[%s18227_s2 + $0x348] ss:$16 sps:$4 sm:$0xff]  }
 0x3d3   :  { %5983 = vmatprep.subr.bf16.mxu0 %v13031_v44  ;;  %v13073_v44 = vld [vmem:[%s18227_s2 + $0x36c] ss:$16 sps:$4 sm:$0xff]  }
 0x3d5   :  { %5955 = vmatmul.mubr.bf16.gmra.mrb[24].mxu0 %v15094_v38  ;;  %v13092_v38 = vld [vmem:[%s18227_s2 + $0x3e0] ss:$16 sps:$4 sm:$0xff]  }
 0x3d6   :  { %5964 = vmatprep.mubr.bf16.mxu0 %v15174_v52  ;;  %5984 = vmatpush1.bf16.msra.mxu0 %v13029_v43  ;;  %v13041_v52 = vld [vmem:[%s18227_s2 + $0x2c8] ss:$16 sps:$4 sm:$0xff]  }
 0x3d7   :  { %5985 = vmatprep.subr.bf16.mxu0 %v13037_v50  ;;  %5860 = vmatpush1.bf16.msra.mxu1 %v13092_v38  ;;  %v13071_v43 = vld [vmem:[%s18227_s2 + $0x368] ss:$16 sps:$4 sm:$0xff]   ;;  %v13079_v50 = vld [vmem:[%s18227_s2 + $0x38c] ss:$16 sps:$4 sm:$0xff]  }
 0x3d8   :  { %v13091_v38 = vld [vmem:[%s18227_s2 + $0x3cc] ss:$16 sps:$4 sm:$0xff]  }
 0x3da   :  { %5986 = vmatpush1.bf16.msra.mxu0 %v13035_v54  ;;  %v13077_v54 = vld [vmem:[%s18227_s2 + $0x388] ss:$16 sps:$4 sm:$0xff]  }
 0x3db   :  { %5987 = vmatprep.subr.bf16.mxu0 %v13043_v60  ;;  %v13085_v60 = vld [vmem:[%s18227_s2 + $0x3ac] ss:$16 sps:$4 sm:$0xff]  }
 0x3dd   :  { %5965 = vmatmul.mubr.bf16.gmra.mrb[28].mxu0 %v15106_v53  ;;  %v13061_v53 = vld [vmem:[%s18227_s2 + $0x32c] ss:$16 sps:$4 sm:$0xff]  }
 0x3de   :  { %5988 = vmatpush1.bf16.msra.mxu0 %v13041_v52  ;;  %v13089_v52 = vld [vmem:[%s18227_s2 + $0x3c8] ss:$16 sps:$4 sm:$0xff]  }
 0x3df   :  { %5989 = vmatprep.subr.bf16.mxu0 %v13049_v34  ;;  %v13097_v34 = vld [vmem:[%s18227_s2 + $0x3ec] ss:$16 sps:$4 sm:$0xff]  }
 0x3e2   :  { %5990 = vmatpush1.bf16.msra.mxu0 %v13047_v51  ;;  %v13095_v51 = vld [vmem:[%s18227_s2 + $0x3e8] ss:$16 sps:$4 sm:$0xff]  }
 0x3e3   :  { %5991 = vmatprep.subr.bf16.mxu0 %v13055_v59 }
 0x3e6   :  { %5992 = vmatpush1.bf16.msra.mxu0 %v13053_v58 }
 0x3e7   :  { %5993 = vmatprep.subr.bf16.mxu0 %v13061_v53 }
 0x3ea   :  { %5994 = vmatpush1.bf16.msra.mxu0 %v13059_v36 }
 0x3eb   :  { %5995 = vmatprep.subr.bf16.mxu0 %v13067_v35 }
 0x3ee   :  { %5996 = vmatpush1.bf16.msra.mxu0 %v13065_v39 }
 0x3ef   :  { %5997 = vmatprep.subr.bf16.mxu0 %v13073_v44 }
 0x3f2   :  { %5998 = vmatpush1.bf16.msra.mxu0 %v13071_v43 }
 0x3f3   :  { %5999 = vmatprep.subr.bf16.mxu0 %v13079_v50 }
 0x3f6   :  { %6000 = vmatpush1.bf16.msra.mxu0 %v13077_v54 }
 0x3f7   :  { %6001 = vmatprep.subr.bf16.mxu0 %v13085_v60 }
 0x3fa   :  { %6002 = vmatpush1.bf16.msra.mxu0 %v13083_v49 }
 0x3fb   :  { %6003 = vmatprep.subr.bf16.mxu0 %v13091_v38 }
 0x3fe   :  { %6004 = vmatpush1.bf16.msra.mxu0 %v13089_v52 }
 0x3ff   :  { %6005 = vmatprep.subr.bf16.mxu0 %v13097_v34 }
 0x402   :  { %6006 = vmatpush1.bf16.msra.mxu0 %v13095_v51 }
 0x458   :  { %v12287_v59 = vpop.f32.mrb[8].mxu0 }
 0x459   :  { %v4903_v58 = vpop.f32.mrb[9].mxu0 }
 0x45a   :  { %v4942_v53 = vpack.c.bf16 %v12287_v59, %v4903_v58 }
 0x45c   :  { %5861 = vmatprep.mubr.bf16.mxu1 %v4942_v53  ;;  %6007 = vmatprep.mubr.bf16.mxu0 %v4942_v53  ;;  %v12290_v36 = vpop.f32.mrb[10].mxu0 }
 0x45d   :  { %5862 = vmatmul.mubr.bf16.vlgmr.msra.gmra.mrb[8].mxu1 %v15347_v42  ;;  %6008 = vmatmul.mubr.bf16.vlgmr.msra.gmra.mrb[16].mxu0 %v15347_v42  ;;  %v4913_v35 = vpop.f32.mrb[11].mxu0  ;;  %v5096_v42 = vlaneseq }
 0x45e   :  { %v4943_v39 = vpack.c.bf16 %v12290_v36, %v4913_v35 }
 0x45f   :  { %v5097_v38 = vshrl.u32 %v5096_v42, 7 }
 0x460   :  { %5871 = vmatprep.mubr.bf16.mxu1 %v4943_v39  ;;  %6017 = vmatprep.mubr.bf16.mxu0 %v4943_v39  ;;  %v12293_v44 = vpop.f32.mrb[12].mxu0 }
 0x461   :  { %v4923_v43 = vpop.f32.mrb[13].mxu0  ;;  %v15630_v52 = vsub.s32 0, %v5097_v38  ;;  %v15632_v34 = vsub.s32 2, %v5097_v38  ;;  %v15637_v51 = vsub.s32 1, %v5097_v38  ;;  %v15639_v59 = vsub.s32 3, %v5097_v38 }
 0x462   :  { %v4944_v50 = vpack.c.bf16 %v12293_v44, %v4923_v43 }
 0x463   :  { %18474 = vst [vmem:[#allocation146_spill] sm:$0xff] %v15630_v52  ;;  %18475 = vst [vmem:[#allocation147_spill] sm:$0xff] %v15632_v34 }
 0x464   :  { %v12296_v54 = vpop.f32.mrb[14].mxu0  ;;  %18476 = vst [vmem:[#allocation148_spill] sm:$0xff] %v15637_v51  ;;  %18477 = vst [vmem:[#allocation149_spill] sm:$0xff] %v15639_v59 }
 0x465   :  { %5872 = vmatmul.mubr.bf16.gmra.mrb[12].mxu1 %v15357_v33  ;;  %6018 = vmatmul.mubr.bf16.gmra.mrb[20].mxu0 %v15357_v33  ;;  %v4933_v60 = vpop.f32.mrb[15].mxu0  ;;  %v5094_v33 = vld [vmem:[%s18228_s3] sm:$0xf] }
 0x466   :  { %5881 = vmatprep.mubr.bf16.mxu1 %v4944_v50  ;;  %6027 = vmatprep.mubr.bf16.mxu0 %v4944_v50  ;;  %v4945_v49 = vpack.c.bf16 %v12296_v54, %v4933_v60  ;;  %v15645_v58 = vrot.slane %v5094_v33, %v15632_v34  ;;  %v15651_v53 = vrot.slane %v5094_v33, %v15639_v59 }
 0x46d   :  { %5882 = vmatmul.mubr.bf16.gmra.mrb[16].mxu1 %v15367_v57  ;;  %6028 = vmatmul.mubr.bf16.gmra.mrb[24].mxu0 %v15367_v57  ;;  %v15642_v57 = vrot.slane %v5094_v33, %v15630_v52 }
 0x46e   :  { %5891 = vmatprep.mubr.bf16.mxu1 %v4945_v49  ;;  %6037 = vmatprep.mubr.bf16.mxu0 %v4945_v49 }
 0x475   :  { %5892 = vmatmul.mubr.bf16.gmra.mrb[20].mxu1 %v15377_v41  ;;  %6038 = vmatmul.mubr.bf16.gmra.mrb[28].mxu0 %v15377_v41  ;;  %v15648_v41 = vrot.slane %v5094_v33, %v15637_v51 }
 0x530   :  { %v5863_v36 = vpop.f32.mrb[8].mxu1  ;;  %v6009_v35 = vpop.f32.mrb[16].mxu0 }
 0x531   :  { %v12553_v39 = vadd.f32 %v5863_v36, %v15642_v57  ;;  %v12569_v44 = vadd.f32 %v6009_v35, %v15645_v58  ;;  %v5865_v43 = vpop.f32.mrb[9].mxu1  ;;  %v6011_v50 = vpop.f32.mrb[17].mxu0 }
 0x532   :  { %v12554_v54 = vadd.f32 %v5865_v43, %v15648_v41  ;;  %v12570_v60 = vadd.f32 %v6011_v50, %v15651_v53  ;;  %v5867_v49 = vpop.f32.mrb[10].mxu1  ;;  %v6013_v42 = vpop.f32.mrb[18].mxu0 }
 0x533   :  { %v6080_v38 = vmul.f32 0.044715, %v12553_v39  ;;  %v6082_v48 = vmul.f32 0.044715, %v12569_v44  ;;  %v12555_v23 = vadd.f32 %v5867_v49, %v15642_v57  ;;  %v12571_v36 = vadd.f32 %v6013_v42, %v15645_v58  ;;  %v5869_v7 = vpop.f32.mrb[11].mxu1  ;;  %v6015_v35 = vpop.f32.mrb[19].mxu0 }
 0x534   :  { %v6081_v32 = vmul.f32 0.044715, %v12554_v54  ;;  %v6083_v56 = vmul.f32 0.044715, %v12570_v60  ;;  %v15662_v4 = vmul.f32 0.5, %v12553_v39  ;;  %v15666_v28 = vmul.f32 0.5, %v12569_v44 }
 0x535   :  { %v6112_v33 = vmul.f32 %v12553_v39, %v6080_v38  ;;  %v6114_v40 = vmul.f32 %v12569_v44, %v6082_v48  ;;  %v6084_v22 = vmul.f32 0.044715, %v12555_v23  ;;  %v6086_v50 = vmul.f32 0.044715, %v12571_v36 }
 0x536   :  { %v6113_v43 = vmul.f32 %v12554_v54, %v6081_v32  ;;  %v6115_v6 = vmul.f32 %v12570_v60, %v6083_v56  ;;  %v15660_v38 = vadd.f32 %v5869_v7, %v15648_v41 }
 0x537   :  { %v6144_v31 = vmul.f32 %v12553_v39, %v6112_v33  ;;  %v6146_v15 = vmul.f32 %v12569_v44, %v6114_v40  ;;  %v6116_v29 = vmul.f32 %v12555_v23, %v6084_v22  ;;  %v6118_v13 = vmul.f32 %v12571_v36, %v6086_v50 }
 0x538   :  { %v5873_v30 = vpop.f32.mrb[12].mxu1  ;;  %v6019_v14 = vpop.f32.mrb[20].mxu0  ;;  %v6085_v50 = vmul.f32 0.044715, %v15660_v38  ;;  %v15716_v11 = vmul.f32 0.5, %v15660_v38 }
 0x539   :  { %v6176_v21 = vadd.f32 %v12553_v39, %v6144_v31  ;;  %v6178_v5 = vadd.f32 %v12569_v44, %v6146_v15  ;;  %v5875_v48 = vpop.f32.mrb[13].mxu1  ;;  %v6021_v49 = vpop.f32.mrb[21].mxu0  ;;  %v6148_v32 = vmul.f32 %v12555_v23, %v6116_v29  ;;  %v6145_v31 = vmul.f32 %v12554_v54, %v6113_v43 }
 0x53a   :  { %v5877_v42 = vpop.f32.mrb[14].mxu1  ;;  %v6023_v20 = vpop.f32.mrb[22].mxu0  ;;  %v6147_v15 = vmul.f32 %v12570_v60, %v6115_v6  ;;  %v6150_v22 = vmul.f32 %v12571_v36, %v6118_v13  ;;  %v12557_v19 = vadd.f32 %v5873_v30, %v15642_v57  ;;  %v15678_v29 = vmul.f32 0.5, %v12554_v54 }
 0x53b   :  { %v6208_v40 = vmul.f32 0.7978846, %v6176_v21  ;;  %v6210_v33 = vmul.f32 0.7978846, %v6178_v5  ;;  %v15664_v56 = vpop.f32.mrb[15].mxu1  ;;  %v15668_v12 = vpop.f32.mrb[23].mxu0  ;;  %v6180_v7 = vadd.f32 %v12555_v23, %v6148_v32  ;;  %v15673_v5 = vadd.f32 %v6015_v35, %v15651_v53 }
 0x53c   :  { %v6182_v39 = vadd.f32 %v12571_v36, %v6150_v22  ;;  %v15676_v21 = vadd.f32 %v6019_v14, %v15645_v58  ;;  %v15680_v6 = vmul.f32 0.5, %v12570_v60  ;;  %v15682_v13 = vmul.f32 0.5, %v12555_v23 }
 0x53d   :  { %13098 = vtanh.f32 %v6208_v40  ;;  %v6212_v44 = vmul.f32 0.7978846, %v6180_v7  ;;  %v6177_v43 = vadd.f32 %v12554_v54, %v6145_v31  ;;  %v6088_v32 = vmul.f32 0.044715, %v12557_v19 }
 0x53e   :  { %13100 = vtanh.f32 %v6210_v33  ;;  %v6214_v40 = vmul.f32 0.7978846, %v6182_v39  ;;  %v6179_v33 = vadd.f32 %v12570_v60, %v6147_v15  ;;  %v6117_v35 = vmul.f32 %v15660_v38, %v6085_v50 }
 0x53f   :  { %13102 = vtanh.f32 %v6212_v44  ;;  %v6090_v14 = vmul.f32 0.044715, %v15676_v21  ;;  %v6087_v23 = vmul.f32 0.044715, %v15673_v5  ;;  %v6120_v54 = vmul.f32 %v12557_v19, %v6088_v32 }
 0x540   :  { %v15684_v3 = vpop.f32.mrb[16].mxu1  ;;  %v15686_v30 = vpop.f32.mrb[24].mxu0  ;;  %13104 = vtanh.f32 %v6214_v40  ;;  %v15696_v31 = vadd.f32 %v5875_v48, %v15648_v41  ;;  %v15702_v60 = vmul.f32 0.5, %v12571_v36  ;;  %v15706_v50 = vadd.f32 %v6021_v49, %v15651_v53 }
 0x541   :  { %v15690_v22 = vpop.f32.mrb[17].mxu1  ;;  %v15692_v27 = vpop.f32.mrb[25].mxu0  ;;  %v6122_v15 = vmul.f32 %v15676_v21, %v6090_v14  ;;  %v15709_v44 = vadd.f32 %v5877_v42, %v15642_v57  ;;  %v6209_v48 = vmul.f32 0.7978846, %v6177_v43  ;;  %v6152_v18 = vmul.f32 %v12557_v19, %v6120_v54 }
 0x542   :  { %v15698_v7 = vpop.f32.mrb[18].mxu1  ;;  %v15700_v39 = vpop.f32.mrb[26].mxu0  ;;  %v6089_v36 = vmul.f32 0.044715, %v15696_v31  ;;  %v6211_v2 = vmul.f32 0.7978846, %v6179_v33  ;;  %v6149_v14 = vmul.f32 %v15660_v38, %v6117_v35  ;;  %v6119_v42 = vmul.f32 %v15673_v5, %v6087_v23 }
 0x543   :  { %v15711_v40 = vpop.f32.mrb[19].mxu1  ;;  %v15713_v32 = vpop.f32.mrb[27].mxu0  ;;  %v6154_v49 = vmul.f32 %v15676_v21, %v6122_v15  ;;  %v6091_v26 = vmul.f32 0.044715, %v15706_v50  ;;  %v6184_v10 = vadd.f32 %v12557_v19, %v6152_v18  ;;  %v6092_v43 = vmul.f32 0.044715, %v15709_v44 }
 0x544   :  { %v6121_v17 = vmul.f32 %v15696_v31, %v6089_v36  ;;  %v15726_v25 = vmul.f32 0.5, %v15673_v5  ;;  %v15731_v35 = vadd.f32 %v6023_v20, %v15645_v58  ;;  %13106 = vtanh.f32 %v6209_v48 }
 0x545   :  { %v6186_v54 = vadd.f32 %v15676_v21, %v6154_v49  ;;  %v6123_v33 = vmul.f32 %v15706_v50, %v6091_v26  ;;  %v6216_v9 = vmul.f32 0.7978846, %v6184_v10  ;;  %v6124_v23 = vmul.f32 %v15709_v44, %v6092_v43 }
 0x546   :  { %v6153_v18 = vmul.f32 %v15696_v31, %v6121_v17  ;;  %13108 = vtanh.f32 %v6211_v2  ;;  %v6181_v0 = vadd.f32 %v15660_v38, %v6149_v14  ;;  %v15740_v49 = vmul.f32 0.5, %v12557_v19 }
 0x547   :  { %v13099_v1 = vpop.eup %13098  ;;  %v6218_v26 = vmul.f32 0.7978846, %v6186_v54  ;;  %v6151_v10 = vmul.f32 %v15673_v5, %v6119_v42  ;;  %13110 = vtanh.f32 %v6216_v9  ;;  %v6156_v17 = vmul.f32 %v15709_v44, %v6124_v23 }
 0x548   :  { %v13101_v15 = vpop.eup %13100  ;;  %v15735_v36 = vpop.f32.mrb[20].mxu1  ;;  %v6272_v48 = vadd.f32 1.0, %v13099_v1  ;;  %v6155_v19 = vmul.f32 %v15706_v50, %v6123_v33  ;;  %v6094_v38 = vmul.f32 0.044715, %v15731_v35  ;;  %v6185_v9 = vadd.f32 %v15696_v31, %v6153_v18 }
 0x549   :  { %v15737_v16 = vpop.f32.mrb[28].mxu0  ;;  %v15742_v24 = vpop.f32.mrb[21].mxu1  ;;  %v6274_v45 = vadd.f32 1.0, %v13101_v15  ;;  %13112 = vtanh.f32 %v6218_v26  ;;  %v6188_v23 = vadd.f32 %v15709_v44, %v6156_v17  ;;  %v12560_v61 = vadd.f32 %v15664_v56, %v15648_v41 }
 0x54a   :  { %v15744_v20 = vpop.f32.mrb[29].mxu0  ;;  %v15748_v43 = vpop.f32.mrb[22].mxu1  ;;  %v6213_v15 = vmul.f32 0.7978846, %v6181_v0  ;;  %v6126_v26 = vmul.f32 %v15731_v35, %v6094_v38  ;;  %v15765_v33 = vadd.f32 %v15668_v12, %v15651_v53  ;;  %v15768_v47 = vmul.f32 %v6272_v48, %v15662_v4 }
 0x54b   :  { %v15750_v8 = vpop.f32.mrb[30].mxu0  ;;  %v13103_v2 = vpop.eup %13102  ;;  %v6183_v18 = vadd.f32 %v15673_v5, %v6151_v10  ;;  %v6220_v17 = vmul.f32 0.7978846, %v6188_v23  ;;  %v15775_v46 = vmul.f32 %v6274_v45, %v15666_v28  ;;  %v6093_v38 = vmul.f32 0.044715, %v12560_v61 }
 0x54c   :  { %v15754_v14 = vpop.f32.mrb[23].mxu1  ;;  %v15756_v54 = vpop.f32.mrb[31].mxu0  ;;  %v6276_v42 = vadd.f32 1.0, %v13103_v2  ;;  %v6158_v56 = vmul.f32 %v15731_v35, %v6126_v26  ;;  %v6217_v4 = vmul.f32 0.7978846, %v6185_v9  ;;  %v6187_v48 = vadd.f32 %v15706_v50, %v6155_v19 }
 0x54d   :  { %v13105_v1 = vpop.eup %13104  ;;  %18478 = vst [vmem:[#allocation150_spill] sm:$0xff] %v15775_v46  ;;  %13114 = vtanh.f32 %v6220_v17  ;;  %v6095_v28 = vmul.f32 0.044715, %v15765_v33  ;;  %v15794_v10 = vmul.f32 0.5, %v15696_v31  ;;  %v12577_v19 = vadd.f32 %v15686_v30, %v15645_v58 }
 0x54e   :  { %v6278_v37 = vadd.f32 1.0, %v13105_v1  ;;  %v15771_v2 = vmul.f32 %v6276_v42, %v15682_v13  ;;  %v6190_v13 = vadd.f32 %v15731_v35, %v6158_v56  ;;  %v15790_v45 = vpop.eup %13106  ;;  %v6125_v1 = vmul.f32 %v12560_v61, %v6093_v38 }
 0x54f   :  { %13116 = vtanh.f32 %v6213_v15  ;;  %v6215_v9 = vmul.f32 0.7978846, %v6183_v18  ;;  %v6219_v56 = vmul.f32 0.7978846, %v6187_v48  ;;  %v6127_v38 = vmul.f32 %v15765_v33, %v6095_v28 }
 0x550   :  { %v15778_v0 = vmul.f32 %v6278_v37, %v15702_v60  ;;  %v6339_v12 = vadd.f32 %v15771_v2, %v15768_v47  ;;  %v12561_v37 = vadd.f32 %v15684_v3, %v15642_v57  ;;  %v6058_v60 = vmul.f32 0.5, %v15676_v21  ;;  %v15798_v42 = vpop.eup %13108 }
 0x551   :  { %v6222_v23 = vmul.f32 0.7978846, %v6190_v13  ;;  %v13111_v17 = vpop.eup %13110  ;;  %13118 = vtanh.f32 %v6217_v4  ;;  %v15801_v3 = vmul.f32 0.5, %v15706_v50  ;;  %v6098_v21 = vmul.f32 0.044715, %v12577_v19 }
 0x552   :  { %18479 = vst [vmem:[#allocation151_spill] sm:$0xff] %v15778_v0  ;;  %v6365_v5 = vadd.f32 %v15778_v0, %v15775_v46  ;;  %v6096_v26 = vmul.f32 0.044715, %v12561_v37  ;;  %v6280_v31 = vadd.f32 1.0, %v13111_v17  ;;  %v6157_v63 = vmul.f32 %v12560_v61, %v6125_v1 }
 0x553   :  { %v13113_v55 = vpop.eup %13112  ;;  %13120 = vtanh.f32 %v6222_v23  ;;  %v6130_v0 = vmul.f32 %v12577_v19, %v6098_v21  ;;  %v15806_v15 = vadd.f32 %v15690_v22, %v15648_v41  ;;  %v6060_v50 = vmul.f32 0.5, %v15709_v44 }
 0x554   :  { %v6128_v62 = vmul.f32 %v12561_v37, %v6096_v26  ;;  %v6282_v30 = vadd.f32 1.0, %v13113_v55  ;;  %13122 = vtanh.f32 %v6215_v9  ;;  %v15809_v18 = vmul.f32 %v6280_v31, %v15740_v49 }
 0x555   :  { %13124 = vtanh.f32 %v6219_v56  ;;  %v6162_v13 = vmul.f32 %v12577_v19, %v6130_v0  ;;  %v15816_v55 = vadd.f32 %v15692_v27, %v15651_v53  ;;  %v6062_v22 = vmul.f32 0.5, %v15731_v35 }
 0x556   :  { %v6160_v4 = vmul.f32 %v12561_v37, %v6128_v62  ;;  %v15812_v48 = vmul.f32 %v6282_v30, %v6058_v60  ;;  %v6340_v28 = vadd.f32 %v6339_v12, %v15809_v18  ;;  %v6159_v1 = vmul.f32 %v15765_v33, %v6127_v38 }
 0x557   :  { %v13115_v49 = vpop.eup %13114  ;;  %v6189_v44 = vadd.f32 %v12560_v61, %v6157_v63  ;;  %v6194_v62 = vadd.f32 %v12577_v19, %v6162_v13  ;;  %v6097_v60 = vmul.f32 0.044715, %v15806_v15  ;;  %v15823_v0 = vmul.f32 0.5, %v12560_v61 }
 0x558   :  { %18480 = vst [vmem:[#allocation152_spill] sm:$0xff] %v15812_v48  ;;  %v6192_v9 = vadd.f32 %v12561_v37, %v6160_v4  ;;  %v6366_v23 = vadd.f32 %v6365_v5, %v15812_v48  ;;  %v6284_v26 = vadd.f32 1.0, %v13115_v49  ;;  %v15826_v27 = vmul.f32 0.5, %v15765_v33 }
 0x559   :  { %v15828_v12 = vmul.f32 0.5, %v12561_v37  ;;  %v6226_v35 = vmul.f32 0.7978846, %v6194_v62  ;;  %v6099_v56 = vmul.f32 0.044715, %v15816_v55  ;;  %v15833_v21 = vadd.f32 %v15698_v7, %v15642_v57  ;;  %v15835_v63 = vpop.eup %13116 }
 0x55a   :  { %v6224_v17 = vmul.f32 0.7978846, %v6192_v9  ;;  %v15837_v5 = vmul.f32 %v6284_v26, %v6060_v50  ;;  %v6191_v61 = vadd.f32 %v15765_v33, %v6159_v1  ;;  %v15842_v31 = vadd.f32 %v15700_v39, %v15645_v58 }
 0x55b   :  { %v13119_v37 = vpop.eup %13118  ;;  %v6221_v38 = vmul.f32 0.7978846, %v6189_v44  ;;  %v6129_v30 = vmul.f32 %v15806_v15, %v6097_v60  ;;  %v6100_v4 = vmul.f32 0.044715, %v15833_v21  ;;  %v6066_v9 = vmul.f32 0.5, %v12577_v19 }
 0x55c   :  { %18481 = vst [vmem:[#allocation153_spill] sm:$0xff] %v15837_v5  ;;  %13126 = vtanh.f32 %v6224_v17  ;;  %v6341_v13 = vadd.f32 %v6340_v28, %v15837_v5  ;;  %v6131_v50 = vmul.f32 %v15816_v55, %v6099_v56  ;;  %v6102_v33 = vmul.f32 0.044715, %v15842_v31 }
 0x55d   :  { %13128 = vtanh.f32 %v6226_v35  ;;  %v13121_v7 = vpop.eup %13120  ;;  %v15850_v49 = vmul.f32 0.5, %v15806_v15  ;;  %v6132_v39 = vmul.f32 %v15833_v21, %v6100_v4  ;;  %v12564_v44 = vadd.f32 %v15711_v40, %v15648_v41 }
 0x55e   :  { %v6286_v1 = vadd.f32 1.0, %v13121_v7  ;;  %v15855_v62 = vpop.eup %13122  ;;  %v6281_v60 = vadd.f32 1.0, %v13119_v37  ;;  %v6223_v26 = vmul.f32 0.7978846, %v6191_v61  ;;  %v6134_v28 = vmul.f32 %v15842_v31, %v6102_v33 }
 0x55f   :  { %v15860_v19 = vadd.f32 %v15713_v32, %v15651_v53  ;;  %v13125_v17 = vpop.eup %13124  ;;  %13130 = vtanh.f32 %v6221_v38  ;;  %v6161_v56 = vmul.f32 %v15806_v15, %v6129_v30  ;;  %v6164_v4 = vmul.f32 %v15833_v21, %v6132_v39 }
 0x560   :  { %v15862_v35 = vmul.f32 %v6286_v1, %v6062_v22  ;;  %v6163_v40 = vmul.f32 %v15816_v55, %v6131_v50  ;;  %v6166_v7 = vmul.f32 %v15842_v31, %v6134_v28  ;;  %v6101_v37 = vmul.f32 0.044715, %v12564_v44 }
 0x561   :  { %v6103_v61 = vmul.f32 0.044715, %v15860_v19  ;;  %v15871_v32 = vmul.f32 0.5, %v15816_v55  ;;  %v6196_v22 = vadd.f32 %v15833_v21, %v6164_v4  ;;  %v15876_v38 = vadd.f32 %v15735_v36, %v15642_v57 }
 0x562   :  { %18482 = vst [vmem:[#allocation154_spill] sm:$0xff] %v15862_v35  ;;  %v6367_v33 = vadd.f32 %v6366_v23, %v15862_v35  ;;  %v6283_v30 = vadd.f32 1.0, %v13125_v17  ;;  %v6198_v1 = vadd.f32 %v15842_v31, %v6166_v7  ;;  %v6133_v50 = vmul.f32 %v12564_v44, %v6101_v37 }
 0x563   :  { %v6135_v39 = vmul.f32 %v15860_v19, %v6103_v61  ;;  %v15881_v28 = vmul.f32 %v6281_v60, %v15794_v10  ;;  %13132 = vtanh.f32 %v6223_v26  ;;  %v6193_v23 = vadd.f32 %v15806_v15, %v6161_v56 }
 0x564   :  { %v6228_v35 = vmul.f32 0.7978846, %v6196_v22  ;;  %v6195_v4 = vadd.f32 %v15816_v55, %v6163_v40  ;;  %v6230_v46 = vmul.f32 0.7978846, %v6198_v1  ;;  %v6165_v59 = vmul.f32 %v12564_v44, %v6133_v50 }
 0x565   :  { %v6167_v36 = vmul.f32 %v15860_v19, %v6135_v39  ;;  %v6104_v7 = vmul.f32 0.044715, %v15876_v38  ;;  %v15889_v10 = vadd.f32 %v15737_v16, %v15645_v58  ;;  %v15892_v60 = vmul.f32 %v6283_v30, %v15801_v3 }
 0x566   :  { %v13127_v48 = vpop.eup %13126  ;;  %13134 = vtanh.f32 %v6228_v35  ;;  %v6197_v26 = vadd.f32 %v12564_v44, %v6165_v59  ;;  %v6225_v56 = vmul.f32 0.7978846, %v6193_v23  ;;  %v6068_v37 = vmul.f32 0.5, %v15833_v21 }
 0x567   :  { %v13129_v17 = vpop.eup %13128  ;;  %v6288_v5 = vadd.f32 1.0, %v13127_v48  ;;  %13136 = vtanh.f32 %v6230_v46  ;;  %v6136_v40 = vmul.f32 %v15876_v38, %v6104_v7  ;;  %v6106_v48 = vmul.f32 0.044715, %v15889_v10 }
 0x568   :  { %v6290_v15 = vadd.f32 1.0, %v13129_v17  ;;  %v6199_v16 = vadd.f32 %v15860_v19, %v6167_v36  ;;  %v15905_v3 = vadd.f32 %v15742_v24, %v15648_v41  ;;  %v6229_v30 = vmul.f32 0.7978846, %v6197_v26 }
 0x569   :  { %v15895_v55 = vmul.f32 %v6288_v5, %v15828_v12  ;;  %v13131_v46 = vpop.eup %13130  ;;  %v6227_v12 = vmul.f32 0.7978846, %v6195_v4  ;;  %v6168_v5 = vmul.f32 %v15876_v38, %v6136_v40  ;;  %v6138_v61 = vmul.f32 %v15889_v10, %v6106_v48 }
 0x56a   :  { %v15899_v35 = vmul.f32 %v6290_v15, %v6066_v9  ;;  %v6070_v9 = vmul.f32 0.5, %v15842_v31  ;;  %v6105_v21 = vmul.f32 0.044715, %v15905_v3  ;;  %13138 = vtanh.f32 %v6225_v56 }
 0x56b   :  { %v6342_v59 = vadd.f32 %v6341_v13, %v15895_v55  ;;  %v15913_v1 = vmul.f32 0.5, %v12564_v44  ;;  %v6200_v24 = vadd.f32 %v15876_v38, %v6168_v5  ;;  %v6170_v50 = vmul.f32 %v15889_v10, %v6138_v61 }
 0x56c   :  { %v6368_v22 = vadd.f32 %v6367_v33, %v15899_v35  ;;  %v6231_v13 = vmul.f32 0.7978846, %v6199_v16  ;;  %v6137_v39 = vmul.f32 %v15905_v3, %v6105_v21  ;;  %v15920_v23 = vadd.f32 %v15744_v20, %v15651_v53 }
 0x56d   :  { %v15924_v31 = vadd.f32 %v15748_v43, %v15642_v57  ;;  %v13133_v33 = vpop.eup %13132  ;;  %v6285_v4 = vadd.f32 1.0, %v13131_v46  ;;  %13140 = vtanh.f32 %v6227_v12  ;;  %v6232_v44 = vmul.f32 0.7978846, %v6200_v24 }
 0x56e   :  { %v6202_v36 = vadd.f32 %v15889_v10, %v6170_v50  ;;  %13142 = vtanh.f32 %v6229_v30  ;;  %v6169_v17 = vmul.f32 %v15905_v3, %v6137_v39  ;;  %v6107_v7 = vmul.f32 0.044715, %v15920_v23 }
 0x56f   :  { %v15931_v15 = vadd.f32 %v15750_v8, %v15645_v58  ;;  %13144 = vtanh.f32 %v6232_v44  ;;  %v6108_v57 = vmul.f32 0.044715, %v15924_v31  ;;  %v15936_v43 = vadd.f32 %v15754_v14, %v15648_v41 }
 0x570   :  { %v13135_v20 = vpop.eup %13134  ;;  %v6234_v26 = vmul.f32 0.7978846, %v6202_v36  ;;  %13146 = vtanh.f32 %v6231_v13  ;;  %v6201_v48 = vadd.f32 %v15905_v3, %v6169_v17  ;;  %v6139_v16 = vmul.f32 %v15920_v23, %v6107_v7 }
 0x571   :  { %v13137_v56 = vpop.eup %13136  ;;  %v6292_v40 = vadd.f32 1.0, %v13135_v20  ;;  %v6287_v46 = vadd.f32 1.0, %v13133_v33  ;;  %v6140_v8 = vmul.f32 %v15924_v31, %v6108_v57  ;;  %v6110_v41 = vmul.f32 0.044715, %v15931_v15 }
 0x572   :  { %v6294_v12 = vadd.f32 1.0, %v13137_v56  ;;  %13148 = vtanh.f32 %v6234_v26  ;;  %v6233_v5 = vmul.f32 0.7978846, %v6201_v48  ;;  %v6171_v61 = vmul.f32 %v15920_v23, %v6139_v16 }
 0x573   :  { %v15941_v58 = vmul.f32 %v6292_v40, %v6068_v37  ;;  %v6172_v30 = vmul.f32 %v15924_v31, %v6140_v8  ;;  %v6109_v21 = vmul.f32 0.044715, %v15936_v43  ;;  %v15951_v24 = vadd.f32 %v15756_v54, %v15651_v53 }
 0x574   :  { %v15945_v14 = vmul.f32 %v6294_v12, %v6070_v9  ;;  %13150 = vtanh.f32 %v6233_v5  ;;  %v6203_v37 = vadd.f32 %v15920_v23, %v6171_v61  ;;  %v6142_v13 = vmul.f32 %v15931_v15, %v6110_v41  ;;  %v13139_v39 = vpop.eup %13138 }
 0x575   :  { %v6343_v50 = vadd.f32 %v6342_v59, %v15941_v58  ;;  %v15957_v33 = vmul.f32 %v6285_v4, %v15823_v0  ;;  %v6204_v44 = vadd.f32 %v15924_v31, %v6172_v30  ;;  %v6141_v36 = vmul.f32 %v15936_v43, %v6109_v21 }
 0x576   :  { %v6369_v9 = vadd.f32 %v6368_v22, %v15945_v14  ;;  %v15963_v53 = vmul.f32 %v6287_v46, %v15826_v27  ;;  %v6072_v54 = vmul.f32 0.5, %v15876_v38  ;;  %v6235_v59 = vmul.f32 0.7978846, %v6203_v37 }
 0x577   :  { %v6174_v17 = vmul.f32 %v15931_v15, %v6142_v13  ;;  %v13141_v7 = vpop.eup %13140  ;;  %v6074_v20 = vmul.f32 0.5, %v15889_v10  ;;  %v6236_v26 = vmul.f32 0.7978846, %v6204_v44  ;;  %v6173_v0 = vmul.f32 %v15936_v43, %v6141_v36 }
 0x578   :  { %v6111_v22 = vmul.f32 0.044715, %v15951_v24  ;;  %v13143_v4 = vpop.eup %13142  ;;  %v6289_v57 = vadd.f32 1.0, %v13139_v39  ;;  %13152 = vtanh.f32 %v6235_v59  ;;  %v6273_v27 = vadd.f32 1.0, %v15790_v45 }
 0x579   :  { %v6206_v56 = vadd.f32 %v15931_v15, %v6174_v17  ;;  %v13145_v40 = vpop.eup %13144  ;;  %13154 = vtanh.f32 %v6236_v26  ;;  %v6205_v38 = vadd.f32 %v15936_v43, %v6173_v0  ;;  %v6277_v10 = vadd.f32 1.0, %v15835_v63 }
 0x57a   :  { %v6143_v48 = vmul.f32 %v15951_v24, %v6111_v22  ;;  %v13147_v16 = vpop.eup %13146  ;;  %v6291_v46 = vadd.f32 1.0, %v13141_v7  ;;  %v6296_v12 = vadd.f32 1.0, %v13145_v40  ;;  %v15976_v5 = vmul.f32 %v6273_v27, %v15678_v29 }
 0x57b   :  { %v6238_v8 = vmul.f32 0.7978846, %v6206_v56  ;;  %v6237_v41 = vmul.f32 0.7978846, %v6205_v38  ;;  %v15980_v45 = vmul.f32 %v6277_v10, %v15716_v11  ;;  %v6275_v21 = vadd.f32 1.0, %v15798_v42 }
 0x57c   :  { %v13149_v61 = vpop.eup %13148  ;;  %v6175_v30 = vmul.f32 %v15951_v24, %v6143_v48  ;;  %v15983_v37 = vmul.f32 %v6296_v12, %v6072_v54  ;;  %v6279_v63 = vadd.f32 1.0, %v15855_v62  ;;  %v6293_v39 = vadd.f32 1.0, %v13143_v4 }
 0x57d   :  { %v6298_v13 = vadd.f32 1.0, %v13149_v61  ;;  %13156 = vtanh.f32 %v6238_v8  ;;  %v6352_v44 = vadd.f32 %v15980_v45, %v15976_v5  ;;  %v15993_v42 = vmul.f32 %v6275_v21, %v15680_v6 }
 0x57e   :  { %13158 = vtanh.f32 %v6237_v41  ;;  %v6207_v29 = vadd.f32 %v15951_v24, %v6175_v30  ;;  %v13151_v36 = vpop.eup %13150  ;;  %v6344_v59 = vadd.f32 %v6343_v50, %v15983_v37  ;;  %v15996_v54 = vmul.f32 %v6279_v63, %v15726_v25 }
 0x57f   :  { %v15990_v11 = vmul.f32 %v6298_v13, %v6074_v20  ;;  %v15999_v62 = vmul.f32 %v6289_v57, %v15850_v49  ;;  %v6297_v17 = vadd.f32 1.0, %v13151_v36  ;;  %v6353_v26 = vadd.f32 %v6352_v44, %v15881_v28 }
 0x580   :  { %v6239_v7 = vmul.f32 0.7978846, %v6207_v29  ;;  %v6295_v0 = vadd.f32 1.0, %v13147_v16  ;;  %v6073_v50 = vmul.f32 0.5, %v15905_v3  ;;  %v6378_v20 = vadd.f32 %v15996_v54, %v15993_v42 }
 0x581   :  { %v6370_v22 = vadd.f32 %v6369_v9, %v15990_v11  ;;  %v16007_v6 = vmul.f32 %v6293_v39, %v15913_v1  ;;  %v6354_v25 = vadd.f32 %v6353_v26, %v15957_v33  ;;  %v16011_v4 = vmul.f32 %v6291_v46, %v15871_v32 }
 0x582   :  { %13160 = vtanh.f32 %v6239_v7  ;;  %v13153_v49 = vpop.eup %13152  ;;  %v6071_v57 = vmul.f32 0.5, %v15860_v19  ;;  %v6379_v56 = vadd.f32 %v6378_v20, %v15892_v60  ;;  %v18279_v9 = vmov 0.0  }
 0x583   :  { %6799 = vmatprep.mubr.f32.mxu1 %v18279_v9  ;;  %6912 = vmatprep.mubr.f32.mxu0 %v18279_v9  ;;  %v13155_v3 = vpop.eup %13154  ;;  %v16017_v27 = vmul.f32 %v6297_v17, %v6073_v50  ;;  %v6075_v1 = vmul.f32 0.5, %v15920_v23  ;;  %v6299_v40 = vadd.f32 1.0, %v13153_v49  ;;  %v6355_v38 = vadd.f32 %v6354_v25, %v15999_v62 }
 0x584   :  { %v16021_v48 = vmul.f32 %v6295_v0, %v6071_v57  ;;  %v6076_v32 = vmul.f32 0.5, %v15924_v31  ;;  %v6300_v19 = vadd.f32 1.0, %v13155_v3  ;;  %v6380_v10 = vadd.f32 %v6379_v56, %v15963_v53 }
 0x585   :  { %v6356_v16 = vadd.f32 %v6355_v38, %v16007_v6  ;;  %v16026_v12 = vmul.f32 %v6299_v40, %v6075_v1  ;;  %v6078_v23 = vmul.f32 0.5, %v15931_v15  ;;  %v6077_v31 = vmul.f32 0.5, %v15936_v43 }
 0x586   :  { %v6332_v8 = vmul.f32 %v6300_v19, %v6076_v32  ;;  %v6381_v61 = vadd.f32 %v6380_v10, %v16011_v4  ;;  %v6079_v15 = vmul.f32 0.5, %v15951_v24 }
 0x587   :  { %v13157_v46 = vpop.eup %13156  ;;  %v6357_v21 = vadd.f32 %v6356_v16, %v16017_v27 }
 0x588   :  { %v13159_v41 = vpop.eup %13158  ;;  %v6302_v30 = vadd.f32 1.0, %v13157_v46  ;;  %v6345_v13 = vadd.f32 %v6344_v59, %v6332_v8  ;;  %v6382_v39 = vadd.f32 %v6381_v61, %v16021_v48 }
 0x589   :  { %v6301_v63 = vadd.f32 1.0, %v13159_v41 }
 0x58a   :  { %v6334_v29 = vmul.f32 %v6302_v30, %v6078_v23  ;;  %v6346_v44 = vrot.slane %v6345_v13, 4  ;;  %v6383_v17 = vadd.f32 %v6382_v39, %v16026_v12 }
 0x58b   :  { %v16033_v36 = vmul.f32 %v6301_v63, %v6077_v31 }
 0x58c   :  { %v13161_v7 = vpop.eup %13160  ;;  %v6371_v26 = vadd.f32 %v6370_v22, %v6334_v29  ;;  %v6347_v0 = vadd.f32 %v6346_v44, %v6345_v13  ;;  %v6338_v22 = vld [vmem:[%s18231_s6] sm:$0xf] }
 0x58d   :  { %v6303_v50 = vadd.f32 1.0, %v13161_v7  ;;  %v6358_v20 = vadd.f32 %v6357_v21, %v16033_v36  ;;  %v6400_v16 = vrot.slane %v6338_v22, %v15630_v52  ;;  %v6408_v31 = vrot.slane %v6338_v22, %v15632_v34 }
 0x58e   :  { %v6372_v59 = vrot.slane %v6371_v26, 4  ;;  %v6348_v25 = vrot.slane %v6347_v0, 2  ;;  %v6404_v63 = vrot.slane %v6338_v22, %v15637_v51 }
 0x58f   :  { %v16038_v43 = vmul.f32 %v6303_v50, %v6079_v15  ;;  %v6359_v49 = vrot.slane %v6358_v20, 4 }
 0x590   :  { %v6373_v57 = vadd.f32 %v6372_v59, %v6371_v26  ;;  %v6349_v56 = vadd.f32 %v6348_v25, %v6347_v0 }
 0x591   :  { %v6360_v3 = vadd.f32 %v6359_v49, %v6358_v20  ;;  %v6384_v1 = vadd.f32 %v6383_v17, %v16038_v43 }
 0x592   :  { %v6374_v40 = vrot.slane %v6373_v57, 2  ;;  %v6350_v38 = vrot.slane %v6349_v56, 1 }
 0x593   :  { %v6361_v24 = vrot.slane %v6360_v3, 2  ;;  %v6385_v32 = vrot.slane %v6384_v1, 4 }
 0x594   :  { %v6375_v19 = vadd.f32 %v6374_v40, %v6373_v57  ;;  %v6351_v10 = vadd.f32 %v6350_v38, %v6349_v56 }
 0x595   :  { %v6362_v46 = vadd.f32 %v6361_v24, %v6360_v3  ;;  %v6386_v61 = vadd.f32 %v6385_v32, %v6384_v1  ;;  %v18483_v1 = vld [vmem:[#allocation153_spill] sm:$0xff] }
 0x596   :  { %v6376_v41 = vrot.slane %v6375_v19, 1  ;;  %v6392_v23 = vmul.f32 0.015625, %v6351_v10  ;;  %v18484_v24 = vld [vmem:[#allocation149_spill] sm:$0xff] }
 0x597   :  { %v6363_v30 = vrot.slane %v6362_v46, 1  ;;  %v6387_v21 = vrot.slane %v6386_v61, 2  ;;  %v6412_v32 = vrot.slane %v6338_v22, %v18484_v24 }
 0x598   :  { %v6377_v13 = vadd.f32 %v6376_v41, %v6375_v19  ;;  %v6417_v39 = vmul.f32 %v6400_v16, %v6392_v23 }
 0x599   :  { %v6364_v44 = vadd.f32 %v6363_v30, %v6362_v46  ;;  %v6388_v17 = vadd.f32 %v6387_v21, %v6386_v61 }
 0x59a   :  { %v6394_v7 = vmul.f32 0.015625, %v6377_v13  ;;  %v6424_v26 = vrot.slane %v6417_v39, %v15630_v52  ;;  %v18486_v39 = vld [vmem:[#allocation151_spill] sm:$0xff] }
 0x59b   :  { %v6393_v0 = vmul.f32 0.015625, %v6364_v44  ;;  %v6389_v15 = vrot.slane %v6388_v17, 1 }
 0x59c   :  { %v6419_v50 = vmul.f32 %v6408_v31, %v6394_v7  ;;  %v16048_v20 = vsub.f32 %v6332_v8, %v6424_v26  ;;  %v16051_v49 = vsub.f32 %v15768_v47, %v6424_v26  ;;  %v16055_v56 = vsub.f32 %v15771_v2, %v6424_v26  ;;  %v18485_v31 = vld [vmem:[#allocation150_spill] sm:$0xff] }
 0x59d   :  { %v6418_v59 = vmul.f32 %v6404_v63, %v6393_v0  ;;  %v6390_v25 = vadd.f32 %v6389_v15, %v6388_v17  ;;  %v16058_v3 = vsub.f32 %v15809_v18, %v6424_v26  ;;  %v16061_v40 = vsub.f32 %v18483_v1, %v6424_v26  ;;  %v18487_v17 = vld [vmem:[#allocation152_spill] sm:$0xff] }
 0x59e   :  { %v6432_v57 = vrot.slane %v6419_v50, %v15630_v52  ;;  %v16065_v8 = vsub.f32 %v15895_v55, %v6424_v26  ;;  %v16071_v19 = vsub.f32 %v15941_v58, %v6424_v26  ;;  %v16074_v2 = vsub.f32 %v15983_v37, %v6424_v26 }
 0x59f   :  { %v6428_v38 = vrot.slane %v6418_v59, %v15630_v52 }
 0x5a0   :  { %v16068_v47 = vsub.f32 %v6334_v29, %v6432_v57  ;;  %v16118_v63 = vsub.f32 %v18485_v31, %v6432_v57  ;;  %v16121_v44 = vsub.f32 %v18486_v39, %v6432_v57  ;;  %v16124_v7 = vsub.f32 %v18487_v17, %v6432_v57 }
 0x5a1   :  { %v16077_v18 = vsub.f32 %v15976_v5, %v6428_v38  ;;  %v16080_v10 = vsub.f32 %v15980_v45, %v6428_v38  ;;  %v16083_v16 = vsub.f32 %v15881_v28, %v6428_v38  ;;  %v16086_v55 = vsub.f32 %v15957_v33, %v6428_v38 }
 0x5a2   :  { %v16089_v29 = vsub.f32 %v15999_v62, %v6428_v38  ;;  %v16092_v58 = vsub.f32 %v16007_v6, %v6428_v38  ;;  %v16095_v37 = vsub.f32 %v16017_v27, %v6428_v38  ;;  %v6395_v5 = vmul.f32 0.015625, %v6390_v25 }
 0x5a3   :  { %v16098_v22 = vsub.f32 %v16033_v36, %v6428_v38  ;;  %v6470_v28 = vmul.f32 %v16077_v18, %v16077_v18  ;;  %v6474_v33 = vmul.f32 %v16080_v10, %v16080_v10  ;;  %v6469_v45 = vmul.f32 %v16051_v49, %v16051_v49 }
 0x5a4   :  { %v6478_v62 = vmul.f32 %v16083_v16, %v16083_v16  ;;  %v6420_v46 = vmul.f32 %v6412_v32, %v6395_v5  ;;  %v6473_v27 = vmul.f32 %v16055_v56, %v16055_v56  ;;  %v6482_v36 = vmul.f32 %v16086_v55, %v16086_v55 }
 0x5a5   :  { %v6514_v6 = vadd.f32 %v6474_v33, %v6470_v28  ;;  %v6486_v41 = vmul.f32 %v16089_v29, %v16089_v29  ;;  %v6490_v23 = vmul.f32 %v16092_v58, %v16092_v58  ;;  %v6481_v5 = vmul.f32 %v16061_v40, %v16061_v40 }
 0x5a6   :  { %v6436_v30 = vrot.slane %v6420_v46, %v15630_v52  ;;  %v6501_v21 = vadd.f32 %v6473_v27, %v6469_v45  ;;  %v6485_v28 = vmul.f32 %v16065_v8, %v16065_v8 }
 0x5a7   :  { %v6515_v61 = vadd.f32 %v6514_v6, %v6478_v62  ;;  %v18488_v6 = vld [vmem:[#allocation154_spill] sm:$0xff] }
 0x5a8   :  { %v16127_v26 = vsub.f32 %v15993_v42, %v6436_v30  ;;  %v16130_v0 = vsub.f32 %v15996_v54, %v6436_v30  ;;  %v16133_v15 = vsub.f32 %v15892_v60, %v6436_v30  ;;  %v16136_v50 = vsub.f32 %v15963_v53, %v6436_v30 }
 0x5a9   :  { %v6516_v13 = vadd.f32 %v6515_v61, %v6482_v36  ;;  %v16139_v25 = vsub.f32 %v16011_v4, %v6436_v30  ;;  %v16142_v1 = vsub.f32 %v16021_v48, %v6436_v30  ;;  %v16145_v38 = vsub.f32 %v16026_v12, %v6436_v30 }
 0x5aa   :  { %v16148_v42 = vsub.f32 %v16038_v43, %v6436_v30  ;;  %v6472_v60 = vmul.f32 %v16127_v26, %v16127_v26  ;;  %v6476_v53 = vmul.f32 %v16130_v0, %v16130_v0  ;;  %v6494_v54 = vmul.f32 %v16095_v37, %v16095_v37 }
 0x5ab   :  { %v6517_v59 = vadd.f32 %v6516_v13, %v6486_v41  ;;  %v6498_v4 = vmul.f32 %v16098_v22, %v16098_v22  ;;  %v6477_v12 = vmul.f32 %v16058_v3, %v16058_v3  ;;  %v6480_v43 = vmul.f32 %v16133_v15, %v16133_v15 }
 0x5ac   :  { %v6540_v32 = vadd.f32 %v6476_v53, %v6472_v60  ;;  %v6484_v45 = vmul.f32 %v16136_v50, %v16136_v50  ;;  %v16169_v46 = vsub.f32 %v18488_v6, %v6432_v57  ;;  %v16172_v36 = vsub.f32 %v15899_v35, %v6432_v57 }
 0x5ad   :  { %v6518_v48 = vadd.f32 %v6517_v59, %v6490_v23  ;;  %v6502_v62 = vadd.f32 %v6501_v21, %v6477_v12  ;;  %v16175_v61 = vsub.f32 %v15945_v14, %v6432_v57  ;;  %v16178_v41 = vsub.f32 %v15990_v11, %v6432_v57 }
 0x5ae   :  { %v6541_v27 = vadd.f32 %v6540_v32, %v6480_v43  ;;  %v6471_v13 = vmul.f32 %v16118_v63, %v16118_v63  ;;  %v6475_v21 = vmul.f32 %v16121_v44, %v16121_v44  ;;  %v6488_v31 = vmul.f32 %v16139_v25, %v16139_v25 }
 0x5af   :  { %v6519_v33 = vadd.f32 %v6518_v48, %v6494_v54  ;;  %v6503_v30 = vadd.f32 %v6502_v62, %v6481_v5  ;;  %v6489_v14 = vmul.f32 %v16071_v19, %v16071_v19  ;;  %v6492_v11 = vmul.f32 %v16142_v1, %v16142_v1 }
 0x5b0   :  { %v6542_v39 = vadd.f32 %v6541_v27, %v6484_v45  ;;  %v6479_v59 = vmul.f32 %v16124_v7, %v16124_v7  ;;  %v6527_v60 = vadd.f32 %v6475_v21, %v6471_v13  ;;  %v6493_v54 = vmul.f32 %v16074_v2, %v16074_v2 }
 0x5b1   :  { %v6520_v23 = vadd.f32 %v6519_v33, %v6498_v4  ;;  %v6504_v17 = vadd.f32 %v6503_v30, %v6485_v28  ;;  %v6496_v48 = vmul.f32 %v16145_v38, %v16145_v38  ;;  %v6483_v43 = vmul.f32 %v16169_v46, %v16169_v46 }
 0x5b2   :  { %v6543_v57 = vadd.f32 %v6542_v39, %v6488_v31  ;;  %v6528_v32 = vadd.f32 %v6527_v60, %v6479_v59  ;;  %v6497_v5 = vmul.f32 %v16048_v20, %v16048_v20  ;;  %v6500_v45 = vmul.f32 %v16148_v42, %v16148_v42 }
 0x5b3   :  { %v6521_v35 = vrot.slane %v6520_v23, 4  ;;  %v6505_v4 = vadd.f32 %v6504_v17, %v6489_v14  ;;  %v6487_v6 = vmul.f32 %v16172_v36, %v16172_v36  ;;  %v6491_v21 = vmul.f32 %v16175_v61, %v16175_v61 }
 0x5b4   :  { %v6544_v12 = vadd.f32 %v6543_v57, %v6492_v11  ;;  %v6529_v27 = vadd.f32 %v6528_v32, %v6483_v43  ;;  %v6495_v17 = vmul.f32 %v16178_v41, %v16178_v41  ;;  %v6499_v60 = vmul.f32 %v16068_v47, %v16068_v47  ;;  %v6337_v43 = vld [vmem:[%s18230_s5] sm:$0xf] }
 0x5b5   :  { %v6522_v53 = vadd.f32 %v6521_v35, %v6520_v23  ;;  %v6506_v33 = vadd.f32 %v6505_v4, %v6493_v54 }
 0x5b6   :  { %v6545_v62 = vadd.f32 %v6544_v12, %v6496_v48  ;;  %v6530_v31 = vadd.f32 %v6529_v27, %v6487_v6 }
 0x5b7   :  { %v6523_v28 = vrot.slane %v6522_v53, 2  ;;  %v6507_v30 = vadd.f32 %v6506_v33, %v6497_v5 }
 0x5b8   :  { %v6546_v13 = vadd.f32 %v6545_v62, %v6500_v45  ;;  %v6531_v11 = vadd.f32 %v6530_v31, %v6491_v21 }
 0x5b9   :  { %v6524_v23 = vadd.f32 %v6523_v28, %v6522_v53  ;;  %v6508_v35 = vrot.slane %v6507_v30, 4  ;;  %v6336_v53 = vld [vmem:[%s18229_s4] sm:$0xf] }
 0x5ba   :  { %v6547_v14 = vrot.slane %v6546_v13, 4  ;;  %v6532_v4 = vadd.f32 %v6531_v11, %v6495_v17  ;;  %v6565_v28 = vrot.slane %v6336_v53, %v15637_v51  ;;  %v16218_v6 = vrot.slane %v6336_v53, %v18484_v24 }
 0x5bb   :  { %v6525_v39 = vrot.slane %v6524_v23, 1  ;;  %v6509_v59 = vadd.f32 %v6508_v35, %v6507_v30  ;;  %v16221_v27 = vrot.slane %v6336_v53, %v15630_v52  ;;  %v16224_v30 = vrot.slane %v6337_v43, %v15637_v51 }
 0x5bc   :  { %v6548_v54 = vadd.f32 %v6547_v14, %v6546_v13  ;;  %v6533_v5 = vadd.f32 %v6532_v4, %v6499_v60  ;;  %v16227_v21 = vrot.slane %v6336_v53, %v15632_v34  ;;  %v16233_v35 = vrot.slane %v6337_v43, %v15630_v52 }
 0x5bd   :  { %v6526_v57 = vadd.f32 %v6525_v39, %v6524_v23  ;;  %v6510_v12 = vrot.slane %v6509_v59, 2  ;;  %v16230_v39 = vrot.slane %v6337_v43, %v18484_v24  ;;  %v6579_v17 = vmul.f32 %v6565_v28, %v16077_v18 }
 0x5be   :  { %v6549_v32 = vrot.slane %v6548_v54, 2  ;;  %v6534_v23 = vrot.slane %v6533_v5, 4  ;;  %v6583_v11 = vmul.f32 %v6565_v28, %v16080_v10  ;;  %v16242_v53 = vmul.f32 %v16221_v27, %v16051_v49 }
 0x5bf   :  { %v6554_v48 = vmul.f32 0.015625, %v6526_v57  ;;  %v6511_v45 = vadd.f32 %v6510_v12, %v6509_v59  ;;  %v16238_v59 = vrot.slane %v6337_v43, %v15632_v34  ;;  %v16254_v18 = vmul.f32 %v16218_v6, %v16130_v0 }
 0x5c0   :  { %v6550_v62 = vadd.f32 %v6549_v32, %v6548_v54  ;;  %v6535_v14 = vadd.f32 %v6534_v23, %v6533_v5  ;;  %v16246_v54 = vmul.f32 %v16221_v27, %v16055_v56  ;;  %v16258_v12 = vmul.f32 %v16227_v21, %v16118_v63 }
 0x5c1   :  { %v6611_v33 = vadd.f32 1e-05, %v6554_v48  ;;  %v6512_v13 = vrot.slane %v6511_v45, 1  ;;  %v16250_v48 = vmul.f32 %v16218_v6, %v16127_v26  ;;  %v16262_v56 = vmul.f32 %v16227_v21, %v16121_v44 }
 0x5c2   :  { %v6551_v31 = vrot.slane %v6550_v62, 1  ;;  %v6536_v4 = vrot.slane %v6535_v14, 2  ;;  %v6587_v32 = vmul.f32 %v6565_v28, %v16083_v16  ;;  %v6591_v26 = vmul.f32 %v6565_v28, %v16086_v55 }
 0x5c3   :  { %13162 = vrsqrt.f32 %v6611_v33  ;;  %v6513_v57 = vadd.f32 %v6512_v13, %v6511_v45  ;;  %v6589_v0 = vmul.f32 %v16218_v6, %v16133_v15  ;;  %v6593_v33 = vmul.f32 %v16218_v6, %v16136_v50 }
 0x5c4   :  { %v6552_v60 = vadd.f32 %v6551_v31, %v6550_v62  ;;  %v6537_v43 = vadd.f32 %v6536_v4, %v6535_v14  ;;  %v6586_v62 = vmul.f32 %v16221_v27, %v16058_v3  ;;  %v6590_v44 = vmul.f32 %v16221_v27, %v16061_v40 }
 0x5c5   :  { %v6553_v10 = vmul.f32 0.015625, %v6513_v57  ;;  %v16276_v16 = vmul.f32 %v16227_v21, %v16124_v7  ;;  %v16280_v55 = vmul.f32 %v16227_v21, %v16169_v46  ;;  %v6595_v15 = vmul.f32 %v6565_v28, %v16089_v29 }
 0x5c6   :  { %v6556_v49 = vmul.f32 0.015625, %v6552_v60  ;;  %v6538_v63 = vrot.slane %v6537_v43, 1  ;;  %v6599_v23 = vmul.f32 %v6565_v28, %v16092_v58  ;;  %v6597_v3 = vmul.f32 %v16218_v6, %v16139_v25 }
 0x5c7   :  { %v6610_v5 = vadd.f32 1e-05, %v6553_v10  ;;  %v6601_v40 = vmul.f32 %v16218_v6, %v16142_v1  ;;  %v6594_v7 = vmul.f32 %v16221_v27, %v16065_v8  ;;  %v6603_v31 = vmul.f32 %v6565_v28, %v16095_v37 }
 0x5c8   :  { %v6613_v45 = vadd.f32 1e-05, %v6556_v49  ;;  %v6539_v50 = vadd.f32 %v6538_v63, %v6537_v43  ;;  %v6607_v46 = vmul.f32 %v6565_v28, %v16098_v22  ;;  %v6596_v63 = vmul.f32 %v16227_v21, %v16172_v36 }
 0x5c9   :  { %13164 = vrsqrt.f32 %v6610_v5  ;;  %v6606_v36 = vmul.f32 %v16221_v27, %v16048_v20 }
 0x5ca   :  { %13166 = vrsqrt.f32 %v6613_v45  ;;  %v6555_v57 = vmul.f32 0.015625, %v6539_v50  ;;  %v6600_v50 = vmul.f32 %v16227_v21, %v16175_v61  ;;  %v6608_v61 = vmul.f32 %v16227_v21, %v16068_v47 }
 0x5cc   :  { %v6612_v1 = vadd.f32 1e-05, %v6555_v57 }
 0x5cd   :  { %v13163_v13 = vpop.eup %13162 }
 0x5ce   :  { %v6619_v14 = vmul.f32 %v13163_v13, %v6579_v17  ;;  %v6623_v29 = vmul.f32 %v13163_v13, %v6583_v11  ;;  %v6627_v60 = vmul.f32 %v13163_v13, %v6587_v32  ;;  %v6631_v4 = vmul.f32 %v13163_v13, %v6591_v26 }
 0x5cf   :  { %v6635_v58 = vmul.f32 %v13163_v13, %v6595_v15  ;;  %v6639_v10 = vmul.f32 %v13163_v13, %v6599_v23  ;;  %v6643_v49 = vmul.f32 %v13163_v13, %v6603_v31  ;;  %v6647_v28 = vmul.f32 %v13163_v13, %v6607_v46 }
 0x5d0   :  { %v6672_v25 = vadd.f32 %v16224_v30, %v6619_v14  ;;  %v6676_v43 = vadd.f32 %v16224_v30, %v6623_v29  ;;  %v6680_v5 = vadd.f32 %v16224_v30, %v6627_v60  ;;  %v6684_v8 = vadd.f32 %v16224_v30, %v6631_v4 }
 0x5d1   :  { %v6688_v37 = vadd.f32 %v16224_v30, %v6635_v58  ;;  %v6692_v22 = vadd.f32 %v16224_v30, %v6639_v10  ;;  %13168 = vrsqrt.f32 %v6612_v1  ;;  %v6598_v11 = vmul.f32 %v16221_v27, %v16071_v19 }
 0x5d2   :  { %v16298_v17 = vpack.c.bf16 %v6676_v43, %v6672_v25  ;;  %v6696_v32 = vadd.f32 %v16224_v30, %v6643_v49  ;;  %v16303_v26 = vpack.c.bf16 %v6684_v8, %v6680_v5  ;;  %v6700_v15 = vadd.f32 %v16224_v30, %v6647_v28 }
 0x5d3   :  { %v16305_v45 = vpack.c.bf16 %v6692_v22, %v6688_v37  ;;  %v6605_v23 = vmul.f32 %v16218_v6, %v16145_v38  ;;  %v6609_v19 = vmul.f32 %v16218_v6, %v16148_v42  ;;  %v6602_v13 = vmul.f32 %v16221_v27, %v16074_v2  ;;  %v13165_v31 = vpop.eup %13164 }
 0x5d4   :  { %12346 = vmatprep.subr.bf16.mxu1 %v16298_v17  ;;  %v16319_v46 = vpack.c.bf16 %v6700_v15, %v6696_v32  ;;  %v6604_v30 = vmul.f32 %v16227_v21, %v16178_v41  ;;  %v13167_v14 = vpop.eup %13166  ;;  %v6618_v38 = vmul.f32 %v13165_v31, %v16242_v53  ;;  %v6622_v42 = vmul.f32 %v13165_v31, %v16246_v54 }
 0x5d5   :  { %v6626_v6 = vmul.f32 %v13165_v31, %v6586_v62  ;;  %v6630_v29 = vmul.f32 %v13165_v31, %v6590_v44  ;;  %v6621_v2 = vmul.f32 %v13167_v14, %v16250_v48  ;;  %v6625_v57 = vmul.f32 %v13167_v14, %v16254_v18 }
 0x5d6   :  { %v6629_v60 = vmul.f32 %v13167_v14, %v6589_v0  ;;  %v6633_v4 = vmul.f32 %v13167_v14, %v6593_v33  ;;  %v6671_v20 = vadd.f32 %v16233_v35, %v6618_v38  ;;  %v6675_v41 = vadd.f32 %v16233_v35, %v6622_v42 }
 0x5d7   :  { %v6679_v27 = vadd.f32 %v16233_v35, %v6626_v6  ;;  %v6683_v47 = vadd.f32 %v16233_v35, %v6630_v29  ;;  %v6674_v21 = vadd.f32 %v16230_v39, %v6621_v2  ;;  %v6678_v53 = vadd.f32 %v16230_v39, %v6625_v57 }
 0x5d8   :  { %v6682_v54 = vadd.f32 %v16230_v39, %v6629_v60  ;;  %v6686_v48 = vadd.f32 %v16230_v39, %v6633_v4  ;;  %v16339_v62 = vpack.c.bf16 %v6675_v41, %v6671_v20  ;;  %v6637_v0 = vmul.f32 %v13167_v14, %v6597_v3  ;;  %v16431_v41 = vld [vmem:[%s18226_s1 + $0x18] sm:$0xff] }
 0x5d9   :  { %v16341_v18 = vpack.c.bf16 %v6683_v47, %v6679_v27  ;;  %v6641_v33 = vmul.f32 %v13167_v14, %v6601_v40  ;;  %v16343_v44 = vpack.c.bf16 %v6678_v53, %v6674_v21  ;;  %v6634_v10 = vmul.f32 %v13165_v31, %v6594_v7  ;;  %v16442_v27 = vld [vmem:[%s18226_s1 + $0x20] sm:$0xff]  ;;  %v16453_v47 = vld [vmem:[%s18226_s1 + $0x28] sm:$0xff]  ;;  %v16464_v21 = vld [vmem:[%s18226_s1 + $0x30] sm:$0xff] }
 0x5da   :  { %v16345_v58 = vpack.c.bf16 %v6686_v48, %v6682_v54  ;;  %v6638_v49 = vmul.f32 %v13165_v31, %v6598_v11  ;;  %12348 = vmatpush1.bf16.msra.mxu1 %v16339_v62  ;;  %v6690_v43 = vadd.f32 %v16230_v39, %v6637_v0  ;;  %v6645_v5 = vmul.f32 %v13167_v14, %v6605_v23  ;;  %v16475_v53 = vld [vmem:[%s18226_s1 + $0x38] sm:$0xff] }
 0x5db   :  { %v13169_v25 = vpop.eup %13168  ;;  %v6694_v1 = vadd.f32 %v16230_v39, %v6641_v33  ;;  %v6649_v8 = vmul.f32 %v13167_v14, %v6609_v19  ;;  %12362 = vmatprep.subr.bf16.mxu0 %v16343_v44  ;;  %12350 = vmatprep.subr.bf16.mxu1 %v16303_v26  ;;  %v6687_v28 = vadd.f32 %v16233_v35, %v6634_v10 }
 0x5dc   :  { %v6620_v3 = vmul.f32 %v13169_v25, %v16258_v12  ;;  %v6624_v40 = vmul.f32 %v13169_v25, %v16262_v56  ;;  %v6628_v7 = vmul.f32 %v13169_v25, %v16276_v16  ;;  %v6632_v37 = vmul.f32 %v13169_v25, %v16280_v55 }
 0x5dd   :  { %v16356_v22 = vpack.c.bf16 %v6694_v1, %v6690_v43  ;;  %v6691_v11 = vadd.f32 %v16233_v35, %v6638_v49  ;;  %v6636_v23 = vmul.f32 %v13169_v25, %v6596_v63  ;;  %v6640_v55 = vmul.f32 %v13169_v25, %v6600_v50 }
 0x5de   :  { %v6673_v32 = vadd.f32 %v16238_v59, %v6620_v3  ;;  %v6677_v15 = vadd.f32 %v16238_v59, %v6624_v40  ;;  %v6681_v12 = vadd.f32 %v16238_v59, %v6628_v7  ;;  %12352 = vmatpush1.bf16.msra.mxu1 %v16341_v18  ;;  %v6685_v56 = vadd.f32 %v16238_v59, %v6632_v37 }
 0x5df   :  { %v16365_v16 = vpack.c.bf16 %v6691_v11, %v6687_v28  ;;  %v6698_v19 = vadd.f32 %v16230_v39, %v6645_v5  ;;  %12354 = vmatprep.subr.bf16.mxu1 %v16305_v45  ;;  %v6689_v38 = vadd.f32 %v16238_v59, %v6636_v23  ;;  %v6702_v42 = vadd.f32 %v16230_v39, %v6649_v8 }
 0x5e0   :  { %v16368_v14 = vpack.c.bf16 %v6677_v15, %v6673_v32  ;;  %v6642_v6 = vmul.f32 %v13165_v31, %v6602_v13  ;;  %v16373_v29 = vpack.c.bf16 %v6685_v56, %v6681_v12  ;;  %v6693_v63 = vadd.f32 %v16238_v59, %v6640_v55 }
 0x5e1   :  { %v6646_v2 = vmul.f32 %v13165_v31, %v6606_v36  ;;  %v6644_v57 = vmul.f32 %v13169_v25, %v6604_v30  ;;  %v16377_v50 = vpack.c.bf16 %v6702_v42, %v6698_v19  ;;  %v6648_v4 = vmul.f32 %v13169_v25, %v6608_v61  ;;  %v16420_v61 = vld [vmem:[%s18226_s1 + $0x10] sm:$0xff] }
 0x5e2   :  { %12364 = vmatpush1.bf16.msra.mxu0 %v16368_v14  ;;  %v6695_v60 = vadd.f32 %v16233_v35, %v6642_v6  ;;  %12356 = vmatpush1.bf16.msra.mxu1 %v16365_v16  ;;  %v16382_v20 = vpack.c.bf16 %v6693_v63, %v6689_v38 }
 0x5e3   :  { %12366 = vmatprep.subr.bf16.mxu0 %v16345_v58  ;;  %v6699_v39 = vadd.f32 %v16233_v35, %v6646_v2  ;;  %v6697_v13 = vadd.f32 %v16238_v59, %v6644_v57  ;;  %12358 = vmatprep.subr.bf16.mxu1 %v16319_v46  ;;  %v6701_v31 = vadd.f32 %v16238_v59, %v6648_v4  ;;  %v16399_v35 = vld [vmem:[%s18226_s1] sm:$0xff]  ;;  %v16409_v59 = vld [vmem:[%s18226_s1 + $0x8] sm:$0xff] }
 0x5e5   :  { %v16388_v36 = vpack.c.bf16 %v6699_v39, %v6695_v60  ;;  %v16391_v30 = vpack.c.bf16 %v6701_v31, %v6697_v13 }
 0x5e6   :  { %12368 = vmatpush1.bf16.msra.mxu0 %v16373_v29 }
 0x5e7   :  { %12370 = vmatprep.subr.bf16.mxu0 %v16356_v22  ;;  %12360 = vmatpush1.bf16.msra.mxu1 %v16388_v36 }
 0x5ea   :  { %12372 = vmatpush1.bf16.msra.mxu0 %v16382_v20  ;;  %11746 = vmatmul.mubr.msk.f32.vlgmr.msra.gmra.mrb[24].mxu1 %vm4586_vm0, %v16399_v35 }
 0x5eb   :  { %12374 = vmatprep.subr.bf16.mxu0 %v16377_v50  ;;  %6805 = vmatprep.mubr.f32.mxu1 %v18279_v9 }
 0x5ee   :  { %12376 = vmatpush1.bf16.msra.mxu0 %v16391_v30  ;;  %11747 = vmatmul.mubr.msk.f32.gmra.mrb[26].mxu1 %vm4586_vm0, %v16409_v59 }
 0x5ef   :  { %6811 = vmatprep.mubr.f32.mxu1 %v18279_v9 }
 0x5f1   :  { %11754 = vmatmul.mubr.msk.f32.vlgmr.msra.gmra.mrb[32].mxu0 %vm4586_vm0, %v16399_v35 }
 0x5f2   :  { %6918 = vmatprep.mubr.f32.mxu0 %v18279_v9  ;;  %11748 = vmatmul.mubr.msk.f32.gmra.mrb[28].mxu1 %vm4586_vm0, %v16420_v61 }
 0x5f3   :  { %6817 = vmatprep.mubr.f32.mxu1 %v18279_v9 }
 0x5f5   :  { %11755 = vmatmul.mubr.msk.f32.gmra.mrb[34].mxu0 %vm4586_vm0, %v16409_v59 }
 0x5f6   :  { %6924 = vmatprep.mubr.f32.mxu0 %v18279_v9  ;;  %11749 = vmatmul.mubr.msk.f32.gmra.mrb[30].mxu1 %vm4586_vm0, %v16431_v41 }
 0x5f7   :  { %6823 = vmatprep.mubr.f32.mxu1 %v18279_v9 }
 0x5f9   :  { %11756 = vmatmul.mubr.msk.f32.gmra.mrb[36].mxu0 %vm4586_vm0, %v16420_v61 }
 0x5fa   :  { %6930 = vmatprep.mubr.f32.mxu0 %v18279_v9  ;;  %11750 = vmatmul.mubr.msk.f32.gmra.mrb[32].mxu1 %vm4586_vm0, %v16442_v27 }
 0x5fb   :  { %6829 = vmatprep.mubr.f32.mxu1 %v18279_v9 }
 0x5fd   :  { %11757 = vmatmul.mubr.msk.f32.gmra.mrb[38].mxu0 %vm4586_vm0, %v16431_v41 }
 0x5fe   :  { %6936 = vmatprep.mubr.f32.mxu0 %v18279_v9  ;;  %11751 = vmatmul.mubr.msk.f32.gmra.mrb[34].mxu1 %vm4586_vm0, %v16453_v47 }
 0x5ff   :  { %6835 = vmatprep.mubr.f32.mxu1 %v18279_v9 }
 0x601   :  { %11758 = vmatmul.mubr.msk.f32.gmra.mrb[40].mxu0 %vm4586_vm0, %v16442_v27 }
 0x602   :  { %6942 = vmatprep.mubr.f32.mxu0 %v18279_v9  ;;  %11752 = vmatmul.mubr.msk.f32.gmra.mrb[36].mxu1 %vm4586_vm0, %v16464_v21 }
 0x603   :  { %6841 = vmatprep.mubr.f32.mxu1 %v18279_v9 }
 0x605   :  { %11759 = vmatmul.mubr.msk.f32.gmra.mrb[42].mxu0 %vm4586_vm0, %v16453_v47 }
 0x606   :  { %6948 = vmatprep.mubr.f32.mxu0 %v18279_v9  ;;  %11753 = vmatmul.mubr.msk.f32.gmra.mrb[38].mxu1 %vm4586_vm0, %v16475_v53 }
 0x607   :  { %7057 = vmatprep.mubr.f32.mxu1 %v18279_v9 }
 0x609   :  { %11760 = vmatmul.mubr.msk.f32.gmra.mrb[44].mxu0 %vm4586_vm0, %v16464_v21 }
 0x60a   :  { %6954 = vmatprep.mubr.f32.mxu0 %v18279_v9 }
 0x60d   :  { %11761 = vmatmul.mubr.msk.f32.gmra.mrb[46].mxu0 %vm4586_vm0, %v16475_v53 }
 0x60e   :  { %7170 = vmatprep.mubr.f32.mxu0 %v18279_v9 }
 0x6bd   :  { %v6801_v54 = vpop.f32.mrb[24].mxu1 }
 0x6be   :  { %v6803_v48 = vpop.f32.mrb[25].mxu1 }
 0x6c1   :  { %v6807_v0 = vpop.f32.mrb[26].mxu1 }
 0x6c2   :  { %v16486_v33 = vpack.c.bf16 %v6807_v0, %v6801_v54  ;;  %v6809_v10 = vpop.f32.mrb[27].mxu1 }
 0x6c3   :  { %v16488_v49 = vpack.c.bf16 %v6809_v10, %v6803_v48 }
 0x6c4   :  { %v6914_v25 = vpop.f32.mrb[32].mxu0 }
 0x6c5   :  { %v6916_v43 = vpop.f32.mrb[33].mxu0  ;;  %12378 = vmatprep.subr.bf16.mxu1 %v16488_v49  ;;  %v6813_v1 = vpop.f32.mrb[28].mxu1 }
 0x6c6   :  { %12380 = vmatpush1.bf16.msra.mxu1 %v16486_v33  ;;  %v6815_v5 = vpop.f32.mrb[29].mxu1 }
 0x6c8   :  { %v6920_v8 = vpop.f32.mrb[34].mxu0 }
 0x6c9   :  { %v16492_v3 = vpack.c.bf16 %v6920_v8, %v6914_v25  ;;  %v6922_v40 = vpop.f32.mrb[35].mxu0  ;;  %v6819_v7 = vpop.f32.mrb[30].mxu1 }
 0x6ca   :  { %v16494_v37 = vpack.c.bf16 %v6922_v40, %v6916_v43  ;;  %v16496_v28 = vpack.c.bf16 %v6819_v7, %v6813_v1  ;;  %v6821_v11 = vpop.f32.mrb[31].mxu1 }
 0x6cb   :  { %v16498_v32 = vpack.c.bf16 %v6821_v11, %v6815_v5 }
 0x6cc   :  { %12394 = vmatprep.subr.bf16.mxu0 %v16494_v37  ;;  %v6926_v15 = vpop.f32.mrb[36].mxu0 }
 0x6cd   :  { %12396 = vmatpush1.bf16.msra.mxu0 %v16492_v3  ;;  %v6928_v12 = vpop.f32.mrb[37].mxu0  ;;  %12382 = vmatprep.subr.bf16.mxu1 %v16498_v32  ;;  %v6825_v23 = vpop.f32.mrb[32].mxu1 }
 0x6ce   :  { %12384 = vmatpush1.bf16.msra.mxu1 %v16496_v28  ;;  %v6827_v56 = vpop.f32.mrb[33].mxu1 }
 0x6d0   :  { %v6932_v55 = vpop.f32.mrb[38].mxu0 }
 0x6d1   :  { %v16504_v19 = vpack.c.bf16 %v6932_v55, %v6926_v15  ;;  %v6934_v38 = vpop.f32.mrb[39].mxu0  ;;  %v6831_v42 = vpop.f32.mrb[34].mxu1 }
 0x6d2   :  { %v16506_v6 = vpack.c.bf16 %v6934_v38, %v6928_v12  ;;  %v16508_v63 = vpack.c.bf16 %v6831_v42, %v6825_v23  ;;  %v6833_v2 = vpop.f32.mrb[35].mxu1 }
 0x6d3   :  { %v16510_v57 = vpack.c.bf16 %v6833_v2, %v6827_v56 }
 0x6d4   :  { %12398 = vmatprep.subr.bf16.mxu0 %v16506_v6  ;;  %v6938_v60 = vpop.f32.mrb[40].mxu0 }
 0x6d5   :  { %12400 = vmatpush1.bf16.msra.mxu0 %v16504_v19  ;;  %v6940_v4 = vpop.f32.mrb[41].mxu0  ;;  %12386 = vmatprep.subr.bf16.mxu1 %v16510_v57  ;;  %v6837_v39 = vpop.f32.mrb[36].mxu1 }
 0x6d6   :  { %12388 = vmatpush1.bf16.msra.mxu1 %v16508_v63  ;;  %v6839_v13 = vpop.f32.mrb[37].mxu1 }
 0x6d8   :  { %v6944_v31 = vpop.f32.mrb[42].mxu0 }
 0x6d9   :  { %v16516_v54 = vpack.c.bf16 %v6944_v31, %v6938_v60  ;;  %v6946_v48 = vpop.f32.mrb[43].mxu0  ;;  %v6843_v0 = vpop.f32.mrb[38].mxu1 }
 0x6da   :  { %v16518_v10 = vpack.c.bf16 %v6946_v48, %v6940_v4  ;;  %v16520_v25 = vpack.c.bf16 %v6843_v0, %v6837_v39  ;;  %v6845_v43 = vpop.f32.mrb[39].mxu1 }
 0x6db   :  { %v16522_v1 = vpack.c.bf16 %v6845_v43, %v6839_v13 }
 0x6dc   :  { %12402 = vmatprep.subr.bf16.mxu0 %v16518_v10  ;;  %v6950_v5 = vpop.f32.mrb[44].mxu0 }
 0x6dd   :  { %12404 = vmatpush1.bf16.msra.mxu0 %v16516_v54  ;;  %v6952_v8 = vpop.f32.mrb[45].mxu0  ;;  %12390 = vmatprep.subr.bf16.mxu1 %v16522_v1 }
 0x6de   :  { %12392 = vmatpush1.bf16.msra.mxu1 %v16520_v25 }
 0x6e0   :  { %v6956_v40 = vpop.f32.mrb[46].mxu0 }
 0x6e1   :  { %v16528_v7 = vpack.c.bf16 %v6956_v40, %v6950_v5  ;;  %v6958_v11 = vpop.f32.mrb[47].mxu0  ;;  %11762 = vmatmul.mubr.msk.f32.vlgmr.msra.gmra.mrb[40].mxu1 %vm4586_vm0, %v16399_v35 }
 0x6e2   :  { %v16532_v15 = vpack.c.bf16 %v6958_v11, %v6952_v8  ;;  %7063 = vmatprep.mubr.f32.mxu1 %v18279_v9 }
 0x6e4   :  { %12406 = vmatprep.subr.bf16.mxu0 %v16532_v15 }
 0x6e5   :  { %12408 = vmatpush1.bf16.msra.mxu0 %v16528_v7  ;;  %11763 = vmatmul.mubr.msk.f32.gmra.mrb[42].mxu1 %vm4586_vm0, %v16409_v59 }
 0x6e6   :  { %7069 = vmatprep.mubr.f32.mxu1 %v18279_v9 }
 0x6e8   :  { %11770 = vmatmul.mubr.msk.f32.vlgmr.msra.gmra.mrb[48].mxu0 %vm4586_vm0, %v16399_v35 }
 0x6e9   :  { %7176 = vmatprep.mubr.f32.mxu0 %v18279_v9  ;;  %11764 = vmatmul.mubr.msk.f32.gmra.mrb[44].mxu1 %vm4586_vm0, %v16420_v61 }
 0x6ea   :  { %7075 = vmatprep.mubr.f32.mxu1 %v18279_v9 }
 0x6ec   :  { %11771 = vmatmul.mubr.msk.f32.gmra.mrb[50].mxu0 %vm4586_vm0, %v16409_v59 }
 0x6ed   :  { %7182 = vmatprep.mubr.f32.mxu0 %v18279_v9  ;;  %11765 = vmatmul.mubr.msk.f32.gmra.mrb[46].mxu1 %vm4586_vm0, %v16431_v41 }
 0x6ee   :  { %7081 = vmatprep.mubr.f32.mxu1 %v18279_v9 }
 0x6f0   :  { %11772 = vmatmul.mubr.msk.f32.gmra.mrb[52].mxu0 %vm4586_vm0, %v16420_v61 }
 0x6f1   :  { %7188 = vmatprep.mubr.f32.mxu0 %v18279_v9  ;;  %11766 = vmatmul.mubr.msk.f32.gmra.mrb[48].mxu1 %vm4586_vm0, %v16442_v27 }
 0x6f2   :  { %7087 = vmatprep.mubr.f32.mxu1 %v18279_v9 }
 0x6f4   :  { %11773 = vmatmul.mubr.msk.f32.gmra.mrb[54].mxu0 %vm4586_vm0, %v16431_v41 }
 0x6f5   :  { %7194 = vmatprep.mubr.f32.mxu0 %v18279_v9  ;;  %11767 = vmatmul.mubr.msk.f32.gmra.mrb[50].mxu1 %vm4586_vm0, %v16453_v47 }
 0x6f6   :  { %7093 = vmatprep.mubr.f32.mxu1 %v18279_v9 }
 0x6f8   :  { %11774 = vmatmul.mubr.msk.f32.gmra.mrb[56].mxu0 %vm4586_vm0, %v16442_v27 }
 0x6f9   :  { %7200 = vmatprep.mubr.f32.mxu0 %v18279_v9  ;;  %11768 = vmatmul.mubr.msk.f32.gmra.mrb[52].mxu1 %vm4586_vm0, %v16464_v21 }
 0x6fa   :  { %7099 = vmatprep.mubr.f32.mxu1 %v18279_v9 }
 0x6fc   :  { %11775 = vmatmul.mubr.msk.f32.gmra.mrb[58].mxu0 %vm4586_vm0, %v16453_v47 }
 0x6fd   :  { %7206 = vmatprep.mubr.f32.mxu0 %v18279_v9  ;;  %11769 = vmatmul.mubr.msk.f32.gmra.mrb[54].mxu1 %vm4586_vm0, %v16475_v53 }
 0x6fe   :  { %7315 = vmatprep.mubr.f32.mxu1 %v18279_v9 }
 0x700   :  { %11776 = vmatmul.mubr.msk.f32.gmra.mrb[60].mxu0 %vm4586_vm0, %v16464_v21 }
 0x701   :  { %7212 = vmatprep.mubr.f32.mxu0 %v18279_v9 }
 0x704   :  { %11777 = vmatmul.mubr.msk.f32.gmra.mrb[62].mxu0 %vm4586_vm0, %v16475_v53 }
 0x705   :  { %7428 = vmatprep.mubr.f32.mxu0 %v18279_v9 }
 0x7b4   :  { %v7059_v12 = vpop.f32.mrb[40].mxu1 }
 0x7b5   :  { %v7061_v23 = vpop.f32.mrb[41].mxu1 }
 0x7b8   :  { %v7065_v56 = vpop.f32.mrb[42].mxu1 }
 0x7b9   :  { %v16582_v55 = vpack.c.bf16 %v7065_v56, %v7059_v12  ;;  %v7067_v38 = vpop.f32.mrb[43].mxu1 }
 0x7ba   :  { %v16584_v42 = vpack.c.bf16 %v7067_v38, %v7061_v23 }
 0x7bb   :  { %v7172_v2 = vpop.f32.mrb[48].mxu0 }
 0x7bc   :  { %v7174_v60 = vpop.f32.mrb[49].mxu0  ;;  %12410 = vmatprep.subr.bf16.mxu1 %v16584_v42  ;;  %v7071_v4 = vpop.f32.mrb[44].mxu1 }
 0x7bd   :  { %12412 = vmatpush1.bf16.msra.mxu1 %v16582_v55  ;;  %v7073_v39 = vpop.f32.mrb[45].mxu1 }
 0x7bf   :  { %v7178_v13 = vpop.f32.mrb[50].mxu0 }
 0x7c0   :  { %v16588_v31 = vpack.c.bf16 %v7178_v13, %v7172_v2  ;;  %v7180_v48 = vpop.f32.mrb[51].mxu0  ;;  %v7077_v0 = vpop.f32.mrb[46].mxu1 }
 0x7c1   :  { %v16590_v43 = vpack.c.bf16 %v7180_v48, %v7174_v60  ;;  %v16592_v5 = vpack.c.bf16 %v7077_v0, %v7071_v4  ;;  %v7079_v8 = vpop.f32.mrb[47].mxu1 }
 0x7c2   :  { %v16594_v40 = vpack.c.bf16 %v7079_v8, %v7073_v39 }
 0x7c3   :  { %12426 = vmatprep.subr.bf16.mxu0 %v16590_v43  ;;  %v7184_v11 = vpop.f32.mrb[52].mxu0 }
 0x7c4   :  { %12428 = vmatpush1.bf16.msra.mxu0 %v16588_v31  ;;  %v7186_v12 = vpop.f32.mrb[53].mxu0  ;;  %12414 = vmatprep.subr.bf16.mxu1 %v16594_v40  ;;  %v7083_v23 = vpop.f32.mrb[48].mxu1 }
 0x7c5   :  { %12416 = vmatpush1.bf16.msra.mxu1 %v16592_v5  ;;  %v7085_v56 = vpop.f32.mrb[49].mxu1 }
 0x7c7   :  { %v7190_v38 = vpop.f32.mrb[54].mxu0 }
 0x7c8   :  { %v16600_v2 = vpack.c.bf16 %v7190_v38, %v7184_v11  ;;  %v7192_v60 = vpop.f32.mrb[55].mxu0  ;;  %v7089_v4 = vpop.f32.mrb[50].mxu1 }
 0x7c9   :  { %v16602_v13 = vpack.c.bf16 %v7192_v60, %v7186_v12  ;;  %v16604_v39 = vpack.c.bf16 %v7089_v4, %v7083_v23  ;;  %v7091_v48 = vpop.f32.mrb[51].mxu1 }
 0x7ca   :  { %v16606_v0 = vpack.c.bf16 %v7091_v48, %v7085_v56 }
 0x7cb   :  { %12430 = vmatprep.subr.bf16.mxu0 %v16602_v13  ;;  %v7196_v8 = vpop.f32.mrb[56].mxu0 }
 0x7cc   :  { %12432 = vmatpush1.bf16.msra.mxu0 %v16600_v2  ;;  %v7198_v9 = vpop.f32.mrb[57].mxu0  ;;  %12418 = vmatprep.subr.bf16.mxu1 %v16606_v0  ;;  %v7095_v24 = vpop.f32.mrb[52].mxu1 }
 0x7cd   :  { %12420 = vmatpush1.bf16.msra.mxu1 %v16604_v39  ;;  %v7097_v11 = vpop.f32.mrb[53].mxu1 }
 0x7cf   :  { %v7202_v38 = vpop.f32.mrb[58].mxu0 }
 0x7d0   :  { %v16612_v12 = vpack.c.bf16 %v7202_v38, %v7196_v8  ;;  %v7204_v23 = vpop.f32.mrb[59].mxu0  ;;  %v7101_v60 = vpop.f32.mrb[54].mxu1 }
 0x7d1   :  { %v16614_v4 = vpack.c.bf16 %v7204_v23, %v7198_v9  ;;  %v16616_v56 = vpack.c.bf16 %v7101_v60, %v7095_v24  ;;  %v7103_v48 = vpop.f32.mrb[55].mxu1 }
 0x7d2   :  { %18489 = vst [vmem:[#allocation153_spill] sm:$0xff] %v16612_v12  ;;  %v16618_v51 = vpack.c.bf16 %v7103_v48, %v7097_v11  ;;  %v18493_v11 = vmov 0.0  }
 0x7d3   :  { %18490 = vst [vmem:[#allocation150_spill] sm:$0xff] %v16614_v4  ;;  %12434 = vmatprep.subr.bf16.mxu0 %v16614_v4  ;;  %v7208_v34 = vpop.f32.mrb[60].mxu0 }
 0x7d4   :  { %12436 = vmatpush1.bf16.msra.mxu0 %v16612_v12  ;;  %v7210_v52 = vpop.f32.mrb[61].mxu0  ;;  %12422 = vmatprep.subr.bf16.mxu1 %v16618_v51 }
 0x7d5   :  { %12424 = vmatpush1.bf16.msra.mxu1 %v16616_v56 }
 0x7d7   :  { %v7214_v8 = vpop.f32.mrb[62].mxu0 }
 0x7d8   :  { %v16624_v38 = vpack.c.bf16 %v7214_v8, %v7208_v34  ;;  %v7216_v9 = vpop.f32.mrb[63].mxu0  ;;  %11778 = vmatmul.mubr.msk.f32.vlgmr.msra.gmra.mrb[56].mxu1 %vm4586_vm0, %v16399_v35 }
 0x7d9   :  { %v16628_v24 = vpack.c.bf16 %v7216_v9, %v7210_v52  ;;  %7321 = vmatprep.mubr.f32.mxu1 %v18493_v11 }
 0x7da   :  { %18491 = vst [vmem:[#allocation151_spill] sm:$0xff] %v16624_v38 }
 0x7db   :  { %18492 = vst [vmem:[#allocation152_spill] sm:$0xff] %v16628_v24  ;;  %12438 = vmatprep.subr.bf16.mxu0 %v16628_v24 }
 0x7dc   :  { %12440 = vmatpush1.bf16.msra.mxu0 %v16624_v38  ;;  %11779 = vmatmul.mubr.msk.f32.gmra.mrb[58].mxu1 %vm4586_vm0, %v16409_v59 }
 0x7dd   :  { %7327 = vmatprep.mubr.f32.mxu1 %v18493_v11 }
 0x7df   :  { %11786 = vmatmul.mubr.msk.f32.vlgmr.msra.gmra.mrb[64].mxu0 %vm4586_vm0, %v16399_v35 }
 0x7e0   :  { %7434 = vmatprep.mubr.f32.mxu0 %v18493_v11  ;;  %11780 = vmatmul.mubr.msk.f32.gmra.mrb[60].mxu1 %vm4586_vm0, %v16420_v61 }
 0x7e1   :  { %7333 = vmatprep.mubr.f32.mxu1 %v18493_v11 }
 0x7e3   :  { %11787 = vmatmul.mubr.msk.f32.gmra.mrb[66].mxu0 %vm4586_vm0, %v16409_v59 }
 0x7e4   :  { %7440 = vmatprep.mubr.f32.mxu0 %v18493_v11  ;;  %11781 = vmatmul.mubr.msk.f32.gmra.mrb[62].mxu1 %vm4586_vm0, %v16431_v41 }
 0x7e5   :  { %7339 = vmatprep.mubr.f32.mxu1 %v18493_v11 }
 0x7e7   :  { %11788 = vmatmul.mubr.msk.f32.gmra.mrb[68].mxu0 %vm4586_vm0, %v16420_v61 }
 0x7e8   :  { %7446 = vmatprep.mubr.f32.mxu0 %v18493_v11  ;;  %11782 = vmatmul.mubr.msk.f32.gmra.mrb[64].mxu1 %vm4586_vm0, %v16442_v27 }
 0x7e9   :  { %7345 = vmatprep.mubr.f32.mxu1 %v18493_v11 }
 0x7eb   :  { %11789 = vmatmul.mubr.msk.f32.gmra.mrb[70].mxu0 %vm4586_vm0, %v16431_v41 }
 0x7ec   :  { %7452 = vmatprep.mubr.f32.mxu0 %v18493_v11  ;;  %11783 = vmatmul.mubr.msk.f32.gmra.mrb[66].mxu1 %vm4586_vm0, %v16453_v47 }
 0x7ed   :  { %7351 = vmatprep.mubr.f32.mxu1 %v18493_v11 }
 0x7ef   :  { %11790 = vmatmul.mubr.msk.f32.gmra.mrb[72].mxu0 %vm4586_vm0, %v16442_v27 }
 0x7f0   :  { %7458 = vmatprep.mubr.f32.mxu0 %v18493_v11  ;;  %11784 = vmatmul.mubr.msk.f32.gmra.mrb[68].mxu1 %vm4586_vm0, %v16464_v21 }
 0x7f1   :  { %7357 = vmatprep.mubr.f32.mxu1 %v18493_v11 }
 0x7f3   :  { %11791 = vmatmul.mubr.msk.f32.gmra.mrb[74].mxu0 %vm4586_vm0, %v16453_v47 }
 0x7f4   :  { %7464 = vmatprep.mubr.f32.mxu0 %v18493_v11  ;;  %11785 = vmatmul.mubr.msk.f32.gmra.mrb[70].mxu1 %vm4586_vm0, %v16475_v53 }
 0x7f7   :  { %11792 = vmatmul.mubr.msk.f32.gmra.mrb[76].mxu0 %vm4586_vm0, %v16464_v21 }
 0x7f8   :  { %7470 = vmatprep.mubr.f32.mxu0 %v18493_v11 }
 0x7fb   :  { %11793 = vmatmul.mubr.msk.f32.gmra.mrb[78].mxu0 %vm4586_vm0, %v16475_v53 }
 0x8ab   :  { %v7317_v52 = vpop.f32.mrb[56].mxu1 }
 0x8ac   :  { %v7319_v34 = vpop.f32.mrb[57].mxu1 }
 0x8af   :  { %v7323_v35 = vpop.f32.mrb[58].mxu1 }
 0x8b0   :  { %v16676_v59 = vpack.c.bf16 %v7323_v35, %v7317_v52  ;;  %v7325_v61 = vpop.f32.mrb[59].mxu1 }
 0x8b1   :  { %v16678_v41 = vpack.c.bf16 %v7325_v61, %v7319_v34 }
 0x8b2   :  { %18494 = vst [vmem:[#allocation154_spill] sm:$0xff] %v16676_v59  ;;  %v7430_v27 = vpop.f32.mrb[64].mxu0 }
 0x8b3   :  { %18495 = vst [vmem:[#allocation155_spill] sm:$0xff] %v16678_v41  ;;  %v7432_v47 = vpop.f32.mrb[65].mxu0  ;;  %v7329_v23 = vpop.f32.mrb[60].mxu1 }
 0x8b4   :  { %v7331_v60 = vpop.f32.mrb[61].mxu1 }
 0x8b6   :  { %v7436_v48 = vpop.f32.mrb[66].mxu0 }
 0x8b7   :  { %v16680_v8 = vpack.c.bf16 %v7436_v48, %v7430_v27  ;;  %v7438_v21 = vpop.f32.mrb[67].mxu0  ;;  %v7335_v9 = vpop.f32.mrb[62].mxu1 }
 0x8b8   :  { %v16682_v11 = vpack.c.bf16 %v7438_v21, %v7432_v47  ;;  %v16684_v53 = vpack.c.bf16 %v7335_v9, %v7329_v23  ;;  %v7337_v38 = vpop.f32.mrb[63].mxu1 }
 0x8b9   :  { %18496 = vst [vmem:[#allocation156_spill] sm:$0xff] %v16680_v8  ;;  %v16686_v24 = vpack.c.bf16 %v7337_v38, %v7331_v60 }
 0x8ba   :  { %18497 = vst [vmem:[#allocation157_spill] sm:$0xff] %v16682_v11  ;;  %18498 = vst [vmem:[#allocation158_spill] sm:$0xff] %v16684_v53  ;;  %v7442_v52 = vpop.f32.mrb[68].mxu0 }
 0x8bb   :  { %18499 = vst [vmem:[#allocation159_spill] sm:$0xff] %v16686_v24  ;;  %v7444_v35 = vpop.f32.mrb[69].mxu0  ;;  %v7341_v34 = vpop.f32.mrb[64].mxu1 }
 0x8bc   :  { %v7343_v61 = vpop.f32.mrb[65].mxu1 }
 0x8be   :  { %v7448_v59 = vpop.f32.mrb[70].mxu0 }
 0x8bf   :  { %v16688_v41 = vpack.c.bf16 %v7448_v59, %v7442_v52  ;;  %v7450_v12 = vpop.f32.mrb[71].mxu0  ;;  %v7347_v4 = vpop.f32.mrb[66].mxu1 }
 0x8c0   :  { %v16690_v27 = vpack.c.bf16 %v7450_v12, %v7444_v35  ;;  %v16692_v48 = vpack.c.bf16 %v7347_v4, %v7341_v34  ;;  %v7349_v47 = vpop.f32.mrb[67].mxu1 }
 0x8c1   :  { %18500 = vst [vmem:[#allocation160_spill] sm:$0xff] %v16688_v41  ;;  %v16694_v21 = vpack.c.bf16 %v7349_v47, %v7343_v61 }
 0x8c2   :  { %18501 = vst [vmem:[#allocation161_spill] sm:$0xff] %v16690_v27  ;;  %v7454_v23 = vpop.f32.mrb[72].mxu0 }
 0x8c3   :  { %v7456_v9 = vpop.f32.mrb[73].mxu0  ;;  %v7353_v38 = vpop.f32.mrb[68].mxu1 }
 0x8c4   :  { %v7355_v60 = vpop.f32.mrb[69].mxu1 }
 0x8c6   :  { %v7460_v8 = vpop.f32.mrb[74].mxu0 }
 0x8c7   :  { %v16696_v11 = vpack.c.bf16 %v7460_v8, %v7454_v23  ;;  %v7462_v53 = vpop.f32.mrb[75].mxu0  ;;  %v7359_v24 = vpop.f32.mrb[70].mxu1 }
 0x8c8   :  { %v16698_v59 = vpack.c.bf16 %v7462_v53, %v7456_v9  ;;  %v16700_v52 = vpack.c.bf16 %v7359_v24, %v7353_v38  ;;  %v7361_v12 = vpop.f32.mrb[71].mxu1 }
 0x8c9   :  { %v16702_v35 = vpack.c.bf16 %v7361_v12, %v7355_v60 }
 0x8ca   :  { %v7466_v4 = vpop.f32.mrb[76].mxu0 }
 0x8cb   :  { %v7468_v34 = vpop.f32.mrb[77].mxu0 }
 0x8ce   :  { %v7472_v61 = vpop.f32.mrb[78].mxu0 }
 0x8cf   :  { %v16704_v47 = vpack.c.bf16 %v7472_v61, %v7466_v4  ;;  %v7474_v41 = vpop.f32.mrb[79].mxu0 }
 0x8d0   :  { %v16706_v27 = vpack.c.bf16 %v7474_v41, %v7468_v34 }
 0x8d1   :  { %13266 = dma.done.wait [#allocation5], 65536 }
 0x8d2   :  { %13267 = vsyncadd [#allocation5], 4294901760  ;;  %8143 = vmatprep.mubr.bf16.mxu1 %v16298_v17  ;;  %8727 = vmatprep.mubr.bf16.mxu0 %v16298_v17  ;;  %v7578_v8 = vld [vmem:[#allocation2 + $0x8] sm:$0xff]  ;;  %v7580_v24 = vld [vmem:[#allocation2 + $0x18] sm:$0xff] }
 0x8d3   :  { %v7577_v53 = vld [vmem:[#allocation2] sm:$0xff]  ;;  %8111 = vmatprep.subr.bf16.mxu1 %v7578_v8  ;;  %8695 = vmatprep.subr.bf16.mxu0 %v7580_v24  ;;  %v7579_v23 = vld [vmem:[#allocation2 + $0x10] sm:$0xff]  ;;  %v7582_v9 = vld [vmem:[#allocation2 + $0x28] sm:$0xff] }
 0x8d4   :  { %v7584_v38 = vld [vmem:[#allocation2 + $0x38] sm:$0xff]  ;;  %8112 = vmatpush1.bf16.msra.mxu1 %v7577_v53  ;;  %8696 = vmatpush1.bf16.msra.mxu0 %v7579_v23  ;;  %v7581_v41 = vld [vmem:[#allocation2 + $0x20] sm:$0xff]  ;;  %v7583_v60 = vld [vmem:[#allocation2 + $0x30] sm:$0xff] }
 0x8d5   :  { %8113 = vmatprep.subr.bf16.mxu1 %v7582_v9  ;;  %8697 = vmatprep.subr.bf16.mxu0 %v7584_v38  ;;  %v7586_v12 = vld [vmem:[#allocation2 + $0x48] sm:$0xff]  ;;  %v7588_v4 = vld [vmem:[#allocation2 + $0x58] sm:$0xff]  ;;  %v7585_v17 = vld [vmem:[#allocation2 + $0x40] sm:$0xff] }
 0x8d6   :  { %v7587_v34 = vld [vmem:[#allocation2 + $0x50] sm:$0xff]  ;;  %v7590_v61 = vld [vmem:[#allocation2 + $0x68] sm:$0xff]  ;;  %v7592_v8 = vld [vmem:[#allocation2 + $0x78] sm:$0xff] }
 0x8d7   :  { %v7589_v24 = vld [vmem:[#allocation2 + $0x60] sm:$0xff]  ;;  %v7591_v53 = vld [vmem:[#allocation2 + $0x70] sm:$0xff]  ;;  %v7594_v23 = vld [vmem:[#allocation2 + $0x88] sm:$0xff] }
 0x8d8   :  { %8114 = vmatpush1.bf16.msra.mxu1 %v7581_v41  ;;  %8698 = vmatpush1.bf16.msra.mxu0 %v7583_v60  ;;  %v7596_v9 = vld [vmem:[#allocation2 + $0x98] sm:$0xff]  ;;  %v7593_v38 = vld [vmem:[#allocation2 + $0x80] sm:$0xff]  ;;  %v7595_v41 = vld [vmem:[#allocation2 + $0x90] sm:$0xff] }
 0x8d9   :  { %8115 = vmatprep.subr.bf16.mxu1 %v7586_v12  ;;  %8699 = vmatprep.subr.bf16.mxu0 %v7588_v4  ;;  %v7598_v60 = vld [vmem:[#allocation2 + $0xa8] sm:$0xff]  ;;  %v7600_v12 = vld [vmem:[#allocation2 + $0xb8] sm:$0xff]  ;;  %v7597_v4 = vld [vmem:[#allocation2 + $0xa0] sm:$0xff] }
 0x8dc   :  { %8116 = vmatpush1.bf16.msra.mxu1 %v7585_v17  ;;  %8700 = vmatpush1.bf16.msra.mxu0 %v7587_v34  ;;  %v7599_v17 = vld [vmem:[#allocation2 + $0xb0] sm:$0xff]  ;;  %v7602_v34 = vld [vmem:[#allocation2 + $0xc8] sm:$0xff] }
 0x8dd   :  { %8117 = vmatprep.subr.bf16.mxu1 %v7590_v61  ;;  %8701 = vmatprep.subr.bf16.mxu0 %v7592_v8  ;;  %v7604_v61 = vld [vmem:[#allocation2 + $0xd8] sm:$0xff]  ;;  %v7601_v8 = vld [vmem:[#allocation2 + $0xc0] sm:$0xff] }
 0x8e0   :  { %8118 = vmatpush1.bf16.msra.mxu1 %v7589_v24  ;;  %8702 = vmatpush1.bf16.msra.mxu0 %v7591_v53  ;;  %v7603_v24 = vld [vmem:[#allocation2 + $0xd0] sm:$0xff]  ;;  %v7606_v53 = vld [vmem:[#allocation2 + $0xe8] sm:$0xff] }
 0x8e1   :  { %8119 = vmatprep.subr.bf16.mxu1 %v7594_v23  ;;  %8703 = vmatprep.subr.bf16.mxu0 %v7596_v9  ;;  %v7608_v23 = vld [vmem:[#allocation2 + $0xf8] sm:$0xff]  ;;  %v7605_v9 = vld [vmem:[#allocation2 + $0xe0] sm:$0xff] }
 0x8e4   :  { %8120 = vmatpush1.bf16.msra.mxu1 %v7593_v38  ;;  %8704 = vmatpush1.bf16.msra.mxu0 %v7595_v41  ;;  %v7607_v38 = vld [vmem:[#allocation2 + $0xf0] sm:$0xff]  ;;  %v7610_v41 = vld [vmem:[#allocation2 + $0x108] sm:$0xff] }
 0x8e5   :  { %8121 = vmatprep.subr.bf16.mxu1 %v7598_v60  ;;  %8705 = vmatprep.subr.bf16.mxu0 %v7600_v12  ;;  %v7612_v60 = vld [vmem:[#allocation2 + $0x118] sm:$0xff]  ;;  %v7609_v12 = vld [vmem:[#allocation2 + $0x100] sm:$0xff] }
 0x8e8   :  { %8122 = vmatpush1.bf16.msra.mxu1 %v7597_v4  ;;  %8706 = vmatpush1.bf16.msra.mxu0 %v7599_v17  ;;  %v7611_v4 = vld [vmem:[#allocation2 + $0x110] sm:$0xff]  ;;  %v7614_v17 = vld [vmem:[#allocation2 + $0x128] sm:$0xff] }
 0x8e9   :  { %8123 = vmatprep.subr.bf16.mxu1 %v7602_v34  ;;  %8707 = vmatprep.subr.bf16.mxu0 %v7604_v61  ;;  %v7616_v34 = vld [vmem:[#allocation2 + $0x138] sm:$0xff]  ;;  %v7613_v61 = vld [vmem:[#allocation2 + $0x120] sm:$0xff] }
 0x8ec   :  { %8124 = vmatpush1.bf16.msra.mxu1 %v7601_v8  ;;  %8708 = vmatpush1.bf16.msra.mxu0 %v7603_v24  ;;  %v7615_v8 = vld [vmem:[#allocation2 + $0x130] sm:$0xff]  ;;  %v7618_v24 = vld [vmem:[#allocation2 + $0x148] sm:$0xff] }
 0x8ed   :  { %8125 = vmatprep.subr.bf16.mxu1 %v7606_v53  ;;  %8709 = vmatprep.subr.bf16.mxu0 %v7608_v23  ;;  %v7620_v53 = vld [vmem:[#allocation2 + $0x158] sm:$0xff]  ;;  %v7617_v23 = vld [vmem:[#allocation2 + $0x140] sm:$0xff] }
 0x8f0   :  { %8126 = vmatpush1.bf16.msra.mxu1 %v7605_v9  ;;  %8710 = vmatpush1.bf16.msra.mxu0 %v7607_v38  ;;  %v7619_v9 = vld [vmem:[#allocation2 + $0x150] sm:$0xff]  ;;  %v7622_v38 = vld [vmem:[#allocation2 + $0x168] sm:$0xff] }
 0x8f1   :  { %8127 = vmatprep.subr.bf16.mxu1 %v7610_v41  ;;  %8711 = vmatprep.subr.bf16.mxu0 %v7612_v60  ;;  %v7624_v41 = vld [vmem:[#allocation2 + $0x178] sm:$0xff]  ;;  %v7621_v60 = vld [vmem:[#allocation2 + $0x160] sm:$0xff] }
 0x8f4   :  { %8128 = vmatpush1.bf16.msra.mxu1 %v7609_v12  ;;  %8712 = vmatpush1.bf16.msra.mxu0 %v7611_v4  ;;  %v7623_v12 = vld [vmem:[#allocation2 + $0x170] sm:$0xff]  ;;  %v7626_v4 = vld [vmem:[#allocation2 + $0x188] sm:$0xff] }
 0x8f5   :  { %8129 = vmatprep.subr.bf16.mxu1 %v7614_v17  ;;  %8713 = vmatprep.subr.bf16.mxu0 %v7616_v34  ;;  %v7628_v17 = vld [vmem:[#allocation2 + $0x198] sm:$0xff]  ;;  %v7625_v34 = vld [vmem:[#allocation2 + $0x180] sm:$0xff] }
 0x8f8   :  { %8130 = vmatpush1.bf16.msra.mxu1 %v7613_v61  ;;  %8714 = vmatpush1.bf16.msra.mxu0 %v7615_v8  ;;  %v7627_v61 = vld [vmem:[#allocation2 + $0x190] sm:$0xff]  ;;  %v7630_v8 = vld [vmem:[#allocation2 + $0x1a8] sm:$0xff] }
 0x8f9   :  { %8131 = vmatprep.subr.bf16.mxu1 %v7618_v24  ;;  %8715 = vmatprep.subr.bf16.mxu0 %v7620_v53  ;;  %v7632_v24 = vld [vmem:[#allocation2 + $0x1b8] sm:$0xff]  ;;  %v7629_v53 = vld [vmem:[#allocation2 + $0x1a0] sm:$0xff] }
 0x8fc   :  { %8132 = vmatpush1.bf16.msra.mxu1 %v7617_v23  ;;  %8716 = vmatpush1.bf16.msra.mxu0 %v7619_v9  ;;  %v7631_v23 = vld [vmem:[#allocation2 + $0x1b0] sm:$0xff]  ;;  %v7634_v9 = vld [vmem:[#allocation2 + $0x1c8] sm:$0xff] }
 0x8fd   :  { %8133 = vmatprep.subr.bf16.mxu1 %v7622_v38  ;;  %8717 = vmatprep.subr.bf16.mxu0 %v7624_v41  ;;  %v7636_v38 = vld [vmem:[#allocation2 + $0x1d8] sm:$0xff]  ;;  %v7633_v41 = vld [vmem:[#allocation2 + $0x1c0] sm:$0xff] }
 0x900   :  { %8134 = vmatpush1.bf16.msra.mxu1 %v7621_v60  ;;  %8718 = vmatpush1.bf16.msra.mxu0 %v7623_v12  ;;  %v7635_v60 = vld [vmem:[#allocation2 + $0x1d0] sm:$0xff]  ;;  %v7638_v12 = vld [vmem:[#allocation2 + $0x1e8] sm:$0xff] }
 0x901   :  { %8135 = vmatprep.subr.bf16.mxu1 %v7626_v4  ;;  %8719 = vmatprep.subr.bf16.mxu0 %v7628_v17  ;;  %v7640_v4 = vld [vmem:[#allocation2 + $0x1f8] sm:$0xff]  ;;  %v7637_v17 = vld [vmem:[#allocation2 + $0x1e0] sm:$0xff] }
 0x904   :  { %8136 = vmatpush1.bf16.msra.mxu1 %v7625_v34  ;;  %8720 = vmatpush1.bf16.msra.mxu0 %v7627_v61  ;;  %v7639_v34 = vld [vmem:[#allocation2 + $0x1f0] sm:$0xff]  ;;  %v7642_v61 = vld [vmem:[#allocation2 + $0x208] sm:$0xff] }
 0x905   :  { %8137 = vmatprep.subr.bf16.mxu1 %v7630_v8  ;;  %8721 = vmatprep.subr.bf16.mxu0 %v7632_v24  ;;  %v7644_v8 = vld [vmem:[#allocation2 + $0x218] sm:$0xff]  ;;  %v7641_v24 = vld [vmem:[#allocation2 + $0x200] sm:$0xff] }
 0x908   :  { %8138 = vmatpush1.bf16.msra.mxu1 %v7629_v53  ;;  %8722 = vmatpush1.bf16.msra.mxu0 %v7631_v23  ;;  %v7643_v53 = vld [vmem:[#allocation2 + $0x210] sm:$0xff]  ;;  %v7646_v23 = vld [vmem:[#allocation2 + $0x228] sm:$0xff] }
 0x909   :  { %8139 = vmatprep.subr.bf16.mxu1 %v7634_v9  ;;  %8723 = vmatprep.subr.bf16.mxu0 %v7636_v38  ;;  %v7648_v9 = vld [vmem:[#allocation2 + $0x238] sm:$0xff]  ;;  %v7645_v38 = vld [vmem:[#allocation2 + $0x220] sm:$0xff] }
 0x90c   :  { %8140 = vmatpush1.bf16.msra.mxu1 %v7633_v41  ;;  %8724 = vmatpush1.bf16.msra.mxu0 %v7635_v60  ;;  %v7647_v41 = vld [vmem:[#allocation2 + $0x230] sm:$0xff]  ;;  %v7650_v60 = vld [vmem:[#allocation2 + $0x248] sm:$0xff] }
 0x90d   :  { %8141 = vmatprep.subr.bf16.mxu1 %v7638_v12  ;;  %8725 = vmatprep.subr.bf16.mxu0 %v7640_v4  ;;  %v7652_v12 = vld [vmem:[#allocation2 + $0x258] sm:$0xff]  ;;  %v7649_v4 = vld [vmem:[#allocation2 + $0x240] sm:$0xff] }
 0x910   :  { %8142 = vmatpush1.bf16.msra.mxu1 %v7637_v17  ;;  %8726 = vmatpush1.bf16.msra.mxu0 %v7639_v34  ;;  %v7651_v17 = vld [vmem:[#allocation2 + $0x250] sm:$0xff]  ;;  %v7654_v34 = vld [vmem:[#allocation2 + $0x268] sm:$0xff] }
 0x911   :  { %8184 = vmatprep.subr.bf16.mxu1 %v7642_v61  ;;  %8768 = vmatprep.subr.bf16.mxu0 %v7644_v8  ;;  %v7653_v61 = vld [vmem:[#allocation2 + $0x260] sm:$0xff]  ;;  %v7655_v8 = vld [vmem:[#allocation2 + $0x270] sm:$0xff] }
 0x913   :  { %8144 = vmatmul.mubr.bf16.vlgmr.msra.gmra.mrb[72].mxu1 %v16339_v62  ;;  %8728 = vmatmul.mubr.bf16.vlgmr.msra.gmra.mrb[80].mxu0 %v16339_v62  ;;  %v7656_v62 = vld [vmem:[#allocation2 + $0x278] sm:$0xff] }
 0x914   :  { %8185 = vmatpush1.bf16.msra.mxu1 %v7641_v24  ;;  %8769 = vmatpush1.bf16.msra.mxu0 %v7643_v53  ;;  %v7658_v24 = vld [vmem:[#allocation2 + $0x288] sm:$0xff]  ;;  %v7657_v53 = vld [vmem:[#allocation2 + $0x280] sm:$0xff] }
 0x915   :  { %8186 = vmatprep.subr.bf16.mxu1 %v7646_v23  ;;  %8770 = vmatprep.subr.bf16.mxu0 %v7648_v9  ;;  %v7659_v23 = vld [vmem:[#allocation2 + $0x290] sm:$0xff]  ;;  %v7662_v9 = vld [vmem:[#allocation2 + $0x2a8] sm:$0xff] }
 0x916   :  { %8153 = vmatprep.mubr.bf16.mxu1 %v16303_v26  ;;  %8737 = vmatprep.mubr.bf16.mxu0 %v16303_v26  ;;  %v7660_v26 = vld [vmem:[#allocation2 + $0x298] sm:$0xff] }
 0x918   :  { %8187 = vmatpush1.bf16.msra.mxu1 %v7645_v38  ;;  %8771 = vmatpush1.bf16.msra.mxu0 %v7647_v41  ;;  %v7661_v38 = vld [vmem:[#allocation2 + $0x2a0] sm:$0xff]  ;;  %v7663_v41 = vld [vmem:[#allocation2 + $0x2b0] sm:$0xff] }
 0x919   :  { %8188 = vmatprep.subr.bf16.mxu1 %v7650_v60  ;;  %8772 = vmatprep.subr.bf16.mxu0 %v7652_v12  ;;  %v7666_v60 = vld [vmem:[#allocation2 + $0x2c8] sm:$0xff]  ;;  %v7665_v12 = vld [vmem:[#allocation2 + $0x2c0] sm:$0xff] }
 0x91b   :  { %8154 = vmatmul.mubr.bf16.gmra.mrb[76].mxu1 %v16341_v18  ;;  %8738 = vmatmul.mubr.bf16.gmra.mrb[84].mxu0 %v16341_v18  ;;  %v7664_v18 = vld [vmem:[#allocation2 + $0x2b8] sm:$0xff] }
 0x91c   :  { %8189 = vmatpush1.bf16.msra.mxu1 %v7649_v4  ;;  %8773 = vmatpush1.bf16.msra.mxu0 %v7651_v17  ;;  %v7667_v4 = vld [vmem:[#allocation2 + $0x2d0] sm:$0xff]  ;;  %v7670_v17 = vld [vmem:[#allocation2 + $0x2e8] sm:$0xff] }
 0x91d   :  { %8190 = vmatprep.subr.bf16.mxu1 %v7654_v34  ;;  %8774 = vmatprep.subr.bf16.mxu0 %v7656_v62  ;;  %v7669_v34 = vld [vmem:[#allocation2 + $0x2e0] sm:$0xff]  ;;  %v7671_v62 = vld [vmem:[#allocation2 + $0x2f0] sm:$0xff] }
 0x91e   :  { %8163 = vmatprep.mubr.bf16.mxu1 %v16305_v45  ;;  %8747 = vmatprep.mubr.bf16.mxu0 %v16305_v45  ;;  %v7668_v45 = vld [vmem:[#allocation2 + $0x2d8] sm:$0xff] }
 0x920   :  { %8191 = vmatpush1.bf16.msra.mxu1 %v7653_v61  ;;  %8775 = vmatpush1.bf16.msra.mxu0 %v7655_v8  ;;  %v7674_v61 = vld [vmem:[#allocation2 + $0x308] sm:$0xff]  ;;  %v7673_v8 = vld [vmem:[#allocation2 + $0x300] sm:$0xff] }
 0x921   :  { %8192 = vmatprep.subr.bf16.mxu1 %v7658_v24  ;;  %8776 = vmatprep.subr.bf16.mxu0 %v7660_v26  ;;  %v7675_v24 = vld [vmem:[#allocation2 + $0x310] sm:$0xff]  ;;  %v7678_v26 = vld [vmem:[#allocation2 + $0x328] sm:$0xff] }
 0x923   :  { %8164 = vmatmul.mubr.bf16.gmra.mrb[80].mxu1 %v16365_v16  ;;  %8748 = vmatmul.mubr.bf16.gmra.mrb[88].mxu0 %v16365_v16  ;;  %v7672_v16 = vld [vmem:[#allocation2 + $0x2f8] sm:$0xff] }
 0x924   :  { %8193 = vmatpush1.bf16.msra.mxu1 %v7657_v53  ;;  %8777 = vmatpush1.bf16.msra.mxu0 %v7659_v23  ;;  %v7677_v53 = vld [vmem:[#allocation2 + $0x320] sm:$0xff]  ;;  %v7679_v23 = vld [vmem:[#allocation2 + $0x330] sm:$0xff] }
 0x925   :  { %8194 = vmatprep.subr.bf16.mxu1 %v7662_v9  ;;  %8778 = vmatprep.subr.bf16.mxu0 %v7664_v18  ;;  %v7682_v9 = vld [vmem:[#allocation2 + $0x348] sm:$0xff]  ;;  %v7684_v18 = vld [vmem:[#allocation2 + $0x358] sm:$0xff] }
 0x926   :  { %8173 = vmatprep.mubr.bf16.mxu1 %v16319_v46  ;;  %8757 = vmatprep.mubr.bf16.mxu0 %v16319_v46  ;;  %v7676_v46 = vld [vmem:[#allocation2 + $0x318] sm:$0xff] }
 0x928   :  { %8195 = vmatpush1.bf16.msra.mxu1 %v7661_v38  ;;  %8779 = vmatpush1.bf16.msra.mxu0 %v7663_v41  ;;  %v7683_v38 = vld [vmem:[#allocation2 + $0x350] sm:$0xff]  ;;  %v7686_v41 = vld [vmem:[#allocation2 + $0x368] sm:$0xff] }
 0x929   :  { %8196 = vmatprep.subr.bf16.mxu1 %v7666_v60  ;;  %8780 = vmatprep.subr.bf16.mxu0 %v7668_v45  ;;  %v7688_v60 = vld [vmem:[#allocation2 + $0x378] sm:$0xff]  ;;  %v7685_v45 = vld [vmem:[#allocation2 + $0x360] sm:$0xff] }
 0x92b   :  { %8174 = vmatmul.mubr.bf16.gmra.mrb[84].mxu1 %v16388_v36  ;;  %8758 = vmatmul.mubr.bf16.gmra.mrb[92].mxu0 %v16388_v36  ;;  %v7680_v36 = vld [vmem:[#allocation2 + $0x338] sm:$0xff] }
 0x92c   :  { %8197 = vmatpush1.bf16.msra.mxu1 %v7665_v12  ;;  %8781 = vmatpush1.bf16.msra.mxu0 %v7667_v4  ;;  %v7687_v12 = vld [vmem:[#allocation2 + $0x370] sm:$0xff]  ;;  %v7690_v4 = vld [vmem:[#allocation2 + $0x388] sm:$0xff] }
 0x92d   :  { %8198 = vmatprep.subr.bf16.mxu1 %v7670_v17  ;;  %8782 = vmatprep.subr.bf16.mxu0 %v7672_v16  ;;  %v7692_v17 = vld [vmem:[#allocation2 + $0x398] sm:$0xff]  ;;  %v7689_v16 = vld [vmem:[#allocation2 + $0x380] sm:$0xff] }
 0x92e   :  { %8216 = vmatprep.mubr.bf16.mxu1 %v16343_v44  ;;  %8800 = vmatprep.mubr.bf16.mxu0 %v16343_v44  ;;  %v7681_v44 = vld [vmem:[#allocation2 + $0x340] sm:$0xff] }
 0x930   :  { %8199 = vmatpush1.bf16.msra.mxu1 %v7669_v34  ;;  %8783 = vmatpush1.bf16.msra.mxu0 %v7671_v62  ;;  %v7691_v34 = vld [vmem:[#allocation2 + $0x390] sm:$0xff]  ;;  %v7694_v62 = vld [vmem:[#allocation2 + $0x3a8] sm:$0xff] }
 0x931   :  { %8200 = vmatprep.subr.bf16.mxu1 %v7674_v61  ;;  %8784 = vmatprep.subr.bf16.mxu0 %v7676_v46  ;;  %v7696_v61 = vld [vmem:[#allocation2 + $0x3b8] sm:$0xff]  ;;  %v7693_v46 = vld [vmem:[#allocation2 + $0x3a0] sm:$0xff] }
 0x934   :  { %8201 = vmatpush1.bf16.msra.mxu1 %v7673_v8  ;;  %8785 = vmatpush1.bf16.msra.mxu0 %v7675_v24  ;;  %v7695_v8 = vld [vmem:[#allocation2 + $0x3b0] sm:$0xff]  ;;  %v7698_v24 = vld [vmem:[#allocation2 + $0x3c8] sm:$0xff] }
 0x935   :  { %8202 = vmatprep.subr.bf16.mxu1 %v7678_v26  ;;  %8786 = vmatprep.subr.bf16.mxu0 %v7680_v36  ;;  %v7700_v26 = vld [vmem:[#allocation2 + $0x3d8] sm:$0xff]  ;;  %v7697_v36 = vld [vmem:[#allocation2 + $0x3c0] sm:$0xff] }
 0x938   :  { %8203 = vmatpush1.bf16.msra.mxu1 %v7677_v53  ;;  %8787 = vmatpush1.bf16.msra.mxu0 %v7679_v23  ;;  %v7699_v53 = vld [vmem:[#allocation2 + $0x3d0] sm:$0xff]  ;;  %v7702_v23 = vld [vmem:[#allocation2 + $0x3e8] sm:$0xff] }
 0x939   :  { %8204 = vmatprep.subr.bf16.mxu1 %v7682_v9  ;;  %8788 = vmatprep.subr.bf16.mxu0 %v7684_v18  ;;  %v7704_v9 = vld [vmem:[#allocation2 + $0x3f8] sm:$0xff]  ;;  %v7701_v18 = vld [vmem:[#allocation2 + $0x3e0] sm:$0xff] }
 0x93c   :  { %8205 = vmatpush1.bf16.msra.mxu1 %v7681_v44  ;;  %8789 = vmatpush1.bf16.msra.mxu0 %v7683_v38  ;;  %v7703_v44 = vld [vmem:[#allocation2 + $0x3f0] sm:$0xff]  ;;  %v7706_v38 = vld [vmem:[#allocation2 + $0x408] sm:$0xff] }
 0x93d   :  { %8206 = vmatprep.subr.bf16.mxu1 %v7686_v41  ;;  %8790 = vmatprep.subr.bf16.mxu0 %v7688_v60  ;;  %v7708_v41 = vld [vmem:[#allocation2 + $0x418] sm:$0xff]  ;;  %v7705_v60 = vld [vmem:[#allocation2 + $0x400] sm:$0xff] }
 0x940   :  { %8207 = vmatpush1.bf16.msra.mxu1 %v7685_v45  ;;  %8791 = vmatpush1.bf16.msra.mxu0 %v7687_v12  ;;  %v7707_v45 = vld [vmem:[#allocation2 + $0x410] sm:$0xff]  ;;  %v7710_v12 = vld [vmem:[#allocation2 + $0x428] sm:$0xff] }
 0x941   :  { %8208 = vmatprep.subr.bf16.mxu1 %v7690_v4  ;;  %8792 = vmatprep.subr.bf16.mxu0 %v7692_v17  ;;  %v7712_v4 = vld [vmem:[#allocation2 + $0x438] sm:$0xff]  ;;  %v7709_v17 = vld [vmem:[#allocation2 + $0x420] sm:$0xff] }
 0x944   :  { %8209 = vmatpush1.bf16.msra.mxu1 %v7689_v16  ;;  %8793 = vmatpush1.bf16.msra.mxu0 %v7691_v34  ;;  %v7711_v16 = vld [vmem:[#allocation2 + $0x430] sm:$0xff]  ;;  %v7714_v34 = vld [vmem:[#allocation2 + $0x448] sm:$0xff] }
 0x945   :  { %8210 = vmatprep.subr.bf16.mxu1 %v7694_v62  ;;  %8794 = vmatprep.subr.bf16.mxu0 %v7696_v61  ;;  %v7716_v62 = vld [vmem:[#allocation2 + $0x458] sm:$0xff]  ;;  %v7713_v61 = vld [vmem:[#allocation2 + $0x440] sm:$0xff] }
 0x948   :  { %8211 = vmatpush1.bf16.msra.mxu1 %v7693_v46  ;;  %8795 = vmatpush1.bf16.msra.mxu0 %v7695_v8  ;;  %v7715_v46 = vld [vmem:[#allocation2 + $0x450] sm:$0xff]  ;;  %v7718_v8 = vld [vmem:[#allocation2 + $0x468] sm:$0xff] }
 0x949   :  { %8212 = vmatprep.subr.bf16.mxu1 %v7698_v24  ;;  %8796 = vmatprep.subr.bf16.mxu0 %v7700_v26  ;;  %v7717_v24 = vld [vmem:[#allocation2 + $0x460] sm:$0xff]  ;;  %v7719_v26 = vld [vmem:[#allocation2 + $0x470] sm:$0xff] }
 0x94c   :  { %8213 = vmatpush1.bf16.msra.mxu1 %v7697_v36  ;;  %8797 = vmatpush1.bf16.msra.mxu0 %v7699_v53  ;;  %v7722_v36 = vld [vmem:[#allocation2 + $0x488] sm:$0xff]  ;;  %v7721_v53 = vld [vmem:[#allocation2 + $0x480] sm:$0xff] }
 0x94d   :  { %8214 = vmatprep.subr.bf16.mxu1 %v7702_v23  ;;  %8798 = vmatprep.subr.bf16.mxu0 %v7704_v9  ;;  %v7723_v23 = vld [vmem:[#allocation2 + $0x490] sm:$0xff]  ;;  %v7726_v9 = vld [vmem:[#allocation2 + $0x4a8] sm:$0xff] }
 0x950   :  { %8215 = vmatpush1.bf16.msra.mxu1 %v7701_v18  ;;  %8799 = vmatpush1.bf16.msra.mxu0 %v7703_v44  ;;  %v7725_v18 = vld [vmem:[#allocation2 + $0x4a0] sm:$0xff]  ;;  %v7727_v44 = vld [vmem:[#allocation2 + $0x4b0] sm:$0xff] }
 0x951   :  { %8257 = vmatprep.subr.bf16.mxu1 %v7706_v38  ;;  %8841 = vmatprep.subr.bf16.mxu0 %v7708_v41  ;;  %v7730_v38 = vld [vmem:[#allocation2 + $0x4c8] sm:$0xff]  ;;  %v7729_v41 = vld [vmem:[#allocation2 + $0x4c0] sm:$0xff] }
 0x953   :  { %8217 = vmatmul.mubr.bf16.vlgmr.msra.gmra.mrb[72].mxu1 %v16368_v14  ;;  %8801 = vmatmul.mubr.bf16.vlgmr.msra.gmra.mrb[80].mxu0 %v16368_v14  ;;  %v7720_v14 = vld [vmem:[#allocation2 + $0x478] sm:$0xff] }
 0x954   :  { %8258 = vmatpush1.bf16.msra.mxu1 %v7705_v60  ;;  %8842 = vmatpush1.bf16.msra.mxu0 %v7707_v45  ;;  %v7731_v60 = vld [vmem:[#allocation2 + $0x4d0] sm:$0xff]  ;;  %v7734_v45 = vld [vmem:[#allocation2 + $0x4e8] sm:$0xff] }
 0x955   :  { %8259 = vmatprep.subr.bf16.mxu1 %v7710_v12  ;;  %8843 = vmatprep.subr.bf16.mxu0 %v7712_v4  ;;  %v7733_v12 = vld [vmem:[#allocation2 + $0x4e0] sm:$0xff]  ;;  %v7735_v4 = vld [vmem:[#allocation2 + $0x4f0] sm:$0xff] }
 0x956   :  { %8226 = vmatprep.mubr.bf16.mxu1 %v16345_v58  ;;  %8810 = vmatprep.mubr.bf16.mxu0 %v16345_v58  ;;  %v7724_v58 = vld [vmem:[#allocation2 + $0x498] sm:$0xff] }
 0x958   :  { %8260 = vmatpush1.bf16.msra.mxu1 %v7709_v17  ;;  %8844 = vmatpush1.bf16.msra.mxu0 %v7711_v16  ;;  %v7738_v17 = vld [vmem:[#allocation2 + $0x508] sm:$0xff]  ;;  %v7737_v16 = vld [vmem:[#allocation2 + $0x500] sm:$0xff] }
 0x959   :  { %8261 = vmatprep.subr.bf16.mxu1 %v7714_v34  ;;  %8845 = vmatprep.subr.bf16.mxu0 %v7716_v62  ;;  %v7739_v34 = vld [vmem:[#allocation2 + $0x510] sm:$0xff]  ;;  %v7742_v62 = vld [vmem:[#allocation2 + $0x528] sm:$0xff] }
 0x95b   :  { %8227 = vmatmul.mubr.bf16.gmra.mrb[76].mxu1 %v16373_v29  ;;  %8811 = vmatmul.mubr.bf16.gmra.mrb[84].mxu0 %v16373_v29  ;;  %v7728_v29 = vld [vmem:[#allocation2 + $0x4b8] sm:$0xff] }
 0x95c   :  { %8262 = vmatpush1.bf16.msra.mxu1 %v7713_v61  ;;  %8846 = vmatpush1.bf16.msra.mxu0 %v7715_v46  ;;  %v7741_v61 = vld [vmem:[#allocation2 + $0x520] sm:$0xff]  ;;  %v7743_v46 = vld [vmem:[#allocation2 + $0x530] sm:$0xff] }
 0x95d   :  { %8263 = vmatprep.subr.bf16.mxu1 %v7718_v8  ;;  %8847 = vmatprep.subr.bf16.mxu0 %v7720_v14  ;;  %v7746_v8 = vld [vmem:[#allocation2 + $0x548] sm:$0xff]  ;;  %v7748_v14 = vld [vmem:[#allocation2 + $0x558] sm:$0xff] }
 0x95e   :  { %8236 = vmatprep.mubr.bf16.mxu1 %v16356_v22  ;;  %8820 = vmatprep.mubr.bf16.mxu0 %v16356_v22  ;;  %v7732_v22 = vld [vmem:[#allocation2 + $0x4d8] sm:$0xff] }
 0x960   :  { %8264 = vmatpush1.bf16.msra.mxu1 %v7717_v24  ;;  %8848 = vmatpush1.bf16.msra.mxu0 %v7719_v26  ;;  %v7747_v24 = vld [vmem:[#allocation2 + $0x550] sm:$0xff]  ;;  %v7750_v26 = vld [vmem:[#allocation2 + $0x568] sm:$0xff] }
 0x961   :  { %8265 = vmatprep.subr.bf16.mxu1 %v7722_v36  ;;  %8849 = vmatprep.subr.bf16.mxu0 %v7724_v58  ;;  %v7752_v36 = vld [vmem:[#allocation2 + $0x578] sm:$0xff]  ;;  %v7749_v58 = vld [vmem:[#allocation2 + $0x560] sm:$0xff] }
 0x963   :  { %8237 = vmatmul.mubr.bf16.gmra.mrb[80].mxu1 %v16382_v20  ;;  %8821 = vmatmul.mubr.bf16.gmra.mrb[88].mxu0 %v16382_v20  ;;  %v7736_v20 = vld [vmem:[#allocation2 + $0x4f8] sm:$0xff] }
 0x964   :  { %8266 = vmatpush1.bf16.msra.mxu1 %v7721_v53  ;;  %8850 = vmatpush1.bf16.msra.mxu0 %v7723_v23  ;;  %v7751_v53 = vld [vmem:[#allocation2 + $0x570] sm:$0xff]  ;;  %v7754_v23 = vld [vmem:[#allocation2 + $0x588] sm:$0xff] }
 0x965   :  { %8267 = vmatprep.subr.bf16.mxu1 %v7726_v9  ;;  %8851 = vmatprep.subr.bf16.mxu0 %v7728_v29  ;;  %v7756_v9 = vld [vmem:[#allocation2 + $0x598] sm:$0xff]  ;;  %v7753_v29 = vld [vmem:[#allocation2 + $0x580] sm:$0xff] }
 0x966   :  { %8246 = vmatprep.mubr.bf16.mxu1 %v16377_v50  ;;  %8830 = vmatprep.mubr.bf16.mxu0 %v16377_v50  ;;  %v7740_v50 = vld [vmem:[#allocation2 + $0x518] sm:$0xff] }
 0x968   :  { %8268 = vmatpush1.bf16.msra.mxu1 %v7725_v18  ;;  %8852 = vmatpush1.bf16.msra.mxu0 %v7727_v44  ;;  %v7755_v18 = vld [vmem:[#allocation2 + $0x590] sm:$0xff]  ;;  %v7758_v44 = vld [vmem:[#allocation2 + $0x5a8] sm:$0xff] }
 0x969   :  { %8269 = vmatprep.subr.bf16.mxu1 %v7730_v38  ;;  %8853 = vmatprep.subr.bf16.mxu0 %v7732_v22  ;;  %v7760_v38 = vld [vmem:[#allocation2 + $0x5b8] sm:$0xff]  ;;  %v7757_v22 = vld [vmem:[#allocation2 + $0x5a0] sm:$0xff] }
 0x96b   :  { %8247 = vmatmul.mubr.bf16.gmra.mrb[84].mxu1 %v16391_v30  ;;  %8831 = vmatmul.mubr.bf16.gmra.mrb[92].mxu0 %v16391_v30  ;;  %v7744_v30 = vld [vmem:[#allocation2 + $0x538] sm:$0xff] }
 0x96c   :  { %8270 = vmatpush1.bf16.msra.mxu1 %v7729_v41  ;;  %8854 = vmatpush1.bf16.msra.mxu0 %v7731_v60  ;;  %v7759_v41 = vld [vmem:[#allocation2 + $0x5b0] sm:$0xff]  ;;  %v7762_v60 = vld [vmem:[#allocation2 + $0x5c8] sm:$0xff] }
 0x96d   :  { %8271 = vmatprep.subr.bf16.mxu1 %v7734_v45  ;;  %8855 = vmatprep.subr.bf16.mxu0 %v7736_v20  ;;  %v7764_v45 = vld [vmem:[#allocation2 + $0x5d8] sm:$0xff]  ;;  %v7761_v20 = vld [vmem:[#allocation2 + $0x5c0] sm:$0xff] }
 0x96e   :  { %8289 = vmatprep.mubr.bf16.mxu1 %v16488_v49  ;;  %8873 = vmatprep.mubr.bf16.mxu0 %v16488_v49  ;;  %v7745_v49 = vld [vmem:[#allocation2 + $0x540] sm:$0xff] }
 0x970   :  { %8272 = vmatpush1.bf16.msra.mxu1 %v7733_v12  ;;  %8856 = vmatpush1.bf16.msra.mxu0 %v7735_v4  ;;  %v7763_v12 = vld [vmem:[#allocation2 + $0x5d0] sm:$0xff]  ;;  %v7766_v4 = vld [vmem:[#allocation2 + $0x5e8] sm:$0xff] }
 0x971   :  { %8273 = vmatprep.subr.bf16.mxu1 %v7738_v17  ;;  %8857 = vmatprep.subr.bf16.mxu0 %v7740_v50  ;;  %v7768_v17 = vld [vmem:[#allocation2 + $0x5f8] sm:$0xff]  ;;  %v7765_v50 = vld [vmem:[#allocation2 + $0x5e0] sm:$0xff] }
 0x974   :  { %8274 = vmatpush1.bf16.msra.mxu1 %v7737_v16  ;;  %8858 = vmatpush1.bf16.msra.mxu0 %v7739_v34  ;;  %v7767_v16 = vld [vmem:[#allocation2 + $0x5f0] sm:$0xff]  ;;  %v7770_v34 = vld [vmem:[#allocation2 + $0x608] sm:$0xff] }
 0x975   :  { %8275 = vmatprep.subr.bf16.mxu1 %v7742_v62  ;;  %8859 = vmatprep.subr.bf16.mxu0 %v7744_v30  ;;  %v7772_v62 = vld [vmem:[#allocation2 + $0x618] sm:$0xff]  ;;  %v7769_v30 = vld [vmem:[#allocation2 + $0x600] sm:$0xff] }
 0x978   :  { %8276 = vmatpush1.bf16.msra.mxu1 %v7741_v61  ;;  %8860 = vmatpush1.bf16.msra.mxu0 %v7743_v46  ;;  %v7771_v61 = vld [vmem:[#allocation2 + $0x610] sm:$0xff]  ;;  %v7774_v46 = vld [vmem:[#allocation2 + $0x628] sm:$0xff] }
 0x979   :  { %8277 = vmatprep.subr.bf16.mxu1 %v7746_v8  ;;  %8861 = vmatprep.subr.bf16.mxu0 %v7748_v14  ;;  %v7776_v8 = vld [vmem:[#allocation2 + $0x638] sm:$0xff]  ;;  %v7773_v14 = vld [vmem:[#allocation2 + $0x620] sm:$0xff] }
 0x97c   :  { %8278 = vmatpush1.bf16.msra.mxu1 %v7745_v49  ;;  %8862 = vmatpush1.bf16.msra.mxu0 %v7747_v24  ;;  %v7775_v49 = vld [vmem:[#allocation2 + $0x630] sm:$0xff]  ;;  %v7778_v24 = vld [vmem:[#allocation2 + $0x648] sm:$0xff] }
 0x97d   :  { %8279 = vmatprep.subr.bf16.mxu1 %v7750_v26  ;;  %8863 = vmatprep.subr.bf16.mxu0 %v7752_v36  ;;  %v7780_v26 = vld [vmem:[#allocation2 + $0x658] sm:$0xff]  ;;  %v7777_v36 = vld [vmem:[#allocation2 + $0x640] sm:$0xff] }
 0x980   :  { %8280 = vmatpush1.bf16.msra.mxu1 %v7749_v58  ;;  %8864 = vmatpush1.bf16.msra.mxu0 %v7751_v53  ;;  %v7779_v58 = vld [vmem:[#allocation2 + $0x650] sm:$0xff]  ;;  %v7782_v53 = vld [vmem:[#allocation2 + $0x668] sm:$0xff] }
 0x981   :  { %8281 = vmatprep.subr.bf16.mxu1 %v7754_v23  ;;  %8865 = vmatprep.subr.bf16.mxu0 %v7756_v9  ;;  %v7781_v23 = vld [vmem:[#allocation2 + $0x660] sm:$0xff]  ;;  %v7783_v9 = vld [vmem:[#allocation2 + $0x670] sm:$0xff] }
 0x984   :  { %8282 = vmatpush1.bf16.msra.mxu1 %v7753_v29  ;;  %8866 = vmatpush1.bf16.msra.mxu0 %v7755_v18  ;;  %v7786_v29 = vld [vmem:[#allocation2 + $0x688] sm:$0xff]  ;;  %v7785_v18 = vld [vmem:[#allocation2 + $0x680] sm:$0xff] }
 0x985   :  { %8283 = vmatprep.subr.bf16.mxu1 %v7758_v44  ;;  %8867 = vmatprep.subr.bf16.mxu0 %v7760_v38  ;;  %v7787_v44 = vld [vmem:[#allocation2 + $0x690] sm:$0xff]  ;;  %v7790_v38 = vld [vmem:[#allocation2 + $0x6a8] sm:$0xff] }
 0x988   :  { %8284 = vmatpush1.bf16.msra.mxu1 %v7757_v22  ;;  %8868 = vmatpush1.bf16.msra.mxu0 %v7759_v41  ;;  %v7789_v22 = vld [vmem:[#allocation2 + $0x6a0] sm:$0xff]  ;;  %v7791_v41 = vld [vmem:[#allocation2 + $0x6b0] sm:$0xff] }
 0x989   :  { %8285 = vmatprep.subr.bf16.mxu1 %v7762_v60  ;;  %8869 = vmatprep.subr.bf16.mxu0 %v7764_v45  ;;  %v7794_v60 = vld [vmem:[#allocation2 + $0x6c8] sm:$0xff]  ;;  %v7793_v45 = vld [vmem:[#allocation2 + $0x6c0] sm:$0xff] }
 0x98c   :  { %8286 = vmatpush1.bf16.msra.mxu1 %v7761_v20  ;;  %8870 = vmatpush1.bf16.msra.mxu0 %v7763_v12  ;;  %v7795_v20 = vld [vmem:[#allocation2 + $0x6d0] sm:$0xff]  ;;  %v7798_v12 = vld [vmem:[#allocation2 + $0x6e8] sm:$0xff] }
 0x98d   :  { %8287 = vmatprep.subr.bf16.mxu1 %v7766_v4  ;;  %8871 = vmatprep.subr.bf16.mxu0 %v7768_v17  ;;  %v7797_v4 = vld [vmem:[#allocation2 + $0x6e0] sm:$0xff]  ;;  %v7799_v17 = vld [vmem:[#allocation2 + $0x6f0] sm:$0xff] }
 0x990   :  { %8288 = vmatpush1.bf16.msra.mxu1 %v7765_v50  ;;  %8872 = vmatpush1.bf16.msra.mxu0 %v7767_v16  ;;  %v7802_v50 = vld [vmem:[#allocation2 + $0x708] sm:$0xff]  ;;  %v7801_v16 = vld [vmem:[#allocation2 + $0x700] sm:$0xff] }
 0x991   :  { %8330 = vmatprep.subr.bf16.mxu1 %v7770_v34  ;;  %8914 = vmatprep.subr.bf16.mxu0 %v7772_v62  ;;  %v7803_v34 = vld [vmem:[#allocation2 + $0x710] sm:$0xff]  ;;  %v7806_v62 = vld [vmem:[#allocation2 + $0x728] sm:$0xff] }
 0x993   :  { %8290 = vmatmul.mubr.bf16.vlgmr.msra.gmra.mrb[72].mxu1 %v16486_v33  ;;  %8874 = vmatmul.mubr.bf16.vlgmr.msra.gmra.mrb[80].mxu0 %v16486_v33  ;;  %v7784_v33 = vld [vmem:[#allocation2 + $0x678] sm:$0xff] }
 0x994   :  { %8331 = vmatpush1.bf16.msra.mxu1 %v7769_v30  ;;  %8915 = vmatpush1.bf16.msra.mxu0 %v7771_v61  ;;  %v7805_v30 = vld [vmem:[#allocation2 + $0x720] sm:$0xff]  ;;  %v7807_v61 = vld [vmem:[#allocation2 + $0x730] sm:$0xff] }
 0x995   :  { %8332 = vmatprep.subr.bf16.mxu1 %v7774_v46  ;;  %8916 = vmatprep.subr.bf16.mxu0 %v7776_v8  ;;  %v7810_v46 = vld [vmem:[#allocation2 + $0x748] sm:$0xff]  ;;  %v7812_v8 = vld [vmem:[#allocation2 + $0x758] sm:$0xff] }
 0x996   :  { %8299 = vmatprep.mubr.bf16.mxu1 %v16498_v32  ;;  %8883 = vmatprep.mubr.bf16.mxu0 %v16498_v32  ;;  %v7788_v32 = vld [vmem:[#allocation2 + $0x698] sm:$0xff] }
 0x998   :  { %8333 = vmatpush1.bf16.msra.mxu1 %v7773_v14  ;;  %8917 = vmatpush1.bf16.msra.mxu0 %v7775_v49  ;;  %v7811_v14 = vld [vmem:[#allocation2 + $0x750] sm:$0xff]  ;;  %v7814_v49 = vld [vmem:[#allocation2 + $0x768] sm:$0xff] }
 0x999   :  { %8334 = vmatprep.subr.bf16.mxu1 %v7778_v24  ;;  %8918 = vmatprep.subr.bf16.mxu0 %v7780_v26  ;;  %v7816_v24 = vld [vmem:[#allocation2 + $0x778] sm:$0xff]  ;;  %v7813_v26 = vld [vmem:[#allocation2 + $0x760] sm:$0xff] }
 0x99b   :  { %8300 = vmatmul.mubr.bf16.gmra.mrb[76].mxu1 %v16496_v28  ;;  %8884 = vmatmul.mubr.bf16.gmra.mrb[84].mxu0 %v16496_v28  ;;  %v7792_v28 = vld [vmem:[#allocation2 + $0x6b8] sm:$0xff] }
 0x99c   :  { %8335 = vmatpush1.bf16.msra.mxu1 %v7777_v36  ;;  %8919 = vmatpush1.bf16.msra.mxu0 %v7779_v58  ;;  %v7815_v36 = vld [vmem:[#allocation2 + $0x770] sm:$0xff]  ;;  %v7818_v58 = vld [vmem:[#allocation2 + $0x788] sm:$0xff] }
 0x99d   :  { %8336 = vmatprep.subr.bf16.mxu1 %v7782_v53  ;;  %8920 = vmatprep.subr.bf16.mxu0 %v7784_v33  ;;  %v7820_v53 = vld [vmem:[#allocation2 + $0x798] sm:$0xff]  ;;  %v7817_v33 = vld [vmem:[#allocation2 + $0x780] sm:$0xff] }
 0x99e   :  { %8309 = vmatprep.mubr.bf16.mxu1 %v16510_v57  ;;  %8893 = vmatprep.mubr.bf16.mxu0 %v16510_v57  ;;  %v7796_v57 = vld [vmem:[#allocation2 + $0x6d8] sm:$0xff] }
 0x9a0   :  { %8337 = vmatpush1.bf16.msra.mxu1 %v7781_v23  ;;  %8921 = vmatpush1.bf16.msra.mxu0 %v7783_v9  ;;  %v7819_v23 = vld [vmem:[#allocation2 + $0x790] sm:$0xff]  ;;  %v7822_v9 = vld [vmem:[#allocation2 + $0x7a8] sm:$0xff] }
 0x9a1   :  { %8338 = vmatprep.subr.bf16.mxu1 %v7786_v29  ;;  %8922 = vmatprep.subr.bf16.mxu0 %v7788_v32  ;;  %v7824_v29 = vld [vmem:[#allocation2 + $0x7b8] sm:$0xff]  ;;  %v7821_v32 = vld [vmem:[#allocation2 + $0x7a0] sm:$0xff] }
 0x9a3   :  { %8310 = vmatmul.mubr.bf16.gmra.mrb[80].mxu1 %v16508_v63  ;;  %8894 = vmatmul.mubr.bf16.gmra.mrb[88].mxu0 %v16508_v63  ;;  %v7800_v63 = vld [vmem:[#allocation2 + $0x6f8] sm:$0xff] }
 0x9a4   :  { %8339 = vmatpush1.bf16.msra.mxu1 %v7785_v18  ;;  %8923 = vmatpush1.bf16.msra.mxu0 %v7787_v44  ;;  %v7823_v18 = vld [vmem:[#allocation2 + $0x7b0] sm:$0xff]  ;;  %v7826_v44 = vld [vmem:[#allocation2 + $0x7c8] sm:$0xff] }
 0x9a5   :  { %8340 = vmatprep.subr.bf16.mxu1 %v7790_v38  ;;  %8924 = vmatprep.subr.bf16.mxu0 %v7792_v28  ;;  %v7828_v38 = vld [vmem:[#allocation2 + $0x7d8] sm:$0xff]  ;;  %v7825_v28 = vld [vmem:[#allocation2 + $0x7c0] sm:$0xff] }
 0x9a6   :  { %8319 = vmatprep.mubr.bf16.mxu1 %v16522_v1  ;;  %8903 = vmatprep.mubr.bf16.mxu0 %v16522_v1  ;;  %v7804_v1 = vld [vmem:[#allocation2 + $0x718] sm:$0xff] }
 0x9a8   :  { %8341 = vmatpush1.bf16.msra.mxu1 %v7789_v22  ;;  %8925 = vmatpush1.bf16.msra.mxu0 %v7791_v41  ;;  %v7827_v22 = vld [vmem:[#allocation2 + $0x7d0] sm:$0xff]  ;;  %v7830_v41 = vld [vmem:[#allocation2 + $0x7e8] sm:$0xff] }
 0x9a9   :  { %8342 = vmatprep.subr.bf16.mxu1 %v7794_v60  ;;  %8926 = vmatprep.subr.bf16.mxu0 %v7796_v57  ;;  %v7832_v60 = vld [vmem:[#allocation2 + $0x7f8] sm:$0xff]  ;;  %v7829_v57 = vld [vmem:[#allocation2 + $0x7e0] sm:$0xff] }
 0x9ab   :  { %8320 = vmatmul.mubr.bf16.gmra.mrb[84].mxu1 %v16520_v25  ;;  %8904 = vmatmul.mubr.bf16.gmra.mrb[92].mxu0 %v16520_v25  ;;  %v7808_v25 = vld [vmem:[#allocation2 + $0x738] sm:$0xff] }
 0x9ac   :  { %8343 = vmatpush1.bf16.msra.mxu1 %v7793_v45  ;;  %8927 = vmatpush1.bf16.msra.mxu0 %v7795_v20  ;;  %v7831_v45 = vld [vmem:[#allocation2 + $0x7f0] sm:$0xff]  ;;  %v7834_v20 = vld [vmem:[#allocation2 + $0x808] sm:$0xff] }
 0x9ad   :  { %8344 = vmatprep.subr.bf16.mxu1 %v7798_v12  ;;  %8928 = vmatprep.subr.bf16.mxu0 %v7800_v63  ;;  %v7836_v12 = vld [vmem:[#allocation2 + $0x818] sm:$0xff]  ;;  %v7833_v63 = vld [vmem:[#allocation2 + $0x800] sm:$0xff] }
 0x9ae   :  { %8362 = vmatprep.mubr.bf16.mxu1 %v16494_v37  ;;  %8946 = vmatprep.mubr.bf16.mxu0 %v16494_v37  ;;  %v7809_v37 = vld [vmem:[#allocation2 + $0x740] sm:$0xff] }
 0x9b0   :  { %8345 = vmatpush1.bf16.msra.mxu1 %v7797_v4  ;;  %8929 = vmatpush1.bf16.msra.mxu0 %v7799_v17  ;;  %v7835_v4 = vld [vmem:[#allocation2 + $0x810] sm:$0xff]  ;;  %v7838_v17 = vld [vmem:[#allocation2 + $0x828] sm:$0xff] }
 0x9b1   :  { %8346 = vmatprep.subr.bf16.mxu1 %v7802_v50  ;;  %8930 = vmatprep.subr.bf16.mxu0 %v7804_v1  ;;  %v7840_v50 = vld [vmem:[#allocation2 + $0x838] sm:$0xff]  ;;  %v7837_v1 = vld [vmem:[#allocation2 + $0x820] sm:$0xff] }
 0x9b4   :  { %8347 = vmatpush1.bf16.msra.mxu1 %v7801_v16  ;;  %8931 = vmatpush1.bf16.msra.mxu0 %v7803_v34  ;;  %v7839_v16 = vld [vmem:[#allocation2 + $0x830] sm:$0xff]  ;;  %v7842_v34 = vld [vmem:[#allocation2 + $0x848] sm:$0xff] }
 0x9b5   :  { %8348 = vmatprep.subr.bf16.mxu1 %v7806_v62  ;;  %8932 = vmatprep.subr.bf16.mxu0 %v7808_v25  ;;  %v7844_v62 = vld [vmem:[#allocation2 + $0x858] sm:$0xff]  ;;  %v7841_v25 = vld [vmem:[#allocation2 + $0x840] sm:$0xff] }
 0x9b8   :  { %8349 = vmatpush1.bf16.msra.mxu1 %v7805_v30  ;;  %8933 = vmatpush1.bf16.msra.mxu0 %v7807_v61  ;;  %v7843_v30 = vld [vmem:[#allocation2 + $0x850] sm:$0xff]  ;;  %v7846_v61 = vld [vmem:[#allocation2 + $0x868] sm:$0xff] }
 0x9b9   :  { %8350 = vmatprep.subr.bf16.mxu1 %v7810_v46  ;;  %8934 = vmatprep.subr.bf16.mxu0 %v7812_v8  ;;  %v7845_v46 = vld [vmem:[#allocation2 + $0x860] sm:$0xff]  ;;  %v7847_v8 = vld [vmem:[#allocation2 + $0x870] sm:$0xff] }
 0x9bc   :  { %8351 = vmatpush1.bf16.msra.mxu1 %v7809_v37  ;;  %8935 = vmatpush1.bf16.msra.mxu0 %v7811_v14  ;;  %v7850_v37 = vld [vmem:[#allocation2 + $0x888] sm:$0xff]  ;;  %v7849_v14 = vld [vmem:[#allocation2 + $0x880] sm:$0xff] }
 0x9bd   :  { %8352 = vmatprep.subr.bf16.mxu1 %v7814_v49  ;;  %8936 = vmatprep.subr.bf16.mxu0 %v7816_v24  ;;  %v7851_v49 = vld [vmem:[#allocation2 + $0x890] sm:$0xff]  ;;  %v7854_v24 = vld [vmem:[#allocation2 + $0x8a8] sm:$0xff] }
 0x9c0   :  { %8353 = vmatpush1.bf16.msra.mxu1 %v7813_v26  ;;  %8937 = vmatpush1.bf16.msra.mxu0 %v7815_v36  ;;  %v7853_v26 = vld [vmem:[#allocation2 + $0x8a0] sm:$0xff]  ;;  %v7855_v36 = vld [vmem:[#allocation2 + $0x8b0] sm:$0xff] }
 0x9c1   :  { %8354 = vmatprep.subr.bf16.mxu1 %v7818_v58  ;;  %8938 = vmatprep.subr.bf16.mxu0 %v7820_v53  ;;  %v7858_v58 = vld [vmem:[#allocation2 + $0x8c8] sm:$0xff]  ;;  %v7857_v53 = vld [vmem:[#allocation2 + $0x8c0] sm:$0xff] }
 0x9c4   :  { %8355 = vmatpush1.bf16.msra.mxu1 %v7817_v33  ;;  %8939 = vmatpush1.bf16.msra.mxu0 %v7819_v23  ;;  %v7859_v33 = vld [vmem:[#allocation2 + $0x8d0] sm:$0xff]  ;;  %v7862_v23 = vld [vmem:[#allocation2 + $0x8e8] sm:$0xff] }
 0x9c5   :  { %8356 = vmatprep.subr.bf16.mxu1 %v7822_v9  ;;  %8940 = vmatprep.subr.bf16.mxu0 %v7824_v29  ;;  %v7861_v9 = vld [vmem:[#allocation2 + $0x8e0] sm:$0xff]  ;;  %v7863_v29 = vld [vmem:[#allocation2 + $0x8f0] sm:$0xff] }
 0x9c8   :  { %8357 = vmatpush1.bf16.msra.mxu1 %v7821_v32  ;;  %8941 = vmatpush1.bf16.msra.mxu0 %v7823_v18  ;;  %v7866_v32 = vld [vmem:[#allocation2 + $0x908] sm:$0xff]  ;;  %v7865_v18 = vld [vmem:[#allocation2 + $0x900] sm:$0xff] }
 0x9c9   :  { %8358 = vmatprep.subr.bf16.mxu1 %v7826_v44  ;;  %8942 = vmatprep.subr.bf16.mxu0 %v7828_v38  ;;  %v7867_v44 = vld [vmem:[#allocation2 + $0x910] sm:$0xff]  ;;  %v7870_v38 = vld [vmem:[#allocation2 + $0x928] sm:$0xff] }
 0x9cc   :  { %8359 = vmatpush1.bf16.msra.mxu1 %v7825_v28  ;;  %8943 = vmatpush1.bf16.msra.mxu0 %v7827_v22  ;;  %v7869_v28 = vld [vmem:[#allocation2 + $0x920] sm:$0xff]  ;;  %v7871_v22 = vld [vmem:[#allocation2 + $0x930] sm:$0xff] }
 0x9cd   :  { %8360 = vmatprep.subr.bf16.mxu1 %v7830_v41  ;;  %8944 = vmatprep.subr.bf16.mxu0 %v7832_v60  ;;  %v7874_v41 = vld [vmem:[#allocation2 + $0x948] sm:$0xff]  ;;  %v7876_v60 = vld [vmem:[#allocation2 + $0x958] sm:$0xff] }
 0x9d0   :  { %8361 = vmatpush1.bf16.msra.mxu1 %v7829_v57  ;;  %8945 = vmatpush1.bf16.msra.mxu0 %v7831_v45  ;;  %v7875_v57 = vld [vmem:[#allocation2 + $0x950] sm:$0xff]  ;;  %v7878_v45 = vld [vmem:[#allocation2 + $0x968] sm:$0xff] }
 0x9d1   :  { %8403 = vmatprep.subr.bf16.mxu1 %v7834_v20  ;;  %8987 = vmatprep.subr.bf16.mxu0 %v7836_v12  ;;  %v7880_v20 = vld [vmem:[#allocation2 + $0x978] sm:$0xff]  ;;  %v7877_v12 = vld [vmem:[#allocation2 + $0x960] sm:$0xff] }
 0x9d3   :  { %8363 = vmatmul.mubr.bf16.vlgmr.msra.gmra.mrb[72].mxu1 %v16492_v3  ;;  %8947 = vmatmul.mubr.bf16.vlgmr.msra.gmra.mrb[80].mxu0 %v16492_v3  ;;  %v7848_v3 = vld [vmem:[#allocation2 + $0x878] sm:$0xff] }
 0x9d4   :  { %8404 = vmatpush1.bf16.msra.mxu1 %v7833_v63  ;;  %8988 = vmatpush1.bf16.msra.mxu0 %v7835_v4  ;;  %v7879_v63 = vld [vmem:[#allocation2 + $0x970] sm:$0xff]  ;;  %v7882_v4 = vld [vmem:[#allocation2 + $0x988] sm:$0xff] }
 0x9d5   :  { %8405 = vmatprep.subr.bf16.mxu1 %v7838_v17  ;;  %8989 = vmatprep.subr.bf16.mxu0 %v7840_v50  ;;  %v7884_v17 = vld [vmem:[#allocation2 + $0x998] sm:$0xff]  ;;  %v7881_v50 = vld [vmem:[#allocation2 + $0x980] sm:$0xff] }
 0x9d6   :  { %8372 = vmatprep.mubr.bf16.mxu1 %v16506_v6  ;;  %8956 = vmatprep.mubr.bf16.mxu0 %v16506_v6  ;;  %v7852_v6 = vld [vmem:[#allocation2 + $0x898] sm:$0xff] }
 0x9d8   :  { %8406 = vmatpush1.bf16.msra.mxu1 %v7837_v1  ;;  %8990 = vmatpush1.bf16.msra.mxu0 %v7839_v16  ;;  %v7883_v1 = vld [vmem:[#allocation2 + $0x990] sm:$0xff]  ;;  %v7886_v16 = vld [vmem:[#allocation2 + $0x9a8] sm:$0xff] }
 0x9d9   :  { %8407 = vmatprep.subr.bf16.mxu1 %v7842_v34  ;;  %8991 = vmatprep.subr.bf16.mxu0 %v7844_v62  ;;  %v7888_v34 = vld [vmem:[#allocation2 + $0x9b8] sm:$0xff]  ;;  %v7885_v62 = vld [vmem:[#allocation2 + $0x9a0] sm:$0xff] }
 0x9db   :  { %8373 = vmatmul.mubr.bf16.gmra.mrb[76].mxu1 %v16504_v19  ;;  %8957 = vmatmul.mubr.bf16.gmra.mrb[84].mxu0 %v16504_v19  ;;  %v7856_v19 = vld [vmem:[#allocation2 + $0x8b8] sm:$0xff] }
 0x9dc   :  { %8408 = vmatpush1.bf16.msra.mxu1 %v7841_v25  ;;  %8992 = vmatpush1.bf16.msra.mxu0 %v7843_v30  ;;  %v7887_v25 = vld [vmem:[#allocation2 + $0x9b0] sm:$0xff]  ;;  %v7890_v30 = vld [vmem:[#allocation2 + $0x9c8] sm:$0xff] }
 0x9dd   :  { %8409 = vmatprep.subr.bf16.mxu1 %v7846_v61  ;;  %8993 = vmatprep.subr.bf16.mxu0 %v7848_v3  ;;  %v7892_v61 = vld [vmem:[#allocation2 + $0x9d8] sm:$0xff]  ;;  %v7889_v3 = vld [vmem:[#allocation2 + $0x9c0] sm:$0xff] }
 0x9de   :  { %8382 = vmatprep.mubr.bf16.mxu1 %v16518_v10  ;;  %8966 = vmatprep.mubr.bf16.mxu0 %v16518_v10  ;;  %v7860_v10 = vld [vmem:[#allocation2 + $0x8d8] sm:$0xff] }
 0x9e0   :  { %8410 = vmatpush1.bf16.msra.mxu1 %v7845_v46  ;;  %8994 = vmatpush1.bf16.msra.mxu0 %v7847_v8  ;;  %v7891_v46 = vld [vmem:[#allocation2 + $0x9d0] sm:$0xff]  ;;  %v7894_v8 = vld [vmem:[#allocation2 + $0x9e8] sm:$0xff] }
 0x9e1   :  { %8411 = vmatprep.subr.bf16.mxu1 %v7850_v37  ;;  %8995 = vmatprep.subr.bf16.mxu0 %v7852_v6  ;;  %v7896_v37 = vld [vmem:[#allocation2 + $0x9f8] sm:$0xff]  ;;  %v7893_v6 = vld [vmem:[#allocation2 + $0x9e0] sm:$0xff] }
 0x9e3   :  { %8383 = vmatmul.mubr.bf16.gmra.mrb[80].mxu1 %v16516_v54  ;;  %8967 = vmatmul.mubr.bf16.gmra.mrb[88].mxu0 %v16516_v54  ;;  %v7864_v54 = vld [vmem:[#allocation2 + $0x8f8] sm:$0xff] }
 0x9e4   :  { %8412 = vmatpush1.bf16.msra.mxu1 %v7849_v14  ;;  %8996 = vmatpush1.bf16.msra.mxu0 %v7851_v49  ;;  %v7895_v14 = vld [vmem:[#allocation2 + $0x9f0] sm:$0xff]  ;;  %v7898_v49 = vld [vmem:[#allocation2 + $0xa08] sm:$0xff] }
 0x9e5   :  { %8413 = vmatprep.subr.bf16.mxu1 %v7854_v24  ;;  %8997 = vmatprep.subr.bf16.mxu0 %v7856_v19  ;;  %v7900_v24 = vld [vmem:[#allocation2 + $0xa18] sm:$0xff]  ;;  %v7897_v19 = vld [vmem:[#allocation2 + $0xa00] sm:$0xff] }
 0x9e6   :  { %8392 = vmatprep.mubr.bf16.mxu1 %v16532_v15  ;;  %8976 = vmatprep.mubr.bf16.mxu0 %v16532_v15  ;;  %v7868_v15 = vld [vmem:[#allocation2 + $0x918] sm:$0xff] }
 0x9e8   :  { %8414 = vmatpush1.bf16.msra.mxu1 %v7853_v26  ;;  %8998 = vmatpush1.bf16.msra.mxu0 %v7855_v36  ;;  %v7899_v26 = vld [vmem:[#allocation2 + $0xa10] sm:$0xff]  ;;  %v7902_v36 = vld [vmem:[#allocation2 + $0xa28] sm:$0xff] }
 0x9e9   :  { %8415 = vmatprep.subr.bf16.mxu1 %v7858_v58  ;;  %8999 = vmatprep.subr.bf16.mxu0 %v7860_v10  ;;  %v7904_v58 = vld [vmem:[#allocation2 + $0xa38] sm:$0xff]  ;;  %v7901_v10 = vld [vmem:[#allocation2 + $0xa20] sm:$0xff] }
 0x9eb   :  { %8393 = vmatmul.mubr.bf16.gmra.mrb[84].mxu1 %v16528_v7  ;;  %8977 = vmatmul.mubr.bf16.gmra.mrb[92].mxu0 %v16528_v7  ;;  %v7872_v7 = vld [vmem:[#allocation2 + $0x938] sm:$0xff] }
 0x9ec   :  { %8416 = vmatpush1.bf16.msra.mxu1 %v7857_v53  ;;  %9000 = vmatpush1.bf16.msra.mxu0 %v7859_v33  ;;  %v7903_v53 = vld [vmem:[#allocation2 + $0xa30] sm:$0xff]  ;;  %v7906_v33 = vld [vmem:[#allocation2 + $0xa48] sm:$0xff] }
 0x9ed   :  { %8417 = vmatprep.subr.bf16.mxu1 %v7862_v23  ;;  %9001 = vmatprep.subr.bf16.mxu0 %v7864_v54  ;;  %v7908_v23 = vld [vmem:[#allocation2 + $0xa58] sm:$0xff]  ;;  %v7905_v54 = vld [vmem:[#allocation2 + $0xa40] sm:$0xff] }
 0x9ee   :  { %8435 = vmatprep.mubr.bf16.mxu1 %v16584_v42  ;;  %9019 = vmatprep.mubr.bf16.mxu0 %v16584_v42  ;;  %v7873_v42 = vld [vmem:[#allocation2 + $0x940] sm:$0xff] }
 0x9f0   :  { %8418 = vmatpush1.bf16.msra.mxu1 %v7861_v9  ;;  %9002 = vmatpush1.bf16.msra.mxu0 %v7863_v29  ;;  %v7907_v9 = vld [vmem:[#allocation2 + $0xa50] sm:$0xff]  ;;  %v7910_v29 = vld [vmem:[#allocation2 + $0xa68] sm:$0xff] }
 0x9f1   :  { %8419 = vmatprep.subr.bf16.mxu1 %v7866_v32  ;;  %9003 = vmatprep.subr.bf16.mxu0 %v7868_v15  ;;  %v7909_v32 = vld [vmem:[#allocation2 + $0xa60] sm:$0xff]  ;;  %v7911_v15 = vld [vmem:[#allocation2 + $0xa70] sm:$0xff] }
 0x9f4   :  { %8420 = vmatpush1.bf16.msra.mxu1 %v7865_v18  ;;  %9004 = vmatpush1.bf16.msra.mxu0 %v7867_v44  ;;  %v7914_v18 = vld [vmem:[#allocation2 + $0xa88] sm:$0xff]  ;;  %v7913_v44 = vld [vmem:[#allocation2 + $0xa80] sm:$0xff] }
 0x9f5   :  { %8421 = vmatprep.subr.bf16.mxu1 %v7870_v38  ;;  %9005 = vmatprep.subr.bf16.mxu0 %v7872_v7  ;;  %v7915_v38 = vld [vmem:[#allocation2 + $0xa90] sm:$0xff]  ;;  %v7918_v7 = vld [vmem:[#allocation2 + $0xaa8] sm:$0xff] }
 0x9f8   :  { %8422 = vmatpush1.bf16.msra.mxu1 %v7869_v28  ;;  %9006 = vmatpush1.bf16.msra.mxu0 %v7871_v22  ;;  %v7917_v28 = vld [vmem:[#allocation2 + $0xaa0] sm:$0xff]  ;;  %v7919_v22 = vld [vmem:[#allocation2 + $0xab0] sm:$0xff] }
 0x9f9   :  { %8423 = vmatprep.subr.bf16.mxu1 %v7874_v41  ;;  %9007 = vmatprep.subr.bf16.mxu0 %v7876_v60  ;;  %v7922_v41 = vld [vmem:[#allocation2 + $0xac8] sm:$0xff]  ;;  %v7921_v60 = vld [vmem:[#allocation2 + $0xac0] sm:$0xff] }
 0x9fc   :  { %8424 = vmatpush1.bf16.msra.mxu1 %v7873_v42  ;;  %9008 = vmatpush1.bf16.msra.mxu0 %v7875_v57  ;;  %v7923_v42 = vld [vmem:[#allocation2 + $0xad0] sm:$0xff]  ;;  %v7926_v57 = vld [vmem:[#allocation2 + $0xae8] sm:$0xff] }
 0x9fd   :  { %8425 = vmatprep.subr.bf16.mxu1 %v7878_v45  ;;  %9009 = vmatprep.subr.bf16.mxu0 %v7880_v20  ;;  %v7925_v45 = vld [vmem:[#allocation2 + $0xae0] sm:$0xff]  ;;  %v7927_v20 = vld [vmem:[#allocation2 + $0xaf0] sm:$0xff] }
 0xa00   :  { %8426 = vmatpush1.bf16.msra.mxu1 %v7877_v12  ;;  %9010 = vmatpush1.bf16.msra.mxu0 %v7879_v63  ;;  %v7930_v12 = vld [vmem:[#allocation2 + $0xb08] sm:$0xff]  ;;  %v7929_v63 = vld [vmem:[#allocation2 + $0xb00] sm:$0xff] }
 0xa01   :  { %8427 = vmatprep.subr.bf16.mxu1 %v7882_v4  ;;  %9011 = vmatprep.subr.bf16.mxu0 %v7884_v17  ;;  %v7931_v4 = vld [vmem:[#allocation2 + $0xb10] sm:$0xff]  ;;  %v7934_v17 = vld [vmem:[#allocation2 + $0xb28] sm:$0xff] }
 0xa04   :  { %8428 = vmatpush1.bf16.msra.mxu1 %v7881_v50  ;;  %9012 = vmatpush1.bf16.msra.mxu0 %v7883_v1  ;;  %v7933_v50 = vld [vmem:[#allocation2 + $0xb20] sm:$0xff]  ;;  %v7935_v1 = vld [vmem:[#allocation2 + $0xb30] sm:$0xff] }
 0xa05   :  { %8429 = vmatprep.subr.bf16.mxu1 %v7886_v16  ;;  %9013 = vmatprep.subr.bf16.mxu0 %v7888_v34  ;;  %v7938_v16 = vld [vmem:[#allocation2 + $0xb48] sm:$0xff]  ;;  %v7940_v34 = vld [vmem:[#allocation2 + $0xb58] sm:$0xff] }
 0xa08   :  { %8430 = vmatpush1.bf16.msra.mxu1 %v7885_v62  ;;  %9014 = vmatpush1.bf16.msra.mxu0 %v7887_v25  ;;  %v7939_v62 = vld [vmem:[#allocation2 + $0xb50] sm:$0xff]  ;;  %v7942_v25 = vld [vmem:[#allocation2 + $0xb68] sm:$0xff] }
 0xa09   :  { %8431 = vmatprep.subr.bf16.mxu1 %v7890_v30  ;;  %9015 = vmatprep.subr.bf16.mxu0 %v7892_v61  ;;  %v7944_v30 = vld [vmem:[#allocation2 + $0xb78] sm:$0xff]  ;;  %v7941_v61 = vld [vmem:[#allocation2 + $0xb60] sm:$0xff] }
 0xa0c   :  { %8432 = vmatpush1.bf16.msra.mxu1 %v7889_v3  ;;  %9016 = vmatpush1.bf16.msra.mxu0 %v7891_v46  ;;  %v7943_v3 = vld [vmem:[#allocation2 + $0xb70] sm:$0xff]  ;;  %v7946_v46 = vld [vmem:[#allocation2 + $0xb88] sm:$0xff] }
 0xa0d   :  { %8433 = vmatprep.subr.bf16.mxu1 %v7894_v8  ;;  %9017 = vmatprep.subr.bf16.mxu0 %v7896_v37  ;;  %v7948_v8 = vld [vmem:[#allocation2 + $0xb98] sm:$0xff]  ;;  %v7945_v37 = vld [vmem:[#allocation2 + $0xb80] sm:$0xff] }
 0xa10   :  { %8434 = vmatpush1.bf16.msra.mxu1 %v7893_v6  ;;  %9018 = vmatpush1.bf16.msra.mxu0 %v7895_v14  ;;  %v7947_v6 = vld [vmem:[#allocation2 + $0xb90] sm:$0xff]  ;;  %v7950_v14 = vld [vmem:[#allocation2 + $0xba8] sm:$0xff] }
 0xa11   :  { %8476 = vmatprep.subr.bf16.mxu1 %v7898_v49  ;;  %9060 = vmatprep.subr.bf16.mxu0 %v7900_v24  ;;  %v7952_v49 = vld [vmem:[#allocation2 + $0xbb8] sm:$0xff]  ;;  %v7949_v24 = vld [vmem:[#allocation2 + $0xba0] sm:$0xff] }
 0xa13   :  { %8436 = vmatmul.mubr.bf16.vlgmr.msra.gmra.mrb[72].mxu1 %v16582_v55  ;;  %9020 = vmatmul.mubr.bf16.vlgmr.msra.gmra.mrb[80].mxu0 %v16582_v55  ;;  %v7912_v55 = vld [vmem:[#allocation2 + $0xa78] sm:$0xff] }
 0xa14   :  { %8477 = vmatpush1.bf16.msra.mxu1 %v7897_v19  ;;  %9061 = vmatpush1.bf16.msra.mxu0 %v7899_v26  ;;  %v7951_v19 = vld [vmem:[#allocation2 + $0xbb0] sm:$0xff]  ;;  %v7954_v26 = vld [vmem:[#allocation2 + $0xbc8] sm:$0xff] }
 0xa15   :  { %8478 = vmatprep.subr.bf16.mxu1 %v7902_v36  ;;  %9062 = vmatprep.subr.bf16.mxu0 %v7904_v58  ;;  %v7956_v36 = vld [vmem:[#allocation2 + $0xbd8] sm:$0xff]  ;;  %v7953_v58 = vld [vmem:[#allocation2 + $0xbc0] sm:$0xff] }
 0xa16   :  { %8445 = vmatprep.mubr.bf16.mxu1 %v16594_v40  ;;  %9029 = vmatprep.mubr.bf16.mxu0 %v16594_v40  ;;  %v7916_v40 = vld [vmem:[#allocation2 + $0xa98] sm:$0xff] }
 0xa18   :  { %8479 = vmatpush1.bf16.msra.mxu1 %v7901_v10  ;;  %9063 = vmatpush1.bf16.msra.mxu0 %v7903_v53  ;;  %v7955_v10 = vld [vmem:[#allocation2 + $0xbd0] sm:$0xff]  ;;  %v7958_v53 = vld [vmem:[#allocation2 + $0xbe8] sm:$0xff] }
 0xa19   :  { %8480 = vmatprep.subr.bf16.mxu1 %v7906_v33  ;;  %9064 = vmatprep.subr.bf16.mxu0 %v7908_v23  ;;  %v7960_v33 = vld [vmem:[#allocation2 + $0xbf8] sm:$0xff]  ;;  %v7957_v23 = vld [vmem:[#allocation2 + $0xbe0] sm:$0xff] }
 0xa1b   :  { %8446 = vmatmul.mubr.bf16.gmra.mrb[76].mxu1 %v16592_v5  ;;  %9030 = vmatmul.mubr.bf16.gmra.mrb[84].mxu0 %v16592_v5  ;;  %v7920_v5 = vld [vmem:[#allocation2 + $0xab8] sm:$0xff] }
 0xa1c   :  { %8481 = vmatpush1.bf16.msra.mxu1 %v7905_v54  ;;  %9065 = vmatpush1.bf16.msra.mxu0 %v7907_v9  ;;  %v7959_v54 = vld [vmem:[#allocation2 + $0xbf0] sm:$0xff]  ;;  %v7962_v9 = vld [vmem:[#allocation2 + $0xc08] sm:$0xff] }
 0xa1d   :  { %8482 = vmatprep.subr.bf16.mxu1 %v7910_v29  ;;  %9066 = vmatprep.subr.bf16.mxu0 %v7912_v55  ;;  %v7964_v29 = vld [vmem:[#allocation2 + $0xc18] sm:$0xff]  ;;  %v7961_v55 = vld [vmem:[#allocation2 + $0xc00] sm:$0xff] }
 0xa1e   :  { %8455 = vmatprep.mubr.bf16.mxu1 %v16606_v0  ;;  %9039 = vmatprep.mubr.bf16.mxu0 %v16606_v0  ;;  %v7924_v0 = vld [vmem:[#allocation2 + $0xad8] sm:$0xff] }
 0xa20   :  { %8483 = vmatpush1.bf16.msra.mxu1 %v7909_v32  ;;  %9067 = vmatpush1.bf16.msra.mxu0 %v7911_v15  ;;  %v7963_v32 = vld [vmem:[#allocation2 + $0xc10] sm:$0xff]  ;;  %v7966_v15 = vld [vmem:[#allocation2 + $0xc28] sm:$0xff] }
 0xa21   :  { %8484 = vmatprep.subr.bf16.mxu1 %v7914_v18  ;;  %9068 = vmatprep.subr.bf16.mxu0 %v7916_v40  ;;  %v7968_v18 = vld [vmem:[#allocation2 + $0xc38] sm:$0xff]  ;;  %v7965_v40 = vld [vmem:[#allocation2 + $0xc20] sm:$0xff] }
 0xa23   :  { %8456 = vmatmul.mubr.bf16.gmra.mrb[80].mxu1 %v16604_v39  ;;  %9040 = vmatmul.mubr.bf16.gmra.mrb[88].mxu0 %v16604_v39  ;;  %v7928_v39 = vld [vmem:[#allocation2 + $0xaf8] sm:$0xff] }
 0xa24   :  { %8485 = vmatpush1.bf16.msra.mxu1 %v7913_v44  ;;  %9069 = vmatpush1.bf16.msra.mxu0 %v7915_v38  ;;  %v7967_v44 = vld [vmem:[#allocation2 + $0xc30] sm:$0xff]  ;;  %v7970_v38 = vld [vmem:[#allocation2 + $0xc48] sm:$0xff] }
 0xa25   :  { %8486 = vmatprep.subr.bf16.mxu1 %v7918_v7  ;;  %9070 = vmatprep.subr.bf16.mxu0 %v7920_v5  ;;  %v7972_v7 = vld [vmem:[#allocation2 + $0xc58] sm:$0xff]  ;;  %v7969_v5 = vld [vmem:[#allocation2 + $0xc40] sm:$0xff] }
 0xa26   :  { %8465 = vmatprep.mubr.bf16.mxu1 %v16618_v51  ;;  %9049 = vmatprep.mubr.bf16.mxu0 %v16618_v51  ;;  %v7932_v51 = vld [vmem:[#allocation2 + $0xb18] sm:$0xff] }
 0xa28   :  { %8487 = vmatpush1.bf16.msra.mxu1 %v7917_v28  ;;  %9071 = vmatpush1.bf16.msra.mxu0 %v7919_v22  ;;  %v7971_v28 = vld [vmem:[#allocation2 + $0xc50] sm:$0xff]  ;;  %v7974_v22 = vld [vmem:[#allocation2 + $0xc68] sm:$0xff] }
 0xa29   :  { %8488 = vmatprep.subr.bf16.mxu1 %v7922_v41  ;;  %9072 = vmatprep.subr.bf16.mxu0 %v7924_v0  ;;  %v7973_v41 = vld [vmem:[#allocation2 + $0xc60] sm:$0xff]  ;;  %v7975_v0 = vld [vmem:[#allocation2 + $0xc70] sm:$0xff] }
 0xa2b   :  { %8466 = vmatmul.mubr.bf16.gmra.mrb[84].mxu1 %v16616_v56  ;;  %9050 = vmatmul.mubr.bf16.gmra.mrb[92].mxu0 %v16616_v56  ;;  %v7936_v56 = vld [vmem:[#allocation2 + $0xb38] sm:$0xff] }
 0xa2c   :  { %8489 = vmatpush1.bf16.msra.mxu1 %v7921_v60  ;;  %9073 = vmatpush1.bf16.msra.mxu0 %v7923_v42  ;;  %v7978_v60 = vld [vmem:[#allocation2 + $0xc88] sm:$0xff]  ;;  %v18502_v42 = vld [vmem:[#allocation150_spill] sm:$0xff] }
 0xa2d   :  { %8490 = vmatprep.subr.bf16.mxu1 %v7926_v57  ;;  %9074 = vmatprep.subr.bf16.mxu0 %v7928_v39  ;;  %v7977_v57 = vld [vmem:[#allocation2 + $0xc80] sm:$0xff]  ;;  %v7979_v39 = vld [vmem:[#allocation2 + $0xc90] sm:$0xff] }
 0xa2e   :  { %8508 = vmatprep.mubr.bf16.mxu1 %v16590_v43  ;;  %9092 = vmatprep.mubr.bf16.mxu0 %v16590_v43  ;;  %v7937_v43 = vld [vmem:[#allocation2 + $0xb40] sm:$0xff] }
 0xa30   :  { %8491 = vmatpush1.bf16.msra.mxu1 %v7925_v45  ;;  %9075 = vmatpush1.bf16.msra.mxu0 %v7927_v20  ;;  %v7982_v45 = vld [vmem:[#allocation2 + $0xca8] sm:$0xff]  ;;  %v18503_v20 = vld [vmem:[#allocation153_spill] sm:$0xff] }
 0xa31   :  { %8492 = vmatprep.subr.bf16.mxu1 %v7930_v12  ;;  %9076 = vmatprep.subr.bf16.mxu0 %v7932_v51  ;;  %v7981_v12 = vld [vmem:[#allocation2 + $0xca0] sm:$0xff]  ;;  %v7983_v51 = vld [vmem:[#allocation2 + $0xcb0] sm:$0xff] }
 0xa34   :  { %8493 = vmatpush1.bf16.msra.mxu1 %v7929_v63  ;;  %9077 = vmatpush1.bf16.msra.mxu0 %v7931_v4  ;;  %v7986_v63 = vld [vmem:[#allocation2 + $0xcc8] sm:$0xff]  ;;  %v7988_v4 = vld [vmem:[#allocation2 + $0xcd8] sm:$0xff] }
 0xa35   :  { %8494 = vmatprep.subr.bf16.mxu1 %v7934_v17  ;;  %9078 = vmatprep.subr.bf16.mxu0 %v7936_v56  ;;  %v18504_v17 = vld [vmem:[#allocation152_spill] sm:$0xff]  ;;  %v7985_v56 = vld [vmem:[#allocation2 + $0xcc0] sm:$0xff] }
 0xa38   :  { %8495 = vmatpush1.bf16.msra.mxu1 %v7933_v50  ;;  %9079 = vmatpush1.bf16.msra.mxu0 %v7935_v1  ;;  %v7987_v50 = vld [vmem:[#allocation2 + $0xcd0] sm:$0xff]  ;;  %v7990_v1 = vld [vmem:[#allocation2 + $0xce8] sm:$0xff] }
 0xa39   :  { %8496 = vmatprep.subr.bf16.mxu1 %v7938_v16  ;;  %9080 = vmatprep.subr.bf16.mxu0 %v7940_v34  ;;  %v7992_v16 = vld [vmem:[#allocation2 + $0xcf8] sm:$0xff]  ;;  %v18505_v34 = vld [vmem:[#allocation151_spill] sm:$0xff] }
 0xa3c   :  { %8497 = vmatpush1.bf16.msra.mxu1 %v7937_v43  ;;  %9081 = vmatpush1.bf16.msra.mxu0 %v7939_v62  ;;  %v7989_v43 = vld [vmem:[#allocation2 + $0xce0] sm:$0xff]  ;;  %v7991_v62 = vld [vmem:[#allocation2 + $0xcf0] sm:$0xff] }
 0xa3d   :  { %8498 = vmatprep.subr.bf16.mxu1 %v7942_v25  ;;  %9082 = vmatprep.subr.bf16.mxu0 %v7944_v30  ;;  %v7994_v25 = vld [vmem:[#allocation2 + $0xd08] sm:$0xff]  ;;  %v7996_v30 = vld [vmem:[#allocation2 + $0xd18] sm:$0xff] }
 0xa40   :  { %8499 = vmatpush1.bf16.msra.mxu1 %v7941_v61  ;;  %9083 = vmatpush1.bf16.msra.mxu0 %v7943_v3  ;;  %v18506_v61 = vld [vmem:[#allocation155_spill] sm:$0xff]  ;;  %v7993_v3 = vld [vmem:[#allocation2 + $0xd00] sm:$0xff] }
 0xa41   :  { %8500 = vmatprep.subr.bf16.mxu1 %v7946_v46  ;;  %9084 = vmatprep.subr.bf16.mxu0 %v7948_v8  ;;  %v7995_v46 = vld [vmem:[#allocation2 + $0xd10] sm:$0xff]  ;;  %v7998_v8 = vld [vmem:[#allocation2 + $0xd28] sm:$0xff] }
 0xa44   :  { %8501 = vmatpush1.bf16.msra.mxu1 %v7945_v37  ;;  %9085 = vmatpush1.bf16.msra.mxu0 %v7947_v6  ;;  %v8000_v37 = vld [vmem:[#allocation2 + $0xd38] sm:$0xff]  ;;  %v7997_v6 = vld [vmem:[#allocation2 + $0xd20] sm:$0xff] }
 0xa45   :  { %8502 = vmatprep.subr.bf16.mxu1 %v7950_v14  ;;  %9086 = vmatprep.subr.bf16.mxu0 %v7952_v49  ;;  %v7999_v14 = vld [vmem:[#allocation2 + $0xd30] sm:$0xff]  ;;  %v8002_v49 = vld [vmem:[#allocation2 + $0xd48] sm:$0xff] }
 0xa48   :  { %8503 = vmatpush1.bf16.msra.mxu1 %v7949_v24  ;;  %9087 = vmatpush1.bf16.msra.mxu0 %v7951_v19  ;;  %v8004_v24 = vld [vmem:[#allocation2 + $0xd58] sm:$0xff]  ;;  %v8001_v19 = vld [vmem:[#allocation2 + $0xd40] sm:$0xff] }
 0xa49   :  { %8504 = vmatprep.subr.bf16.mxu1 %v7954_v26  ;;  %9088 = vmatprep.subr.bf16.mxu0 %v7956_v36  ;;  %v8003_v26 = vld [vmem:[#allocation2 + $0xd50] sm:$0xff]  ;;  %v8006_v36 = vld [vmem:[#allocation2 + $0xd68] sm:$0xff] }
 0xa4c   :  { %8505 = vmatpush1.bf16.msra.mxu1 %v7953_v58  ;;  %9089 = vmatpush1.bf16.msra.mxu0 %v7955_v10  ;;  %v8008_v58 = vld [vmem:[#allocation2 + $0xd78] sm:$0xff]  ;;  %v8005_v10 = vld [vmem:[#allocation2 + $0xd60] sm:$0xff] }
 0xa4d   :  { %8506 = vmatprep.subr.bf16.mxu1 %v7958_v53  ;;  %9090 = vmatprep.subr.bf16.mxu0 %v7960_v33  ;;  %v8007_v53 = vld [vmem:[#allocation2 + $0xd70] sm:$0xff]  ;;  %v8010_v33 = vld [vmem:[#allocation2 + $0xd88] sm:$0xff] }
 0xa50   :  { %8507 = vmatpush1.bf16.msra.mxu1 %v7957_v23  ;;  %9091 = vmatpush1.bf16.msra.mxu0 %v7959_v54  ;;  %v8012_v23 = vld [vmem:[#allocation2 + $0xd98] sm:$0xff]  ;;  %v8009_v54 = vld [vmem:[#allocation2 + $0xd80] sm:$0xff] }
 0xa51   :  { %8549 = vmatprep.subr.bf16.mxu1 %v7962_v9  ;;  %9133 = vmatprep.subr.bf16.mxu0 %v7964_v29  ;;  %v8011_v9 = vld [vmem:[#allocation2 + $0xd90] sm:$0xff]  ;;  %v8014_v29 = vld [vmem:[#allocation2 + $0xda8] sm:$0xff] }
 0xa53   :  { %8509 = vmatmul.mubr.bf16.vlgmr.msra.gmra.mrb[72].mxu1 %v16588_v31  ;;  %9093 = vmatmul.mubr.bf16.vlgmr.msra.gmra.mrb[80].mxu0 %v16588_v31  ;;  %v7976_v31 = vld [vmem:[#allocation2 + $0xc78] sm:$0xff] }
 0xa54   :  { %8550 = vmatpush1.bf16.msra.mxu1 %v7961_v55  ;;  %9134 = vmatpush1.bf16.msra.mxu0 %v7963_v32  ;;  %v8016_v55 = vld [vmem:[#allocation2 + $0xdb8] sm:$0xff]  ;;  %v8013_v32 = vld [vmem:[#allocation2 + $0xda0] sm:$0xff] }
 0xa55   :  { %8551 = vmatprep.subr.bf16.mxu1 %v7966_v15  ;;  %9135 = vmatprep.subr.bf16.mxu0 %v7968_v18  ;;  %v8015_v15 = vld [vmem:[#allocation2 + $0xdb0] sm:$0xff]  ;;  %v8018_v18 = vld [vmem:[#allocation2 + $0xdc8] sm:$0xff] }
 0xa56   :  { %8518 = vmatprep.mubr.bf16.mxu1 %v16602_v13  ;;  %9102 = vmatprep.mubr.bf16.mxu0 %v16602_v13  ;;  %v7980_v13 = vld [vmem:[#allocation2 + $0xc98] sm:$0xff] }
 0xa58   :  { %8552 = vmatpush1.bf16.msra.mxu1 %v7965_v40  ;;  %9136 = vmatpush1.bf16.msra.mxu0 %v7967_v44  ;;  %v8020_v40 = vld [vmem:[#allocation2 + $0xdd8] sm:$0xff]  ;;  %v8017_v44 = vld [vmem:[#allocation2 + $0xdc0] sm:$0xff] }
 0xa59   :  { %8553 = vmatprep.subr.bf16.mxu1 %v7970_v38  ;;  %9137 = vmatprep.subr.bf16.mxu0 %v7972_v7  ;;  %v8019_v38 = vld [vmem:[#allocation2 + $0xdd0] sm:$0xff]  ;;  %v8022_v7 = vld [vmem:[#allocation2 + $0xde8] sm:$0xff] }
 0xa5b   :  { %8519 = vmatmul.mubr.bf16.gmra.mrb[76].mxu1 %v16600_v2  ;;  %9103 = vmatmul.mubr.bf16.gmra.mrb[84].mxu0 %v16600_v2  ;;  %v7984_v2 = vld [vmem:[#allocation2 + $0xcb8] sm:$0xff] }
 0xa5c   :  { %8554 = vmatpush1.bf16.msra.mxu1 %v7969_v5  ;;  %9138 = vmatpush1.bf16.msra.mxu0 %v7971_v28  ;;  %v8024_v5 = vld [vmem:[#allocation2 + $0xdf8] sm:$0xff]  ;;  %v8021_v28 = vld [vmem:[#allocation2 + $0xde0] sm:$0xff] }
 0xa5d   :  { %8555 = vmatprep.subr.bf16.mxu1 %v7974_v22  ;;  %9139 = vmatprep.subr.bf16.mxu0 %v7976_v31  ;;  %v8023_v22 = vld [vmem:[#allocation2 + $0xdf0] sm:$0xff]  ;;  %v8026_v31 = vld [vmem:[#allocation2 + $0xe08] sm:$0xff] }
 0xa5e   :  { %8528 = vmatprep.mubr.bf16.mxu1 %v18502_v42  ;;  %9112 = vmatprep.mubr.bf16.mxu0 %v18502_v42  ;;  %v8032_v42 = vld [vmem:[#allocation2 + $0xe38] sm:$0xff] }
 0xa60   :  { %8556 = vmatpush1.bf16.msra.mxu1 %v7973_v41  ;;  %9140 = vmatpush1.bf16.msra.mxu0 %v7975_v0  ;;  %v8028_v41 = vld [vmem:[#allocation2 + $0xe18] sm:$0xff]  ;;  %v8025_v0 = vld [vmem:[#allocation2 + $0xe00] sm:$0xff] }
 0xa61   :  { %8557 = vmatprep.subr.bf16.mxu1 %v7978_v60  ;;  %9141 = vmatprep.subr.bf16.mxu0 %v7980_v13  ;;  %v8027_v60 = vld [vmem:[#allocation2 + $0xe10] sm:$0xff]  ;;  %v8030_v13 = vld [vmem:[#allocation2 + $0xe28] sm:$0xff] }
 0xa63   :  { %8529 = vmatmul.mubr.bf16.gmra.mrb[80].mxu1 %v18503_v20  ;;  %9113 = vmatmul.mubr.bf16.gmra.mrb[88].mxu0 %v18503_v20  ;;  %v8036_v20 = vld [vmem:[#allocation2 + $0xe58] sm:$0xff] }
 0xa64   :  { %8558 = vmatpush1.bf16.msra.mxu1 %v7977_v57  ;;  %9142 = vmatpush1.bf16.msra.mxu0 %v7979_v39  ;;  %v18507_v57 = vld [vmem:[#allocation154_spill] sm:$0xff] }
 0xa65   :  { %8559 = vmatprep.subr.bf16.mxu1 %v7982_v45  ;;  %9143 = vmatprep.subr.bf16.mxu0 %v7984_v2  ;;  %v8029_v39 = vld [vmem:[#allocation2 + $0xe20] sm:$0xff]  ;;  %v8031_v45 = vld [vmem:[#allocation2 + $0xe30] sm:$0xff]  ;;  %v8034_v2 = vld [vmem:[#allocation2 + $0xe48] sm:$0xff] }
 0xa66   :  { %8538 = vmatprep.mubr.bf16.mxu1 %v18504_v17  ;;  %9122 = vmatprep.mubr.bf16.mxu0 %v18504_v17  ;;  %v8040_v17 = vld [vmem:[#allocation2 + $0xe78] sm:$0xff] }
 0xa68   :  { %8560 = vmatpush1.bf16.msra.mxu1 %v7981_v12  ;;  %9144 = vmatpush1.bf16.msra.mxu0 %v7983_v51  ;;  %v18508_v12 = vld [vmem:[#allocation159_spill] sm:$0xff]  ;;  %v8033_v51 = vld [vmem:[#allocation2 + $0xe40] sm:$0xff] }
 0xa69   :  { %8561 = vmatprep.subr.bf16.mxu1 %v7986_v63  ;;  %9145 = vmatprep.subr.bf16.mxu0 %v7988_v4  ;;  %v8035_v63 = vld [vmem:[#allocation2 + $0xe50] sm:$0xff]  ;;  %v8038_v4 = vld [vmem:[#allocation2 + $0xe68] sm:$0xff] }
 0xa6b   :  { %8539 = vmatmul.mubr.bf16.gmra.mrb[84].mxu1 %v18505_v34  ;;  %9123 = vmatmul.mubr.bf16.gmra.mrb[92].mxu0 %v18505_v34  ;;  %v8044_v34 = vld [vmem:[#allocation2 + $0xe98] sm:$0xff] }
 0xa6c   :  { %8562 = vmatpush1.bf16.msra.mxu1 %v7985_v56  ;;  %9146 = vmatpush1.bf16.msra.mxu0 %v7987_v50  ;;  %v18509_v56 = vld [vmem:[#allocation158_spill] sm:$0xff] }
 0xa6d   :  { %8563 = vmatprep.subr.bf16.mxu1 %v7990_v1  ;;  %9147 = vmatprep.subr.bf16.mxu0 %v7992_v16  ;;  %v8037_v50 = vld [vmem:[#allocation2 + $0xe60] sm:$0xff]  ;;  %v8039_v1 = vld [vmem:[#allocation2 + $0xe70] sm:$0xff]  ;;  %v8042_v16 = vld [vmem:[#allocation2 + $0xe88] sm:$0xff] }
 0xa6e   :  { %8581 = vmatprep.mubr.bf16.mxu1 %v18506_v61  ;;  %9165 = vmatprep.mubr.bf16.mxu0 %v18506_v61  ;;  %v8045_v61 = vld [vmem:[#allocation2 + $0xea0] sm:$0xff] }
 0xa70   :  { %8564 = vmatpush1.bf16.msra.mxu1 %v7989_v43  ;;  %9148 = vmatpush1.bf16.msra.mxu0 %v7991_v62  ;;  %v8041_v43 = vld [vmem:[#allocation2 + $0xe80] sm:$0xff]  ;;  %v8043_v62 = vld [vmem:[#allocation2 + $0xe90] sm:$0xff] }
 0xa71   :  { %8565 = vmatprep.subr.bf16.mxu1 %v7994_v25  ;;  %9149 = vmatprep.subr.bf16.mxu0 %v7996_v30  ;;  %v8046_v25 = vld [vmem:[#allocation2 + $0xea8] sm:$0xff]  ;;  %v8048_v30 = vld [vmem:[#allocation2 + $0xeb8] sm:$0xff] }
 0xa74   :  { %8566 = vmatpush1.bf16.msra.mxu1 %v7993_v3  ;;  %9150 = vmatpush1.bf16.msra.mxu0 %v7995_v46  ;;  %v8047_v3 = vld [vmem:[#allocation2 + $0xeb0] sm:$0xff]  ;;  %v8050_v46 = vld [vmem:[#allocation2 + $0xec8] sm:$0xff] }
 0xa75   :  { %8567 = vmatprep.subr.bf16.mxu1 %v7998_v8  ;;  %9151 = vmatprep.subr.bf16.mxu0 %v8000_v37  ;;  %v8049_v8 = vld [vmem:[#allocation2 + $0xec0] sm:$0xff]  ;;  %v8051_v37 = vld [vmem:[#allocation2 + $0xed0] sm:$0xff] }
 0xa78   :  { %8568 = vmatpush1.bf16.msra.mxu1 %v7997_v6  ;;  %9152 = vmatpush1.bf16.msra.mxu0 %v7999_v14  ;;  %v8054_v6 = vld [vmem:[#allocation2 + $0xee8] sm:$0xff]  ;;  %v8053_v14 = vld [vmem:[#allocation2 + $0xee0] sm:$0xff] }
 0xa79   :  { %8569 = vmatprep.subr.bf16.mxu1 %v8002_v49  ;;  %9153 = vmatprep.subr.bf16.mxu0 %v8004_v24  ;;  %v8055_v49 = vld [vmem:[#allocation2 + $0xef0] sm:$0xff]  ;;  %v8058_v24 = vld [vmem:[#allocation2 + $0xf08] sm:$0xff] }
 0xa7c   :  { %8570 = vmatpush1.bf16.msra.mxu1 %v8001_v19  ;;  %9154 = vmatpush1.bf16.msra.mxu0 %v8003_v26  ;;  %v18510_v19 = vld [vmem:[#allocation157_spill] sm:$0xff]  ;;  %v8057_v26 = vld [vmem:[#allocation2 + $0xf00] sm:$0xff] }
 0xa7d   :  { %8571 = vmatprep.subr.bf16.mxu1 %v8006_v36  ;;  %9155 = vmatprep.subr.bf16.mxu0 %v8008_v58  ;;  %v8059_v36 = vld [vmem:[#allocation2 + $0xf10] sm:$0xff]  ;;  %v8062_v58 = vld [vmem:[#allocation2 + $0xf28] sm:$0xff] }
 0xa80   :  { %8572 = vmatpush1.bf16.msra.mxu1 %v8005_v10  ;;  %9156 = vmatpush1.bf16.msra.mxu0 %v8007_v53  ;;  %v8061_v10 = vld [vmem:[#allocation2 + $0xf20] sm:$0xff]  ;;  %v8063_v53 = vld [vmem:[#allocation2 + $0xf30] sm:$0xff] }
 0xa81   :  { %8573 = vmatprep.subr.bf16.mxu1 %v8010_v33  ;;  %9157 = vmatprep.subr.bf16.mxu0 %v8012_v23  ;;  %v8066_v33 = vld [vmem:[#allocation2 + $0xf48] sm:$0xff]  ;;  %v8068_v23 = vld [vmem:[#allocation2 + $0xf58] sm:$0xff] }
 0xa84   :  { %8574 = vmatpush1.bf16.msra.mxu1 %v8009_v54  ;;  %9158 = vmatpush1.bf16.msra.mxu0 %v8011_v9  ;;  %v8065_v54 = vld [vmem:[#allocation2 + $0xf40] sm:$0xff]  ;;  %v8067_v9 = vld [vmem:[#allocation2 + $0xf50] sm:$0xff] }
 0xa85   :  { %8575 = vmatprep.subr.bf16.mxu1 %v8014_v29  ;;  %9159 = vmatprep.subr.bf16.mxu0 %v8016_v55  ;;  %v8070_v29 = vld [vmem:[#allocation2 + $0xf68] sm:$0xff]  ;;  %v8072_v55 = vld [vmem:[#allocation2 + $0xf78] sm:$0xff] }
 0xa88   :  { %8576 = vmatpush1.bf16.msra.mxu1 %v8013_v32  ;;  %9160 = vmatpush1.bf16.msra.mxu0 %v8015_v15  ;;  %v8069_v32 = vld [vmem:[#allocation2 + $0xf60] sm:$0xff]  ;;  %v8071_v15 = vld [vmem:[#allocation2 + $0xf70] sm:$0xff] }
 0xa89   :  { %8577 = vmatprep.subr.bf16.mxu1 %v8018_v18  ;;  %9161 = vmatprep.subr.bf16.mxu0 %v8020_v40  ;;  %v8074_v18 = vld [vmem:[#allocation2 + $0xf88] sm:$0xff]  ;;  %v8076_v40 = vld [vmem:[#allocation2 + $0xf98] sm:$0xff] }
 0xa8c   :  { %8578 = vmatpush1.bf16.msra.mxu1 %v8017_v44  ;;  %9162 = vmatpush1.bf16.msra.mxu0 %v8019_v38  ;;  %v8073_v44 = vld [vmem:[#allocation2 + $0xf80] sm:$0xff]  ;;  %v8075_v38 = vld [vmem:[#allocation2 + $0xf90] sm:$0xff] }
 0xa8d   :  { %8579 = vmatprep.subr.bf16.mxu1 %v8022_v7  ;;  %9163 = vmatprep.subr.bf16.mxu0 %v8024_v5  ;;  %v8078_v7 = vld [vmem:[#allocation2 + $0xfa8] sm:$0xff]  ;;  %v8080_v5 = vld [vmem:[#allocation2 + $0xfb8] sm:$0xff] }
 0xa90   :  { %8580 = vmatpush1.bf16.msra.mxu1 %v8021_v28  ;;  %9164 = vmatpush1.bf16.msra.mxu0 %v8023_v22  ;;  %v8077_v28 = vld [vmem:[#allocation2 + $0xfa0] sm:$0xff]  ;;  %v8079_v22 = vld [vmem:[#allocation2 + $0xfb0] sm:$0xff] }
 0xa91   :  { %8622 = vmatprep.subr.bf16.mxu1 %v8026_v31  ;;  %9206 = vmatprep.subr.bf16.mxu0 %v8028_v41  ;;  %v8082_v31 = vld [vmem:[#allocation2 + $0xfc8] sm:$0xff]  ;;  %v8084_v41 = vld [vmem:[#allocation2 + $0xfd8] sm:$0xff] }
 0xa93   :  { %8582 = vmatmul.mubr.bf16.vlgmr.msra.gmra.mrb[72].mxu1 %v18507_v57  ;;  %9166 = vmatmul.mubr.bf16.vlgmr.msra.gmra.mrb[80].mxu0 %v18507_v57  ;;  %v8085_v57 = vld [vmem:[#allocation2 + $0xfe0] sm:$0xff] }
 0xa94   :  { %8623 = vmatpush1.bf16.msra.mxu1 %v8025_v0  ;;  %9207 = vmatpush1.bf16.msra.mxu0 %v8027_v60  ;;  %v8081_v0 = vld [vmem:[#allocation2 + $0xfc0] sm:$0xff]  ;;  %v8083_v60 = vld [vmem:[#allocation2 + $0xfd0] sm:$0xff] }
 0xa95   :  { %8624 = vmatprep.subr.bf16.mxu1 %v8030_v13  ;;  %9208 = vmatprep.subr.bf16.mxu0 %v8032_v42  ;;  %v8086_v13 = vld [vmem:[#allocation2 + $0xfe8] sm:$0xff]  ;;  %v8088_v42 = vld [vmem:[#allocation2 + $0xff8] sm:$0xff] }
 0xa96   :  { %8591 = vmatprep.mubr.bf16.mxu1 %v18508_v12  ;;  %9175 = vmatprep.mubr.bf16.mxu0 %v18508_v12  ;;  %v18514_v12 = vmov 0.0  }
 0xa98   :  { %8625 = vmatpush1.bf16.msra.mxu1 %v8029_v39  ;;  %9209 = vmatpush1.bf16.msra.mxu0 %v8031_v45  ;;  %v8087_v39 = vld [vmem:[#allocation2 + $0xff0] sm:$0xff] }
 0xa99   :  { %8626 = vmatprep.subr.bf16.mxu1 %v8034_v2  ;;  %9210 = vmatprep.subr.bf16.mxu0 %v8036_v20  ;;  %v18511_v45 = vld [vmem:[#allocation156_spill] sm:$0xff]  ;;  %v18512_v2 = vld [vmem:[#allocation161_spill] sm:$0xff] }
 0xa9a   :  { %v18513_v20 = vld [vmem:[#allocation160_spill] sm:$0xff] }
 0xa9b   :  { %8592 = vmatmul.mubr.bf16.gmra.mrb[76].mxu1 %v18509_v56  ;;  %9176 = vmatmul.mubr.bf16.gmra.mrb[84].mxu0 %v18509_v56  ;;  %v18518_v56 = vld [vmem:[#allocation149_spill] sm:$0xff] }
 0xa9c   :  { %8627 = vmatpush1.bf16.msra.mxu1 %v8033_v51  ;;  %9211 = vmatpush1.bf16.msra.mxu0 %v8035_v63  ;;  %v18515_v51 = vld [vmem:[#allocation146_spill] sm:$0xff] }
 0xa9d   :  { %8628 = vmatprep.subr.bf16.mxu1 %v8038_v4  ;;  %9212 = vmatprep.subr.bf16.mxu0 %v8040_v17  ;;  %v18517_v17 = vld [vmem:[#allocation148_spill] sm:$0xff] }
 0xa9e   :  { %8601 = vmatprep.mubr.bf16.mxu1 %v16694_v21  ;;  %9185 = vmatprep.mubr.bf16.mxu0 %v16694_v21  ;;  %v8052_v21 = vld [vmem:[#allocation2 + $0xed8] sm:$0xff] }
 0xaa0   :  { %8629 = vmatpush1.bf16.msra.mxu1 %v8037_v50  ;;  %9213 = vmatpush1.bf16.msra.mxu0 %v8039_v1 }
 0xaa1   :  { %8630 = vmatprep.subr.bf16.mxu1 %v8042_v16  ;;  %9214 = vmatprep.subr.bf16.mxu0 %v8044_v34 }
 0xaa3   :  { %8602 = vmatmul.mubr.bf16.gmra.mrb[80].mxu1 %v16692_v48  ;;  %9186 = vmatmul.mubr.bf16.gmra.mrb[88].mxu0 %v16692_v48  ;;  %v8056_v48 = vld [vmem:[#allocation2 + $0xef8] sm:$0xff] }
 0xaa4   :  { %8631 = vmatpush1.bf16.msra.mxu1 %v8041_v43  ;;  %9215 = vmatpush1.bf16.msra.mxu0 %v8043_v62 }
 0xaa5   :  { %8632 = vmatprep.subr.bf16.mxu1 %v8046_v25  ;;  %9216 = vmatprep.subr.bf16.mxu0 %v8048_v30 }
 0xaa6   :  { %8611 = vmatprep.mubr.bf16.mxu1 %v16702_v35  ;;  %9195 = vmatprep.mubr.bf16.mxu0 %v16702_v35  ;;  %v8060_v35 = vld [vmem:[#allocation2 + $0xf18] sm:$0xff] }
 0xaa8   :  { %8633 = vmatpush1.bf16.msra.mxu1 %v8045_v61  ;;  %9217 = vmatpush1.bf16.msra.mxu0 %v8047_v3 }
 0xaa9   :  { %8634 = vmatprep.subr.bf16.mxu1 %v8050_v46  ;;  %9218 = vmatprep.subr.bf16.mxu0 %v8052_v21 }
 0xaab   :  { %8612 = vmatmul.mubr.bf16.gmra.mrb[84].mxu1 %v16700_v52  ;;  %9196 = vmatmul.mubr.bf16.gmra.mrb[92].mxu0 %v16700_v52  ;;  %v8064_v52 = vld [vmem:[#allocation2 + $0xf38] sm:$0xff] }
 0xaac   :  { %8635 = vmatpush1.bf16.msra.mxu1 %v8049_v8  ;;  %9219 = vmatpush1.bf16.msra.mxu0 %v8051_v37 }
 0xaad   :  { %8636 = vmatprep.subr.bf16.mxu1 %v8054_v6  ;;  %9220 = vmatprep.subr.bf16.mxu0 %v8056_v48 }
 0xaae   :  { %8654 = vmatprep.mubr.bf16.mxu1 %v18510_v19  ;;  %9238 = vmatprep.mubr.bf16.mxu0 %v18510_v19 }
 0xab0   :  { %8637 = vmatpush1.bf16.msra.mxu1 %v8053_v14  ;;  %9221 = vmatpush1.bf16.msra.mxu0 %v8055_v49 }
 0xab1   :  { %8638 = vmatprep.subr.bf16.mxu1 %v8058_v24  ;;  %9222 = vmatprep.subr.bf16.mxu0 %v8060_v35 }
 0xab4   :  { %8639 = vmatpush1.bf16.msra.mxu1 %v8057_v26  ;;  %9223 = vmatpush1.bf16.msra.mxu0 %v8059_v36 }
 0xab5   :  { %8640 = vmatprep.subr.bf16.mxu1 %v8062_v58  ;;  %9224 = vmatprep.subr.bf16.mxu0 %v8064_v52 }
 0xab8   :  { %8641 = vmatpush1.bf16.msra.mxu1 %v8061_v10  ;;  %9225 = vmatpush1.bf16.msra.mxu0 %v8063_v53 }
 0xab9   :  { %8642 = vmatprep.subr.bf16.mxu1 %v8066_v33  ;;  %9226 = vmatprep.subr.bf16.mxu0 %v8068_v23 }
 0xabc   :  { %8643 = vmatpush1.bf16.msra.mxu1 %v8065_v54  ;;  %9227 = vmatpush1.bf16.msra.mxu0 %v8067_v9 }
 0xabd   :  { %8644 = vmatprep.subr.bf16.mxu1 %v8070_v29  ;;  %9228 = vmatprep.subr.bf16.mxu0 %v8072_v55 }
 0xac0   :  { %8645 = vmatpush1.bf16.msra.mxu1 %v8069_v32  ;;  %9229 = vmatpush1.bf16.msra.mxu0 %v8071_v15 }
 0xac1   :  { %8646 = vmatprep.subr.bf16.mxu1 %v8074_v18  ;;  %9230 = vmatprep.subr.bf16.mxu0 %v8076_v40 }
 0xac4   :  { %8647 = vmatpush1.bf16.msra.mxu1 %v8073_v44  ;;  %9231 = vmatpush1.bf16.msra.mxu0 %v8075_v38 }
 0xac5   :  { %8648 = vmatprep.subr.bf16.mxu1 %v8078_v7  ;;  %9232 = vmatprep.subr.bf16.mxu0 %v8080_v5 }
 0xac8   :  { %8649 = vmatpush1.bf16.msra.mxu1 %v8077_v28  ;;  %9233 = vmatpush1.bf16.msra.mxu0 %v8079_v22 }
 0xac9   :  { %8650 = vmatprep.subr.bf16.mxu1 %v8082_v31  ;;  %9234 = vmatprep.subr.bf16.mxu0 %v8084_v41 }
 0xacc   :  { %8651 = vmatpush1.bf16.msra.mxu1 %v8081_v0  ;;  %9235 = vmatpush1.bf16.msra.mxu0 %v8083_v60 }
 0xacd   :  { %8652 = vmatprep.subr.bf16.mxu1 %v8086_v13  ;;  %9236 = vmatprep.subr.bf16.mxu0 %v8088_v42 }
 0xad0   :  { %8653 = vmatpush1.bf16.msra.mxu1 %v8085_v57  ;;  %9237 = vmatpush1.bf16.msra.mxu0 %v8087_v39 }
 0xad3   :  { %8655 = vmatmul.mubr.bf16.vlgmr.msra.gmra.mrb[72].mxu1 %v18511_v45  ;;  %9239 = vmatmul.mubr.bf16.vlgmr.msra.gmra.mrb[80].mxu0 %v18511_v45 }
 0xad4   :  { %8664 = vmatprep.mubr.bf16.mxu1 %v18512_v2  ;;  %9248 = vmatprep.mubr.bf16.mxu0 %v18512_v2 }
 0xadb   :  { %8665 = vmatmul.mubr.bf16.gmra.mrb[76].mxu1 %v18513_v20  ;;  %9249 = vmatmul.mubr.bf16.gmra.mrb[84].mxu0 %v18513_v20 }
 0xadc   :  { %8674 = vmatprep.mubr.bf16.mxu1 %v16698_v59  ;;  %9258 = vmatprep.mubr.bf16.mxu0 %v16698_v59  ;;  %v8089_v59 = vld [vmem:[%s18233_s8] sm:$0xf] }
 0xadd   :  { %v16842_v63 = vrot.slane %v8089_v59, %v18515_v51  ;;  %v16851_v50 = vrot.slane %v8089_v59, %v18518_v56 }
 0xae3   :  { %8675 = vmatmul.mubr.bf16.gmra.mrb[80].mxu1 %v16696_v11  ;;  %9259 = vmatmul.mubr.bf16.gmra.mrb[88].mxu0 %v16696_v11  ;;  %v18516_v11 = vld [vmem:[#allocation147_spill] sm:$0xff] }
 0xae4   :  { %8684 = vmatprep.mubr.bf16.mxu1 %v16706_v27  ;;  %9268 = vmatprep.mubr.bf16.mxu0 %v16706_v27  ;;  %v16845_v4 = vrot.slane %v8089_v59, %v18516_v11  ;;  %v16848_v27 = vrot.slane %v8089_v59, %v18517_v17 }
 0xaeb   :  { %8685 = vmatmul.mubr.bf16.gmra.mrb[84].mxu1 %v16704_v47  ;;  %9269 = vmatmul.mubr.bf16.gmra.mrb[92].mxu0 %v16704_v47 }
 0xaec   :  { %10029 = vmatprep.mubr.f32.mxu1 %v18514_v12  ;;  %10142 = vmatprep.mubr.f32.mxu0 %v18514_v12 }
 0xba6   :  { %v8656_v47 = vpop.f32.mrb[72].mxu1  ;;  %v9240_v1 = vpop.f32.mrb[80].mxu0 }
 0xba7   :  { %v12585_v16 = vadd.f32 %v8656_v47, %v16842_v63  ;;  %v12601_v34 = vadd.f32 %v9240_v1, %v16845_v4  ;;  %v8658_v43 = vpop.f32.mrb[73].mxu1  ;;  %v9242_v62 = vpop.f32.mrb[81].mxu0 }
 0xba8   :  { %v12586_v25 = vadd.f32 %v8658_v43, %v16848_v27  ;;  %v12602_v30 = vadd.f32 %v9242_v62, %v16851_v50  ;;  %v8660_v61 = vpop.f32.mrb[74].mxu1  ;;  %v9244_v3 = vpop.f32.mrb[82].mxu0 }
 0xba9   :  { %v9311_v46 = vmul.f32 0.044715, %v12585_v16  ;;  %v9313_v21 = vmul.f32 0.044715, %v12601_v34  ;;  %v16858_v14 = vadd.f32 %v8660_v61, %v16842_v63  ;;  %v16861_v49 = vadd.f32 %v9244_v3, %v16845_v4  ;;  %v8662_v24 = vpop.f32.mrb[75].mxu1  ;;  %v9246_v35 = vpop.f32.mrb[83].mxu0 }
 0xbaa   :  { %v9312_v8 = vmul.f32 0.044715, %v12586_v25  ;;  %v9314_v37 = vmul.f32 0.044715, %v12602_v30  ;;  %v16867_v29 = vadd.f32 %v8662_v24, %v16848_v27  ;;  %v16871_v18 = vadd.f32 %v9246_v35, %v16851_v50 }
 0xbab   :  { %v9343_v6 = vmul.f32 %v12585_v16, %v9311_v46  ;;  %v9345_v48 = vmul.f32 %v12601_v34, %v9313_v21  ;;  %v9315_v58 = vmul.f32 0.044715, %v16858_v14  ;;  %v9317_v10 = vmul.f32 0.044715, %v16861_v49 }
 0xbac   :  { %v9344_v36 = vmul.f32 %v12586_v25, %v9312_v8  ;;  %v9346_v52 = vmul.f32 %v12602_v30, %v9314_v37  ;;  %v16876_v31 = vmul.f32 0.5, %v12585_v16  ;;  %v9316_v42 = vmul.f32 0.044715, %v16867_v29 }
 0xbad   :  { %v9375_v19 = vmul.f32 %v12585_v16, %v9343_v6  ;;  %v9377_v26 = vmul.f32 %v12601_v34, %v9345_v48  ;;  %v9347_v9 = vmul.f32 %v16858_v14, %v9315_v58  ;;  %v9349_v15 = vmul.f32 %v16861_v49, %v9317_v10 }
 0xbae   :  { %v8666_v53 = vpop.f32.mrb[76].mxu1  ;;  %v9250_v33 = vpop.f32.mrb[84].mxu0  ;;  %v9376_v5 = vmul.f32 %v12586_v25, %v9344_v36  ;;  %v9378_v41 = vmul.f32 %v12602_v30, %v9346_v52  ;;  %v16884_v39 = vmul.f32 0.5, %v12601_v34  ;;  %v16890_v20 = vmul.f32 0.5, %v12586_v25 }
 0xbaf   :  { %v9407_v23 = vadd.f32 %v12585_v16, %v9375_v19  ;;  %v9409_v54 = vadd.f32 %v12601_v34, %v9377_v26  ;;  %v8668_v55 = vpop.f32.mrb[77].mxu1  ;;  %v9252_v32 = vpop.f32.mrb[85].mxu0  ;;  %v9379_v28 = vmul.f32 %v16858_v14, %v9347_v9  ;;  %v9381_v0 = vmul.f32 %v16861_v49, %v9349_v15 }
 0xbb0   :  { %v8670_v40 = vpop.f32.mrb[78].mxu1  ;;  %v9254_v44 = vpop.f32.mrb[86].mxu0  ;;  %v12589_v57 = vadd.f32 %v8666_v53, %v16842_v63  ;;  %v16888_v2 = vadd.f32 %v9250_v33, %v16845_v4  ;;  %v9408_v59 = vadd.f32 %v12586_v25, %v9376_v5  ;;  %v9318_v1 = vmul.f32 0.044715, %v16871_v18 }
 0xbb1   :  { %v9439_v38 = vmul.f32 0.7978846, %v9407_v23  ;;  %v9441_v7 = vmul.f32 0.7978846, %v9409_v54  ;;  %v16874_v22 = vpop.f32.mrb[79].mxu1  ;;  %v16879_v60 = vpop.f32.mrb[87].mxu0  ;;  %v9411_v13 = vadd.f32 %v16858_v14, %v9379_v28  ;;  %v9413_v45 = vadd.f32 %v16861_v49, %v9381_v0 }
 0xbb2   :  { %v9319_v43 = vmul.f32 0.044715, %v12589_v57  ;;  %v9410_v34 = vadd.f32 %v12602_v30, %v9378_v41  ;;  %v9348_v3 = vmul.f32 %v16867_v29, %v9316_v42  ;;  %v9321_v46 = vmul.f32 0.044715, %v16888_v2 }
 0xbb3   :  { %13178 = vtanh.f32 %v9439_v38  ;;  %v9443_v47 = vmul.f32 0.7978846, %v9411_v13  ;;  %v9445_v16 = vmul.f32 0.7978846, %v9413_v45  ;;  %v16903_v25 = vmul.f32 0.5, %v12602_v30 }
 0xbb4   :  { %13180 = vtanh.f32 %v9441_v7  ;;  %v9351_v37 = vmul.f32 %v12589_v57, %v9319_v43  ;;  %v16906_v6 = vadd.f32 %v8668_v55, %v16848_v27  ;;  %v9440_v35 = vmul.f32 0.7978846, %v9408_v59 }
 0xbb5   :  { %13182 = vtanh.f32 %v9443_v47  ;;  %v9353_v19 = vmul.f32 %v16888_v2, %v9321_v46  ;;  %v16914_v26 = vadd.f32 %v9252_v32, %v16851_v50  ;;  %v16917_v36 = vadd.f32 %v8670_v40, %v16842_v63 }
 0xbb6   :  { %v16893_v62 = vpop.f32.mrb[80].mxu1  ;;  %v16895_v61 = vpop.f32.mrb[88].mxu0  ;;  %13184 = vtanh.f32 %v9445_v16  ;;  %v9283_v52 = vmul.f32 0.5, %v16858_v14  ;;  %v9350_v10 = vmul.f32 %v16871_v18, %v9318_v1  ;;  %v9383_v53 = vmul.f32 %v12589_v57, %v9351_v37 }
 0xbb7   :  { %v16899_v21 = vpop.f32.mrb[81].mxu1  ;;  %v16901_v8 = vpop.f32.mrb[89].mxu0  ;;  %v9320_v33 = vmul.f32 0.044715, %v16906_v6  ;;  %v9442_v23 = vmul.f32 0.7978846, %v9410_v34  ;;  %v9380_v54 = vmul.f32 %v16867_v29, %v9348_v3  ;;  %v9385_v9 = vmul.f32 %v16888_v2, %v9353_v19 }
 0xbb8   :  { %v16908_v48 = vpop.f32.mrb[82].mxu1  ;;  %v16910_v24 = vpop.f32.mrb[90].mxu0  ;;  %v9322_v55 = vmul.f32 0.044715, %v16914_v26  ;;  %v9285_v32 = vmul.f32 0.5, %v16861_v49  ;;  %v16931_v15 = vmul.f32 0.5, %v16867_v29  ;;  %v9415_v40 = vadd.f32 %v12589_v57, %v9383_v53 }
 0xbb9   :  { %v16919_v30 = vpop.f32.mrb[83].mxu1  ;;  %v16921_v58 = vpop.f32.mrb[91].mxu0  ;;  %v9323_v14 = vmul.f32 0.044715, %v16917_v36  ;;  %13186 = vtanh.f32 %v9440_v35  ;;  %v9417_v7 = vadd.f32 %v16888_v2, %v9385_v9  ;;  %v9352_v5 = vmul.f32 %v16906_v6, %v9320_v33 }
 0xbba   :  { %v16937_v28 = vadd.f32 %v9254_v44, %v16845_v4  ;;  %v9382_v0 = vmul.f32 %v16871_v18, %v9350_v10  ;;  %v9447_v13 = vmul.f32 0.7978846, %v9415_v40  ;;  %v9354_v49 = vmul.f32 %v16914_v26, %v9322_v55 }
 0xbbb   :  { %v9355_v42 = vmul.f32 %v16917_v36, %v9323_v14  ;;  %13188 = vtanh.f32 %v9442_v23  ;;  %v9412_v47 = vadd.f32 %v16867_v29, %v9380_v54  ;;  %v16948_v1 = vmul.f32 0.5, %v16871_v18 }
 0xbbc   :  { %v9449_v44 = vmul.f32 0.7978846, %v9417_v7  ;;  %v9287_v3 = vmul.f32 0.5, %v12589_v57  ;;  %13190 = vtanh.f32 %v9447_v13  ;;  %v9384_v29 = vmul.f32 %v16906_v6, %v9352_v5 }
 0xbbd   :  { %v13179_v38 = vpop.eup %13178  ;;  %v9387_v46 = vmul.f32 %v16917_v36, %v9355_v42  ;;  %v9325_v53 = vmul.f32 0.044715, %v16937_v28  ;;  %v9414_v9 = vadd.f32 %v16871_v18, %v9382_v0  ;;  %v9386_v55 = vmul.f32 %v16914_v26, %v9354_v49 }
 0xbbe   :  { %v13181_v41 = vpop.eup %13180  ;;  %v16942_v45 = vpop.f32.mrb[84].mxu1  ;;  %v9503_v34 = vadd.f32 1.0, %v13179_v38  ;;  %13192 = vtanh.f32 %v9449_v44  ;;  %v9444_v38 = vmul.f32 0.7978846, %v9412_v47  ;;  %v16971_v5 = vadd.f32 %v16874_v22, %v16848_v27 }
 0xbbf   :  { %v16944_v59 = vpop.f32.mrb[92].mxu0  ;;  %v16950_v16 = vpop.f32.mrb[85].mxu1  ;;  %v9505_v10 = vadd.f32 1.0, %v13181_v41  ;;  %v9419_v40 = vadd.f32 %v16917_v36, %v9387_v46  ;;  %v9357_v7 = vmul.f32 %v16937_v28, %v9325_v53  ;;  %v16980_v18 = vadd.f32 %v16879_v60, %v16851_v50 }
 0xbc0   :  { %v16952_v43 = vpop.f32.mrb[93].mxu0  ;;  %v16955_v37 = vpop.f32.mrb[86].mxu1  ;;  %v16974_v41 = vmul.f32 %v9503_v34, %v16876_v31  ;;  %v9416_v47 = vadd.f32 %v16906_v6, %v9384_v29  ;;  %v9446_v44 = vmul.f32 0.7978846, %v9414_v9  ;;  %v12593_v46 = vadd.f32 %v16893_v62, %v16842_v63 }
 0xbc1   :  { %v16957_v35 = vpop.f32.mrb[94].mxu0  ;;  %v13183_v19 = vpop.eup %13182  ;;  %v9451_v42 = vmul.f32 0.7978846, %v9419_v40  ;;  %v16983_v0 = vmul.f32 %v9505_v10, %v16884_v39  ;;  %v9389_v22 = vmul.f32 %v16937_v28, %v9357_v7  ;;  %v17002_v10 = vmul.f32 0.5, %v16906_v6 }
 0xbc2   :  { %v16961_v33 = vpop.f32.mrb[87].mxu1  ;;  %v16963_v23 = vpop.f32.mrb[95].mxu0  ;;  %v9507_v57 = vadd.f32 1.0, %v13183_v19  ;;  %v9289_v19 = vmul.f32 0.5, %v16888_v2  ;;  %v9326_v29 = vmul.f32 0.044715, %v16980_v18  ;;  %v12609_v53 = vadd.f32 %v16895_v61, %v16845_v4 }
 0xbc3   :  { %v13185_v54 = vpop.eup %13184  ;;  %18519 = vst [vmem:[#allocation150_spill] sm:$0xff] %v16983_v0  ;;  %13194 = vtanh.f32 %v9451_v42  ;;  %v9421_v39 = vadd.f32 %v16937_v28, %v9389_v22  ;;  %v17010_v62 = vmul.f32 0.5, %v16914_v26 }
 0xbc4   :  { %v9509_v14 = vadd.f32 1.0, %v13185_v54  ;;  %v16976_v13 = vmul.f32 %v9507_v57, %v9283_v52  ;;  %v9418_v52 = vadd.f32 %v16914_v26, %v9386_v55  ;;  %v16992_v34 = vpop.eup %13186  ;;  %13196 = vtanh.f32 %v9444_v38 }
 0xbc5   :  { %v17007_v54 = vpop.eup %13188  ;;  %v9448_v57 = vmul.f32 0.7978846, %v9416_v47  ;;  %v9453_v9 = vmul.f32 0.7978846, %v9421_v39  ;;  %v9327_v55 = vmul.f32 0.044715, %v12593_v46  ;;  %13198 = vtanh.f32 %v9446_v44 }
 0xbc6   :  { %v16985_v49 = vmul.f32 %v9509_v14, %v9285_v32  ;;  %v9570_v31 = vadd.f32 %v16976_v13, %v16974_v41  ;;  %v9324_v32 = vmul.f32 0.044715, %v16971_v5  ;;  %v13191_v40 = vpop.eup %13190  ;;  %v9450_v2 = vmul.f32 0.7978846, %v9418_v52 }
 0xbc7   :  { %v9329_v14 = vmul.f32 0.044715, %v12609_v53  ;;  %v9511_v7 = vadd.f32 1.0, %v13191_v40  ;;  %13200 = vtanh.f32 %v9453_v9  ;;  %v9359_v22 = vmul.f32 %v12593_v46, %v9327_v55 }
 0xbc8   :  { %18520 = vst [vmem:[#allocation153_spill] sm:$0xff] %v16985_v49  ;;  %v9596_v60 = vadd.f32 %v16985_v49, %v16983_v0  ;;  %v13193_v6 = vpop.eup %13192  ;;  %v9356_v42 = vmul.f32 %v16971_v5, %v9324_v32  ;;  %v9358_v12 = vmul.f32 %v16980_v18, %v9326_v29  ;;  %v17016_v47 = vadd.f32 %v16899_v21, %v16848_v27 }
 0xbc9   :  { %v9513_v61 = vadd.f32 1.0, %v13193_v6  ;;  %v9361_v38 = vmul.f32 %v12609_v53, %v9329_v14  ;;  %v17018_v44 = vmul.f32 %v9511_v7, %v9287_v3  ;;  %13202 = vtanh.f32 %v9448_v57 }
 0xbca   :  { %v9291_v26 = vmul.f32 0.5, %v16917_v36  ;;  %v9391_v52 = vmul.f32 %v12593_v46, %v9359_v22  ;;  %v9293_v9 = vmul.f32 0.5, %v16937_v28  ;;  %v17026_v55 = vadd.f32 %v16901_v8, %v16851_v50 }
 0xbcb   :  { %v17021_v39 = vmul.f32 %v9513_v61, %v9289_v19  ;;  %v9393_v32 = vmul.f32 %v12609_v53, %v9361_v38  ;;  %v9571_v29 = vadd.f32 %v9570_v31, %v17018_v44  ;;  %13204 = vtanh.f32 %v9450_v2 }
 0xbcc   :  { %v9388_v21 = vmul.f32 %v16971_v5, %v9356_v42  ;;  %v9423_v3 = vadd.f32 %v12593_v46, %v9391_v52  ;;  %v9390_v36 = vmul.f32 %v16980_v18, %v9358_v12  ;;  %v9328_v14 = vmul.f32 0.044715, %v17016_v47 }
 0xbcd   :  { %18521 = vst [vmem:[#allocation152_spill] sm:$0xff] %v17021_v39  ;;  %v13195_v40 = vpop.eup %13194  ;;  %v9597_v57 = vadd.f32 %v9596_v60, %v17021_v39  ;;  %v9425_v19 = vadd.f32 %v12609_v53, %v9393_v32  ;;  %v17034_v6 = vmul.f32 0.5, %v16971_v5  ;;  %v17037_v8 = vmul.f32 0.5, %v16980_v18 }
 0xbce   :  { %v9515_v28 = vadd.f32 1.0, %v13195_v40  ;;  %v9455_v31 = vmul.f32 0.7978846, %v9423_v3  ;;  %v17039_v2 = vmul.f32 0.5, %v12593_v46  ;;  %v9330_v42 = vmul.f32 0.044715, %v17026_v55  ;;  %v17046_v12 = vpop.eup %13196 }
 0xbcf   :  { %v9457_v7 = vmul.f32 0.7978846, %v9425_v19  ;;  %v17044_v60 = vadd.f32 %v16908_v48, %v16842_v63  ;;  %v9420_v61 = vadd.f32 %v16971_v5, %v9388_v21  ;;  %v17053_v38 = vadd.f32 %v16910_v24, %v16845_v4  ;;  %v17055_v46 = vpop.eup %13198 }
 0xbd0   :  { %v17048_v22 = vmul.f32 %v9515_v28, %v9291_v26  ;;  %13206 = vtanh.f32 %v9455_v31  ;;  %v9422_v52 = vadd.f32 %v16980_v18, %v9390_v36  ;;  %v9360_v32 = vmul.f32 %v17016_v47, %v9328_v14 }
 0xbd1   :  { %13208 = vtanh.f32 %v9457_v7  ;;  %v9331_v48 = vmul.f32 0.044715, %v17044_v60  ;;  %v13201_v3 = vpop.eup %13200  ;;  %v9297_v40 = vmul.f32 0.5, %v12609_v53  ;;  %v9362_v5 = vmul.f32 %v17026_v55, %v9330_v42 }
 0xbd2   :  { %18522 = vst [vmem:[#allocation151_spill] sm:$0xff] %v17048_v22  ;;  %v9572_v26 = vadd.f32 %v9571_v29, %v17048_v22  ;;  %v9333_v21 = vmul.f32 0.044715, %v17053_v38  ;;  %v9517_v19 = vadd.f32 1.0, %v13201_v3  ;;  %v17064_v24 = vmul.f32 0.5, %v17016_v47 }
 0xbd3   :  { %v9363_v28 = vmul.f32 %v17044_v60, %v9331_v48  ;;  %v17069_v18 = vadd.f32 %v16919_v30, %v16848_v27  ;;  %v13203_v36 = vpop.eup %13202  ;;  %v9452_v14 = vmul.f32 0.7978846, %v9420_v61  ;;  %v17072_v31 = vmul.f32 0.5, %v17026_v55 }
 0xbd4   :  { %v9365_v53 = vmul.f32 %v17053_v38, %v9333_v21  ;;  %v17077_v29 = vadd.f32 %v16921_v58, %v16851_v50  ;;  %v17079_v7 = vmul.f32 %v9517_v19, %v9293_v9  ;;  %v9454_v42 = vmul.f32 0.7978846, %v9422_v52 }
 0xbd5   :  { %v9392_v48 = vmul.f32 %v17016_v47, %v9360_v32  ;;  %v9395_v3 = vmul.f32 %v17044_v60, %v9363_v28  ;;  %v13205_v30 = vpop.eup %13204  ;;  %v9394_v39 = vmul.f32 %v17026_v55, %v9362_v5  ;;  %v9332_v49 = vmul.f32 0.044715, %v17069_v18 }
 0xbd6   :  { %18523 = vst [vmem:[#allocation155_spill] sm:$0xff] %v17079_v7  ;;  %v9397_v61 = vmul.f32 %v17053_v38, %v9365_v53  ;;  %v9334_v21 = vmul.f32 0.044715, %v17077_v29  ;;  %v9512_v0 = vadd.f32 1.0, %v13203_v36  ;;  %v9598_v58 = vadd.f32 %v9597_v57, %v17079_v7 }
 0xbd7   :  { %v9427_v9 = vadd.f32 %v17044_v60, %v9395_v3  ;;  %v17091_v52 = vadd.f32 %v16942_v45, %v16842_v63  ;;  %13210 = vtanh.f32 %v9452_v14  ;;  %v9364_v5 = vmul.f32 %v17069_v18, %v9332_v49 }
 0xbd8   :  { %v9429_v32 = vadd.f32 %v17053_v38, %v9397_v61  ;;  %v9366_v19 = vmul.f32 %v17077_v29, %v9334_v21  ;;  %v9514_v28 = vadd.f32 1.0, %v13205_v30  ;;  %13212 = vtanh.f32 %v9454_v42 }
 0xbd9   :  { %v9424_v53 = vadd.f32 %v17016_v47, %v9392_v48  ;;  %v9459_v36 = vmul.f32 0.7978846, %v9427_v9  ;;  %v9426_v57 = vadd.f32 %v17026_v55, %v9394_v39  ;;  %v9396_v7 = vmul.f32 %v17069_v18, %v9364_v5 }
 0xbda   :  { %v13207_v56 = vpop.eup %13206  ;;  %v9461_v3 = vmul.f32 0.7978846, %v9429_v32  ;;  %v9398_v45 = vmul.f32 %v17077_v29, %v9366_v19  ;;  %v9335_v49 = vmul.f32 0.044715, %v17091_v52  ;;  %v17103_v30 = vadd.f32 %v16944_v59, %v16845_v4 }
 0xbdb   :  { %v13209_v14 = vpop.eup %13208  ;;  %v9519_v22 = vadd.f32 1.0, %v13207_v56  ;;  %13214 = vtanh.f32 %v9459_v36  ;;  %v17106_v47 = vmul.f32 %v9512_v0, %v17002_v10  ;;  %v9428_v39 = vadd.f32 %v17069_v18, %v9396_v7 }
 0xbdc   :  { %v9521_v42 = vadd.f32 1.0, %v13209_v14  ;;  %13216 = vtanh.f32 %v9461_v3  ;;  %v9456_v48 = vmul.f32 0.7978846, %v9424_v53  ;;  %v9367_v56 = vmul.f32 %v17091_v52, %v9335_v49 }
 0xbdd   :  { %v17110_v55 = vmul.f32 %v9519_v22, %v17039_v2  ;;  %v9337_v61 = vmul.f32 0.044715, %v17103_v30  ;;  %v17115_v21 = vmul.f32 %v9514_v28, %v17010_v62  ;;  %v9430_v0 = vadd.f32 %v17077_v29, %v9398_v45 }
 0xbde   :  { %v17117_v59 = vmul.f32 %v9521_v42, %v9297_v40  ;;  %v17122_v10 = vadd.f32 %v16950_v16, %v16848_v27  ;;  %v9458_v2 = vmul.f32 0.7978846, %v9426_v57  ;;  %v9399_v22 = vmul.f32 %v17091_v52, %v9367_v56 }
 0xbdf   :  { %v9573_v7 = vadd.f32 %v9572_v26, %v17110_v55  ;;  %v9369_v9 = vmul.f32 %v17103_v30, %v9337_v61  ;;  %v9299_v62 = vmul.f32 0.5, %v17044_v60  ;;  %v9460_v5 = vmul.f32 0.7978846, %v9428_v39 }
 0xbe0   :  { %v9599_v32 = vadd.f32 %v9598_v58, %v17117_v59  ;;  %v9336_v40 = vmul.f32 0.044715, %v17122_v10  ;;  %13218 = vtanh.f32 %v9456_v48  ;;  %v9301_v19 = vmul.f32 0.5, %v17053_v38 }
 0xbe1   :  { %v9431_v16 = vadd.f32 %v17091_v52, %v9399_v22  ;;  %v9401_v28 = vmul.f32 %v17103_v30, %v9369_v9  ;;  %v13211_v26 = vpop.eup %13210  ;;  %v9462_v53 = vmul.f32 0.7978846, %v9430_v0  ;;  %v17136_v57 = vadd.f32 %v16952_v43, %v16851_v50 }
 0xbe2   :  { %v9368_v36 = vmul.f32 %v17122_v10, %v9336_v40  ;;  %v17140_v60 = vadd.f32 %v16955_v37, %v16842_v63  ;;  %v13213_v58 = vpop.eup %13212  ;;  %13220 = vtanh.f32 %v9458_v2  ;;  %v17143_v38 = vmul.f32 0.5, %v17069_v18 }
 0xbe3   :  { %v9463_v3 = vmul.f32 0.7978846, %v9431_v16  ;;  %v9433_v45 = vadd.f32 %v17103_v30, %v9401_v28  ;;  %13222 = vtanh.f32 %v9460_v5  ;;  %v9338_v49 = vmul.f32 0.044715, %v17136_v57 }
 0xbe4   :  { %v9400_v14 = vmul.f32 %v17122_v10, %v9368_v36  ;;  %v17150_v43 = vadd.f32 %v16957_v35, %v16845_v4  ;;  %v9339_v37 = vmul.f32 0.044715, %v17140_v60  ;;  %v17155_v18 = vadd.f32 %v16961_v33, %v16848_v27 }
 0xbe5   :  { %v13215_v42 = vpop.eup %13214  ;;  %13224 = vtanh.f32 %v9463_v3  ;;  %v9465_v63 = vmul.f32 0.7978846, %v9433_v45  ;;  %v9370_v61 = vmul.f32 %v17136_v57, %v9338_v49  ;;  %v9516_v0 = vadd.f32 1.0, %v13211_v26 }
 0xbe6   :  { %v13217_v39 = vpop.eup %13216  ;;  %v9523_v48 = vadd.f32 1.0, %v13215_v42  ;;  %13226 = vtanh.f32 %v9462_v53  ;;  %v9432_v56 = vadd.f32 %v17122_v10, %v9400_v14  ;;  %v9371_v4 = vmul.f32 %v17140_v60, %v9339_v37 }
 0xbe7   :  { %v9525_v2 = vadd.f32 1.0, %v13217_v39  ;;  %13228 = vtanh.f32 %v9465_v63  ;;  %v9402_v9 = vmul.f32 %v17136_v57, %v9370_v61  ;;  %v9341_v27 = vmul.f32 0.044715, %v17150_v43 }
 0xbe8   :  { %v17160_v35 = vmul.f32 %v9523_v48, %v9299_v62  ;;  %v9464_v22 = vmul.f32 0.7978846, %v9432_v56  ;;  %v9403_v5 = vmul.f32 %v17140_v60, %v9371_v4  ;;  %v9340_v40 = vmul.f32 0.044715, %v17155_v18 }
 0xbe9   :  { %v17164_v33 = vmul.f32 %v9525_v2, %v9301_v19  ;;  %v17170_v16 = vadd.f32 %v16963_v23, %v16851_v50  ;;  %v9434_v62 = vadd.f32 %v17136_v57, %v9402_v9  ;;  %v9373_v26 = vmul.f32 %v17150_v43, %v9341_v27 }
 0xbea   :  { %v9574_v28 = vadd.f32 %v9573_v7, %v17160_v35  ;;  %13230 = vtanh.f32 %v9464_v22  ;;  %v13219_v53 = vpop.eup %13218  ;;  %v9518_v36 = vadd.f32 1.0, %v13213_v58  ;;  %v9435_v3 = vadd.f32 %v17140_v60, %v9403_v5 }
 0xbeb   :  { %v9600_v19 = vadd.f32 %v9599_v32, %v17164_v33  ;;  %v9372_v45 = vmul.f32 %v17155_v18, %v9340_v40  ;;  %v17179_v14 = vmul.f32 %v9516_v0, %v17034_v6  ;;  %v9303_v50 = vmul.f32 0.5, %v17091_v52 }
 0xbec   :  { %v9466_v23 = vmul.f32 0.7978846, %v9434_v62  ;;  %v9405_v7 = vmul.f32 %v17150_v43, %v9373_v26  ;;  %v13221_v49 = vpop.eup %13220  ;;  %v9305_v42 = vmul.f32 0.5, %v17103_v30  ;;  %v9467_v63 = vmul.f32 0.7978846, %v9435_v3 }
 0xbed   :  { %v9404_v58 = vmul.f32 %v17155_v18, %v9372_v45  ;;  %v9342_v32 = vmul.f32 0.044715, %v17170_v16  ;;  %v13223_v37 = vpop.eup %13222  ;;  %v9520_v39 = vadd.f32 1.0, %v13219_v53  ;;  %v9504_v6 = vadd.f32 1.0, %v16992_v34 }
 0xbee   :  { %13232 = vtanh.f32 %v9466_v23  ;;  %v9437_v48 = vadd.f32 %v17150_v43, %v9405_v7  ;;  %v9508_v30 = vadd.f32 1.0, %v17046_v12  ;;  %v9522_v2 = vadd.f32 1.0, %v13221_v49 }
 0xbef   :  { %v13225_v56 = vpop.eup %13224  ;;  %13234 = vtanh.f32 %v9467_v63  ;;  %v9436_v52 = vadd.f32 %v17155_v18, %v9404_v58  ;;  %v9374_v61 = vmul.f32 %v17170_v16, %v9342_v32  ;;  %v17192_v9 = vmul.f32 %v9504_v6, %v16890_v20 }
 0xbf0   :  { %v13227_v0 = vpop.eup %13226  ;;  %v9527_v4 = vadd.f32 1.0, %v13225_v56  ;;  %v9469_v22 = vmul.f32 0.7978846, %v9437_v48  ;;  %v17196_v34 = vmul.f32 %v9508_v30, %v16931_v15  ;;  %v9506_v62 = vadd.f32 1.0, %v17007_v54 }
 0xbf1   :  { %v13229_v27 = vpop.eup %13228  ;;  %v9468_v5 = vmul.f32 0.7978846, %v9436_v52  ;;  %v9406_v40 = vmul.f32 %v17170_v16, %v9374_v61  ;;  %v9510_v12 = vadd.f32 1.0, %v17055_v46  ;;  %v9524_v3 = vadd.f32 1.0, %v13223_v37 }
 0xbf2   :  { %v17199_v26 = vmul.f32 %v9527_v4, %v9303_v50  ;;  %v9529_v53 = vadd.f32 1.0, %v13229_v27  ;;  %13236 = vtanh.f32 %v9469_v22  ;;  %v9583_v45 = vadd.f32 %v17196_v34, %v17192_v9 }
 0xbf3   :  { %13238 = vtanh.f32 %v9468_v5  ;;  %v9438_v20 = vadd.f32 %v17170_v16, %v9406_v40  ;;  %v17209_v54 = vmul.f32 %v9506_v62, %v16903_v25  ;;  %v17212_v50 = vmul.f32 %v9510_v12, %v16948_v1 }
 0xbf4   :  { %v13231_v23 = vpop.eup %13230  ;;  %v9575_v7 = vadd.f32 %v9574_v28, %v17199_v26  ;;  %v17206_v15 = vmul.f32 %v9529_v53, %v9305_v42  ;;  %v17215_v46 = vmul.f32 %v9520_v39, %v17064_v24  ;;  %v9584_v58 = vadd.f32 %v9583_v45, %v17106_v47 }
 0xbf5   :  { %v9528_v49 = vadd.f32 1.0, %v13231_v23  ;;  %v9470_v63 = vmul.f32 0.7978846, %v9438_v20  ;;  %v17219_v32 = vmul.f32 %v9518_v36, %v17037_v8  ;;  %v9526_v37 = vadd.f32 1.0, %v13227_v0 }
 0xbf6   :  { %v9601_v28 = vadd.f32 %v9600_v19, %v17206_v15  ;;  %v9609_v25 = vadd.f32 %v17212_v50, %v17209_v54  ;;  %v17225_v42 = vmul.f32 %v9524_v3, %v17143_v38  ;;  %v9304_v1 = vmul.f32 0.5, %v17122_v10 }
 0xbf7   :  { %13240 = vtanh.f32 %v9470_v63  ;;  %v9585_v24 = vadd.f32 %v9584_v58, %v17179_v14  ;;  %v17230_v48 = vmul.f32 %v9522_v2, %v17072_v31  ;;  %v9302_v8 = vmul.f32 0.5, %v17077_v29 }
 0xbf8   :  { %v13233_v39 = vpop.eup %13232  ;;  %v9610_v36 = vadd.f32 %v9609_v25, %v17115_v21  ;;  %v17234_v6 = vmul.f32 %v9528_v49, %v9304_v1  ;;  %v9306_v56 = vmul.f32 0.5, %v17136_v57  ;;  %v9307_v61 = vmul.f32 0.5, %v17140_v60 }
 0xbf9   :  { %v13235_v19 = vpop.eup %13234  ;;  %v9530_v38 = vadd.f32 1.0, %v13233_v39  ;;  %v9586_v52 = vadd.f32 %v9585_v24, %v17215_v46  ;;  %v17238_v10 = vmul.f32 %v9526_v37, %v9302_v8  ;;  %v9309_v57 = vmul.f32 0.5, %v17150_v43 }
 0xbfa   :  { %v9531_v30 = vadd.f32 1.0, %v13235_v19  ;;  %v9611_v31 = vadd.f32 %v9610_v36, %v17219_v32  ;;  %v9308_v60 = vmul.f32 0.5, %v17155_v18  ;;  %v9310_v43 = vmul.f32 0.5, %v17170_v16 }
 0xbfb   :  { %v9587_v0 = vadd.f32 %v9586_v52, %v17225_v42  ;;  %v17243_v2 = vmul.f32 %v9530_v38, %v9306_v56 }
 0xbfc   :  { %v13237_v29 = vpop.eup %13236  ;;  %v9563_v4 = vmul.f32 %v9531_v30, %v9307_v61  ;;  %v9612_v22 = vadd.f32 %v9611_v31, %v17230_v48 }
 0xbfd   :  { %v13239_v27 = vpop.eup %13238  ;;  %v9533_v5 = vadd.f32 1.0, %v13237_v29  ;;  %v9588_v40 = vadd.f32 %v9587_v0, %v17234_v6 }
 0xbfe   :  { %v9576_v62 = vadd.f32 %v9575_v7, %v9563_v4  ;;  %v9532_v53 = vadd.f32 1.0, %v13239_v27  ;;  %v9613_v12 = vadd.f32 %v9612_v22, %v17238_v10 }
 0xbff   :  { %v9565_v3 = vmul.f32 %v9533_v5, %v9309_v57 }
 0xc00   :  { %v9577_v20 = vrot.slane %v9576_v62, 4  ;;  %v17250_v45 = vmul.f32 %v9532_v53, %v9308_v60  ;;  %v9614_v23 = vadd.f32 %v9613_v12, %v17243_v2 }
 0xc01   :  { %v13241_v49 = vpop.eup %13240  ;;  %v9602_v63 = vadd.f32 %v9601_v28, %v9565_v3  ;;  %v9569_v28 = vld [vmem:[%s18236_s11] sm:$0xf] }
 0xc02   :  { %v9578_v58 = vadd.f32 %v9577_v20, %v9576_v62  ;;  %v9534_v37 = vadd.f32 1.0, %v13241_v49  ;;  %v9589_v25 = vadd.f32 %v9588_v40, %v17250_v45  ;;  %v9630_v31 = vrot.slane %v9569_v28, %v18515_v51 }
 0xc03   :  { %v9603_v7 = vrot.slane %v9602_v63, 4  ;;  %v9638_v62 = vrot.slane %v9569_v28, %v18516_v11  ;;  %v9634_v60 = vrot.slane %v9569_v28, %v18517_v17 }
 0xc04   :  { %v9579_v1 = vrot.slane %v9578_v58, 2  ;;  %v17255_v18 = vmul.f32 %v9534_v37, %v9310_v43  ;;  %v9590_v24 = vrot.slane %v9589_v25, 4 }
 0xc05   :  { %v9604_v39 = vadd.f32 %v9603_v7, %v9602_v63 }
 0xc06   :  { %v9580_v8 = vadd.f32 %v9579_v1, %v9578_v58  ;;  %v9591_v36 = vadd.f32 %v9590_v24, %v9589_v25  ;;  %v9615_v19 = vadd.f32 %v9614_v23, %v17255_v18 }
 0xc07   :  { %v9605_v56 = vrot.slane %v9604_v39, 2 }
 0xc08   :  { %v9581_v38 = vrot.slane %v9580_v8, 1  ;;  %v9592_v16 = vrot.slane %v9591_v36, 2  ;;  %v9616_v52 = vrot.slane %v9615_v19, 4 }
 0xc09   :  { %v9606_v61 = vadd.f32 %v9605_v56, %v9604_v39 }
 0xc0a   :  { %v9582_v30 = vadd.f32 %v9581_v38, %v9580_v8  ;;  %v9593_v0 = vadd.f32 %v9592_v16, %v9591_v36  ;;  %v9617_v29 = vadd.f32 %v9616_v52, %v9615_v19  ;;  %v18524_v36 = vld [vmem:[#allocation151_spill] sm:$0xff]  ;;  %v18525_v38 = vld [vmem:[#allocation149_spill] sm:$0xff] }
 0xc0b   :  { %v9607_v22 = vrot.slane %v9606_v61, 1  ;;  %v9642_v16 = vrot.slane %v9569_v28, %v18525_v38 }
 0xc0c   :  { %v9622_v27 = vmul.f32 0.015625, %v9582_v30  ;;  %v9594_v57 = vrot.slane %v9593_v0, 1  ;;  %v9618_v5 = vrot.slane %v9617_v29, 2 }
 0xc0d   :  { %v9608_v40 = vadd.f32 %v9607_v22, %v9606_v61 }
 0xc0e   :  { %v9647_v53 = vmul.f32 %v9630_v31, %v9622_v27  ;;  %v9595_v12 = vadd.f32 %v9594_v57, %v9593_v0  ;;  %v9619_v20 = vadd.f32 %v9618_v5, %v9617_v29 }
 0xc0f   :  { %v9624_v23 = vmul.f32 0.015625, %v9608_v40  ;;  %v18526_v40 = vld [vmem:[#allocation150_spill] sm:$0xff] }
 0xc10   :  { %v9654_v49 = vrot.slane %v9647_v53, %v18515_v51  ;;  %v9623_v63 = vmul.f32 0.015625, %v9595_v12  ;;  %v9620_v58 = vrot.slane %v9619_v20, 1  ;;  %v18528_v12 = vld [vmem:[#allocation152_spill] sm:$0xff] }
 0xc11   :  { %v9649_v43 = vmul.f32 %v9638_v62, %v9624_v23 }
 0xc12   :  { %v17265_v37 = vsub.f32 %v9563_v4, %v9654_v49  ;;  %v9648_v25 = vmul.f32 %v9634_v60, %v9623_v63  ;;  %v9621_v7 = vadd.f32 %v9620_v58, %v9619_v20  ;;  %v17268_v1 = vsub.f32 %v16974_v41, %v9654_v49  ;;  %v18527_v60 = vld [vmem:[#allocation153_spill] sm:$0xff] }
 0xc13   :  { %v9662_v24 = vrot.slane %v9649_v43, %v18515_v51  ;;  %v17272_v39 = vsub.f32 %v16976_v13, %v9654_v49  ;;  %v17275_v8 = vsub.f32 %v17018_v44, %v9654_v49  ;;  %v17278_v19 = vsub.f32 %v18524_v36, %v9654_v49 }
 0xc14   :  { %v9658_v56 = vrot.slane %v9648_v25, %v18515_v51  ;;  %v17282_v4 = vsub.f32 %v17110_v55, %v9654_v49  ;;  %v17288_v52 = vsub.f32 %v17160_v35, %v9654_v49  ;;  %v17291_v13 = vsub.f32 %v17199_v26, %v9654_v49 }
 0xc15   :  { %v17285_v41 = vsub.f32 %v9565_v3, %v9662_v24  ;;  %v17335_v62 = vsub.f32 %v18526_v40, %v9662_v24  ;;  %v17338_v53 = vsub.f32 %v18527_v60, %v9662_v24  ;;  %v17341_v20 = vsub.f32 %v18528_v12, %v9662_v24 }
 0xc16   :  { %v17294_v44 = vsub.f32 %v17192_v9, %v9658_v56  ;;  %v17297_v61 = vsub.f32 %v17196_v34, %v9658_v56  ;;  %v17300_v30 = vsub.f32 %v17106_v47, %v9658_v56  ;;  %v17303_v55 = vsub.f32 %v17179_v14, %v9658_v56 }
 0xc17   :  { %v17306_v3 = vsub.f32 %v17215_v46, %v9658_v56  ;;  %v17309_v35 = vsub.f32 %v17225_v42, %v9658_v56  ;;  %v17312_v26 = vsub.f32 %v17234_v6, %v9658_v56  ;;  %v9625_v9 = vmul.f32 0.015625, %v9621_v7 }
 0xc18   :  { %v17315_v28 = vsub.f32 %v17250_v45, %v9658_v56  ;;  %v9700_v47 = vmul.f32 %v17294_v44, %v17294_v44  ;;  %v9704_v14 = vmul.f32 %v17297_v61, %v17297_v61  ;;  %v9699_v34 = vmul.f32 %v17268_v1, %v17268_v1 }
 0xc19   :  { %v9708_v46 = vmul.f32 %v17300_v30, %v17300_v30  ;;  %v9650_v31 = vmul.f32 %v9642_v16, %v9625_v9  ;;  %v9703_v6 = vmul.f32 %v17272_v39, %v17272_v39  ;;  %v9712_v45 = vmul.f32 %v17303_v55, %v17303_v55 }
 0xc1a   :  { %v9744_v42 = vadd.f32 %v9704_v14, %v9700_v47  ;;  %v9716_v29 = vmul.f32 %v17306_v3, %v17306_v3  ;;  %v9720_v22 = vmul.f32 %v17309_v35, %v17309_v35  ;;  %v9711_v16 = vmul.f32 %v17278_v19, %v17278_v19 }
 0xc1b   :  { %v9666_v27 = vrot.slane %v9650_v31, %v18515_v51  ;;  %v9731_v57 = vadd.f32 %v9703_v6, %v9699_v34  ;;  %v9715_v9 = vmul.f32 %v17282_v4, %v17282_v4  ;;  %v17389_v6 = vsub.f32 %v17117_v59, %v9662_v24 }
 0xc1c   :  { %v9745_v0 = vadd.f32 %v9744_v42, %v9708_v46  ;;  %v18529_v46 = vld [vmem:[#allocation155_spill] sm:$0xff]  ;;  %v9709_v12 = vmul.f32 %v17341_v20, %v17341_v20 }
 0xc1d   :  { %v17344_v23 = vsub.f32 %v17209_v54, %v9666_v27  ;;  %v17347_v49 = vsub.f32 %v17212_v50, %v9666_v27  ;;  %v17350_v63 = vsub.f32 %v17115_v21, %v9666_v27  ;;  %v17353_v58 = vsub.f32 %v17219_v32, %v9666_v27 }
 0xc1e   :  { %v9746_v5 = vadd.f32 %v9745_v0, %v9712_v45  ;;  %v17356_v25 = vsub.f32 %v17230_v48, %v9666_v27  ;;  %v17359_v7 = vsub.f32 %v17238_v10, %v9666_v27  ;;  %v17362_v36 = vsub.f32 %v17243_v2, %v9666_v27 }
 0xc1f   :  { %v17365_v54 = vsub.f32 %v17255_v18, %v9666_v27  ;;  %v9702_v21 = vmul.f32 %v17344_v23, %v17344_v23  ;;  %v9706_v50 = vmul.f32 %v17347_v49, %v17347_v49  ;;  %v9724_v32 = vmul.f32 %v17312_v26, %v17312_v26 }
 0xc20   :  { %v9747_v43 = vadd.f32 %v9746_v5, %v9716_v29  ;;  %v9728_v48 = vmul.f32 %v17315_v28, %v17315_v28  ;;  %v9707_v2 = vmul.f32 %v17275_v8, %v17275_v8  ;;  %v9710_v18 = vmul.f32 %v17350_v63, %v17350_v63 }
 0xc21   :  { %v9770_v56 = vadd.f32 %v9706_v50, %v9702_v21  ;;  %v9714_v14 = vmul.f32 %v17353_v58, %v17353_v58  ;;  %v17386_v42 = vsub.f32 %v18529_v46, %v9662_v24  ;;  %v17392_v45 = vsub.f32 %v17164_v33, %v9662_v24 }
 0xc22   :  { %v9748_v10 = vadd.f32 %v9747_v43, %v9720_v22  ;;  %v9732_v34 = vadd.f32 %v9731_v57, %v9707_v2  ;;  %v17395_v0 = vsub.f32 %v17206_v15, %v9662_v24  ;;  %v9701_v27 = vmul.f32 %v17335_v62, %v17335_v62 }
 0xc23   :  { %v9771_v31 = vadd.f32 %v9770_v56, %v9710_v18  ;;  %v9705_v57 = vmul.f32 %v17338_v53, %v17338_v53  ;;  %v9718_v5 = vmul.f32 %v17356_v25, %v17356_v25  ;;  %v9719_v33 = vmul.f32 %v17288_v52, %v17288_v52 }
 0xc24   :  { %v9749_v47 = vadd.f32 %v9748_v10, %v9724_v32  ;;  %v9733_v22 = vadd.f32 %v9732_v34, %v9711_v16  ;;  %v9722_v15 = vmul.f32 %v17359_v7, %v17359_v7  ;;  %v9723_v50 = vmul.f32 %v17291_v13, %v17291_v13 }
 0xc25   :  { %v9772_v40 = vadd.f32 %v9771_v31, %v9714_v14  ;;  %v9757_v43 = vadd.f32 %v9705_v57, %v9701_v27  ;;  %v9713_v2 = vmul.f32 %v17386_v42, %v17386_v42  ;;  %v9727_v56 = vmul.f32 %v17265_v37, %v17265_v37 }
 0xc26   :  { %v9750_v29 = vadd.f32 %v9749_v47, %v9728_v48  ;;  %v9734_v60 = vadd.f32 %v9733_v22, %v9715_v9  ;;  %v9726_v48 = vmul.f32 %v17362_v36, %v17362_v36  ;;  %v9730_v47 = vmul.f32 %v17365_v54, %v17365_v54 }
 0xc27   :  { %v9773_v24 = vadd.f32 %v9772_v40, %v9718_v5  ;;  %v9758_v18 = vadd.f32 %v9757_v43, %v9709_v12  ;;  %v9717_v34 = vmul.f32 %v17389_v6, %v17389_v6  ;;  %v9721_v27 = vmul.f32 %v17392_v45, %v17392_v45  ;;  %v9567_v43 = vld [vmem:[%s18234_s9] sm:$0xf] }
 0xc28   :  { %v9751_v59 = vrot.slane %v9750_v29, 4  ;;  %v9735_v32 = vadd.f32 %v9734_v60, %v9719_v33  ;;  %v9725_v33 = vmul.f32 %v17395_v0, %v17395_v0  ;;  %v9729_v12 = vmul.f32 %v17285_v41, %v17285_v41 }
 0xc29   :  { %v9774_v10 = vadd.f32 %v9773_v24, %v9722_v15  ;;  %v9759_v46 = vadd.f32 %v9758_v18, %v9713_v2 }
 0xc2a   :  { %v9752_v21 = vadd.f32 %v9751_v59, %v9750_v29  ;;  %v9736_v9 = vadd.f32 %v9735_v32, %v9723_v50 }
 0xc2b   :  { %v9775_v14 = vadd.f32 %v9774_v10, %v9726_v48  ;;  %v9760_v57 = vadd.f32 %v9759_v46, %v9717_v34  ;;  %v9568_v10 = vld [vmem:[%s18235_s10] sm:$0xf]  ;;  %v17438_v34 = vrot.slane %v9567_v43, %v18515_v51 }
 0xc2c   :  { %v9753_v16 = vrot.slane %v9752_v21, 2  ;;  %v9737_v29 = vadd.f32 %v9736_v9, %v9727_v56  ;;  %v9795_v56 = vrot.slane %v9567_v43, %v18517_v17 }
 0xc2d   :  { %v9776_v22 = vadd.f32 %v9775_v14, %v9730_v47  ;;  %v9761_v60 = vadd.f32 %v9760_v57, %v9721_v27  ;;  %v17435_v14 = vrot.slane %v9567_v43, %v18525_v38  ;;  %v17447_v57 = vrot.slane %v9568_v10, %v18525_v38 }
 0xc2e   :  { %v9754_v31 = vadd.f32 %v9753_v16, %v9752_v21  ;;  %v9738_v40 = vrot.slane %v9737_v29, 4  ;;  %v17463_v38 = vmul.f32 %v17438_v34, %v17272_v39 }
 0xc2f   :  { %v9777_v59 = vrot.slane %v9776_v22, 4  ;;  %v9762_v50 = vadd.f32 %v9761_v60, %v9725_v33  ;;  %v9813_v33 = vmul.f32 %v9795_v56, %v17297_v61 }
 0xc30   :  { %v9755_v5 = vrot.slane %v9754_v31, 1  ;;  %v9739_v24 = vadd.f32 %v9738_v40, %v9737_v29 }
 0xc31   :  { %v9778_v21 = vadd.f32 %v9777_v59, %v9776_v22  ;;  %v9763_v18 = vadd.f32 %v9762_v50, %v9729_v12  ;;  %v17444_v22 = vrot.slane %v9567_v43, %v18516_v11  ;;  %v9809_v59 = vmul.f32 %v9795_v56, %v17294_v44 }
 0xc32   :  { %v9756_v15 = vadd.f32 %v9755_v5, %v9754_v31  ;;  %v9740_v48 = vrot.slane %v9739_v24, 2  ;;  %v17441_v31 = vrot.slane %v9568_v10, %v18517_v17  ;;  %v17450_v5 = vrot.slane %v9568_v10, %v18515_v51 }
 0xc33   :  { %v9779_v2 = vrot.slane %v9778_v21, 2  ;;  %v9764_v46 = vrot.slane %v9763_v18, 4  ;;  %v17455_v17 = vrot.slane %v9568_v10, %v18516_v11  ;;  %v17467_v12 = vmul.f32 %v17435_v14, %v17344_v23 }
 0xc34   :  { %v9784_v32 = vmul.f32 0.015625, %v9756_v15  ;;  %v9741_v9 = vadd.f32 %v9740_v48, %v9739_v24  ;;  %v17459_v24 = vmul.f32 %v17438_v34, %v17268_v1  ;;  %v17471_v44 = vmul.f32 %v17435_v14, %v17347_v49 }
 0xc35   :  { %v9780_v47 = vadd.f32 %v9779_v2, %v9778_v21  ;;  %v9765_v40 = vadd.f32 %v9764_v46, %v9763_v18  ;;  %v17475_v61 = vmul.f32 %v17444_v22, %v17335_v62  ;;  %v17479_v39 = vmul.f32 %v17444_v22, %v17338_v53 }
 0xc36   :  { %v9841_v16 = vadd.f32 1e-05, %v9784_v32  ;;  %v9742_v29 = vrot.slane %v9741_v9, 1  ;;  %v9817_v21 = vmul.f32 %v9795_v56, %v17300_v30  ;;  %v9821_v23 = vmul.f32 %v9795_v56, %v17303_v55 }
 0xc37   :  { %v9781_v27 = vrot.slane %v9780_v47, 1  ;;  %v9766_v51 = vrot.slane %v9765_v40, 2  ;;  %v9819_v49 = vmul.f32 %v17435_v14, %v17350_v63  ;;  %v9823_v32 = vmul.f32 %v17435_v14, %v17353_v58 }
 0xc38   :  { %13242 = vrsqrt.f32 %v9841_v16  ;;  %v9743_v60 = vadd.f32 %v9742_v29, %v9741_v9  ;;  %v9816_v10 = vmul.f32 %v17438_v34, %v17275_v8  ;;  %v9820_v53 = vmul.f32 %v17438_v34, %v17278_v19 }
 0xc39   :  { %v9782_v15 = vadd.f32 %v9781_v27, %v9780_v47  ;;  %v9767_v43 = vadd.f32 %v9766_v51, %v9765_v40  ;;  %v17493_v30 = vmul.f32 %v17444_v22, %v17341_v20  ;;  %v17497_v55 = vmul.f32 %v17444_v22, %v17386_v42 }
 0xc3a   :  { %v9783_v11 = vmul.f32 0.015625, %v9743_v60  ;;  %v9825_v63 = vmul.f32 %v9795_v56, %v17306_v3  ;;  %v9829_v2 = vmul.f32 %v9795_v56, %v17309_v35  ;;  %v9827_v8 = vmul.f32 %v17435_v14, %v17356_v25 }
 0xc3b   :  { %v9786_v1 = vmul.f32 0.015625, %v9782_v15  ;;  %v9768_v62 = vrot.slane %v9767_v43, 1  ;;  %v9831_v19 = vmul.f32 %v17435_v14, %v17359_v7  ;;  %v9824_v20 = vmul.f32 %v17438_v34, %v17282_v4 }
 0xc3c   :  { %v9840_v50 = vadd.f32 1e-05, %v9783_v11  ;;  %v9833_v16 = vmul.f32 %v9795_v56, %v17312_v26  ;;  %v9837_v42 = vmul.f32 %v9795_v56, %v17315_v28 }
 0xc3d   :  { %v9843_v48 = vadd.f32 1e-05, %v9786_v1  ;;  %v9769_v58 = vadd.f32 %v9768_v62, %v9767_v43  ;;  %v9826_v43 = vmul.f32 %v17444_v22, %v17389_v6  ;;  %v9836_v6 = vmul.f32 %v17438_v34, %v17265_v37 }
 0xc3e   :  { %13244 = vrsqrt.f32 %v9840_v50  ;;  %v9830_v50 = vmul.f32 %v17444_v22, %v17392_v45  ;;  %v9838_v45 = vmul.f32 %v17444_v22, %v17285_v41 }
 0xc3f   :  { %13246 = vrsqrt.f32 %v9843_v48  ;;  %v9785_v47 = vmul.f32 0.015625, %v9769_v58  ;;  %v9832_v48 = vmul.f32 %v17438_v34, %v17291_v13 }
 0xc41   :  { %v9842_v7 = vadd.f32 1e-05, %v9785_v47 }
 0xc42   :  { %v13243_v18 = vpop.eup %13242 }
 0xc43   :  { %v9849_v9 = vmul.f32 %v13243_v18, %v9809_v59  ;;  %v9853_v3 = vmul.f32 %v13243_v18, %v9813_v33  ;;  %v9857_v46 = vmul.f32 %v13243_v18, %v9817_v21  ;;  %v9861_v29 = vmul.f32 %v13243_v18, %v9821_v23 }
 0xc44   :  { %v9865_v35 = vmul.f32 %v13243_v18, %v9825_v63  ;;  %v9869_v27 = vmul.f32 %v13243_v18, %v9829_v2  ;;  %v9873_v40 = vmul.f32 %v13243_v18, %v9833_v16  ;;  %v9877_v56 = vmul.f32 %v13243_v18, %v9837_v42 }
 0xc45   :  { %v9902_v25 = vadd.f32 %v17441_v31, %v9849_v9  ;;  %v9906_v60 = vadd.f32 %v17441_v31, %v9853_v3  ;;  %v9910_v15 = vadd.f32 %v17441_v31, %v9857_v46  ;;  %v9914_v4 = vadd.f32 %v17441_v31, %v9861_v29 }
 0xc46   :  { %v9918_v26 = vadd.f32 %v17441_v31, %v9865_v35  ;;  %v9922_v28 = vadd.f32 %v17441_v31, %v9869_v27  ;;  %13248 = vrsqrt.f32 %v9842_v7  ;;  %v9828_v33 = vmul.f32 %v17438_v34, %v17288_v52 }
 0xc47   :  { %v17515_v59 = vpack.c.bf16 %v9906_v60, %v9902_v25  ;;  %v9926_v51 = vadd.f32 %v17441_v31, %v9873_v40  ;;  %v17520_v11 = vpack.c.bf16 %v9914_v4, %v9910_v15  ;;  %v9930_v21 = vadd.f32 %v17441_v31, %v9877_v56 }
 0xc48   :  { %v17522_v1 = vpack.c.bf16 %v9922_v28, %v9918_v26  ;;  %v9835_v23 = vmul.f32 %v17435_v14, %v17362_v36  ;;  %v9839_v52 = vmul.f32 %v17435_v14, %v17365_v54  ;;  %v13245_v62 = vpop.eup %13244  ;;  %v9834_v31 = vmul.f32 %v17444_v22, %v17395_v0 }
 0xc49   :  { %12442 = vmatprep.subr.bf16.mxu1 %v17515_v59  ;;  %v17536_v63 = vpack.c.bf16 %v9930_v21, %v9926_v51  ;;  %v13247_v58 = vpop.eup %13246  ;;  %v9848_v36 = vmul.f32 %v13245_v62, %v17459_v24  ;;  %v9852_v54 = vmul.f32 %v13245_v62, %v17463_v38  ;;  %v9856_v14 = vmul.f32 %v13245_v62, %v9816_v10 }
 0xc4a   :  { %v9860_v2 = vmul.f32 %v13245_v62, %v9820_v53  ;;  %v9851_v13 = vmul.f32 %v13247_v58, %v17467_v12  ;;  %v9855_v18 = vmul.f32 %v13247_v58, %v17471_v44  ;;  %v9859_v16 = vmul.f32 %v13247_v58, %v9819_v49 }
 0xc4b   :  { %v9863_v42 = vmul.f32 %v13247_v58, %v9823_v32  ;;  %v9901_v37 = vadd.f32 %v17450_v5, %v9848_v36  ;;  %v9905_v0 = vadd.f32 %v17450_v5, %v9852_v54  ;;  %v9909_v34 = vadd.f32 %v17450_v5, %v9856_v14 }
 0xc4c   :  { %v9913_v41 = vadd.f32 %v17450_v5, %v9860_v2  ;;  %v9904_v22 = vadd.f32 %v17447_v57, %v9851_v13  ;;  %v9908_v24 = vadd.f32 %v17447_v57, %v9855_v18  ;;  %v9912_v38 = vadd.f32 %v17447_v57, %v9859_v16  ;;  %v18533_v13 = vld [vmem:[#allocation140_spill] sm:$0xff]  ;;  %v18534_v18 = vld [vmem:[#allocation141_spill] sm:$0xff]  ;;  %v18535_v16 = vld [vmem:[#allocation142_spill] sm:$0xff] }
 0xc4d   :  { %v9916_v12 = vadd.f32 %v17447_v57, %v9863_v42  ;;  %v17556_v10 = vpack.c.bf16 %v9905_v0, %v9901_v37  ;;  %v9867_v49 = vmul.f32 %v13247_v58, %v9827_v8  ;;  %v9871_v32 = vmul.f32 %v13247_v58, %v9831_v19  ;;  %v18536_v42 = vld [vmem:[#allocation143_spill] sm:$0xff]  ;;  %v18537_v37 = vld [vmem:[#allocation144_spill] sm:$0xff]  ;;  %v18538_v0 = vld [vmem:[#allocation145_spill] sm:$0xff] }
 0xc4e   :  { %v17558_v44 = vpack.c.bf16 %v9913_v41, %v9909_v34  ;;  %v17560_v53 = vpack.c.bf16 %v9908_v24, %v9904_v22  ;;  %v9864_v3 = vmul.f32 %v13245_v62, %v9824_v20  ;;  %v9868_v47 = vmul.f32 %v13245_v62, %v9828_v33 }
 0xc4f   :  { %v17562_v9 = vpack.c.bf16 %v9916_v12, %v9912_v38  ;;  %12444 = vmatpush1.bf16.msra.mxu1 %v17556_v10  ;;  %v9920_v29 = vadd.f32 %v17447_v57, %v9867_v49  ;;  %v9924_v35 = vadd.f32 %v17447_v57, %v9871_v32  ;;  %v9875_v27 = vmul.f32 %v13247_v58, %v9835_v23 }
 0xc50   :  { %v13249_v46 = vpop.eup %13248  ;;  %v9879_v40 = vmul.f32 %v13247_v58, %v9839_v52  ;;  %12458 = vmatprep.subr.bf16.mxu0 %v17560_v53  ;;  %12446 = vmatprep.subr.bf16.mxu1 %v17520_v11  ;;  %v9917_v7 = vadd.f32 %v17450_v5, %v9864_v3  ;;  %v9921_v15 = vadd.f32 %v17450_v5, %v9868_v47 }
 0xc51   :  { %v9850_v8 = vmul.f32 %v13249_v46, %v17475_v61  ;;  %v9854_v19 = vmul.f32 %v13249_v46, %v17479_v39  ;;  %v9858_v20 = vmul.f32 %v13249_v46, %v17493_v30  ;;  %v9862_v25 = vmul.f32 %v13249_v46, %v17497_v55 }
 0xc52   :  { %v17573_v60 = vpack.c.bf16 %v9924_v35, %v9920_v29  ;;  %v9866_v28 = vmul.f32 %v13249_v46, %v9826_v43  ;;  %v17582_v30 = vpack.c.bf16 %v9921_v15, %v9917_v7  ;;  %v9870_v55 = vmul.f32 %v13249_v46, %v9830_v50 }
 0xc53   :  { %v9903_v4 = vadd.f32 %v17455_v17, %v9850_v8  ;;  %v9907_v26 = vadd.f32 %v17455_v17, %v9854_v19  ;;  %v9911_v61 = vadd.f32 %v17455_v17, %v9858_v20  ;;  %12448 = vmatpush1.bf16.msra.mxu1 %v17558_v44  ;;  %v9915_v39 = vadd.f32 %v17455_v17, %v9862_v25 }
 0xc54   :  { %v9928_v56 = vadd.f32 %v17447_v57, %v9875_v27  ;;  %12450 = vmatprep.subr.bf16.mxu1 %v17522_v1  ;;  %v9919_v51 = vadd.f32 %v17455_v17, %v9866_v28  ;;  %v9932_v21 = vadd.f32 %v17447_v57, %v9879_v40  ;;  %v9872_v23 = vmul.f32 %v13245_v62, %v9832_v48 }
 0xc55   :  { %v17585_v33 = vpack.c.bf16 %v9907_v26, %v9903_v4  ;;  %v17590_v52 = vpack.c.bf16 %v9915_v39, %v9911_v61  ;;  %v9923_v43 = vadd.f32 %v17455_v17, %v9870_v55  ;;  %v9876_v58 = vmul.f32 %v13245_v62, %v9836_v6 }
 0xc56   :  { %v9874_v36 = vmul.f32 %v13249_v46, %v9834_v31  ;;  %v17594_v50 = vpack.c.bf16 %v9932_v21, %v9928_v56  ;;  %v9925_v54 = vadd.f32 %v17450_v5, %v9872_v23  ;;  %v9878_v14 = vmul.f32 %v13249_v46, %v9838_v45  ;;  %v18530_v45 = vld [vmem:[#allocation138_spill] sm:$0xff] }
 0xc57   :  { %12460 = vmatpush1.bf16.msra.mxu0 %v17585_v33  ;;  %12452 = vmatpush1.bf16.msra.mxu1 %v17582_v30  ;;  %v17599_v2 = vpack.c.bf16 %v9923_v43, %v9919_v51  ;;  %v9929_v57 = vadd.f32 %v17450_v5, %v9876_v58  ;;  %v18531_v5 = vmov 0.0  }
 0xc58   :  { %12462 = vmatprep.subr.bf16.mxu0 %v17562_v9  ;;  %v9927_v48 = vadd.f32 %v17455_v17, %v9874_v36  ;;  %12454 = vmatprep.subr.bf16.mxu1 %v17536_v63  ;;  %v9931_v62 = vadd.f32 %v17455_v17, %v9878_v14  ;;  %v18532_v17 = vld [vmem:[#allocation139_spill] sm:$0xff] }
 0xc59   :  { %v17605_v6 = vpack.c.bf16 %v9929_v57, %v9925_v54 }
 0xc5a   :  { %v17608_v31 = vpack.c.bf16 %v9931_v62, %v9927_v48 }
 0xc5b   :  { %12464 = vmatpush1.bf16.msra.mxu0 %v17590_v52  ;;  %12456 = vmatpush1.bf16.msra.mxu1 %v17605_v6 }
 0xc5c   :  { %12466 = vmatprep.subr.bf16.mxu0 %v17573_v60 }
 0xc5e   :  { %11794 = vmatmul.mubr.msk.f32.vlgmr.msra.gmra.mrb[88].mxu1 %vm4586_vm0, %v18530_v45 }
 0xc5f   :  { %12468 = vmatpush1.bf16.msra.mxu0 %v17599_v2  ;;  %10035 = vmatprep.mubr.f32.mxu1 %v18531_v5 }
 0xc60   :  { %12470 = vmatprep.subr.bf16.mxu0 %v17594_v50 }
 0xc62   :  { %11795 = vmatmul.mubr.msk.f32.gmra.mrb[90].mxu1 %vm4586_vm0, %v18532_v17 }
 0xc63   :  { %12472 = vmatpush1.bf16.msra.mxu0 %v17608_v31  ;;  %10041 = vmatprep.mubr.f32.mxu1 %v18531_v5 }
 0xc66   :  { %11802 = vmatmul.mubr.msk.f32.vlgmr.msra.gmra.mrb[96].mxu0 %vm4586_vm0, %v18530_v45  ;;  %11796 = vmatmul.mubr.msk.f32.gmra.mrb[92].mxu1 %vm4586_vm0, %v18533_v13 }
 0xc67   :  { %10148 = vmatprep.mubr.f32.mxu0 %v18531_v5  ;;  %10047 = vmatprep.mubr.f32.mxu1 %v18531_v5 }
 0xc6a   :  { %11803 = vmatmul.mubr.msk.f32.gmra.mrb[98].mxu0 %vm4586_vm0, %v18532_v17  ;;  %11797 = vmatmul.mubr.msk.f32.gmra.mrb[94].mxu1 %vm4586_vm0, %v18534_v18 }
 0xc6b   :  { %10154 = vmatprep.mubr.f32.mxu0 %v18531_v5  ;;  %10053 = vmatprep.mubr.f32.mxu1 %v18531_v5 }
 0xc6e   :  { %11804 = vmatmul.mubr.msk.f32.gmra.mrb[100].mxu0 %vm4586_vm0, %v18533_v13  ;;  %11798 = vmatmul.mubr.msk.f32.gmra.mrb[96].mxu1 %vm4586_vm0, %v18535_v16 }
 0xc6f   :  { %10160 = vmatprep.mubr.f32.mxu0 %v18531_v5  ;;  %10059 = vmatprep.mubr.f32.mxu1 %v18531_v5 }
 0xc72   :  { %11805 = vmatmul.mubr.msk.f32.gmra.mrb[102].mxu0 %vm4586_vm0, %v18534_v18  ;;  %11799 = vmatmul.mubr.msk.f32.gmra.mrb[98].mxu1 %vm4586_vm0, %v18536_v42 }
 0xc73   :  { %10166 = vmatprep.mubr.f32.mxu0 %v18531_v5  ;;  %10065 = vmatprep.mubr.f32.mxu1 %v18531_v5 }
 0xc76   :  { %11806 = vmatmul.mubr.msk.f32.gmra.mrb[104].mxu0 %vm4586_vm0, %v18535_v16  ;;  %11800 = vmatmul.mubr.msk.f32.gmra.mrb[100].mxu1 %vm4586_vm0, %v18537_v37 }
 0xc77   :  { %10172 = vmatprep.mubr.f32.mxu0 %v18531_v5  ;;  %10071 = vmatprep.mubr.f32.mxu1 %v18531_v5 }
 0xc7a   :  { %11807 = vmatmul.mubr.msk.f32.gmra.mrb[106].mxu0 %vm4586_vm0, %v18536_v42  ;;  %11801 = vmatmul.mubr.msk.f32.gmra.mrb[102].mxu1 %vm4586_vm0, %v18538_v0 }
 0xc7b   :  { %10178 = vmatprep.mubr.f32.mxu0 %v18531_v5  ;;  %10287 = vmatprep.mubr.f32.mxu1 %v18531_v5 }
 0xc7e   :  { %11808 = vmatmul.mubr.msk.f32.gmra.mrb[108].mxu0 %vm4586_vm0, %v18537_v37 }
 0xc7f   :  { %10184 = vmatprep.mubr.f32.mxu0 %v18531_v5 }
 0xc82   :  { %11809 = vmatmul.mubr.msk.f32.gmra.mrb[110].mxu0 %vm4586_vm0, %v18538_v0 }
 0xc83   :  { %10400 = vmatprep.mubr.f32.mxu0 %v18531_v5 }
 0xd31   :  { %v10031_v34 = vpop.f32.mrb[88].mxu1 }
 0xd32   :  { %v10033_v41 = vpop.f32.mrb[89].mxu1 }
 0xd35   :  { %v10037_v22 = vpop.f32.mrb[90].mxu1 }
 0xd36   :  { %v17663_v24 = vpack.c.bf16 %v10037_v22, %v10031_v34  ;;  %v10039_v38 = vpop.f32.mrb[91].mxu1 }
 0xd37   :  { %v17665_v12 = vpack.c.bf16 %v10039_v38, %v10033_v41 }
 0xd39   :  { %v10144_v49 = vpop.f32.mrb[96].mxu0  ;;  %12474 = vmatprep.subr.bf16.mxu1 %v17665_v12  ;;  %v10043_v3 = vpop.f32.mrb[92].mxu1 }
 0xd3a   :  { %v10146_v32 = vpop.f32.mrb[97].mxu0  ;;  %12476 = vmatpush1.bf16.msra.mxu1 %v17663_v24  ;;  %v10045_v47 = vpop.f32.mrb[93].mxu1 }
 0xd3d   :  { %v10150_v46 = vpop.f32.mrb[98].mxu0  ;;  %v10049_v27 = vpop.f32.mrb[94].mxu1 }
 0xd3e   :  { %v17669_v29 = vpack.c.bf16 %v10150_v46, %v10144_v49  ;;  %v10152_v35 = vpop.f32.mrb[99].mxu0  ;;  %v17673_v8 = vpack.c.bf16 %v10049_v27, %v10043_v3  ;;  %v10051_v19 = vpop.f32.mrb[95].mxu1 }
 0xd3f   :  { %v17671_v40 = vpack.c.bf16 %v10152_v35, %v10146_v32  ;;  %v17675_v20 = vpack.c.bf16 %v10051_v19, %v10045_v47 }
 0xd41   :  { %12490 = vmatprep.subr.bf16.mxu0 %v17671_v40  ;;  %v10156_v25 = vpop.f32.mrb[100].mxu0  ;;  %12478 = vmatprep.subr.bf16.mxu1 %v17675_v20  ;;  %v10055_v15 = vpop.f32.mrb[96].mxu1 }
 0xd42   :  { %12492 = vmatpush1.bf16.msra.mxu0 %v17669_v29  ;;  %v10158_v7 = vpop.f32.mrb[101].mxu0  ;;  %12480 = vmatpush1.bf16.msra.mxu1 %v17673_v8  ;;  %v10057_v4 = vpop.f32.mrb[97].mxu1 }
 0xd45   :  { %v10162_v26 = vpop.f32.mrb[102].mxu0  ;;  %v10061_v39 = vpop.f32.mrb[98].mxu1 }
 0xd46   :  { %v17681_v61 = vpack.c.bf16 %v10162_v26, %v10156_v25  ;;  %v10164_v28 = vpop.f32.mrb[103].mxu0  ;;  %v17685_v56 = vpack.c.bf16 %v10061_v39, %v10055_v15  ;;  %v10063_v51 = vpop.f32.mrb[99].mxu1 }
 0xd47   :  { %v17683_v55 = vpack.c.bf16 %v10164_v28, %v10158_v7  ;;  %v17687_v21 = vpack.c.bf16 %v10063_v51, %v10057_v4 }
 0xd49   :  { %12494 = vmatprep.subr.bf16.mxu0 %v17683_v55  ;;  %v10168_v23 = vpop.f32.mrb[104].mxu0  ;;  %12482 = vmatprep.subr.bf16.mxu1 %v17687_v21  ;;  %v10067_v58 = vpop.f32.mrb[100].mxu1 }
 0xd4a   :  { %12496 = vmatpush1.bf16.msra.mxu0 %v17681_v61  ;;  %v10170_v43 = vpop.f32.mrb[105].mxu0  ;;  %12484 = vmatpush1.bf16.msra.mxu1 %v17685_v56  ;;  %v10069_v36 = vpop.f32.mrb[101].mxu1 }
 0xd4d   :  { %v10174_v54 = vpop.f32.mrb[106].mxu0  ;;  %v10073_v48 = vpop.f32.mrb[102].mxu1 }
 0xd4e   :  { %v17693_v14 = vpack.c.bf16 %v10174_v54, %v10168_v23  ;;  %v10176_v57 = vpop.f32.mrb[107].mxu0  ;;  %v17697_v34 = vpack.c.bf16 %v10073_v48, %v10067_v58  ;;  %v10075_v41 = vpop.f32.mrb[103].mxu1 }
 0xd4f   :  { %v17695_v62 = vpack.c.bf16 %v10176_v57, %v10170_v43  ;;  %v17699_v22 = vpack.c.bf16 %v10075_v41, %v10069_v36 }
 0xd51   :  { %12498 = vmatprep.subr.bf16.mxu0 %v17695_v62  ;;  %v10180_v38 = vpop.f32.mrb[108].mxu0  ;;  %12486 = vmatprep.subr.bf16.mxu1 %v17699_v22 }
 0xd52   :  { %12500 = vmatpush1.bf16.msra.mxu0 %v17693_v14  ;;  %v10182_v49 = vpop.f32.mrb[109].mxu0  ;;  %12488 = vmatpush1.bf16.msra.mxu1 %v17697_v34 }
 0xd55   :  { %v10186_v32 = vpop.f32.mrb[110].mxu0  ;;  %11810 = vmatmul.mubr.msk.f32.vlgmr.msra.gmra.mrb[104].mxu1 %vm4586_vm0, %v18530_v45 }
 0xd56   :  { %v17705_v3 = vpack.c.bf16 %v10186_v32, %v10180_v38  ;;  %v10188_v47 = vpop.f32.mrb[111].mxu0  ;;  %10293 = vmatprep.mubr.f32.mxu1 %v18531_v5 }
 0xd57   :  { %v17709_v46 = vpack.c.bf16 %v10188_v47, %v10182_v49 }
 0xd59   :  { %12502 = vmatprep.subr.bf16.mxu0 %v17709_v46  ;;  %11811 = vmatmul.mubr.msk.f32.gmra.mrb[106].mxu1 %vm4586_vm0, %v18532_v17 }
 0xd5a   :  { %12504 = vmatpush1.bf16.msra.mxu0 %v17705_v3  ;;  %10299 = vmatprep.mubr.f32.mxu1 %v18531_v5 }
 0xd5d   :  { %11818 = vmatmul.mubr.msk.f32.vlgmr.msra.gmra.mrb[112].mxu0 %vm4586_vm0, %v18530_v45  ;;  %11812 = vmatmul.mubr.msk.f32.gmra.mrb[108].mxu1 %vm4586_vm0, %v18533_v13 }
 0xd5e   :  { %10406 = vmatprep.mubr.f32.mxu0 %v18531_v5  ;;  %10305 = vmatprep.mubr.f32.mxu1 %v18531_v5 }
 0xd61   :  { %11819 = vmatmul.mubr.msk.f32.gmra.mrb[114].mxu0 %vm4586_vm0, %v18532_v17  ;;  %11813 = vmatmul.mubr.msk.f32.gmra.mrb[110].mxu1 %vm4586_vm0, %v18534_v18 }
 0xd62   :  { %10412 = vmatprep.mubr.f32.mxu0 %v18531_v5  ;;  %10311 = vmatprep.mubr.f32.mxu1 %v18531_v5 }
 0xd65   :  { %11820 = vmatmul.mubr.msk.f32.gmra.mrb[116].mxu0 %vm4586_vm0, %v18533_v13  ;;  %11814 = vmatmul.mubr.msk.f32.gmra.mrb[112].mxu1 %vm4586_vm0, %v18535_v16 }
 0xd66   :  { %10418 = vmatprep.mubr.f32.mxu0 %v18531_v5  ;;  %10317 = vmatprep.mubr.f32.mxu1 %v18531_v5 }
 0xd69   :  { %11821 = vmatmul.mubr.msk.f32.gmra.mrb[118].mxu0 %vm4586_vm0, %v18534_v18  ;;  %11815 = vmatmul.mubr.msk.f32.gmra.mrb[114].mxu1 %vm4586_vm0, %v18536_v42 }
 0xd6a   :  { %10424 = vmatprep.mubr.f32.mxu0 %v18531_v5  ;;  %10323 = vmatprep.mubr.f32.mxu1 %v18531_v5 }
 0xd6d   :  { %11822 = vmatmul.mubr.msk.f32.gmra.mrb[120].mxu0 %vm4586_vm0, %v18535_v16  ;;  %11816 = vmatmul.mubr.msk.f32.gmra.mrb[116].mxu1 %vm4586_vm0, %v18537_v37 }
 0xd6e   :  { %10430 = vmatprep.mubr.f32.mxu0 %v18531_v5  ;;  %10329 = vmatprep.mubr.f32.mxu1 %v18531_v5 }
 0xd71   :  { %11823 = vmatmul.mubr.msk.f32.gmra.mrb[122].mxu0 %vm4586_vm0, %v18536_v42  ;;  %11817 = vmatmul.mubr.msk.f32.gmra.mrb[118].mxu1 %vm4586_vm0, %v18538_v0 }
 0xd72   :  { %10436 = vmatprep.mubr.f32.mxu0 %v18531_v5  ;;  %10545 = vmatprep.mubr.f32.mxu1 %v18531_v5 }
 0xd75   :  { %11824 = vmatmul.mubr.msk.f32.gmra.mrb[124].mxu0 %vm4586_vm0, %v18537_v37 }
 0xd76   :  { %10442 = vmatprep.mubr.f32.mxu0 %v18531_v5 }
 0xd79   :  { %11825 = vmatmul.mubr.msk.f32.gmra.mrb[126].mxu0 %vm4586_vm0, %v18538_v0 }
 0xd7a   :  { %10658 = vmatprep.mubr.f32.mxu0 %v18531_v5 }
 0xe28   :  { %v10289_v35 = vpop.f32.mrb[104].mxu1 }
 0xe29   :  { %v10291_v27 = vpop.f32.mrb[105].mxu1 }
 0xe2c   :  { %v10295_v19 = vpop.f32.mrb[106].mxu1 }
 0xe2d   :  { %v17759_v25 = vpack.c.bf16 %v10295_v19, %v10289_v35  ;;  %v10297_v7 = vpop.f32.mrb[107].mxu1 }
 0xe2e   :  { %v17761_v15 = vpack.c.bf16 %v10297_v7, %v10291_v27 }
 0xe30   :  { %v10402_v4 = vpop.f32.mrb[112].mxu0  ;;  %12506 = vmatprep.subr.bf16.mxu1 %v17761_v15  ;;  %v10301_v28 = vpop.f32.mrb[108].mxu1 }
 0xe31   :  { %v10404_v26 = vpop.f32.mrb[113].mxu0  ;;  %12508 = vmatpush1.bf16.msra.mxu1 %v17759_v25  ;;  %v10303_v39 = vpop.f32.mrb[109].mxu1 }
 0xe34   :  { %v10408_v51 = vpop.f32.mrb[114].mxu0  ;;  %v10307_v58 = vpop.f32.mrb[110].mxu1 }
 0xe35   :  { %v17765_v23 = vpack.c.bf16 %v10408_v51, %v10402_v4  ;;  %v10410_v43 = vpop.f32.mrb[115].mxu0  ;;  %v17769_v54 = vpack.c.bf16 %v10307_v58, %v10301_v28  ;;  %v10309_v57 = vpop.f32.mrb[111].mxu1 }
 0xe36   :  { %v17767_v36 = vpack.c.bf16 %v10410_v43, %v10404_v26  ;;  %v17771_v48 = vpack.c.bf16 %v10309_v57, %v10303_v39 }
 0xe38   :  { %12522 = vmatprep.subr.bf16.mxu0 %v17767_v36  ;;  %v10414_v41 = vpop.f32.mrb[116].mxu0  ;;  %12510 = vmatprep.subr.bf16.mxu1 %v17771_v48  ;;  %v10313_v49 = vpop.f32.mrb[112].mxu1 }
 0xe39   :  { %12524 = vmatpush1.bf16.msra.mxu0 %v17765_v23  ;;  %v10416_v38 = vpop.f32.mrb[117].mxu0  ;;  %12512 = vmatpush1.bf16.msra.mxu1 %v17769_v54  ;;  %v10315_v32 = vpop.f32.mrb[113].mxu1 }
 0xe3c   :  { %v10420_v47 = vpop.f32.mrb[118].mxu0  ;;  %v10319_v19 = vpop.f32.mrb[114].mxu1 }
 0xe3d   :  { %v17777_v35 = vpack.c.bf16 %v10420_v47, %v10414_v41  ;;  %v10422_v27 = vpop.f32.mrb[119].mxu0  ;;  %v17781_v4 = vpack.c.bf16 %v10319_v19, %v10313_v49  ;;  %v10321_v26 = vpop.f32.mrb[115].mxu1 }
 0xe3e   :  { %v17779_v7 = vpack.c.bf16 %v10422_v27, %v10416_v38  ;;  %v17783_v28 = vpack.c.bf16 %v10321_v26, %v10315_v32 }
 0xe40   :  { %18539 = vst [vmem:[#allocation154_spill] sm:$0xff] %v17783_v28  ;;  %12526 = vmatprep.subr.bf16.mxu0 %v17779_v7  ;;  %v10426_v39 = vpop.f32.mrb[120].mxu0  ;;  %12514 = vmatprep.subr.bf16.mxu1 %v17783_v28  ;;  %v10325_v43 = vpop.f32.mrb[116].mxu1 }
 0xe41   :  { %12528 = vmatpush1.bf16.msra.mxu0 %v17777_v35  ;;  %v10428_v51 = vpop.f32.mrb[121].mxu0  ;;  %12516 = vmatpush1.bf16.msra.mxu1 %v17781_v4  ;;  %v10327_v58 = vpop.f32.mrb[117].mxu1 }
 0xe44   :  { %v10432_v57 = vpop.f32.mrb[122].mxu0  ;;  %v10331_v49 = vpop.f32.mrb[118].mxu1 }
 0xe45   :  { %v17789_v41 = vpack.c.bf16 %v10432_v57, %v10426_v39  ;;  %v10434_v38 = vpop.f32.mrb[123].mxu0  ;;  %v17793_v32 = vpack.c.bf16 %v10331_v49, %v10325_v43  ;;  %v10333_v27 = vpop.f32.mrb[119].mxu1 }
 0xe46   :  { %v17791_v47 = vpack.c.bf16 %v10434_v38, %v10428_v51  ;;  %v17795_v19 = vpack.c.bf16 %v10333_v27, %v10327_v58 }
 0xe48   :  { %12530 = vmatprep.subr.bf16.mxu0 %v17791_v47  ;;  %v10438_v26 = vpop.f32.mrb[124].mxu0  ;;  %12518 = vmatprep.subr.bf16.mxu1 %v17795_v19 }
 0xe49   :  { %12532 = vmatpush1.bf16.msra.mxu0 %v17789_v41  ;;  %v10440_v28 = vpop.f32.mrb[125].mxu0  ;;  %12520 = vmatpush1.bf16.msra.mxu1 %v17793_v32 }
 0xe4c   :  { %v10444_v39 = vpop.f32.mrb[126].mxu0  ;;  %11826 = vmatmul.mubr.msk.f32.vlgmr.msra.gmra.mrb[120].mxu1 %vm4586_vm0, %v18530_v45 }
 0xe4d   :  { %v17801_v57 = vpack.c.bf16 %v10444_v39, %v10438_v26  ;;  %v10446_v51 = vpop.f32.mrb[127].mxu0  ;;  %10551 = vmatprep.mubr.f32.mxu1 %v18531_v5 }
 0xe4e   :  { %v17805_v43 = vpack.c.bf16 %v10446_v51, %v10440_v28 }
 0xe50   :  { %12534 = vmatprep.subr.bf16.mxu0 %v17805_v43  ;;  %11827 = vmatmul.mubr.msk.f32.gmra.mrb[122].mxu1 %vm4586_vm0, %v18532_v17 }
 0xe51   :  { %12536 = vmatpush1.bf16.msra.mxu0 %v17801_v57  ;;  %10557 = vmatprep.mubr.f32.mxu1 %v18531_v5 }
 0xe54   :  { %11834 = vmatmul.mubr.msk.f32.vlgmr.msra.gmra.mrb[128].mxu0 %vm4586_vm0, %v18530_v45  ;;  %11828 = vmatmul.mubr.msk.f32.gmra.mrb[124].mxu1 %vm4586_vm0, %v18533_v13 }
 0xe55   :  { %10664 = vmatprep.mubr.f32.mxu0 %v18531_v5  ;;  %10563 = vmatprep.mubr.f32.mxu1 %v18531_v5 }
 0xe58   :  { %11835 = vmatmul.mubr.msk.f32.gmra.mrb[130].mxu0 %vm4586_vm0, %v18532_v17  ;;  %11829 = vmatmul.mubr.msk.f32.gmra.mrb[126].mxu1 %vm4586_vm0, %v18534_v18 }
 0xe59   :  { %10670 = vmatprep.mubr.f32.mxu0 %v18531_v5  ;;  %10569 = vmatprep.mubr.f32.mxu1 %v18531_v5 }
 0xe5c   :  { %11836 = vmatmul.mubr.msk.f32.gmra.mrb[132].mxu0 %vm4586_vm0, %v18533_v13  ;;  %11830 = vmatmul.mubr.msk.f32.gmra.mrb[128].mxu1 %vm4586_vm0, %v18535_v16 }
 0xe5d   :  { %10676 = vmatprep.mubr.f32.mxu0 %v18531_v5  ;;  %10575 = vmatprep.mubr.f32.mxu1 %v18531_v5 }
 0xe60   :  { %11837 = vmatmul.mubr.msk.f32.gmra.mrb[134].mxu0 %vm4586_vm0, %v18534_v18  ;;  %11831 = vmatmul.mubr.msk.f32.gmra.mrb[130].mxu1 %vm4586_vm0, %v18536_v42 }
 0xe61   :  { %10682 = vmatprep.mubr.f32.mxu0 %v18531_v5  ;;  %10581 = vmatprep.mubr.f32.mxu1 %v18531_v5 }
 0xe64   :  { %11838 = vmatmul.mubr.msk.f32.gmra.mrb[136].mxu0 %vm4586_vm0, %v18535_v16  ;;  %11832 = vmatmul.mubr.msk.f32.gmra.mrb[132].mxu1 %vm4586_vm0, %v18537_v37 }
 0xe65   :  { %10688 = vmatprep.mubr.f32.mxu0 %v18531_v5  ;;  %10587 = vmatprep.mubr.f32.mxu1 %v18531_v5 }
 0xe68   :  { %11839 = vmatmul.mubr.msk.f32.gmra.mrb[138].mxu0 %vm4586_vm0, %v18536_v42  ;;  %11833 = vmatmul.mubr.msk.f32.gmra.mrb[134].mxu1 %vm4586_vm0, %v18538_v0 }
 0xe69   :  { %10694 = vmatprep.mubr.f32.mxu0 %v18531_v5 }
 0xe6c   :  { %11840 = vmatmul.mubr.msk.f32.gmra.mrb[140].mxu0 %vm4586_vm0, %v18537_v37 }
 0xe6d   :  { %10700 = vmatprep.mubr.f32.mxu0 %v18531_v5 }
 0xe70   :  { %11841 = vmatmul.mubr.msk.f32.gmra.mrb[142].mxu0 %vm4586_vm0, %v18538_v0 }
 0xf1f   :  { %v17853_v45 = vpop.f32.mrb[120].mxu1 }
 0xf20   :  { %18540 = vst [vmem:[#allocation159_spill] sm:$0xff] %v17853_v45  ;;  %v17855_v17 = vpop.f32.mrb[121].mxu1 }
 0xf23   :  { %v17857_v13 = vpop.f32.mrb[122].mxu1 }
 0xf24   :  { %18541 = vst [vmem:[#allocation158_spill] sm:$0xff] %v17857_v13  ;;  %v17861_v16 = vpop.f32.mrb[123].mxu1 }
 0xf27   :  { %v17865_v37 = vpop.f32.mrb[128].mxu0  ;;  %v17869_v28 = vpop.f32.mrb[124].mxu1 }
 0xf28   :  { %18542 = vst [vmem:[#allocation157_spill] sm:$0xff] %v17865_v37  ;;  %v17867_v5 = vpop.f32.mrb[129].mxu0  ;;  %18544 = vst [vmem:[#allocation161_spill] sm:$0xff] %v17869_v28  ;;  %v17871_v0 = vpop.f32.mrb[125].mxu1 }
 0xf29   :  { %18543 = vst [vmem:[#allocation156_spill] sm:$0xff] %v17867_v5  ;;  %18545 = vst [vmem:[#allocation160_spill] sm:$0xff] %v17871_v0 }
 0xf2b   :  { %v17873_v58 = vpop.f32.mrb[130].mxu0  ;;  %v17879_v27 = vpop.f32.mrb[126].mxu1 }
 0xf2c   :  { %18546 = vst [vmem:[#allocation146_spill] sm:$0xff] %v17873_v58  ;;  %v17877_v49 = vpop.f32.mrb[131].mxu0  ;;  %18547 = vst [vmem:[#allocation147_spill] sm:$0xff] %v17879_v27  ;;  %v17885_v51 = vpop.f32.mrb[127].mxu1 }
 0xf2d   :  { %18548 = vst [vmem:[#allocation148_spill] sm:$0xff] %v17885_v51 }
 0xf2f   :  { %v17889_v42 = vpop.f32.mrb[132].mxu0  ;;  %v17893_v38 = vpop.f32.mrb[128].mxu1 }
 0xf30   :  { %18549 = vst [vmem:[#allocation151_spill] sm:$0xff] %v17889_v42  ;;  %v17891_v45 = vpop.f32.mrb[133].mxu0  ;;  %18551 = vst [vmem:[#allocation150_spill] sm:$0xff] %v17893_v38  ;;  %v17895_v37 = vpop.f32.mrb[129].mxu1  ;;  %v18564_v38 = vld [vmem:[#allocation18_spill] sm:$0xff] }
 0xf31   :  { %18550 = vst [vmem:[#allocation149_spill] sm:$0xff] %v17891_v45  ;;  %18552 = vst [vmem:[#allocation153_spill] sm:$0xff] %v17895_v37  ;;  %11893 = vmatprep.subr.bf16.mxu1 %v18564_v38 }
 0xf33   :  { %v17897_v58 = vpop.f32.mrb[134].mxu0  ;;  %v17903_v39 = vpop.f32.mrb[130].mxu1 }
 0xf34   :  { %18553 = vst [vmem:[#allocation152_spill] sm:$0xff] %v17897_v58  ;;  %v17901_v13 = vpop.f32.mrb[135].mxu0  ;;  %18555 = vst [vmem:[#allocation138_spill] sm:$0xff] %v17903_v39  ;;  %v17909_v27 = vpop.f32.mrb[131].mxu1 }
 0xf35   :  { %18554 = vst [vmem:[#allocation155_spill] sm:$0xff] %v17901_v13  ;;  %18556 = vst [vmem:[#allocation139_spill] sm:$0xff] %v17909_v27 }
 0xf37   :  { %v17913_v51 = vpop.f32.mrb[136].mxu0  ;;  %v17917_v26 = vpop.f32.mrb[132].mxu1 }
 0xf38   :  { %18557 = vst [vmem:[#allocation140_spill] sm:$0xff] %v17913_v51  ;;  %v17915_v5 = vpop.f32.mrb[137].mxu0  ;;  %18558 = vst [vmem:[#allocation141_spill] sm:$0xff] %v17917_v26  ;;  %v17919_v42 = vpop.f32.mrb[133].mxu1  ;;  %v18565_v26 = vld [vmem:[#allocation34_spill] sm:$0xff] }
 0xf39   :  { %18559 = vst [vmem:[#allocation142_spill] sm:$0xff] %v17919_v42  ;;  %11933 = vmatprep.subr.bf16.mxu0 %v18565_v26 }
 0xf3b   :  { %v17921_v58 = vpop.f32.mrb[138].mxu0  ;;  %v17927_v28 = vpop.f32.mrb[134].mxu1 }
 0xf3c   :  { %18560 = vst [vmem:[#allocation143_spill] sm:$0xff] %v17921_v58  ;;  %v17925_v45 = vpop.f32.mrb[139].mxu0  ;;  %18561 = vst [vmem:[#allocation144_spill] sm:$0xff] %v17927_v28  ;;  %v17933_v39 = vpop.f32.mrb[135].mxu1 }
 0xf3d   :  { %18562 = vst [vmem:[#allocation145_spill] sm:$0xff] %v17933_v39 }
 0xf3f   :  { %v17937_v27 = vpop.f32.mrb[140].mxu0 }
 0xf40   :  { %18563 = vst [vmem:[#allocation162_spill] sm:$0xff] %v17937_v27  ;;  %v17939_v13 = vpop.f32.mrb[141].mxu0 }
 0xf43   :  { %v17941_v18 = vpop.f32.mrb[142].mxu0 }
 0xf44   :  { %v17945_v58 = vpop.f32.mrb[143].mxu0 }
 0xf45   :  { %13268 = dma.done.wait [#allocation5 + $0x1], 16384 }
 0xf46   :  { %13269 = vsyncadd [#allocation5 + $0x1], 4294950912  ;;  %v18566_v37 = vld [vmem:[#allocation10_spill] sm:$0xff]  ;;  %v18568_v42 = vld [vmem:[#allocation19_spill] sm:$0xff]  ;;  %10973 = vmatprep.mubr.bf16.mxu1 %v17515_v59  ;;  %11038 = vmatprep.mubr.bf16.mxu0 %v17560_v53 }
 0xf47   :  { %11894 = vmatpush3.bf16.msra.mxu1 %v18566_v37  ;;  %v18567_v28 = vld [vmem:[#allocation26_spill] sm:$0xff]  ;;  %v18569_v39 = vld [vmem:[#allocation35_spill] sm:$0xff]  ;;  %v18572_v38 = vld [vmem:[#allocation20_spill] sm:$0xff] }
 0xf48   :  { %11934 = vmatpush3.bf16.msra.mxu0 %v18567_v28  ;;  %11895 = vmatprep.subr.bf16.mxu1 %v18568_v42  ;;  %v18570_v51 = vld [vmem:[#allocation11_spill] sm:$0xff]  ;;  %v18573_v26 = vld [vmem:[#allocation36_spill] sm:$0xff]  ;;  %v18576_v28 = vld [vmem:[#allocation21_spill] sm:$0xff] }
 0xf49   :  { %11935 = vmatprep.subr.bf16.mxu0 %v18569_v39  ;;  %v18571_v0 = vld [vmem:[#allocation27_spill] sm:$0xff]  ;;  %v18574_v27 = vld [vmem:[#allocation12_spill] sm:$0xff]  ;;  %v18577_v42 = vld [vmem:[#allocation37_spill] sm:$0xff] }
 0xf4a   :  { %v18575_v37 = vld [vmem:[#allocation28_spill] sm:$0xff]  ;;  %v18578_v39 = vld [vmem:[#allocation13_spill] sm:$0xff]  ;;  %v18580_v53 = vld [vmem:[#allocation22_spill] sm:$0xff] }
 0xf4b   :  { %11896 = vmatpush3.bf16.msra.mxu1 %v18570_v51  ;;  %v18579_v59 = vld [vmem:[#allocation29_spill] sm:$0xff]  ;;  %v18581_v51 = vld [vmem:[#allocation38_spill] sm:$0xff] }
 0xf4c   :  { %11936 = vmatpush3.bf16.msra.mxu0 %v18571_v0  ;;  %11897 = vmatprep.subr.bf16.mxu1 %v18572_v38  ;;  %v18582_v0 = vld [vmem:[#allocation14_spill] sm:$0xff] }
 0xf4d   :  { %11937 = vmatprep.subr.bf16.mxu0 %v18573_v26  ;;  %v18583_v38 = vld [vmem:[#allocation30_spill] sm:$0xff]  ;;  %v18584_v26 = vld [vmem:[#allocation23_spill] sm:$0xff] }
 0xf4f   :  { %11898 = vmatpush3.bf16.msra.mxu1 %v18574_v27  ;;  %v18585_v27 = vld [vmem:[#allocation39_spill] sm:$0xff] }
 0xf50   :  { %11938 = vmatpush3.bf16.msra.mxu0 %v18575_v37  ;;  %11899 = vmatprep.subr.bf16.mxu1 %v18576_v28  ;;  %v18586_v37 = vld [vmem:[#allocation15_spill] sm:$0xff] }
 0xf51   :  { %11939 = vmatprep.subr.bf16.mxu0 %v18577_v42  ;;  %v18587_v28 = vld [vmem:[#allocation31_spill] sm:$0xff]  ;;  %v18588_v42 = vld [vmem:[#allocation24_spill] sm:$0xff] }
 0xf53   :  { %11900 = vmatpush3.bf16.msra.mxu1 %v18578_v39  ;;  %v18589_v39 = vld [vmem:[#allocation40_spill] sm:$0xff] }
 0xf54   :  { %11940 = vmatpush3.bf16.msra.mxu0 %v18579_v59  ;;  %11901 = vmatprep.subr.bf16.mxu1 %v18580_v53  ;;  %v18590_v59 = vld [vmem:[#allocation16_spill] sm:$0xff] }
 0xf55   :  { %11941 = vmatprep.subr.bf16.mxu0 %v18581_v51  ;;  %v18591_v53 = vld [vmem:[#allocation32_spill] sm:$0xff]  ;;  %v18592_v51 = vld [vmem:[#allocation25_spill] sm:$0xff] }
 0xf57   :  { %11902 = vmatpush3.bf16.msra.mxu1 %v18582_v0  ;;  %v18593_v0 = vld [vmem:[#allocation41_spill] sm:$0xff] }
 0xf58   :  { %11942 = vmatpush3.bf16.msra.mxu0 %v18583_v38  ;;  %11903 = vmatprep.subr.bf16.mxu1 %v18584_v26  ;;  %v18594_v38 = vld [vmem:[#allocation17_spill] sm:$0xff] }
 0xf59   :  { %11943 = vmatprep.subr.bf16.mxu0 %v18585_v27  ;;  %v18595_v26 = vld [vmem:[#allocation33_spill] sm:$0xff]  ;;  %v18596_v27 = vld [vmem:[#allocation50_spill] sm:$0xff] }
 0xf5b   :  { %11904 = vmatpush3.bf16.msra.mxu1 %v18586_v37  ;;  %v18597_v37 = vld [vmem:[#allocation66_spill] sm:$0xff] }
 0xf5c   :  { %11944 = vmatpush3.bf16.msra.mxu0 %v18587_v28  ;;  %11905 = vmatprep.subr.bf16.mxu1 %v18588_v42  ;;  %v18598_v28 = vld [vmem:[#allocation42_spill] sm:$0xff] }
 0xf5d   :  { %11945 = vmatprep.subr.bf16.mxu0 %v18589_v39  ;;  %v18599_v42 = vld [vmem:[#allocation58_spill] sm:$0xff]  ;;  %v18600_v39 = vld [vmem:[#allocation51_spill] sm:$0xff] }
 0xf5f   :  { %11906 = vmatpush3.bf16.msra.mxu1 %v18590_v59  ;;  %v18601_v59 = vld [vmem:[#allocation67_spill] sm:$0xff] }
 0xf60   :  { %11946 = vmatpush3.bf16.msra.mxu0 %v18591_v53  ;;  %11907 = vmatprep.subr.bf16.mxu1 %v18592_v51  ;;  %v18602_v53 = vld [vmem:[#allocation43_spill] sm:$0xff] }
 0xf61   :  { %11947 = vmatprep.subr.bf16.mxu0 %v18593_v0  ;;  %v18603_v51 = vld [vmem:[#allocation59_spill] sm:$0xff]  ;;  %v18604_v0 = vld [vmem:[#allocation52_spill] sm:$0xff] }
 0xf63   :  { %11908 = vmatpush3.bf16.msra.mxu1 %v18594_v38  ;;  %v18607_v38 = vld [vmem:[#allocation60_spill] sm:$0xff] }
 0xf64   :  { %11948 = vmatpush3.bf16.msra.mxu0 %v18595_v26  ;;  %11973 = vmatprep.subr.bf16.mxu1 %v18596_v27  ;;  %v18608_v26 = vld [vmem:[#allocation53_spill] sm:$0xff] }
 0xf65   :  { %12013 = vmatprep.subr.bf16.mxu0 %v18597_v37  ;;  %v18611_v27 = vld [vmem:[#allocation61_spill] sm:$0xff]  ;;  %v18612_v37 = vld [vmem:[#allocation54_spill] sm:$0xff] }
 0xf66   :  { %10974 = vmatmul.mubr.bf16.vlgmr.msra.gmra.mrb[136].mxu1 %v17556_v10  ;;  %v18605_v10 = vld [vmem:[#allocation68_spill] sm:$0xff] }
 0xf67   :  { %11039 = vmatmul.mubr.bf16.vlgmr.msra.gmra.mrb[144].mxu0 %v17585_v33  ;;  %11974 = vmatpush3.bf16.msra.mxu1 %v18598_v28  ;;  %v18606_v33 = vld [vmem:[#allocation44_spill] sm:$0xff]  ;;  %v18615_v28 = vld [vmem:[#allocation62_spill] sm:$0xff] }
 0xf68   :  { %12014 = vmatpush3.bf16.msra.mxu0 %v18599_v42  ;;  %11975 = vmatprep.subr.bf16.mxu1 %v18600_v39  ;;  %v18616_v42 = vld [vmem:[#allocation55_spill] sm:$0xff] }
 0xf69   :  { %12015 = vmatprep.subr.bf16.mxu0 %v18601_v59  ;;  %10981 = vmatprep.mubr.bf16.mxu1 %v17520_v11  ;;  %v18609_v11 = vld [vmem:[#allocation69_spill] sm:$0xff]  ;;  %v18619_v39 = vld [vmem:[#allocation63_spill] sm:$0xff]  ;;  %v18620_v59 = vld [vmem:[#allocation56_spill] sm:$0xff] }
 0xf6a   :  { %11046 = vmatprep.mubr.bf16.mxu0 %v17562_v9  ;;  %v18610_v9 = vld [vmem:[#allocation45_spill] sm:$0xff] }
 0xf6b   :  { %11976 = vmatpush3.bf16.msra.mxu1 %v18602_v53  ;;  %v18623_v53 = vld [vmem:[#allocation64_spill] sm:$0xff] }
 0xf6c   :  { %12016 = vmatpush3.bf16.msra.mxu0 %v18603_v51  ;;  %11977 = vmatprep.subr.bf16.mxu1 %v18604_v0  ;;  %v18624_v51 = vld [vmem:[#allocation57_spill] sm:$0xff] }
 0xf6d   :  { %12017 = vmatprep.subr.bf16.mxu0 %v18605_v10  ;;  %v18627_v0 = vld [vmem:[#allocation65_spill] sm:$0xff]  ;;  %v18628_v10 = vld [vmem:[#allocation82_spill] sm:$0xff] }
 0xf6e   :  { %10982 = vmatmul.mubr.bf16.gmra.mrb[140].mxu1 %v17558_v44  ;;  %v18613_v44 = vld [vmem:[#allocation70_spill] sm:$0xff] }
 0xf6f   :  { %11047 = vmatmul.mubr.bf16.gmra.mrb[148].mxu0 %v17590_v52  ;;  %11978 = vmatpush3.bf16.msra.mxu1 %v18606_v33  ;;  %v18614_v52 = vld [vmem:[#allocation46_spill] sm:$0xff] }
 0xf70   :  { %12018 = vmatpush3.bf16.msra.mxu0 %v18607_v38  ;;  %11979 = vmatprep.subr.bf16.mxu1 %v18608_v26  ;;  %v18631_v33 = vld [vmem:[#allocation90_spill] sm:$0xff]  ;;  %v18632_v38 = vld [vmem:[#allocation83_spill] sm:$0xff] }
 0xf71   :  { %12019 = vmatprep.subr.bf16.mxu0 %v18609_v11  ;;  %10989 = vmatprep.mubr.bf16.mxu1 %v17522_v1  ;;  %v18617_v1 = vld [vmem:[#allocation71_spill] sm:$0xff]  ;;  %v18636_v11 = vld [vmem:[#allocation84_spill] sm:$0xff] }
 0xf72   :  { %11054 = vmatprep.mubr.bf16.mxu0 %v17573_v60  ;;  %v18618_v60 = vld [vmem:[#allocation47_spill] sm:$0xff] }
 0xf73   :  { %11980 = vmatpush3.bf16.msra.mxu1 %v18610_v9  ;;  %v18635_v26 = vld [vmem:[#allocation91_spill] sm:$0xff]  ;;  %v18639_v9 = vld [vmem:[#allocation92_spill] sm:$0xff] }
 0xf74   :  { %12020 = vmatpush3.bf16.msra.mxu0 %v18611_v27  ;;  %11981 = vmatprep.subr.bf16.mxu1 %v18612_v37  ;;  %v18640_v27 = vld [vmem:[#allocation85_spill] sm:$0xff] }
 0xf75   :  { %12021 = vmatprep.subr.bf16.mxu0 %v18613_v44  ;;  %v18643_v37 = vld [vmem:[#allocation93_spill] sm:$0xff]  ;;  %v18644_v44 = vld [vmem:[#allocation86_spill] sm:$0xff] }
 0xf76   :  { %10990 = vmatmul.mubr.bf16.gmra.mrb[144].mxu1 %v17582_v30  ;;  %v18621_v30 = vld [vmem:[#allocation72_spill] sm:$0xff] }
 0xf77   :  { %11055 = vmatmul.mubr.bf16.gmra.mrb[152].mxu0 %v17599_v2  ;;  %11982 = vmatpush3.bf16.msra.mxu1 %v18614_v52  ;;  %v18622_v2 = vld [vmem:[#allocation48_spill] sm:$0xff]  ;;  %v18647_v52 = vld [vmem:[#allocation94_spill] sm:$0xff] }
 0xf78   :  { %12022 = vmatpush3.bf16.msra.mxu0 %v18615_v28  ;;  %11983 = vmatprep.subr.bf16.mxu1 %v18616_v42  ;;  %v18648_v28 = vld [vmem:[#allocation87_spill] sm:$0xff] }
 0xf79   :  { %12023 = vmatprep.subr.bf16.mxu0 %v18617_v1  ;;  %10997 = vmatprep.mubr.bf16.mxu1 %v17536_v63  ;;  %v18625_v63 = vld [vmem:[#allocation73_spill] sm:$0xff]  ;;  %v18651_v42 = vld [vmem:[#allocation95_spill] sm:$0xff]  ;;  %v18652_v1 = vld [vmem:[#allocation88_spill] sm:$0xff] }
 0xf7a   :  { %11062 = vmatprep.mubr.bf16.mxu0 %v17594_v50  ;;  %v18626_v50 = vld [vmem:[#allocation49_spill] sm:$0xff] }
 0xf7b   :  { %11984 = vmatpush3.bf16.msra.mxu1 %v18618_v60  ;;  %v18655_v60 = vld [vmem:[#allocation96_spill] sm:$0xff] }
 0xf7c   :  { %12024 = vmatpush3.bf16.msra.mxu0 %v18619_v39  ;;  %11985 = vmatprep.subr.bf16.mxu1 %v18620_v59  ;;  %v18656_v39 = vld [vmem:[#allocation89_spill] sm:$0xff] }
 0xf7d   :  { %12025 = vmatprep.subr.bf16.mxu0 %v18621_v30  ;;  %v18659_v59 = vld [vmem:[#allocation97_spill] sm:$0xff]  ;;  %v18660_v30 = vld [vmem:[#allocation114_spill] sm:$0xff] }
 0xf7e   :  { %10998 = vmatmul.mubr.bf16.gmra.mrb[148].mxu1 %v17605_v6  ;;  %v18629_v6 = vld [vmem:[#allocation98_spill] sm:$0xff] }
 0xf7f   :  { %11063 = vmatmul.mubr.bf16.gmra.mrb[156].mxu0 %v17608_v31  ;;  %11986 = vmatpush3.bf16.msra.mxu1 %v18622_v2  ;;  %v18630_v31 = vld [vmem:[#allocation74_spill] sm:$0xff] }
 0xf80   :  { %12026 = vmatpush3.bf16.msra.mxu0 %v18623_v53  ;;  %11987 = vmatprep.subr.bf16.mxu1 %v18624_v51  ;;  %v18663_v2 = vld [vmem:[#allocation122_spill] sm:$0xff]  ;;  %v18664_v53 = vld [vmem:[#allocation115_spill] sm:$0xff] }
 0xf81   :  { %12027 = vmatprep.subr.bf16.mxu0 %v18625_v63  ;;  %11103 = vmatprep.mubr.bf16.mxu1 %v17665_v12  ;;  %v18633_v12 = vld [vmem:[#allocation99_spill] sm:$0xff]  ;;  %v18668_v63 = vld [vmem:[#allocation116_spill] sm:$0xff] }
 0xf82   :  { %11168 = vmatprep.mubr.bf16.mxu0 %v17671_v40  ;;  %v18634_v40 = vld [vmem:[#allocation75_spill] sm:$0xff] }
 0xf83   :  { %11988 = vmatpush3.bf16.msra.mxu1 %v18626_v50  ;;  %v18667_v51 = vld [vmem:[#allocation123_spill] sm:$0xff]  ;;  %v18671_v50 = vld [vmem:[#allocation124_spill] sm:$0xff] }
 0xf84   :  { %12028 = vmatpush3.bf16.msra.mxu0 %v18627_v0  ;;  %12053 = vmatprep.subr.bf16.mxu1 %v18628_v10  ;;  %v18672_v0 = vld [vmem:[#allocation117_spill] sm:$0xff] }
 0xf85   :  { %12093 = vmatprep.subr.bf16.mxu0 %v18629_v6  ;;  %v18675_v10 = vld [vmem:[#allocation109_spill] sm:$0xff] }
 0xf86   :  { %11104 = vmatmul.mubr.bf16.vlgmr.msra.gmra.mrb[152].mxu1 %v17663_v24  ;;  %v18637_v24 = vld [vmem:[#allocation100_spill] sm:$0xff]  ;;  %v18676_v6 = vld [vmem:[#allocation125_spill] sm:$0xff] }
 0xf87   :  { %11169 = vmatmul.mubr.bf16.vlgmr.msra.gmra.mrb[160].mxu0 %v17669_v29  ;;  %12054 = vmatpush3.bf16.msra.mxu1 %v18630_v31  ;;  %v18638_v29 = vld [vmem:[#allocation76_spill] sm:$0xff]  ;;  %v18677_v31 = vld [vmem:[#allocation118_spill] sm:$0xff] }
 0xf88   :  { %12094 = vmatpush3.bf16.msra.mxu0 %v18631_v33  ;;  %12055 = vmatprep.subr.bf16.mxu1 %v18632_v38  ;;  %v18680_v33 = vld [vmem:[#allocation126_spill] sm:$0xff]  ;;  %v18681_v38 = vld [vmem:[#allocation119_spill] sm:$0xff] }
 0xf89   :  { %12095 = vmatprep.subr.bf16.mxu0 %v18633_v12  ;;  %11111 = vmatprep.mubr.bf16.mxu1 %v17675_v20  ;;  %v18641_v20 = vld [vmem:[#allocation101_spill] sm:$0xff]  ;;  %v18682_v12 = vld [vmem:[#allocation135_spill] sm:$0xff] }
 0xf8a   :  { %11176 = vmatprep.mubr.bf16.mxu0 %v17683_v55  ;;  %v18642_v55 = vld [vmem:[#allocation77_spill] sm:$0xff] }
 0xf8b   :  { %12056 = vmatpush3.bf16.msra.mxu1 %v18634_v40  ;;  %v18684_v40 = vld [vmem:[#allocation127_spill] sm:$0xff] }
 0xf8c   :  { %12096 = vmatpush3.bf16.msra.mxu0 %v18635_v26  ;;  %12057 = vmatprep.subr.bf16.mxu1 %v18636_v11  ;;  %v18685_v26 = vld [vmem:[#allocation120_spill] sm:$0xff] }
 0xf8d   :  { %12097 = vmatprep.subr.bf16.mxu0 %v18637_v24  ;;  %v18688_v11 = vld [vmem:[#allocation128_spill] sm:$0xff]  ;;  %v18689_v24 = vld [vmem:[#allocation121_spill] sm:$0xff] }
 0xf8e   :  { %11112 = vmatmul.mubr.bf16.gmra.mrb[156].mxu1 %v17673_v8  ;;  %v18645_v8 = vld [vmem:[#allocation102_spill] sm:$0xff] }
 0xf8f   :  { %11177 = vmatmul.mubr.bf16.gmra.mrb[164].mxu0 %v17681_v61  ;;  %12058 = vmatpush3.bf16.msra.mxu1 %v18638_v29  ;;  %v18646_v61 = vld [vmem:[#allocation78_spill] sm:$0xff]  ;;  %v18692_v29 = vld [vmem:[#allocation156_spill] sm:$0xff] }
 0xf90   :  { %12098 = vmatpush3.bf16.msra.mxu0 %v18639_v9  ;;  %12059 = vmatprep.subr.bf16.mxu1 %v18640_v27  ;;  %v18693_v9 = vpack.c.bf16 %v17877_v49, %v18692_v29  ;;  %v18694_v27 = vld [vmem:[#allocation113_spill] sm:$0xff] }
 0xf91   :  { %12099 = vmatprep.subr.bf16.mxu0 %v18641_v20  ;;  %11119 = vmatprep.mubr.bf16.mxu1 %v17687_v21  ;;  %v18649_v21 = vld [vmem:[#allocation103_spill] sm:$0xff] }
 0xf92   :  { %11184 = vmatprep.mubr.bf16.mxu0 %v17695_v62  ;;  %v18650_v62 = vld [vmem:[#allocation79_spill] sm:$0xff] }
 0xf93   :  { %12060 = vmatpush3.bf16.msra.mxu1 %v18642_v55  ;;  %v18697_v20 = vld [vmem:[#allocation159_spill] sm:$0xff] }
 0xf94   :  { %12100 = vmatpush3.bf16.msra.mxu0 %v18643_v37  ;;  %12061 = vmatprep.subr.bf16.mxu1 %v18644_v44  ;;  %v18699_v37 = vld [vmem:[#allocation146_spill] sm:$0xff]  ;;  %v18700_v44 = vld [vmem:[#allocation157_spill] sm:$0xff] }
 0xf95   :  { %12101 = vmatprep.subr.bf16.mxu0 %v18645_v8  ;;  %v18701_v8 = vpack.c.bf16 %v18699_v37, %v18700_v44 }
 0xf96   :  { %11120 = vmatmul.mubr.bf16.gmra.mrb[160].mxu1 %v17685_v56  ;;  %v18653_v56 = vld [vmem:[#allocation104_spill] sm:$0xff] }
 0xf97   :  { %11185 = vmatmul.mubr.bf16.gmra.mrb[168].mxu0 %v17693_v14  ;;  %12062 = vmatpush3.bf16.msra.mxu1 %v18646_v61  ;;  %v18654_v14 = vld [vmem:[#allocation80_spill] sm:$0xff]  ;;  %v18705_v61 = vld [vmem:[#allocation155_spill] sm:$0xff] }
 0xf98   :  { %12102 = vmatpush3.bf16.msra.mxu0 %v18647_v52  ;;  %12063 = vmatprep.subr.bf16.mxu1 %v18648_v28  ;;  %v18706_v52 = vld [vmem:[#allocation149_spill] sm:$0xff] }
 0xf99   :  { %12103 = vmatprep.subr.bf16.mxu0 %v18649_v21  ;;  %11127 = vmatprep.mubr.bf16.mxu1 %v17699_v22  ;;  %v18657_v22 = vld [vmem:[#allocation105_spill] sm:$0xff]  ;;  %v18707_v28 = vpack.c.bf16 %v18705_v61, %v18706_v52  ;;  %v18708_v21 = vld [vmem:[#allocation147_spill] sm:$0xff] }
 0xf9a   :  { %11192 = vmatprep.mubr.bf16.mxu0 %v17709_v46  ;;  %v18658_v46 = vld [vmem:[#allocation81_spill] sm:$0xff] }
 0xf9b   :  { %12064 = vmatpush3.bf16.msra.mxu1 %v18650_v62  ;;  %v18709_v62 = vld [vmem:[#allocation161_spill] sm:$0xff] }
 0xf9c   :  { %12104 = vmatpush3.bf16.msra.mxu0 %v18651_v42  ;;  %12065 = vmatprep.subr.bf16.mxu1 %v18652_v1  ;;  %v18710_v42 = vpack.c.bf16 %v18708_v21, %v18709_v62  ;;  %v18711_v1 = vld [vmem:[#allocation152_spill] sm:$0xff] }
 0xf9d   :  { %12105 = vmatprep.subr.bf16.mxu0 %v18653_v56  ;;  %v18712_v56 = vld [vmem:[#allocation151_spill] sm:$0xff] }
 0xf9e   :  { %11128 = vmatmul.mubr.bf16.gmra.mrb[164].mxu1 %v17697_v34  ;;  %v18661_v34 = vld [vmem:[#allocation130_spill] sm:$0xff] }
 0xf9f   :  { %11193 = vmatmul.mubr.bf16.gmra.mrb[172].mxu0 %v17705_v3  ;;  %12066 = vmatpush3.bf16.msra.mxu1 %v18654_v14  ;;  %v18662_v3 = vld [vmem:[#allocation106_spill] sm:$0xff]  ;;  %v18713_v14 = vpack.c.bf16 %v18711_v1, %v18712_v56 }
 0xfa0   :  { %12106 = vmatpush3.bf16.msra.mxu0 %v18655_v60  ;;  %12067 = vmatprep.subr.bf16.mxu1 %v18656_v39  ;;  %v18714_v60 = vld [vmem:[#allocation139_spill] sm:$0xff]  ;;  %v18715_v39 = vld [vmem:[#allocation153_spill] sm:$0xff] }
 0xfa1   :  { %12107 = vmatprep.subr.bf16.mxu0 %v18657_v22  ;;  %11233 = vmatprep.mubr.bf16.mxu1 %v17761_v15  ;;  %v18665_v15 = vld [vmem:[#allocation131_spill] sm:$0xff]  ;;  %v18716_v22 = vpack.c.bf16 %v18714_v60, %v18715_v39 }
 0xfa2   :  { %11298 = vmatprep.mubr.bf16.mxu0 %v17767_v36  ;;  %v18666_v36 = vld [vmem:[#allocation107_spill] sm:$0xff] }
 0xfa3   :  { %12068 = vmatpush3.bf16.msra.mxu1 %v18658_v46  ;;  %v18717_v46 = vpack.c.bf16 %v17925_v45, %v17915_v5  ;;  %v18727_v45 = vld [vmem:[#allocation144_spill] sm:$0xff]  ;;  %v18728_v5 = vld [vmem:[#allocation141_spill] sm:$0xff] }
 0xfa4   :  { %12108 = vmatpush3.bf16.msra.mxu0 %v18659_v59  ;;  %12133 = vmatprep.subr.bf16.mxu1 %v18660_v30  ;;  %v18718_v59 = vld [vmem:[#allocation138_spill] sm:$0xff] }
 0xfa5   :  { %12173 = vmatprep.subr.bf16.mxu0 %v18661_v34  ;;  %v18719_v30 = vld [vmem:[#allocation150_spill] sm:$0xff] }
 0xfa6   :  { %11234 = vmatmul.mubr.bf16.vlgmr.msra.gmra.mrb[168].mxu1 %v17759_v25  ;;  %v18669_v25 = vld [vmem:[#allocation132_spill] sm:$0xff] }
 0xfa7   :  { %11299 = vmatmul.mubr.bf16.vlgmr.msra.gmra.mrb[176].mxu0 %v17765_v23  ;;  %12134 = vmatpush3.bf16.msra.mxu1 %v18662_v3  ;;  %v18670_v23 = vld [vmem:[#allocation108_spill] sm:$0xff]  ;;  %v18721_v3 = vld [vmem:[#allocation143_spill] sm:$0xff] }
 0xfa8   :  { %12174 = vmatpush3.bf16.msra.mxu0 %v18663_v2  ;;  %12135 = vmatprep.subr.bf16.mxu1 %v18664_v53 }
 0xfa9   :  { %12175 = vmatprep.subr.bf16.mxu0 %v18665_v15  ;;  %11241 = vmatprep.mubr.bf16.mxu1 %v17771_v48  ;;  %v18673_v48 = vld [vmem:[#allocation133_spill] sm:$0xff] }
 0xfaa   :  { %11306 = vmatprep.mubr.bf16.mxu0 %v17779_v7  ;;  %v18674_v7 = vld [vmem:[#allocation154_spill] sm:$0xff] }
 0xfab   :  { %12136 = vmatpush3.bf16.msra.mxu1 %v18666_v36  ;;  %v18725_v36 = vld [vmem:[#allocation142_spill] sm:$0xff] }
 0xfac   :  { %12176 = vmatpush3.bf16.msra.mxu0 %v18667_v51  ;;  %12137 = vmatprep.subr.bf16.mxu1 %v18668_v63  ;;  %v18729_v63 = vpack.c.bf16 %v18727_v45, %v18728_v5 }
 0xfad   :  { %12177 = vmatprep.subr.bf16.mxu0 %v18669_v25 }
 0xfae   :  { %11242 = vmatmul.mubr.bf16.gmra.mrb[172].mxu1 %v17769_v54  ;;  %v18678_v54 = vld [vmem:[#allocation134_spill] sm:$0xff] }
 0xfaf   :  { %11307 = vmatmul.mubr.bf16.gmra.mrb[180].mxu0 %v17777_v35  ;;  %12138 = vmatpush3.bf16.msra.mxu1 %v18670_v23  ;;  %v18679_v35 = vld [vmem:[#allocation110_spill] sm:$0xff] }
 0xfb0   :  { %12178 = vmatpush3.bf16.msra.mxu0 %v18671_v50  ;;  %12139 = vmatprep.subr.bf16.mxu1 %v18672_v0  ;;  %v18731_v23 = vld [vmem:[#allocation162_spill] sm:$0xff] }
 0xfb1   :  { %12179 = vmatprep.subr.bf16.mxu0 %v18673_v48  ;;  %11249 = vmatprep.mubr.bf16.mxu1 %v18674_v7  ;;  %v11842_v7 = vld [vmem:[%s18238_s13] ss:$0 sm:$0xff] }
 0xfb2   :  { %11314 = vmatprep.mubr.bf16.mxu0 %v17791_v47  ;;  %v18683_v47 = vld [vmem:[#allocation111_spill] sm:$0xff] }
 0xfb3   :  { %12140 = vmatpush3.bf16.msra.mxu1 %v18675_v10 }
 0xfb4   :  { %12180 = vmatpush3.bf16.msra.mxu0 %v18676_v6  ;;  %12141 = vmatprep.subr.bf16.mxu1 %v18677_v31 }
 0xfb5   :  { %12181 = vmatprep.subr.bf16.mxu0 %v18678_v54 }
 0xfb6   :  { %11250 = vmatmul.mubr.bf16.gmra.mrb[176].mxu1 %v17781_v4  ;;  %v18686_v4 = vld [vmem:[#allocation136_spill] sm:$0xff] }
 0xfb7   :  { %11315 = vmatmul.mubr.bf16.gmra.mrb[184].mxu0 %v17789_v41  ;;  %12142 = vmatpush3.bf16.msra.mxu1 %v18679_v35  ;;  %v18687_v41 = vld [vmem:[#allocation112_spill] sm:$0xff] }
 0xfb8   :  { %12182 = vmatpush3.bf16.msra.mxu0 %v18680_v33  ;;  %12143 = vmatprep.subr.bf16.mxu1 %v18681_v38 }
 0xfb9   :  { %12183 = vmatprep.subr.bf16.mxu0 %v18682_v12  ;;  %11257 = vmatprep.mubr.bf16.mxu1 %v17795_v19  ;;  %v18690_v19 = vld [vmem:[#allocation137_spill] sm:$0xff] }
 0xfba   :  { %11322 = vmatprep.mubr.bf16.mxu0 %v17805_v43  ;;  %v18691_v43 = vpack.c.bf16 %v17861_v16, %v17855_v17  ;;  %v18702_v17 = vld [vmem:[#allocation148_spill] sm:$0xff] }
 0xfbb   :  { %12144 = vmatpush3.bf16.msra.mxu1 %v18683_v47  ;;  %v18703_v16 = vld [vmem:[#allocation160_spill] sm:$0xff] }
 0xfbc   :  { %12184 = vmatpush3.bf16.msra.mxu0 %v18684_v40  ;;  %12145 = vmatprep.subr.bf16.mxu1 %v18685_v26  ;;  %v18704_v49 = vpack.c.bf16 %v18702_v17, %v18703_v16 }
 0xfbd   :  { %12185 = vmatprep.subr.bf16.mxu0 %v18686_v4 }
 0xfbe   :  { %11258 = vmatmul.mubr.bf16.gmra.mrb[180].mxu1 %v17793_v32  ;;  %v18695_v32 = vld [vmem:[#allocation129_spill] sm:$0xff] }
 0xfbf   :  { %11323 = vmatmul.mubr.bf16.gmra.mrb[188].mxu0 %v17801_v57  ;;  %12146 = vmatpush3.bf16.msra.mxu1 %v18687_v41  ;;  %v18696_v57 = vld [vmem:[#allocation158_spill] sm:$0xff] }
 0xfc0   :  { %12186 = vmatpush3.bf16.msra.mxu0 %v18688_v11  ;;  %12147 = vmatprep.subr.bf16.mxu1 %v18689_v24  ;;  %v18698_v55 = vpack.c.bf16 %v18696_v57, %v18697_v20 }
 0xfc1   :  { %12187 = vmatprep.subr.bf16.mxu0 %v18690_v19  ;;  %11363 = vmatprep.mubr.bf16.mxu1 %v18691_v43 }
 0xfc2   :  { %11428 = vmatprep.mubr.bf16.mxu0 %v18693_v9 }
 0xfc3   :  { %12148 = vmatpush3.bf16.msra.mxu1 %v18694_v27 }
 0xfc4   :  { %12188 = vmatpush3.bf16.msra.mxu0 %v18695_v32  ;;  %12537 = vmatprep.subr.bf16.mxu1 %v18661_v34  ;;  %v18720_v34 = vpack.c.bf16 %v18718_v59, %v18719_v30 }
 0xfc6   :  { %11364 = vmatmul.mubr.bf16.vlgmr.msra.gmra.mrb[184].mxu1 %v18698_v55 }
 0xfc7   :  { %11429 = vmatmul.mubr.bf16.vlgmr.msra.gmra.mrb[192].mxu0 %v18701_v8  ;;  %12545 = vmatpush3.bf16.msra.mxu1 %v18663_v2  ;;  %v18722_v2 = vld [vmem:[#allocation140_spill] sm:$0xff] }
 0xfc8   :  { %11371 = vmatprep.mubr.bf16.mxu1 %v18704_v49  ;;  %12538 = vmatprep.subr.bf16.mxu1 %v18665_v15  ;;  %v18723_v53 = vpack.c.bf16 %v18721_v3, %v18722_v2  ;;  %v18724_v15 = vld [vmem:[#allocation145_spill] sm:$0xff] }
 0xfc9   :  { %11436 = vmatprep.mubr.bf16.mxu0 %v18707_v28 }
 0xfcb   :  { %12546 = vmatpush3.bf16.msra.mxu1 %v18667_v51  ;;  %v18726_v51 = vpack.c.bf16 %v18724_v15, %v18725_v36 }
 0xfcc   :  { %12539 = vmatprep.subr.bf16.mxu1 %v18669_v25  ;;  %v18730_v25 = vpack.c.bf16 %v17945_v58, %v17939_v13 }
 0xfce   :  { %11372 = vmatmul.mubr.bf16.gmra.mrb[188].mxu1 %v18710_v42 }
 0xfcf   :  { %11437 = vmatmul.mubr.bf16.gmra.mrb[196].mxu0 %v18713_v14  ;;  %12547 = vmatpush3.bf16.msra.mxu1 %v18671_v50  ;;  %v18732_v50 = vpack.c.bf16 %v17941_v18, %v18731_v23 }
 0xfd0   :  { %11379 = vmatprep.mubr.bf16.mxu1 %v18716_v22  ;;  %12540 = vmatprep.subr.bf16.mxu1 %v18673_v48 }
 0xfd1   :  { %11444 = vmatprep.mubr.bf16.mxu0 %v18717_v46 }
 0xfd3   :  { %12548 = vmatpush3.bf16.msra.mxu1 %v18676_v6 }
 0xfd4   :  { %12541 = vmatprep.subr.bf16.mxu1 %v18678_v54 }
 0xfd6   :  { %11380 = vmatmul.mubr.bf16.gmra.mrb[192].mxu1 %v18720_v34 }
 0xfd7   :  { %11445 = vmatmul.mubr.bf16.gmra.mrb[200].mxu0 %v18723_v53  ;;  %12549 = vmatpush3.bf16.msra.mxu1 %v18680_v33 }
 0xfd8   :  { %11387 = vmatprep.mubr.bf16.mxu1 %v18726_v51  ;;  %12542 = vmatprep.subr.bf16.mxu1 %v18682_v12 }
 0xfdb   :  { %12550 = vmatpush3.bf16.msra.mxu1 %v18684_v40 }
 0xfdc   :  { %12543 = vmatprep.subr.bf16.mxu1 %v18686_v4 }
 0xfde   :  { %11388 = vmatmul.mubr.bf16.gmra.mrb[196].mxu1 %v18729_v63 }
 0xfdf   :  { %12551 = vmatpush3.bf16.msra.mxu1 %v18688_v11  ;;  %11452 = vmatprep.mubr.bf16.mxu1 %v18730_v25 }
 0xfe0   :  { %12544 = vmatprep.subr.bf16.mxu1 %v18690_v19 }
 0xfe3   :  { %12552 = vmatpush3.bf16.msra.mxu1 %v18695_v32 }
 0xfe6   :  { %11453 = vmatmul.mubr.bf16.vlgmr.msra.gmra.mrb[200].mxu1 %v18732_v50 }
0x1039   :  { %v11909_v0 = vpop.f32.mrb[136].mxu1 }
0x103a   :  { %v11949_v48 = vpop.f32.mrb[144].mxu0  ;;  %v11910_v10 = vpop.f32.mrb[137].mxu1 }
0x103b   :  { %v11950_v6 = vpop.f32.mrb[145].mxu0  ;;  %v11911_v31 = vadd.f32 %v11910_v10, %v11909_v0  ;;  %v11912_v54 = vpop.f32.mrb[138].mxu1 }
0x103c   :  { %v11951_v13 = vadd.f32 %v11950_v6, %v11949_v48  ;;  %v11952_v58 = vpop.f32.mrb[146].mxu0  ;;  %v11913_v35 = vpop.f32.mrb[139].mxu1 }
0x103d   :  { %v11953_v33 = vpop.f32.mrb[147].mxu0  ;;  %v10976_v38 = vadd.f32 %v11911_v31, %v11842_v7  ;;  %v11914_v12 = vadd.f32 %v11913_v35, %v11912_v54 }
0x103e   :  { %v11954_v47 = vadd.f32 %v11953_v33, %v11952_v58 }
0x103f   :  { %v10979_v40 = vadd.f32 %v11914_v12, %v11842_v7  ;;  %v11041_v18 = vadd.f32 %v11951_v13, %v10976_v38 }
0x1041   :  { %v11044_v26 = vadd.f32 %v11954_v47, %v10979_v40  ;;  %v11915_v4 = vpop.f32.mrb[140].mxu1 }
0x1042   :  { %v11955_v41 = vpop.f32.mrb[148].mxu0  ;;  %v11916_v11 = vpop.f32.mrb[141].mxu1 }
0x1043   :  { %v11956_v24 = vpop.f32.mrb[149].mxu0  ;;  %v11917_v19 = vadd.f32 %v11916_v11, %v11915_v4  ;;  %v11918_v43 = vpop.f32.mrb[142].mxu1 }
0x1044   :  { %v11957_v29 = vadd.f32 %v11956_v24, %v11955_v41  ;;  %v11958_v9 = vpop.f32.mrb[150].mxu0  ;;  %v11919_v27 = vpop.f32.mrb[143].mxu1 }
0x1045   :  { %v11959_v32 = vpop.f32.mrb[151].mxu0  ;;  %v10984_v57 = vadd.f32 %v11917_v19, %v11842_v7  ;;  %v11920_v20 = vadd.f32 %v11919_v27, %v11918_v43 }
0x1046   :  { %v11960_v55 = vadd.f32 %v11959_v32, %v11958_v9 }
0x1047   :  { %v10987_v37 = vadd.f32 %v11920_v20, %v11842_v7  ;;  %v11049_v44 = vadd.f32 %v11957_v29, %v10984_v57 }
0x1049   :  { %v11052_v8 = vadd.f32 %v11960_v55, %v10987_v37  ;;  %v11921_v17 = vpop.f32.mrb[144].mxu1 }
0x104a   :  { %v11961_v16 = vpop.f32.mrb[152].mxu0  ;;  %v11922_v49 = vpop.f32.mrb[145].mxu1 }
0x104b   :  { %v11962_v61 = vpop.f32.mrb[153].mxu0  ;;  %v11923_v52 = vadd.f32 %v11922_v49, %v11921_v17  ;;  %v11924_v28 = vpop.f32.mrb[146].mxu1 }
0x104c   :  { %v11963_v21 = vadd.f32 %v11962_v61, %v11961_v16  ;;  %v11964_v62 = vpop.f32.mrb[154].mxu0  ;;  %v11925_v42 = vpop.f32.mrb[147].mxu1 }
0x104d   :  { %v11965_v1 = vpop.f32.mrb[155].mxu0  ;;  %v10992_v56 = vadd.f32 %v11923_v52, %v11842_v7  ;;  %v11926_v14 = vadd.f32 %v11925_v42, %v11924_v28 }
0x104e   :  { %v11966_v60 = vadd.f32 %v11965_v1, %v11964_v62 }
0x104f   :  { %v10995_v39 = vadd.f32 %v11926_v14, %v11842_v7  ;;  %v11057_v22 = vadd.f32 %v11963_v21, %v10992_v56 }
0x1051   :  { %v11060_v46 = vadd.f32 %v11966_v60, %v10995_v39  ;;  %v11927_v59 = vpop.f32.mrb[148].mxu1 }
0x1052   :  { %v11967_v30 = vpop.f32.mrb[156].mxu0  ;;  %v11928_v34 = vpop.f32.mrb[149].mxu1 }
0x1053   :  { %v11968_v3 = vpop.f32.mrb[157].mxu0  ;;  %v11929_v2 = vadd.f32 %v11928_v34, %v11927_v59  ;;  %v11930_v53 = vpop.f32.mrb[150].mxu1 }
0x1054   :  { %v11969_v15 = vadd.f32 %v11968_v3, %v11967_v30  ;;  %v11970_v36 = vpop.f32.mrb[158].mxu0  ;;  %v11931_v51 = vpop.f32.mrb[151].mxu1 }
0x1055   :  { %v11971_v45 = vpop.f32.mrb[159].mxu0  ;;  %v11000_v5 = vadd.f32 %v11929_v2, %v11842_v7  ;;  %v11932_v63 = vadd.f32 %v11931_v51, %v11930_v53 }
0x1056   :  { %v11972_v25 = vadd.f32 %v11971_v45, %v11970_v36 }
0x1057   :  { %v11003_v23 = vadd.f32 %v11932_v63, %v11842_v7  ;;  %v11065_v50 = vadd.f32 %v11969_v15, %v11000_v5 }
0x1059   :  { %v11068_v0 = vadd.f32 %v11972_v25, %v11003_v23  ;;  %v11989_v48 = vpop.f32.mrb[152].mxu1 }
0x105a   :  { %v12029_v10 = vpop.f32.mrb[160].mxu0  ;;  %v11990_v6 = vpop.f32.mrb[153].mxu1 }
0x105b   :  { %v12030_v31 = vpop.f32.mrb[161].mxu0  ;;  %v11991_v54 = vadd.f32 %v11990_v6, %v11989_v48  ;;  %v11992_v13 = vpop.f32.mrb[154].mxu1 }
0x105c   :  { %v12031_v58 = vadd.f32 %v12030_v31, %v12029_v10  ;;  %v12032_v35 = vpop.f32.mrb[162].mxu0  ;;  %v11993_v33 = vpop.f32.mrb[155].mxu1 }
0x105d   :  { %v12033_v38 = vpop.f32.mrb[163].mxu0  ;;  %v11106_v12 = vadd.f32 %v11991_v54, %v11041_v18  ;;  %v11994_v47 = vadd.f32 %v11993_v33, %v11992_v13 }
0x105e   :  { %v12034_v40 = vadd.f32 %v12033_v38, %v12032_v35 }
0x105f   :  { %v11109_v4 = vadd.f32 %v11994_v47, %v11044_v26  ;;  %v11171_v41 = vadd.f32 %v12031_v58, %v11106_v12 }
0x1061   :  { %v11174_v11 = vadd.f32 %v12034_v40, %v11109_v4  ;;  %v11995_v24 = vpop.f32.mrb[156].mxu1 }
0x1062   :  { %v12035_v7 = vpop.f32.mrb[164].mxu0  ;;  %v11996_v19 = vpop.f32.mrb[157].mxu1 }
0x1063   :  { %v12036_v43 = vpop.f32.mrb[165].mxu0  ;;  %v11997_v29 = vadd.f32 %v11996_v19, %v11995_v24  ;;  %v11998_v9 = vpop.f32.mrb[158].mxu1 }
0x1064   :  { %v12037_v27 = vadd.f32 %v12036_v43, %v12035_v7  ;;  %v12038_v32 = vpop.f32.mrb[166].mxu0  ;;  %v11999_v57 = vpop.f32.mrb[159].mxu1 }
0x1065   :  { %v12039_v20 = vpop.f32.mrb[167].mxu0  ;;  %v11114_v55 = vadd.f32 %v11997_v29, %v11049_v44  ;;  %v12000_v37 = vadd.f32 %v11999_v57, %v11998_v9 }
0x1066   :  { %v12040_v17 = vadd.f32 %v12039_v20, %v12038_v32 }
0x1067   :  { %v11117_v16 = vadd.f32 %v12000_v37, %v11052_v8  ;;  %v11179_v18 = vadd.f32 %v12037_v27, %v11114_v55 }
0x1069   :  { %v11182_v49 = vadd.f32 %v12040_v17, %v11117_v16  ;;  %v12001_v61 = vpop.f32.mrb[160].mxu1 }
0x106a   :  { %v12041_v26 = vpop.f32.mrb[168].mxu0  ;;  %v12002_v52 = vpop.f32.mrb[161].mxu1 }
0x106b   :  { %v12042_v28 = vpop.f32.mrb[169].mxu0  ;;  %v12003_v21 = vadd.f32 %v12002_v52, %v12001_v61  ;;  %v12004_v62 = vpop.f32.mrb[162].mxu1 }
0x106c   :  { %v12043_v42 = vadd.f32 %v12042_v28, %v12041_v26  ;;  %v12044_v1 = vpop.f32.mrb[170].mxu0  ;;  %v12005_v56 = vpop.f32.mrb[163].mxu1 }
0x106d   :  { %v12045_v14 = vpop.f32.mrb[171].mxu0  ;;  %v11122_v60 = vadd.f32 %v12003_v21, %v11057_v22  ;;  %v12006_v39 = vadd.f32 %v12005_v56, %v12004_v62 }
0x106e   :  { %v12046_v59 = vadd.f32 %v12045_v14, %v12044_v1 }
0x106f   :  { %v11125_v30 = vadd.f32 %v12006_v39, %v11060_v46  ;;  %v11187_v44 = vadd.f32 %v12043_v42, %v11122_v60 }
0x1071   :  { %v11190_v34 = vadd.f32 %v12046_v59, %v11125_v30  ;;  %v12007_v3 = vpop.f32.mrb[164].mxu1 }
0x1072   :  { %v12047_v8 = vpop.f32.mrb[172].mxu0  ;;  %v12008_v2 = vpop.f32.mrb[165].mxu1 }
0x1073   :  { %v12048_v53 = vpop.f32.mrb[173].mxu0  ;;  %v12009_v15 = vadd.f32 %v12008_v2, %v12007_v3  ;;  %v12010_v36 = vpop.f32.mrb[166].mxu1 }
0x1074   :  { %v12049_v51 = vadd.f32 %v12048_v53, %v12047_v8  ;;  %v12050_v45 = vpop.f32.mrb[174].mxu0  ;;  %v12011_v5 = vpop.f32.mrb[167].mxu1 }
0x1075   :  { %v12051_v63 = vpop.f32.mrb[175].mxu0  ;;  %v11130_v25 = vadd.f32 %v12009_v15, %v11065_v50  ;;  %v12012_v23 = vadd.f32 %v12011_v5, %v12010_v36 }
0x1076   :  { %v12052_v48 = vadd.f32 %v12051_v63, %v12050_v45 }
0x1077   :  { %v11133_v10 = vadd.f32 %v12012_v23, %v11068_v0  ;;  %v11195_v22 = vadd.f32 %v12049_v51, %v11130_v25 }
0x1079   :  { %v11198_v6 = vadd.f32 %v12052_v48, %v11133_v10  ;;  %v12069_v31 = vpop.f32.mrb[168].mxu1 }
0x107a   :  { %v12109_v46 = vpop.f32.mrb[176].mxu0  ;;  %v12070_v54 = vpop.f32.mrb[169].mxu1 }
0x107b   :  { %v12110_v13 = vpop.f32.mrb[177].mxu0  ;;  %v12071_v58 = vadd.f32 %v12070_v54, %v12069_v31  ;;  %v12072_v35 = vpop.f32.mrb[170].mxu1 }
0x107c   :  { %v12111_v33 = vadd.f32 %v12110_v13, %v12109_v46  ;;  %v12112_v38 = vpop.f32.mrb[178].mxu0  ;;  %v12073_v12 = vpop.f32.mrb[171].mxu1 }
0x107d   :  { %v12113_v47 = vpop.f32.mrb[179].mxu0  ;;  %v11236_v40 = vadd.f32 %v12071_v58, %v11171_v41  ;;  %v12074_v4 = vadd.f32 %v12073_v12, %v12072_v35 }
0x107e   :  { %v12114_v24 = vadd.f32 %v12113_v47, %v12112_v38 }
0x107f   :  { %v11239_v7 = vadd.f32 %v12074_v4, %v11174_v11  ;;  %v11301_v50 = vadd.f32 %v12111_v33, %v11236_v40 }
0x1081   :  { %v11304_v19 = vadd.f32 %v12114_v24, %v11239_v7  ;;  %v12075_v43 = vpop.f32.mrb[172].mxu1 }
0x1082   :  { %v12115_v0 = vpop.f32.mrb[180].mxu0  ;;  %v12076_v29 = vpop.f32.mrb[173].mxu1 }
0x1083   :  { %v12116_v9 = vpop.f32.mrb[181].mxu0  ;;  %v12077_v27 = vadd.f32 %v12076_v29, %v12075_v43  ;;  %v12078_v32 = vpop.f32.mrb[174].mxu1 }
0x1084   :  { %v12117_v57 = vadd.f32 %v12116_v9, %v12115_v0  ;;  %v12118_v20 = vpop.f32.mrb[182].mxu0  ;;  %v12079_v55 = vpop.f32.mrb[175].mxu1 }
0x1085   :  { %v12119_v37 = vpop.f32.mrb[183].mxu0  ;;  %v11244_v17 = vadd.f32 %v12077_v27, %v11179_v18  ;;  %v12080_v16 = vadd.f32 %v12079_v55, %v12078_v32 }
0x1086   :  { %v12120_v61 = vadd.f32 %v12119_v37, %v12118_v20 }
0x1087   :  { %v11247_v26 = vadd.f32 %v12080_v16, %v11182_v49  ;;  %v11309_v41 = vadd.f32 %v12117_v57, %v11244_v17 }
0x1089   :  { %v18192_v52 = vadd.f32 %v12120_v61, %v11247_v26  ;;  %v12081_v11 = vpop.f32.mrb[176].mxu1 }
0x108a   :  { %v12121_v28 = vpop.f32.mrb[184].mxu0  ;;  %v12082_v21 = vpop.f32.mrb[177].mxu1 }
0x108b   :  { %v12122_v62 = vpop.f32.mrb[185].mxu0  ;;  %v12083_v42 = vadd.f32 %v12082_v21, %v12081_v11  ;;  %v12084_v1 = vpop.f32.mrb[178].mxu1 }
0x108c   :  { %v12123_v56 = vadd.f32 %v12122_v62, %v12121_v28  ;;  %v12124_v14 = vpop.f32.mrb[186].mxu0  ;;  %v12085_v60 = vpop.f32.mrb[179].mxu1 }
0x108d   :  { %v12125_v39 = vpop.f32.mrb[187].mxu0  ;;  %v11252_v59 = vadd.f32 %v12083_v42, %v11187_v44  ;;  %v12086_v30 = vadd.f32 %v12085_v60, %v12084_v1 }
0x108e   :  { %v12126_v3 = vadd.f32 %v12125_v39, %v12124_v14 }
0x108f   :  { %v11255_v18 = vadd.f32 %v12086_v30, %v11190_v34  ;;  %v18194_v8 = vadd.f32 %v12123_v56, %v11252_v59 }
0x1091   :  { %v18196_v49 = vadd.f32 %v12126_v3, %v11255_v18  ;;  %v12087_v2 = vpop.f32.mrb[180].mxu1 }
0x1092   :  { %v12127_v53 = vpop.f32.mrb[188].mxu0  ;;  %v12088_v15 = vpop.f32.mrb[181].mxu1 }
0x1093   :  { %v12128_v36 = vpop.f32.mrb[189].mxu0  ;;  %v12089_v51 = vadd.f32 %v12088_v15, %v12087_v2  ;;  %v12090_v45 = vpop.f32.mrb[182].mxu1 }
0x1094   :  { %v12129_v5 = vadd.f32 %v12128_v36, %v12127_v53  ;;  %v12130_v63 = vpop.f32.mrb[190].mxu0  ;;  %v12091_v25 = vpop.f32.mrb[183].mxu1 }
0x1095   :  { %v12131_v23 = vpop.f32.mrb[191].mxu0  ;;  %v11260_v48 = vadd.f32 %v12089_v51, %v11195_v22  ;;  %v12092_v10 = vadd.f32 %v12091_v25, %v12090_v45 }
0x1096   :  { %v12132_v44 = vadd.f32 %v12131_v23, %v12130_v63 }
0x1097   :  { %v11263_v31 = vadd.f32 %v12092_v10, %v11198_v6  ;;  %v11325_v46 = vadd.f32 %v12129_v5, %v11260_v48 }
0x1099   :  { %v11328_v34 = vadd.f32 %v12132_v44, %v11263_v31  ;;  %v12149_v54 = vpop.f32.mrb[184].mxu1 }
0x109a   :  { %v12189_v13 = vpop.f32.mrb[192].mxu0  ;;  %v12150_v58 = vpop.f32.mrb[185].mxu1 }
0x109b   :  { %v12190_v35 = vpop.f32.mrb[193].mxu0  ;;  %v12151_v33 = vadd.f32 %v12150_v58, %v12149_v54  ;;  %v12152_v38 = vpop.f32.mrb[186].mxu1 }
0x109c   :  { %v12191_v12 = vadd.f32 %v12190_v35, %v12189_v13  ;;  %v12192_v47 = vpop.f32.mrb[194].mxu0  ;;  %v12153_v40 = vpop.f32.mrb[187].mxu1 }
0x109d   :  { %v12193_v4 = vpop.f32.mrb[195].mxu0  ;;  %v11366_v24 = vadd.f32 %v12151_v33, %v11301_v50  ;;  %v12154_v7 = vadd.f32 %v12153_v40, %v12152_v38 }
0x109e   :  { %v12194_v43 = vadd.f32 %v12193_v4, %v12192_v47 }
0x109f   :  { %v11369_v0 = vadd.f32 %v12154_v7, %v11304_v19  ;;  %v11431_v22 = vadd.f32 %v12191_v12, %v11366_v24 }
0x10a1   :  { %11461 = vst [vmem:[%s18239_s14] sm:$0xff] %v11431_v22  ;;  %v11434_v6 = vadd.f32 %v12194_v43, %v11369_v0  ;;  %v12155_v29 = vpop.f32.mrb[188].mxu1 }
0x10a2   :  { %v12195_v9 = vpop.f32.mrb[196].mxu0  ;;  %v12156_v27 = vpop.f32.mrb[189].mxu1 }
0x10a3   :  { %v12196_v32 = vpop.f32.mrb[197].mxu0  ;;  %11462 = vst [vmem:[%s18239_s14 + $0x8] sm:$0xff] %v11434_v6  ;;  %v12157_v57 = vadd.f32 %v12156_v27, %v12155_v29  ;;  %v12158_v20 = vpop.f32.mrb[190].mxu1 }
0x10a4   :  { %v12197_v50 = vadd.f32 %v12196_v32, %v12195_v9  ;;  %v12198_v55 = vpop.f32.mrb[198].mxu0  ;;  %v12159_v37 = vpop.f32.mrb[191].mxu1 }
0x10a5   :  { %v12199_v19 = vpop.f32.mrb[199].mxu0  ;;  %v11374_v17 = vadd.f32 %v12157_v57, %v11309_v41  ;;  %v12160_v16 = vadd.f32 %v12159_v37, %v12158_v20 }
0x10a6   :  { %v12200_v61 = vadd.f32 %v12199_v19, %v12198_v55 }
0x10a7   :  { %v11377_v26 = vadd.f32 %v12160_v16, %v18192_v52  ;;  %v11439_v11 = vadd.f32 %v12197_v50, %v11374_v17 }
0x10a9   :  { %11463 = vst [vmem:[%s18239_s14 + $0x10] sm:$0xff] %v11439_v11  ;;  %v11442_v28 = vadd.f32 %v12200_v61, %v11377_v26  ;;  %v12161_v21 = vpop.f32.mrb[192].mxu1 }
0x10aa   :  { %v12201_v62 = vpop.f32.mrb[200].mxu0  ;;  %v12162_v42 = vpop.f32.mrb[193].mxu1 }
0x10ab   :  { %v12202_v1 = vpop.f32.mrb[201].mxu0  ;;  %11464 = vst [vmem:[%s18239_s14 + $0x18] sm:$0xff] %v11442_v28  ;;  %v12163_v56 = vadd.f32 %v12162_v42, %v12161_v21  ;;  %v12164_v41 = vpop.f32.mrb[194].mxu1 }
0x10ac   :  { %v12203_v14 = vadd.f32 %v12202_v1, %v12201_v62  ;;  %v12204_v60 = vpop.f32.mrb[202].mxu0  ;;  %v12165_v39 = vpop.f32.mrb[195].mxu1 }
0x10ad   :  { %v12205_v52 = vpop.f32.mrb[203].mxu0  ;;  %v11382_v59 = vadd.f32 %v12163_v56, %v18194_v8  ;;  %v12166_v30 = vadd.f32 %v12165_v39, %v12164_v41 }
0x10ae   :  { %v12206_v3 = vadd.f32 %v12205_v52, %v12204_v60 }
0x10af   :  { %v11385_v18 = vadd.f32 %v12166_v30, %v18196_v49  ;;  %v11447_v2 = vadd.f32 %v12203_v14, %v11382_v59 }
0x10b1   :  { %11465 = vst [vmem:[%s18239_s14 + $0x20] sm:$0xff] %v11447_v2  ;;  %v11450_v53 = vadd.f32 %v12206_v3, %v11385_v18  ;;  %v12167_v15 = vpop.f32.mrb[196].mxu1 }
0x10b2   :  { %v12168_v36 = vpop.f32.mrb[197].mxu1 }
0x10b3   :  { %11466 = vst [vmem:[%s18239_s14 + $0x28] sm:$0xff] %v11450_v53  ;;  %v12169_v51 = vadd.f32 %v12168_v36, %v12167_v15  ;;  %v12170_v45 = vpop.f32.mrb[198].mxu1 }
0x10b4   :  { %v12171_v5 = vpop.f32.mrb[199].mxu1 }
0x10b5   :  { %v11390_v8 = vadd.f32 %v12169_v51, %v11325_v46  ;;  %v12172_v63 = vadd.f32 %v12171_v5, %v12170_v45 }
0x10b7   :  { %v11393_v25 = vadd.f32 %v12172_v63, %v11328_v34 }
0x10b9   :  { %v12207_v23 = vpop.f32.mrb[200].mxu1 }
0x10ba   :  { %v12208_v49 = vpop.f32.mrb[201].mxu1 }
0x10bb   :  { %v12209_v48 = vadd.f32 %v12208_v49, %v12207_v23  ;;  %v12210_v10 = vpop.f32.mrb[202].mxu1 }
0x10bc   :  { %v12211_v44 = vpop.f32.mrb[203].mxu1 }
0x10bd   :  { %v11455_v31 = vadd.f32 %v12209_v48, %v11390_v8  ;;  %v12212_v54 = vadd.f32 %v12211_v44, %v12210_v10 }
0x10bf   :  { %11467 = vst [vmem:[%s18239_s14 + $0x30] sm:$0xff] %v11455_v31  ;;  %v11458_v13 = vadd.f32 %v12212_v54, %v11393_v25 }
0x10c1   :  { %11468 = vst [vmem:[%s18239_s14 + $0x38] sm:$0xff] %v11458_v13 }
0x10c2   :  { %11473 = vsyncmov [#allocation5] }
0x10c5   :  { %s11474_s25 = vpop.sfrf %11473 }
0x10c6   :  { %p11843_p2 = scmp.ne.s32.totalorder %s11474_s25, 0 }
0x10c8   :  { %11478 = shalt.err (%p11843_p2)  }
0x10c9   :  { %11480 = vsyncmov [#allocation5 + $0x1] }
0x10cc   :  { %s11481_s26 = vpop.sfrf %11480 }
0x10cd   :  { %p11844_p3 = scmp.ne.s32.totalorder %s11481_s26, 0 }
0x10cf   :  { %11485 = shalt.err (%p11844_p3)  }

</bundles_post_ra>
